<compile_context>
chip_gen: v5e
topology: v5e:2x2
jax: 0.10.0
libtpu: 0.0.40
codegen_flags: <defaults>
</compile_context>

<pallas_src>
import functools

import jax
import jax.numpy as jnp
from jax import lax
from jax.experimental import pallas as pl
from jax.experimental.pallas import tpu as pltpu

_SQRT_HALF = 0.7071067811865476
_BN_EPS = 1e-5


# ----------------------------------------------------------------------------
# Pallas kernel: one Ghost-BN chunk per grid step, transposed (features, batch)
# layout, everything fused (16 GLU layers, 3 attentive transformers, sparsemax,
# entropy loss, final linear head).
# ----------------------------------------------------------------------------
def _tabnet_kernel(xt_ref, init_a_ref, init_b_ref, sw0_ref, sw1_ref, spec_ref,
                   fts_ref, ftb_ref, atw_ref, ats_ref, atb_ref, finw_ref,
                   logits_ref, ent_ref, *, n_d, n_a, n_steps, gamma, epsilon):
    h = n_d + n_a
    xt = xt_ref[...]                  # (D, C): features on sublanes, batch on lanes
    d = xt.shape[0]                   # static python int
    c = xt.shape[1]

    # Encoder initial BatchNorm1d (full-batch stats) pre-folded into an affine.
    x_bn = xt * init_a_ref[...] + init_b_ref[...]

    sw0 = sw0_ref[...]                # (2H, D)
    sw1 = sw1_ref[...]                # (2H, H)
    finw = finw_ref[...]              # (out_dim, n_d)

    def bn_t(v, scale, bias):
        # Training-mode BN over the chunk's batch (lane axis).  scale/bias: (F, 1).
        mean = jnp.mean(v, axis=1, keepdims=True)
        var = jnp.mean(jnp.square(v - mean), axis=1, keepdims=True)
        return (v - mean) * lax.rsqrt(var + _BN_EPS) * scale + bias

    def glu_t(v, w, scale, bias):
        # Linear (no bias) -> GBN -> GLU gate.  The value/gate split at h=16 is
        # a sublane-tile boundary in this layout (free view).
        y = bn_t(jnp.dot(w, v, preferred_element_type=jnp.float32), scale, bias)
        gate = 1.0 / (1.0 + jnp.exp(-y[h:, :]))          # exp on EUP
        return y[:h, :] * gate

    def feat_transformer(v, ft):
        # Shared GLU block (first=True) followed by the step-specific block.
        y = glu_t(v, sw0, fts_ref[ft, 0], ftb_ref[ft, 0])
        y = (y + glu_t(y, sw1, fts_ref[ft, 1], ftb_ref[ft, 1])) * _SQRT_HALF
        y = (y + glu_t(y, spec_ref[ft, 0], fts_ref[ft, 2], ftb_ref[ft, 2])) * _SQRT_HALF
        y = (y + glu_t(y, spec_ref[ft, 1], fts_ref[ft, 3], ftb_ref[ft, 3])) * _SQRT_HALF
        return y

    def sparsemax_t(z):
        # Exact Michelot support-shrinking simplex projection over the feature
        # axis (axis 0); converges in <= d iterations, fully unrolled.
        tau = (jnp.sum(z, axis=0, keepdims=True) - 1.0) * (1.0 / d)
        for _ in range(d - 1):
            active = (z > tau).astype(jnp.float32)
            k = jnp.sum(active, axis=0, keepdims=True)            # >= 1 always
            s = jnp.sum(z * active, axis=0, keepdims=True)
            tau = (s - 1.0) / k
        return jnp.maximum(z - tau, 0.0)

    prior = jnp.ones_like(x_bn)
    att = feat_transformer(x_bn, 0)[n_d:, :]                      # (n_a, C)

    ent = jnp.zeros((1, c), jnp.float32)                          # per-row entropy sum
    res = jnp.zeros((n_d, c), jnp.float32)
    for step in range(n_steps):
        a = jnp.dot(atw_ref[step], att, preferred_element_type=jnp.float32)  # (D, C)
        a = bn_t(a, ats_ref[step], atb_ref[step])
        m = sparsemax_t(a * prior)
        ent = ent + jnp.sum(m * jnp.log(m + epsilon), axis=0, keepdims=True)
        prior = (gamma - m) * prior
        out = feat_transformer(m * x_bn, step + 1)
        res = res + jnp.maximum(out[:n_d, :], 0.0)                # ReLU(d)
        att = out[n_d:, :]

    logits_ref[...] = jnp.dot(finw, res, preferred_element_type=jnp.float32)
    ent_ref[...] = ent * (1.0 / n_steps)


def tabnet_forward(x, params, *, n_d=8, n_a=8, n_steps=3, gamma=1.3,
                   epsilon=1e-15, virtual_batch_size=128):
    """x: (B, input_dim) float32.  Returns (logits (B, out_dim), M_loss scalar)."""
    b, d = x.shape
    out_dim = params["final_w"].shape[0]
    chunk = min(virtual_batch_size, b)
    # TODO(synk): uneven GBN remainder chunks (b % virtual_batch_size != 0).
    assert b % chunk == 0, "batch must be a multiple of the GBN virtual batch size"
    num_chunks = b // chunk

    # Encoder initial BatchNorm1d uses FULL-batch statistics (it is not a GBN);
    # fold it into a per-feature affine so the per-chunk kernel stays exact.
    mean = jnp.mean(x, axis=0)
    var = jnp.mean(jnp.square(x - mean), axis=0)
    a_vec = params["init_bn_scale"] * lax.rsqrt(var + _BN_EPS)   # (D,)
    b_vec = params["init_bn_bias"] - mean * a_vec                # (D,)

    def col(v):  # per-feature vectors -> column vectors for lane broadcast
        return v[..., None]

    xt = x.T  # (D, B): features on sublanes, virtual-batch chunks along lanes.

    args = (xt, col(a_vec), col(b_vec),
            params["shared_w0"], params["shared_w1"], params["spec_w"],
            col(params["ft_bn_scale"]), col(params["ft_bn_bias"]),
            params["att_w"], col(params["att_bn_scale"]), col(params["att_bn_bias"]),
            params["final_w"])

    def full_spec(arr):
        nd = arr.ndim
        return pl.BlockSpec(arr.shape, lambda c_, _n=nd: (0,) * _n)

    in_specs = ([pl.BlockSpec((d, chunk), lambda c_: (0, c_))] +
                [full_spec(a) for a in args[1:]])
    out_specs = (pl.BlockSpec((out_dim, chunk), lambda c_: (0, c_)),
                 pl.BlockSpec((1, chunk), lambda c_: (0, c_)))

    kernel = functools.partial(_tabnet_kernel, n_d=n_d, n_a=n_a, n_steps=n_steps,
                               gamma=gamma, epsilon=epsilon)

    logits_t, ent_rows = pl.pallas_call(
        kernel,
        grid=(num_chunks,),
        out_shape=(jax.ShapeDtypeStruct((out_dim, b), jnp.float32),
                   jax.ShapeDtypeStruct((1, b), jnp.float32)),
        in_specs=in_specs,
        out_specs=out_specs,
        compiler_params=pltpu.CompilerParams(
            dimension_semantics=("parallel",),          # v7x: shard chunks over TCs
            vmem_limit_bytes=48 * 1024 * 1024),         # <= 64 MiB physical on v7x
    )(*args)

    m_loss = jnp.mean(ent_rows)           # mean over the full batch of per-row entropy
    return logits_t.T, m_loss


# ----------------------------------------------------------------------------
# Pure-JAX reference (natural (batch, features) layout, exact sort-based
# sparsemax, explicit GBN chunking) -- mirrors the PyTorch module directly.
# ----------------------------------------------------------------------------
def _sparsemax_exact(z):
    d = z.shape[-1]
    z_sorted = jnp.flip(jnp.sort(z, axis=-1), axis=-1)
    k = jnp.arange(1, d + 1, dtype=z.dtype)
    z_cumsum = jnp.cumsum(z_sorted, axis=-1)
    support = (1.0 + k * z_sorted) > z_cumsum
    k_z = jnp.sum(support.astype(jnp.int32), axis=-1, keepdims=True)
    tau_sum = jnp.take_along_axis(z_cumsum, k_z - 1, axis=-1)
    tau = (tau_sum - 1.0) / k_z.astype(z.dtype)
    return jnp.maximum(z - tau, 0.0)


def _tabnet_reference(x, params, *, n_d, n_a, n_steps, gamma, epsilon,
                      virtual_batch_size=128):
    b = x.shape[0]
    chunk = min(virtual_batch_size, b)
    nc = b // chunk
    h = n_d + n_a

    def bn_full(v, scale, bias):
        m = jnp.mean(v, axis=0, keepdims=True)
        var = jnp.mean(jnp.square(v - m), axis=0, keepdims=True)
        return (v - m) * lax.rsqrt(var + _BN_EPS) * scale + bias

    def gbn(v, scale, bias):
        vc = v.reshape(nc, chunk, v.shape[-1])
        m = jnp.mean(vc, axis=1, keepdims=True)
        var = jnp.mean(jnp.square(vc - m), axis=1, keepdims=True)
        out = (vc - m) * lax.rsqrt(var + _BN_EPS) * scale + bias
        return out.reshape(b, v.shape[-1])

    def glu(v, w, scale, bias):
        y = gbn(v @ w.T, scale, bias)
        return y[:, :h] * jax.nn.sigmoid(y[:, h:])

    def feat_transformer(v, ft):
        y = glu(v, params["shared_w0"], params["ft_bn_scale"][ft, 0], params["ft_bn_bias"][ft, 0])
        y = (y + glu(y, params["shared_w1"], params["ft_bn_scale"][ft, 1], params["ft_bn_bias"][ft, 1])) * _SQRT_HALF
        y = (y + glu(y, params["spec_w"][ft, 0], params["ft_bn_scale"][ft, 2], params["ft_bn_bias"][ft, 2])) * _SQRT_HALF
        y = (y + glu(y, params["spec_w"][ft, 1], params["ft_bn_scale"][ft, 3], params["ft_bn_bias"][ft, 3])) * _SQRT_HALF
        return y

    x_bn = bn_full(x, params["init_bn_scale"], params["init_bn_bias"])
    prior = jnp.ones_like(x_bn)
    att = feat_transformer(x_bn, 0)[:, n_d:]
    m_loss = jnp.float32(0.0)
    res = jnp.zeros((b, n_d), jnp.float32)
    for step in range(n_steps):
        a = gbn(att @ params["att_w"][step].T,
                params["att_bn_scale"][step], params["att_bn_bias"][step])
        m = _sparsemax_exact(a * prior)
        m_loss = m_loss + jnp.mean(jnp.sum(m * jnp.log(m + epsilon), axis=1))
        prior = (gamma - m) * prior
        out = feat_transformer(m * x_bn, step + 1)
        res = res + jnp.maximum(out[:, :n_d], 0.0)
        att = out[:, n_d:]
    m_loss = m_loss / n_steps
    logits = res @ params["final_w"].T
    return logits, m_loss


# ----------------------------------------------------------------------------
# Demo / self-check
# ----------------------------------------------------------------------------
if __name__ == "__main__":
    B = 256                 # 2 Ghost-BN virtual batches of 128 rows
    INPUT_DIM = 16
    OUTPUT_DIM = 4
    N_D = 8
    N_A = 8
    N_STEPS = 3
    GAMMA = 1.3
    EPSILON = 1e-15
    VBS = 128
    H = N_D + N_A
    N_FT = N_STEPS + 1      # initial splitter + one FeatTransformer per step

    key = jax.random.PRNGKey(0)
    keys = jax.random.split(key, 12)

    def xavier(k, shape, gain):
        # PyTorch Linear weight layout: (out_features, in_features).
        fan_out, fan_in = shape[-2], shape[-1]
        std = gain * (2.0 / (fan_in + fan_out)) ** 0.5
        return std * jax.random.normal(k, shape, dtype=jnp.float32)

    glu_gain_0 = ((INPUT_DIM + 2 * H) / INPUT_DIM ** 0.5) ** 0.5
    glu_gain_1 = ((H + 2 * H) / H ** 0.5) ** 0.5
    non_glu_gain = ((N_A + INPUT_DIM) / (4 * N_A) ** 0.5) ** 0.5
    final_gain = ((N_D + OUTPUT_DIM) / (4 * N_D) ** 0.5) ** 0.5

    params = {
        # Linear weights in PyTorch (out_features, in_features) layout.
        "shared_w0": xavier(keys[0], (2 * H, INPUT_DIM), glu_gain_0),
        "shared_w1": xavier(keys[1], (2 * H, H), glu_gain_1),
        "spec_w": xavier(keys[2], (N_FT, 2, 2 * H, H), glu_gain_1),
        "att_w": xavier(keys[3], (N_STEPS, INPUT_DIM, N_A), non_glu_gain),
        "final_w": xavier(keys[4], (OUTPUT_DIM, N_D), final_gain),
        # BatchNorm affine parameters (perturbed from 1/0 to exercise them).
        "init_bn_scale": 1.0 + 0.1 * jax.random.normal(keys[5], (INPUT_DIM,), jnp.float32),
        "init_bn_bias": 0.1 * jax.random.normal(keys[6], (INPUT_DIM,), jnp.float32),
        "ft_bn_scale": 1.0 + 0.1 * jax.random.normal(keys[7], (N_FT, 4, 2 * H), jnp.float32),
        "ft_bn_bias": 0.1 * jax.random.normal(keys[8], (N_FT, 4, 2 * H), jnp.float32),
        "att_bn_scale": 1.0 + 0.1 * jax.random.normal(keys[9], (N_STEPS, INPUT_DIM), jnp.float32),
        "att_bn_bias": 0.1 * jax.random.normal(keys[10], (N_STEPS, INPUT_DIM), jnp.float32),
    }
    x = jax.random.normal(keys[11], (B, INPUT_DIM), dtype=jnp.float32)

    logits, m_loss = tabnet_forward(x, params, n_d=N_D, n_a=N_A, n_steps=N_STEPS,
                                    gamma=GAMMA, epsilon=EPSILON,
                                    virtual_batch_size=VBS)
    jax.block_until_ready((logits, m_loss))

    ref_logits, ref_mloss = _tabnet_reference(
        x, params, n_d=N_D, n_a=N_A, n_steps=N_STEPS, gamma=GAMMA,
        epsilon=EPSILON, virtual_batch_size=VBS)

    assert logits.shape == (B, OUTPUT_DIM)
    assert jnp.allclose(logits, ref_logits, rtol=1e-3, atol=1e-3), (logits, ref_logits)
    assert jnp.allclose(m_loss, ref_mloss, rtol=1e-3, atol=1e-3), (m_loss, ref_mloss)

    print("KERNEL_OK")
</pallas_src>

<mosaic_0001>
module attributes {stable_mosaic.version = 11 : i64} {
  func.func @_tabnet_kernel(%arg0: i32, %arg1: memref<16x128xf32, #tpu.memory_space<vmem>>, %arg2: memref<16x1xf32, #tpu.memory_space<vmem>>, %arg3: memref<16x1xf32, #tpu.memory_space<vmem>>, %arg4: memref<32x16xf32, #tpu.memory_space<vmem>>, %arg5: memref<32x16xf32, #tpu.memory_space<vmem>>, %arg6: memref<4x2x32x16xf32, #tpu.memory_space<vmem>>, %arg7: memref<4x4x32x1xf32, #tpu.memory_space<vmem>>, %arg8: memref<4x4x32x1xf32, #tpu.memory_space<vmem>>, %arg9: memref<3x16x8xf32, #tpu.memory_space<vmem>>, %arg10: memref<3x16x1xf32, #tpu.memory_space<vmem>>, %arg11: memref<3x16x1xf32, #tpu.memory_space<vmem>>, %arg12: memref<4x8xf32, #tpu.memory_space<vmem>>, %arg13: memref<4x128xf32, #tpu.memory_space<vmem>>, %arg14: memref<1x128xf32, #tpu.memory_space<vmem>>) attributes {dimension_semantics = [#tpu.dimension_semantics<parallel>], iteration_bounds = array<i64: 2>, scalar_prefetch = 0 : i64, scratch_operands = 0 : i64, tpu.core_type = #tpu.core_type<tc>, window_params = [{transform_indices = @transform_0, window_bounds = array<i64: 16, 128>}, {pipeline_mode = #tpu.pipeline_mode<synchronous>, transform_indices = @transform_1, window_bounds = array<i64: 16, 1>}, {pipeline_mode = #tpu.pipeline_mode<synchronous>, transform_indices = @transform_2, window_bounds = array<i64: 16, 1>}, {pipeline_mode = #tpu.pipeline_mode<synchronous>, transform_indices = @transform_3, window_bounds = array<i64: 32, 16>}, {pipeline_mode = #tpu.pipeline_mode<synchronous>, transform_indices = @transform_4, window_bounds = array<i64: 32, 16>}, {pipeline_mode = #tpu.pipeline_mode<synchronous>, transform_indices = @transform_5, window_bounds = array<i64: 4, 2, 32, 16>}, {pipeline_mode = #tpu.pipeline_mode<synchronous>, transform_indices = @transform_6, window_bounds = array<i64: 4, 4, 32, 1>}, {pipeline_mode = #tpu.pipeline_mode<synchronous>, transform_indices = @transform_7, window_bounds = array<i64: 4, 4, 32, 1>}, {pipeline_mode = #tpu.pipeline_mode<synchronous>, transform_indices = @transform_8, window_bounds = array<i64: 3, 16, 8>}, {pipeline_mode = #tpu.pipeline_mode<synchronous>, transform_indices = @transform_9, window_bounds = array<i64: 3, 16, 1>}, {pipeline_mode = #tpu.pipeline_mode<synchronous>, transform_indices = @transform_10, window_bounds = array<i64: 3, 16, 1>}, {pipeline_mode = #tpu.pipeline_mode<synchronous>, transform_indices = @transform_11, window_bounds = array<i64: 4, 8>}, {transform_indices = @transform_12, window_bounds = array<i64: 4, 128>}, {transform_indices = @transform_13, window_bounds = array<i64: 1, 128>}]} {
    %c0 = arith.constant 0 : index
    %c0_0 = arith.constant 0 : index
    %0 = vector.load %arg1[%c0, %c0_0] : memref<16x128xf32, #tpu.memory_space<vmem>>, vector<16x128xf32>
    %c0_1 = arith.constant 0 : index
    %c0_2 = arith.constant 0 : index
    %1 = vector.load %arg2[%c0_1, %c0_2] : memref<16x1xf32, #tpu.memory_space<vmem>>, vector<16x1xf32>
    %2 = vector.broadcast %1 : vector<16x1xf32> to vector<16x128xf32>
    %3 = arith.mulf %0, %2 : vector<16x128xf32>
    %c0_3 = arith.constant 0 : index
    %c0_4 = arith.constant 0 : index
    %4 = vector.load %arg3[%c0_3, %c0_4] : memref<16x1xf32, #tpu.memory_space<vmem>>, vector<16x1xf32>
    %5 = vector.broadcast %4 : vector<16x1xf32> to vector<16x128xf32>
    %6 = arith.addf %3, %5 : vector<16x128xf32>
    %c0_5 = arith.constant 0 : index
    %c0_6 = arith.constant 0 : index
    %7 = vector.load %arg4[%c0_5, %c0_6] : memref<32x16xf32, #tpu.memory_space<vmem>>, vector<32x16xf32>
    %c0_7 = arith.constant 0 : index
    %c0_8 = arith.constant 0 : index
    %8 = vector.load %arg5[%c0_7, %c0_8] : memref<32x16xf32, #tpu.memory_space<vmem>>, vector<32x16xf32>
    %c0_9 = arith.constant 0 : index
    %c0_10 = arith.constant 0 : index
    %9 = vector.load %arg12[%c0_9, %c0_10] : memref<4x8xf32, #tpu.memory_space<vmem>>, vector<4x8xf32>
    %cst = arith.constant 1.000000e+00 : f32
    %10 = vector.broadcast %cst : f32 to vector<16x128xf32>
    %c0_11 = arith.constant 0 : index
    %c0_12 = arith.constant 0 : index
    %c0_13 = arith.constant 0 : index
    %c0_14 = arith.constant 0 : index
    %11 = vector.load %arg7[%c0_11, %c0_12, %c0_13, %c0_14] : memref<4x4x32x1xf32, #tpu.memory_space<vmem>>, vector<1x1x32x1xf32>
    %12 = vector.shape_cast %11 : vector<1x1x32x1xf32> to vector<32x1xf32>
    %c0_15 = arith.constant 0 : index
    %c0_16 = arith.constant 0 : index
    %c0_17 = arith.constant 0 : index
    %c0_18 = arith.constant 0 : index
    %13 = vector.load %arg8[%c0_15, %c0_16, %c0_17, %c0_18] : memref<4x4x32x1xf32, #tpu.memory_space<vmem>>, vector<1x1x32x1xf32>
    %14 = vector.shape_cast %13 : vector<1x1x32x1xf32> to vector<32x1xf32>
    %cst_19 = arith.constant dense<0.000000e+00> : vector<32x128xf32>
    %15 = tpu.matmul %7, %6, %cst_19 {dimension_numbers = #tpu.dot_dimension_numbers<[1], [0], [0], [1], [0, 0, 1, 1], [], []>} : vector<32x16xf32>, vector<16x128xf32>, vector<32x128xf32> -> vector<32x128xf32>
    %cst_20 = arith.constant dense<0.000000e+00> : vector<32xf32>
    %16 = vector.multi_reduction <add>, %15, %cst_20 [1] : vector<32x128xf32> to vector<32xf32>
    %17 = vector.shape_cast %16 : vector<32xf32> to vector<32x1xf32>
    %cst_21 = arith.constant 1.280000e+02 : f32
    %18 = vector.broadcast %cst_21 : f32 to vector<32x1xf32>
    %19 = arith.divf %17, %18 : vector<32x1xf32>
    %20 = vector.broadcast %19 : vector<32x1xf32> to vector<32x128xf32>
    %21 = arith.subf %15, %20 : vector<32x128xf32>
    %22 = arith.mulf %21, %21 : vector<32x128xf32>
    %cst_22 = arith.constant dense<0.000000e+00> : vector<32xf32>
    %23 = vector.multi_reduction <add>, %22, %cst_22 [1] : vector<32x128xf32> to vector<32xf32>
    %24 = vector.shape_cast %23 : vector<32xf32> to vector<32x1xf32>
    %cst_23 = arith.constant 1.280000e+02 : f32
    %25 = vector.broadcast %cst_23 : f32 to vector<32x1xf32>
    %26 = arith.divf %24, %25 : vector<32x1xf32>
    %27 = vector.broadcast %19 : vector<32x1xf32> to vector<32x128xf32>
    %28 = arith.subf %15, %27 : vector<32x128xf32>
    %cst_24 = arith.constant 9.99999974E-6 : f32
    %29 = vector.broadcast %cst_24 : f32 to vector<32x1xf32>
    %30 = arith.addf %26, %29 : vector<32x1xf32>
    %31 = math.rsqrt %30 : vector<32x1xf32>
    %32 = vector.broadcast %31 : vector<32x1xf32> to vector<32x128xf32>
    %33 = arith.mulf %28, %32 : vector<32x128xf32>
    %34 = vector.broadcast %12 : vector<32x1xf32> to vector<32x128xf32>
    %35 = arith.mulf %33, %34 : vector<32x128xf32>
    %36 = vector.broadcast %14 : vector<32x1xf32> to vector<32x128xf32>
    %37 = arith.addf %35, %36 : vector<32x128xf32>
    %38 = vector.extract_strided_slice %37 {offsets = [16, 0], sizes = [16, 128], strides = [1, 1]} : vector<32x128xf32> to vector<16x128xf32>
    %cst_25 = arith.constant 0.000000e+00 : f32
    %39 = vector.broadcast %cst_25 : f32 to vector<16x128xf32>
    %40 = arith.subf %39, %38 : vector<16x128xf32>
    %41 = math.exp %40 : vector<16x128xf32>
    %cst_26 = arith.constant 1.000000e+00 : f32
    %42 = vector.broadcast %cst_26 : f32 to vector<16x128xf32>
    %43 = arith.addf %42, %41 : vector<16x128xf32>
    %cst_27 = arith.constant 1.000000e+00 : f32
    %44 = vector.broadcast %cst_27 : f32 to vector<16x128xf32>
    %45 = arith.divf %44, %43 : vector<16x128xf32>
    %46 = vector.extract_strided_slice %37 {offsets = [0, 0], sizes = [16, 128], strides = [1, 1]} : vector<32x128xf32> to vector<16x128xf32>
    %47 = arith.mulf %46, %45 : vector<16x128xf32>
    %c0_28 = arith.constant 0 : index
    %c1 = arith.constant 1 : index
    %c0_29 = arith.constant 0 : index
    %c0_30 = arith.constant 0 : index
    %48 = vector.load %arg7[%c0_28, %c1, %c0_29, %c0_30] : memref<4x4x32x1xf32, #tpu.memory_space<vmem>>, vector<1x1x32x1xf32>
    %49 = vector.shape_cast %48 : vector<1x1x32x1xf32> to vector<32x1xf32>
    %c0_31 = arith.constant 0 : index
    %c1_32 = arith.constant 1 : index
    %c0_33 = arith.constant 0 : index
    %c0_34 = arith.constant 0 : index
    %50 = vector.load %arg8[%c0_31, %c1_32, %c0_33, %c0_34] : memref<4x4x32x1xf32, #tpu.memory_space<vmem>>, vector<1x1x32x1xf32>
    %51 = vector.shape_cast %50 : vector<1x1x32x1xf32> to vector<32x1xf32>
    %cst_35 = arith.constant dense<0.000000e+00> : vector<32x128xf32>
    %52 = tpu.matmul %8, %47, %cst_35 {dimension_numbers = #tpu.dot_dimension_numbers<[1], [0], [0], [1], [0, 0, 1, 1], [], []>} : vector<32x16xf32>, vector<16x128xf32>, vector<32x128xf32> -> vector<32x128xf32>
    %cst_36 = arith.constant dense<0.000000e+00> : vector<32xf32>
    %53 = vector.multi_reduction <add>, %52, %cst_36 [1] : vector<32x128xf32> to vector<32xf32>
    %54 = vector.shape_cast %53 : vector<32xf32> to vector<32x1xf32>
    %cst_37 = arith.constant 1.280000e+02 : f32
    %55 = vector.broadcast %cst_37 : f32 to vector<32x1xf32>
    %56 = arith.divf %54, %55 : vector<32x1xf32>
    %57 = vector.broadcast %56 : vector<32x1xf32> to vector<32x128xf32>
    %58 = arith.subf %52, %57 : vector<32x128xf32>
    %59 = arith.mulf %58, %58 : vector<32x128xf32>
    %cst_38 = arith.constant dense<0.000000e+00> : vector<32xf32>
    %60 = vector.multi_reduction <add>, %59, %cst_38 [1] : vector<32x128xf32> to vector<32xf32>
    %61 = vector.shape_cast %60 : vector<32xf32> to vector<32x1xf32>
    %cst_39 = arith.constant 1.280000e+02 : f32
    %62 = vector.broadcast %cst_39 : f32 to vector<32x1xf32>
    %63 = arith.divf %61, %62 : vector<32x1xf32>
    %64 = vector.broadcast %56 : vector<32x1xf32> to vector<32x128xf32>
    %65 = arith.subf %52, %64 : vector<32x128xf32>
    %cst_40 = arith.constant 9.99999974E-6 : f32
    %66 = vector.broadcast %cst_40 : f32 to vector<32x1xf32>
    %67 = arith.addf %63, %66 : vector<32x1xf32>
    %68 = math.rsqrt %67 : vector<32x1xf32>
    %69 = vector.broadcast %68 : vector<32x1xf32> to vector<32x128xf32>
    %70 = arith.mulf %65, %69 : vector<32x128xf32>
    %71 = vector.broadcast %49 : vector<32x1xf32> to vector<32x128xf32>
    %72 = arith.mulf %70, %71 : vector<32x128xf32>
    %73 = vector.broadcast %51 : vector<32x1xf32> to vector<32x128xf32>
    %74 = arith.addf %72, %73 : vector<32x128xf32>
    %75 = vector.extract_strided_slice %74 {offsets = [16, 0], sizes = [16, 128], strides = [1, 1]} : vector<32x128xf32> to vector<16x128xf32>
    %cst_41 = arith.constant 0.000000e+00 : f32
    %76 = vector.broadcast %cst_41 : f32 to vector<16x128xf32>
    %77 = arith.subf %76, %75 : vector<16x128xf32>
    %78 = math.exp %77 : vector<16x128xf32>
    %cst_42 = arith.constant 1.000000e+00 : f32
    %79 = vector.broadcast %cst_42 : f32 to vector<16x128xf32>
    %80 = arith.addf %79, %78 : vector<16x128xf32>
    %cst_43 = arith.constant 1.000000e+00 : f32
    %81 = vector.broadcast %cst_43 : f32 to vector<16x128xf32>
    %82 = arith.divf %81, %80 : vector<16x128xf32>
    %83 = vector.extract_strided_slice %74 {offsets = [0, 0], sizes = [16, 128], strides = [1, 1]} : vector<32x128xf32> to vector<16x128xf32>
    %84 = arith.mulf %83, %82 : vector<16x128xf32>
    %85 = arith.addf %47, %84 : vector<16x128xf32>
    %cst_44 = arith.constant 0.707106769 : f32
    %86 = vector.broadcast %cst_44 : f32 to vector<16x128xf32>
    %87 = arith.mulf %85, %86 : vector<16x128xf32>
    %c0_45 = arith.constant 0 : index
    %c0_46 = arith.constant 0 : index
    %c0_47 = arith.constant 0 : index
    %c0_48 = arith.constant 0 : index
    %88 = vector.load %arg6[%c0_45, %c0_46, %c0_47, %c0_48] : memref<4x2x32x16xf32, #tpu.memory_space<vmem>>, vector<1x1x32x16xf32>
    %89 = vector.shape_cast %88 : vector<1x1x32x16xf32> to vector<32x16xf32>
    %c0_49 = arith.constant 0 : index
    %c2 = arith.constant 2 : index
    %c0_50 = arith.constant 0 : index
    %c0_51 = arith.constant 0 : index
    %90 = vector.load %arg7[%c0_49, %c2, %c0_50, %c0_51] : memref<4x4x32x1xf32, #tpu.memory_space<vmem>>, vector<1x1x32x1xf32>
    %91 = vector.shape_cast %90 : vector<1x1x32x1xf32> to vector<32x1xf32>
    %c0_52 = arith.constant 0 : index
    %c2_53 = arith.constant 2 : index
    %c0_54 = arith.constant 0 : index
    %c0_55 = arith.constant 0 : index
    %92 = vector.load %arg8[%c0_52, %c2_53, %c0_54, %c0_55] : memref<4x4x32x1xf32, #tpu.memory_space<vmem>>, vector<1x1x32x1xf32>
    %93 = vector.shape_cast %92 : vector<1x1x32x1xf32> to vector<32x1xf32>
    %cst_56 = arith.constant dense<0.000000e+00> : vector<32x128xf32>
    %94 = tpu.matmul %89, %87, %cst_56 {dimension_numbers = #tpu.dot_dimension_numbers<[1], [0], [0], [1], [0, 0, 1, 1], [], []>} : vector<32x16xf32>, vector<16x128xf32>, vector<32x128xf32> -> vector<32x128xf32>
    %cst_57 = arith.constant dense<0.000000e+00> : vector<32xf32>
    %95 = vector.multi_reduction <add>, %94, %cst_57 [1] : vector<32x128xf32> to vector<32xf32>
    %96 = vector.shape_cast %95 : vector<32xf32> to vector<32x1xf32>
    %cst_58 = arith.constant 1.280000e+02 : f32
    %97 = vector.broadcast %cst_58 : f32 to vector<32x1xf32>
    %98 = arith.divf %96, %97 : vector<32x1xf32>
    %99 = vector.broadcast %98 : vector<32x1xf32> to vector<32x128xf32>
    %100 = arith.subf %94, %99 : vector<32x128xf32>
    %101 = arith.mulf %100, %100 : vector<32x128xf32>
    %cst_59 = arith.constant dense<0.000000e+00> : vector<32xf32>
    %102 = vector.multi_reduction <add>, %101, %cst_59 [1] : vector<32x128xf32> to vector<32xf32>
    %103 = vector.shape_cast %102 : vector<32xf32> to vector<32x1xf32>
    %cst_60 = arith.constant 1.280000e+02 : f32
    %104 = vector.broadcast %cst_60 : f32 to vector<32x1xf32>
    %105 = arith.divf %103, %104 : vector<32x1xf32>
    %106 = vector.broadcast %98 : vector<32x1xf32> to vector<32x128xf32>
    %107 = arith.subf %94, %106 : vector<32x128xf32>
    %cst_61 = arith.constant 9.99999974E-6 : f32
    %108 = vector.broadcast %cst_61 : f32 to vector<32x1xf32>
    %109 = arith.addf %105, %108 : vector<32x1xf32>
    %110 = math.rsqrt %109 : vector<32x1xf32>
    %111 = vector.broadcast %110 : vector<32x1xf32> to vector<32x128xf32>
    %112 = arith.mulf %107, %111 : vector<32x128xf32>
    %113 = vector.broadcast %91 : vector<32x1xf32> to vector<32x128xf32>
    %114 = arith.mulf %112, %113 : vector<32x128xf32>
    %115 = vector.broadcast %93 : vector<32x1xf32> to vector<32x128xf32>
    %116 = arith.addf %114, %115 : vector<32x128xf32>
    %117 = vector.extract_strided_slice %116 {offsets = [16, 0], sizes = [16, 128], strides = [1, 1]} : vector<32x128xf32> to vector<16x128xf32>
    %cst_62 = arith.constant 0.000000e+00 : f32
    %118 = vector.broadcast %cst_62 : f32 to vector<16x128xf32>
    %119 = arith.subf %118, %117 : vector<16x128xf32>
    %120 = math.exp %119 : vector<16x128xf32>
    %cst_63 = arith.constant 1.000000e+00 : f32
    %121 = vector.broadcast %cst_63 : f32 to vector<16x128xf32>
    %122 = arith.addf %121, %120 : vector<16x128xf32>
    %cst_64 = arith.constant 1.000000e+00 : f32
    %123 = vector.broadcast %cst_64 : f32 to vector<16x128xf32>
    %124 = arith.divf %123, %122 : vector<16x128xf32>
    %125 = vector.extract_strided_slice %116 {offsets = [0, 0], sizes = [16, 128], strides = [1, 1]} : vector<32x128xf32> to vector<16x128xf32>
    %126 = arith.mulf %125, %124 : vector<16x128xf32>
    %127 = arith.addf %87, %126 : vector<16x128xf32>
    %cst_65 = arith.constant 0.707106769 : f32
    %128 = vector.broadcast %cst_65 : f32 to vector<16x128xf32>
    %129 = arith.mulf %127, %128 : vector<16x128xf32>
    %c0_66 = arith.constant 0 : index
    %c1_67 = arith.constant 1 : index
    %c0_68 = arith.constant 0 : index
    %c0_69 = arith.constant 0 : index
    %130 = vector.load %arg6[%c0_66, %c1_67, %c0_68, %c0_69] : memref<4x2x32x16xf32, #tpu.memory_space<vmem>>, vector<1x1x32x16xf32>
    %131 = vector.shape_cast %130 : vector<1x1x32x16xf32> to vector<32x16xf32>
    %c0_70 = arith.constant 0 : index
    %c3 = arith.constant 3 : index
    %c0_71 = arith.constant 0 : index
    %c0_72 = arith.constant 0 : index
    %132 = vector.load %arg7[%c0_70, %c3, %c0_71, %c0_72] : memref<4x4x32x1xf32, #tpu.memory_space<vmem>>, vector<1x1x32x1xf32>
    %133 = vector.shape_cast %132 : vector<1x1x32x1xf32> to vector<32x1xf32>
    %c0_73 = arith.constant 0 : index
    %c3_74 = arith.constant 3 : index
    %c0_75 = arith.constant 0 : index
    %c0_76 = arith.constant 0 : index
    %134 = vector.load %arg8[%c0_73, %c3_74, %c0_75, %c0_76] : memref<4x4x32x1xf32, #tpu.memory_space<vmem>>, vector<1x1x32x1xf32>
    %135 = vector.shape_cast %134 : vector<1x1x32x1xf32> to vector<32x1xf32>
    %cst_77 = arith.constant dense<0.000000e+00> : vector<32x128xf32>
    %136 = tpu.matmul %131, %129, %cst_77 {dimension_numbers = #tpu.dot_dimension_numbers<[1], [0], [0], [1], [0, 0, 1, 1], [], []>} : vector<32x16xf32>, vector<16x128xf32>, vector<32x128xf32> -> vector<32x128xf32>
    %cst_78 = arith.constant dense<0.000000e+00> : vector<32xf32>
    %137 = vector.multi_reduction <add>, %136, %cst_78 [1] : vector<32x128xf32> to vector<32xf32>
    %138 = vector.shape_cast %137 : vector<32xf32> to vector<32x1xf32>
    %cst_79 = arith.constant 1.280000e+02 : f32
    %139 = vector.broadcast %cst_79 : f32 to vector<32x1xf32>
    %140 = arith.divf %138, %139 : vector<32x1xf32>
    %141 = vector.broadcast %140 : vector<32x1xf32> to vector<32x128xf32>
    %142 = arith.subf %136, %141 : vector<32x128xf32>
    %143 = arith.mulf %142, %142 : vector<32x128xf32>
    %cst_80 = arith.constant dense<0.000000e+00> : vector<32xf32>
    %144 = vector.multi_reduction <add>, %143, %cst_80 [1] : vector<32x128xf32> to vector<32xf32>
    %145 = vector.shape_cast %144 : vector<32xf32> to vector<32x1xf32>
    %cst_81 = arith.constant 1.280000e+02 : f32
    %146 = vector.broadcast %cst_81 : f32 to vector<32x1xf32>
    %147 = arith.divf %145, %146 : vector<32x1xf32>
    %148 = vector.broadcast %140 : vector<32x1xf32> to vector<32x128xf32>
    %149 = arith.subf %136, %148 : vector<32x128xf32>
    %cst_82 = arith.constant 9.99999974E-6 : f32
    %150 = vector.broadcast %cst_82 : f32 to vector<32x1xf32>
    %151 = arith.addf %147, %150 : vector<32x1xf32>
    %152 = math.rsqrt %151 : vector<32x1xf32>
    %153 = vector.broadcast %152 : vector<32x1xf32> to vector<32x128xf32>
    %154 = arith.mulf %149, %153 : vector<32x128xf32>
    %155 = vector.broadcast %133 : vector<32x1xf32> to vector<32x128xf32>
    %156 = arith.mulf %154, %155 : vector<32x128xf32>
    %157 = vector.broadcast %135 : vector<32x1xf32> to vector<32x128xf32>
    %158 = arith.addf %156, %157 : vector<32x128xf32>
    %159 = vector.extract_strided_slice %158 {offsets = [16, 0], sizes = [16, 128], strides = [1, 1]} : vector<32x128xf32> to vector<16x128xf32>
    %cst_83 = arith.constant 0.000000e+00 : f32
    %160 = vector.broadcast %cst_83 : f32 to vector<16x128xf32>
    %161 = arith.subf %160, %159 : vector<16x128xf32>
    %162 = math.exp %161 : vector<16x128xf32>
    %cst_84 = arith.constant 1.000000e+00 : f32
    %163 = vector.broadcast %cst_84 : f32 to vector<16x128xf32>
    %164 = arith.addf %163, %162 : vector<16x128xf32>
    %cst_85 = arith.constant 1.000000e+00 : f32
    %165 = vector.broadcast %cst_85 : f32 to vector<16x128xf32>
    %166 = arith.divf %165, %164 : vector<16x128xf32>
    %167 = vector.extract_strided_slice %158 {offsets = [0, 0], sizes = [16, 128], strides = [1, 1]} : vector<32x128xf32> to vector<16x128xf32>
    %168 = arith.mulf %167, %166 : vector<16x128xf32>
    %169 = arith.addf %129, %168 : vector<16x128xf32>
    %cst_86 = arith.constant 0.707106769 : f32
    %170 = vector.broadcast %cst_86 : f32 to vector<16x128xf32>
    %171 = arith.mulf %169, %170 : vector<16x128xf32>
    %172 = vector.extract_strided_slice %171 {offsets = [8, 0], sizes = [8, 128], strides = [1, 1]} : vector<16x128xf32> to vector<8x128xf32>
    %cst_87 = arith.constant 0.000000e+00 : f32
    %173 = vector.broadcast %cst_87 : f32 to vector<1x128xf32>
    %cst_88 = arith.constant 0.000000e+00 : f32
    %174 = vector.broadcast %cst_88 : f32 to vector<8x128xf32>
    %c0_89 = arith.constant 0 : index
    %c0_90 = arith.constant 0 : index
    %c0_91 = arith.constant 0 : index
    %175 = vector.load %arg9[%c0_89, %c0_90, %c0_91] : memref<3x16x8xf32, #tpu.memory_space<vmem>>, vector<1x16x8xf32>
    %176 = vector.shape_cast %175 : vector<1x16x8xf32> to vector<16x8xf32>
    %cst_92 = arith.constant dense<0.000000e+00> : vector<16x128xf32>
    %177 = tpu.matmul %176, %172, %cst_92 {dimension_numbers = #tpu.dot_dimension_numbers<[1], [0], [0], [1], [0, 0, 1, 1], [], []>} : vector<16x8xf32>, vector<8x128xf32>, vector<16x128xf32> -> vector<16x128xf32>
    %c0_93 = arith.constant 0 : index
    %c0_94 = arith.constant 0 : index
    %c0_95 = arith.constant 0 : index
    %178 = vector.load %arg10[%c0_93, %c0_94, %c0_95] : memref<3x16x1xf32, #tpu.memory_space<vmem>>, vector<1x16x1xf32>
    %179 = vector.shape_cast %178 : vector<1x16x1xf32> to vector<16x1xf32>
    %c0_96 = arith.constant 0 : index
    %c0_97 = arith.constant 0 : index
    %c0_98 = arith.constant 0 : index
    %180 = vector.load %arg11[%c0_96, %c0_97, %c0_98] : memref<3x16x1xf32, #tpu.memory_space<vmem>>, vector<1x16x1xf32>
    %181 = vector.shape_cast %180 : vector<1x16x1xf32> to vector<16x1xf32>
    %cst_99 = arith.constant dense<0.000000e+00> : vector<16xf32>
    %182 = vector.multi_reduction <add>, %177, %cst_99 [1] : vector<16x128xf32> to vector<16xf32>
    %183 = vector.shape_cast %182 : vector<16xf32> to vector<16x1xf32>
    %cst_100 = arith.constant 1.280000e+02 : f32
    %184 = vector.broadcast %cst_100 : f32 to vector<16x1xf32>
    %185 = arith.divf %183, %184 : vector<16x1xf32>
    %186 = vector.broadcast %185 : vector<16x1xf32> to vector<16x128xf32>
    %187 = arith.subf %177, %186 : vector<16x128xf32>
    %188 = arith.mulf %187, %187 : vector<16x128xf32>
    %cst_101 = arith.constant dense<0.000000e+00> : vector<16xf32>
    %189 = vector.multi_reduction <add>, %188, %cst_101 [1] : vector<16x128xf32> to vector<16xf32>
    %190 = vector.shape_cast %189 : vector<16xf32> to vector<16x1xf32>
    %cst_102 = arith.constant 1.280000e+02 : f32
    %191 = vector.broadcast %cst_102 : f32 to vector<16x1xf32>
    %192 = arith.divf %190, %191 : vector<16x1xf32>
    %193 = vector.broadcast %185 : vector<16x1xf32> to vector<16x128xf32>
    %194 = arith.subf %177, %193 : vector<16x128xf32>
    %cst_103 = arith.constant 9.99999974E-6 : f32
    %195 = vector.broadcast %cst_103 : f32 to vector<16x1xf32>
    %196 = arith.addf %192, %195 : vector<16x1xf32>
    %197 = math.rsqrt %196 : vector<16x1xf32>
    %198 = vector.broadcast %197 : vector<16x1xf32> to vector<16x128xf32>
    %199 = arith.mulf %194, %198 : vector<16x128xf32>
    %200 = vector.broadcast %179 : vector<16x1xf32> to vector<16x128xf32>
    %201 = arith.mulf %199, %200 : vector<16x128xf32>
    %202 = vector.broadcast %181 : vector<16x1xf32> to vector<16x128xf32>
    %203 = arith.addf %201, %202 : vector<16x128xf32>
    %204 = arith.mulf %203, %10 : vector<16x128xf32>
    %cst_104 = arith.constant dense<0.000000e+00> : vector<128xf32>
    %205 = vector.multi_reduction <add>, %204, %cst_104 [0] : vector<16x128xf32> to vector<128xf32>
    %206 = vector.shape_cast %205 : vector<128xf32> to vector<1x128xf32>
    %cst_105 = arith.constant 1.000000e+00 : f32
    %207 = vector.broadcast %cst_105 : f32 to vector<1x128xf32>
    %208 = arith.subf %206, %207 : vector<1x128xf32>
    %cst_106 = arith.constant 6.250000e-02 : f32
    %209 = vector.broadcast %cst_106 : f32 to vector<1x128xf32>
    %210 = arith.mulf %208, %209 : vector<1x128xf32>
    %211 = vector.broadcast %210 : vector<1x128xf32> to vector<16x128xf32>
    %212 = arith.cmpf ogt, %204, %211 : vector<16x128xf32>
    %213 = arith.extui %212 : vector<16x128xi1> to vector<16x128xi32>
    %214 = arith.sitofp %213 : vector<16x128xi32> to vector<16x128xf32>
    %cst_107 = arith.constant dense<0.000000e+00> : vector<128xf32>
    %215 = vector.multi_reduction <add>, %214, %cst_107 [0] : vector<16x128xf32> to vector<128xf32>
    %216 = vector.shape_cast %215 : vector<128xf32> to vector<1x128xf32>
    %217 = arith.mulf %204, %214 : vector<16x128xf32>
    %cst_108 = arith.constant dense<0.000000e+00> : vector<128xf32>
    %218 = vector.multi_reduction <add>, %217, %cst_108 [0] : vector<16x128xf32> to vector<128xf32>
    %219 = vector.shape_cast %218 : vector<128xf32> to vector<1x128xf32>
    %cst_109 = arith.constant 1.000000e+00 : f32
    %220 = vector.broadcast %cst_109 : f32 to vector<1x128xf32>
    %221 = arith.subf %219, %220 : vector<1x128xf32>
    %222 = arith.divf %221, %216 : vector<1x128xf32>
    %223 = vector.broadcast %222 : vector<1x128xf32> to vector<16x128xf32>
    %224 = arith.cmpf ogt, %204, %223 : vector<16x128xf32>
    %225 = arith.extui %224 : vector<16x128xi1> to vector<16x128xi32>
    %226 = arith.sitofp %225 : vector<16x128xi32> to vector<16x128xf32>
    %cst_110 = arith.constant dense<0.000000e+00> : vector<128xf32>
    %227 = vector.multi_reduction <add>, %226, %cst_110 [0] : vector<16x128xf32> to vector<128xf32>
    %228 = vector.shape_cast %227 : vector<128xf32> to vector<1x128xf32>
    %229 = arith.mulf %204, %226 : vector<16x128xf32>
    %cst_111 = arith.constant dense<0.000000e+00> : vector<128xf32>
    %230 = vector.multi_reduction <add>, %229, %cst_111 [0] : vector<16x128xf32> to vector<128xf32>
    %231 = vector.shape_cast %230 : vector<128xf32> to vector<1x128xf32>
    %cst_112 = arith.constant 1.000000e+00 : f32
    %232 = vector.broadcast %cst_112 : f32 to vector<1x128xf32>
    %233 = arith.subf %231, %232 : vector<1x128xf32>
    %234 = arith.divf %233, %228 : vector<1x128xf32>
    %235 = vector.broadcast %234 : vector<1x128xf32> to vector<16x128xf32>
    %236 = arith.cmpf ogt, %204, %235 : vector<16x128xf32>
    %237 = arith.extui %236 : vector<16x128xi1> to vector<16x128xi32>
    %238 = arith.sitofp %237 : vector<16x128xi32> to vector<16x128xf32>
    %cst_113 = arith.constant dense<0.000000e+00> : vector<128xf32>
    %239 = vector.multi_reduction <add>, %238, %cst_113 [0] : vector<16x128xf32> to vector<128xf32>
    %240 = vector.shape_cast %239 : vector<128xf32> to vector<1x128xf32>
    %241 = arith.mulf %204, %238 : vector<16x128xf32>
    %cst_114 = arith.constant dense<0.000000e+00> : vector<128xf32>
    %242 = vector.multi_reduction <add>, %241, %cst_114 [0] : vector<16x128xf32> to vector<128xf32>
    %243 = vector.shape_cast %242 : vector<128xf32> to vector<1x128xf32>
    %cst_115 = arith.constant 1.000000e+00 : f32
    %244 = vector.broadcast %cst_115 : f32 to vector<1x128xf32>
    %245 = arith.subf %243, %244 : vector<1x128xf32>
    %246 = arith.divf %245, %240 : vector<1x128xf32>
    %247 = vector.broadcast %246 : vector<1x128xf32> to vector<16x128xf32>
    %248 = arith.cmpf ogt, %204, %247 : vector<16x128xf32>
    %249 = arith.extui %248 : vector<16x128xi1> to vector<16x128xi32>
    %250 = arith.sitofp %249 : vector<16x128xi32> to vector<16x128xf32>
    %cst_116 = arith.constant dense<0.000000e+00> : vector<128xf32>
    %251 = vector.multi_reduction <add>, %250, %cst_116 [0] : vector<16x128xf32> to vector<128xf32>
    %252 = vector.shape_cast %251 : vector<128xf32> to vector<1x128xf32>
    %253 = arith.mulf %204, %250 : vector<16x128xf32>
    %cst_117 = arith.constant dense<0.000000e+00> : vector<128xf32>
    %254 = vector.multi_reduction <add>, %253, %cst_117 [0] : vector<16x128xf32> to vector<128xf32>
    %255 = vector.shape_cast %254 : vector<128xf32> to vector<1x128xf32>
    %cst_118 = arith.constant 1.000000e+00 : f32
    %256 = vector.broadcast %cst_118 : f32 to vector<1x128xf32>
    %257 = arith.subf %255, %256 : vector<1x128xf32>
    %258 = arith.divf %257, %252 : vector<1x128xf32>
    %259 = vector.broadcast %258 : vector<1x128xf32> to vector<16x128xf32>
    %260 = arith.cmpf ogt, %204, %259 : vector<16x128xf32>
    %261 = arith.extui %260 : vector<16x128xi1> to vector<16x128xi32>
    %262 = arith.sitofp %261 : vector<16x128xi32> to vector<16x128xf32>
    %cst_119 = arith.constant dense<0.000000e+00> : vector<128xf32>
    %263 = vector.multi_reduction <add>, %262, %cst_119 [0] : vector<16x128xf32> to vector<128xf32>
    %264 = vector.shape_cast %263 : vector<128xf32> to vector<1x128xf32>
    %265 = arith.mulf %204, %262 : vector<16x128xf32>
    %cst_120 = arith.constant dense<0.000000e+00> : vector<128xf32>
    %266 = vector.multi_reduction <add>, %265, %cst_120 [0] : vector<16x128xf32> to vector<128xf32>
    %267 = vector.shape_cast %266 : vector<128xf32> to vector<1x128xf32>
    %cst_121 = arith.constant 1.000000e+00 : f32
    %268 = vector.broadcast %cst_121 : f32 to vector<1x128xf32>
    %269 = arith.subf %267, %268 : vector<1x128xf32>
    %270 = arith.divf %269, %264 : vector<1x128xf32>
    %271 = vector.broadcast %270 : vector<1x128xf32> to vector<16x128xf32>
    %272 = arith.cmpf ogt, %204, %271 : vector<16x128xf32>
    %273 = arith.extui %272 : vector<16x128xi1> to vector<16x128xi32>
    %274 = arith.sitofp %273 : vector<16x128xi32> to vector<16x128xf32>
    %cst_122 = arith.constant dense<0.000000e+00> : vector<128xf32>
    %275 = vector.multi_reduction <add>, %274, %cst_122 [0] : vector<16x128xf32> to vector<128xf32>
    %276 = vector.shape_cast %275 : vector<128xf32> to vector<1x128xf32>
    %277 = arith.mulf %204, %274 : vector<16x128xf32>
    %cst_123 = arith.constant dense<0.000000e+00> : vector<128xf32>
    %278 = vector.multi_reduction <add>, %277, %cst_123 [0] : vector<16x128xf32> to vector<128xf32>
    %279 = vector.shape_cast %278 : vector<128xf32> to vector<1x128xf32>
    %cst_124 = arith.constant 1.000000e+00 : f32
    %280 = vector.broadcast %cst_124 : f32 to vector<1x128xf32>
    %281 = arith.subf %279, %280 : vector<1x128xf32>
    %282 = arith.divf %281, %276 : vector<1x128xf32>
    %283 = vector.broadcast %282 : vector<1x128xf32> to vector<16x128xf32>
    %284 = arith.cmpf ogt, %204, %283 : vector<16x128xf32>
    %285 = arith.extui %284 : vector<16x128xi1> to vector<16x128xi32>
    %286 = arith.sitofp %285 : vector<16x128xi32> to vector<16x128xf32>
    %cst_125 = arith.constant dense<0.000000e+00> : vector<128xf32>
    %287 = vector.multi_reduction <add>, %286, %cst_125 [0] : vector<16x128xf32> to vector<128xf32>
    %288 = vector.shape_cast %287 : vector<128xf32> to vector<1x128xf32>
    %289 = arith.mulf %204, %286 : vector<16x128xf32>
    %cst_126 = arith.constant dense<0.000000e+00> : vector<128xf32>
    %290 = vector.multi_reduction <add>, %289, %cst_126 [0] : vector<16x128xf32> to vector<128xf32>
    %291 = vector.shape_cast %290 : vector<128xf32> to vector<1x128xf32>
    %cst_127 = arith.constant 1.000000e+00 : f32
    %292 = vector.broadcast %cst_127 : f32 to vector<1x128xf32>
    %293 = arith.subf %291, %292 : vector<1x128xf32>
    %294 = arith.divf %293, %288 : vector<1x128xf32>
    %295 = vector.broadcast %294 : vector<1x128xf32> to vector<16x128xf32>
    %296 = arith.cmpf ogt, %204, %295 : vector<16x128xf32>
    %297 = arith.extui %296 : vector<16x128xi1> to vector<16x128xi32>
    %298 = arith.sitofp %297 : vector<16x128xi32> to vector<16x128xf32>
    %cst_128 = arith.constant dense<0.000000e+00> : vector<128xf32>
    %299 = vector.multi_reduction <add>, %298, %cst_128 [0] : vector<16x128xf32> to vector<128xf32>
    %300 = vector.shape_cast %299 : vector<128xf32> to vector<1x128xf32>
    %301 = arith.mulf %204, %298 : vector<16x128xf32>
    %cst_129 = arith.constant dense<0.000000e+00> : vector<128xf32>
    %302 = vector.multi_reduction <add>, %301, %cst_129 [0] : vector<16x128xf32> to vector<128xf32>
    %303 = vector.shape_cast %302 : vector<128xf32> to vector<1x128xf32>
    %cst_130 = arith.constant 1.000000e+00 : f32
    %304 = vector.broadcast %cst_130 : f32 to vector<1x128xf32>
    %305 = arith.subf %303, %304 : vector<1x128xf32>
    %306 = arith.divf %305, %300 : vector<1x128xf32>
    %307 = vector.broadcast %306 : vector<1x128xf32> to vector<16x128xf32>
    %308 = arith.cmpf ogt, %204, %307 : vector<16x128xf32>
    %309 = arith.extui %308 : vector<16x128xi1> to vector<16x128xi32>
    %310 = arith.sitofp %309 : vector<16x128xi32> to vector<16x128xf32>
    %cst_131 = arith.constant dense<0.000000e+00> : vector<128xf32>
    %311 = vector.multi_reduction <add>, %310, %cst_131 [0] : vector<16x128xf32> to vector<128xf32>
    %312 = vector.shape_cast %311 : vector<128xf32> to vector<1x128xf32>
    %313 = arith.mulf %204, %310 : vector<16x128xf32>
    %cst_132 = arith.constant dense<0.000000e+00> : vector<128xf32>
    %314 = vector.multi_reduction <add>, %313, %cst_132 [0] : vector<16x128xf32> to vector<128xf32>
    %315 = vector.shape_cast %314 : vector<128xf32> to vector<1x128xf32>
    %cst_133 = arith.constant 1.000000e+00 : f32
    %316 = vector.broadcast %cst_133 : f32 to vector<1x128xf32>
    %317 = arith.subf %315, %316 : vector<1x128xf32>
    %318 = arith.divf %317, %312 : vector<1x128xf32>
    %319 = vector.broadcast %318 : vector<1x128xf32> to vector<16x128xf32>
    %320 = arith.cmpf ogt, %204, %319 : vector<16x128xf32>
    %321 = arith.extui %320 : vector<16x128xi1> to vector<16x128xi32>
    %322 = arith.sitofp %321 : vector<16x128xi32> to vector<16x128xf32>
    %cst_134 = arith.constant dense<0.000000e+00> : vector<128xf32>
    %323 = vector.multi_reduction <add>, %322, %cst_134 [0] : vector<16x128xf32> to vector<128xf32>
    %324 = vector.shape_cast %323 : vector<128xf32> to vector<1x128xf32>
    %325 = arith.mulf %204, %322 : vector<16x128xf32>
    %cst_135 = arith.constant dense<0.000000e+00> : vector<128xf32>
    %326 = vector.multi_reduction <add>, %325, %cst_135 [0] : vector<16x128xf32> to vector<128xf32>
    %327 = vector.shape_cast %326 : vector<128xf32> to vector<1x128xf32>
    %cst_136 = arith.constant 1.000000e+00 : f32
    %328 = vector.broadcast %cst_136 : f32 to vector<1x128xf32>
    %329 = arith.subf %327, %328 : vector<1x128xf32>
    %330 = arith.divf %329, %324 : vector<1x128xf32>
    %331 = vector.broadcast %330 : vector<1x128xf32> to vector<16x128xf32>
    %332 = arith.cmpf ogt, %204, %331 : vector<16x128xf32>
    %333 = arith.extui %332 : vector<16x128xi1> to vector<16x128xi32>
    %334 = arith.sitofp %333 : vector<16x128xi32> to vector<16x128xf32>
    %cst_137 = arith.constant dense<0.000000e+00> : vector<128xf32>
    %335 = vector.multi_reduction <add>, %334, %cst_137 [0] : vector<16x128xf32> to vector<128xf32>
    %336 = vector.shape_cast %335 : vector<128xf32> to vector<1x128xf32>
    %337 = arith.mulf %204, %334 : vector<16x128xf32>
    %cst_138 = arith.constant dense<0.000000e+00> : vector<128xf32>
    %338 = vector.multi_reduction <add>, %337, %cst_138 [0] : vector<16x128xf32> to vector<128xf32>
    %339 = vector.shape_cast %338 : vector<128xf32> to vector<1x128xf32>
    %cst_139 = arith.constant 1.000000e+00 : f32
    %340 = vector.broadcast %cst_139 : f32 to vector<1x128xf32>
    %341 = arith.subf %339, %340 : vector<1x128xf32>
    %342 = arith.divf %341, %336 : vector<1x128xf32>
    %343 = vector.broadcast %342 : vector<1x128xf32> to vector<16x128xf32>
    %344 = arith.cmpf ogt, %204, %343 : vector<16x128xf32>
    %345 = arith.extui %344 : vector<16x128xi1> to vector<16x128xi32>
    %346 = arith.sitofp %345 : vector<16x128xi32> to vector<16x128xf32>
    %cst_140 = arith.constant dense<0.000000e+00> : vector<128xf32>
    %347 = vector.multi_reduction <add>, %346, %cst_140 [0] : vector<16x128xf32> to vector<128xf32>
    %348 = vector.shape_cast %347 : vector<128xf32> to vector<1x128xf32>
    %349 = arith.mulf %204, %346 : vector<16x128xf32>
    %cst_141 = arith.constant dense<0.000000e+00> : vector<128xf32>
    %350 = vector.multi_reduction <add>, %349, %cst_141 [0] : vector<16x128xf32> to vector<128xf32>
    %351 = vector.shape_cast %350 : vector<128xf32> to vector<1x128xf32>
    %cst_142 = arith.constant 1.000000e+00 : f32
    %352 = vector.broadcast %cst_142 : f32 to vector<1x128xf32>
    %353 = arith.subf %351, %352 : vector<1x128xf32>
    %354 = arith.divf %353, %348 : vector<1x128xf32>
    %355 = vector.broadcast %354 : vector<1x128xf32> to vector<16x128xf32>
    %356 = arith.cmpf ogt, %204, %355 : vector<16x128xf32>
    %357 = arith.extui %356 : vector<16x128xi1> to vector<16x128xi32>
    %358 = arith.sitofp %357 : vector<16x128xi32> to vector<16x128xf32>
    %cst_143 = arith.constant dense<0.000000e+00> : vector<128xf32>
    %359 = vector.multi_reduction <add>, %358, %cst_143 [0] : vector<16x128xf32> to vector<128xf32>
    %360 = vector.shape_cast %359 : vector<128xf32> to vector<1x128xf32>
    %361 = arith.mulf %204, %358 : vector<16x128xf32>
    %cst_144 = arith.constant dense<0.000000e+00> : vector<128xf32>
    %362 = vector.multi_reduction <add>, %361, %cst_144 [0] : vector<16x128xf32> to vector<128xf32>
    %363 = vector.shape_cast %362 : vector<128xf32> to vector<1x128xf32>
    %cst_145 = arith.constant 1.000000e+00 : f32
    %364 = vector.broadcast %cst_145 : f32 to vector<1x128xf32>
    %365 = arith.subf %363, %364 : vector<1x128xf32>
    %366 = arith.divf %365, %360 : vector<1x128xf32>
    %367 = vector.broadcast %366 : vector<1x128xf32> to vector<16x128xf32>
    %368 = arith.cmpf ogt, %204, %367 : vector<16x128xf32>
    %369 = arith.extui %368 : vector<16x128xi1> to vector<16x128xi32>
    %370 = arith.sitofp %369 : vector<16x128xi32> to vector<16x128xf32>
    %cst_146 = arith.constant dense<0.000000e+00> : vector<128xf32>
    %371 = vector.multi_reduction <add>, %370, %cst_146 [0] : vector<16x128xf32> to vector<128xf32>
    %372 = vector.shape_cast %371 : vector<128xf32> to vector<1x128xf32>
    %373 = arith.mulf %204, %370 : vector<16x128xf32>
    %cst_147 = arith.constant dense<0.000000e+00> : vector<128xf32>
    %374 = vector.multi_reduction <add>, %373, %cst_147 [0] : vector<16x128xf32> to vector<128xf32>
    %375 = vector.shape_cast %374 : vector<128xf32> to vector<1x128xf32>
    %cst_148 = arith.constant 1.000000e+00 : f32
    %376 = vector.broadcast %cst_148 : f32 to vector<1x128xf32>
    %377 = arith.subf %375, %376 : vector<1x128xf32>
    %378 = arith.divf %377, %372 : vector<1x128xf32>
    %379 = vector.broadcast %378 : vector<1x128xf32> to vector<16x128xf32>
    %380 = arith.cmpf ogt, %204, %379 : vector<16x128xf32>
    %381 = arith.extui %380 : vector<16x128xi1> to vector<16x128xi32>
    %382 = arith.sitofp %381 : vector<16x128xi32> to vector<16x128xf32>
    %cst_149 = arith.constant dense<0.000000e+00> : vector<128xf32>
    %383 = vector.multi_reduction <add>, %382, %cst_149 [0] : vector<16x128xf32> to vector<128xf32>
    %384 = vector.shape_cast %383 : vector<128xf32> to vector<1x128xf32>
    %385 = arith.mulf %204, %382 : vector<16x128xf32>
    %cst_150 = arith.constant dense<0.000000e+00> : vector<128xf32>
    %386 = vector.multi_reduction <add>, %385, %cst_150 [0] : vector<16x128xf32> to vector<128xf32>
    %387 = vector.shape_cast %386 : vector<128xf32> to vector<1x128xf32>
    %cst_151 = arith.constant 1.000000e+00 : f32
    %388 = vector.broadcast %cst_151 : f32 to vector<1x128xf32>
    %389 = arith.subf %387, %388 : vector<1x128xf32>
    %390 = arith.divf %389, %384 : vector<1x128xf32>
    %391 = vector.broadcast %390 : vector<1x128xf32> to vector<16x128xf32>
    %392 = arith.subf %204, %391 : vector<16x128xf32>
    %cst_152 = arith.constant 0.000000e+00 : f32
    %393 = vector.broadcast %cst_152 : f32 to vector<16x128xf32>
    %394 = arith.maximumf %392, %393 : vector<16x128xf32>
    %cst_153 = arith.constant 1.000000e-15 : f32
    %395 = vector.broadcast %cst_153 : f32 to vector<16x128xf32>
    %396 = arith.addf %394, %395 : vector<16x128xf32>
    %397 = math.log %396 : vector<16x128xf32>
    %398 = arith.mulf %394, %397 : vector<16x128xf32>
    %cst_154 = arith.constant dense<0.000000e+00> : vector<128xf32>
    %399 = vector.multi_reduction <add>, %398, %cst_154 [0] : vector<16x128xf32> to vector<128xf32>
    %400 = vector.shape_cast %399 : vector<128xf32> to vector<1x128xf32>
    %401 = arith.addf %173, %400 : vector<1x128xf32>
    %cst_155 = arith.constant 1.300000e+00 : f32
    %402 = vector.broadcast %cst_155 : f32 to vector<16x128xf32>
    %403 = arith.subf %402, %394 : vector<16x128xf32>
    %404 = arith.mulf %403, %10 : vector<16x128xf32>
    %405 = arith.mulf %394, %6 : vector<16x128xf32>
    %c1_156 = arith.constant 1 : index
    %c0_157 = arith.constant 0 : index
    %c0_158 = arith.constant 0 : index
    %c0_159 = arith.constant 0 : index
    %406 = vector.load %arg7[%c1_156, %c0_157, %c0_158, %c0_159] : memref<4x4x32x1xf32, #tpu.memory_space<vmem>>, vector<1x1x32x1xf32>
    %407 = vector.shape_cast %406 : vector<1x1x32x1xf32> to vector<32x1xf32>
    %c1_160 = arith.constant 1 : index
    %c0_161 = arith.constant 0 : index
    %c0_162 = arith.constant 0 : index
    %c0_163 = arith.constant 0 : index
    %408 = vector.load %arg8[%c1_160, %c0_161, %c0_162, %c0_163] : memref<4x4x32x1xf32, #tpu.memory_space<vmem>>, vector<1x1x32x1xf32>
    %409 = vector.shape_cast %408 : vector<1x1x32x1xf32> to vector<32x1xf32>
    %cst_164 = arith.constant dense<0.000000e+00> : vector<32x128xf32>
    %410 = tpu.matmul %7, %405, %cst_164 {dimension_numbers = #tpu.dot_dimension_numbers<[1], [0], [0], [1], [0, 0, 1, 1], [], []>} : vector<32x16xf32>, vector<16x128xf32>, vector<32x128xf32> -> vector<32x128xf32>
    %cst_165 = arith.constant dense<0.000000e+00> : vector<32xf32>
    %411 = vector.multi_reduction <add>, %410, %cst_165 [1] : vector<32x128xf32> to vector<32xf32>
    %412 = vector.shape_cast %411 : vector<32xf32> to vector<32x1xf32>
    %cst_166 = arith.constant 1.280000e+02 : f32
    %413 = vector.broadcast %cst_166 : f32 to vector<32x1xf32>
    %414 = arith.divf %412, %413 : vector<32x1xf32>
    %415 = vector.broadcast %414 : vector<32x1xf32> to vector<32x128xf32>
    %416 = arith.subf %410, %415 : vector<32x128xf32>
    %417 = arith.mulf %416, %416 : vector<32x128xf32>
    %cst_167 = arith.constant dense<0.000000e+00> : vector<32xf32>
    %418 = vector.multi_reduction <add>, %417, %cst_167 [1] : vector<32x128xf32> to vector<32xf32>
    %419 = vector.shape_cast %418 : vector<32xf32> to vector<32x1xf32>
    %cst_168 = arith.constant 1.280000e+02 : f32
    %420 = vector.broadcast %cst_168 : f32 to vector<32x1xf32>
    %421 = arith.divf %419, %420 : vector<32x1xf32>
    %422 = vector.broadcast %414 : vector<32x1xf32> to vector<32x128xf32>
    %423 = arith.subf %410, %422 : vector<32x128xf32>
    %cst_169 = arith.constant 9.99999974E-6 : f32
    %424 = vector.broadcast %cst_169 : f32 to vector<32x1xf32>
    %425 = arith.addf %421, %424 : vector<32x1xf32>
    %426 = math.rsqrt %425 : vector<32x1xf32>
    %427 = vector.broadcast %426 : vector<32x1xf32> to vector<32x128xf32>
    %428 = arith.mulf %423, %427 : vector<32x128xf32>
    %429 = vector.broadcast %407 : vector<32x1xf32> to vector<32x128xf32>
    %430 = arith.mulf %428, %429 : vector<32x128xf32>
    %431 = vector.broadcast %409 : vector<32x1xf32> to vector<32x128xf32>
    %432 = arith.addf %430, %431 : vector<32x128xf32>
    %433 = vector.extract_strided_slice %432 {offsets = [16, 0], sizes = [16, 128], strides = [1, 1]} : vector<32x128xf32> to vector<16x128xf32>
    %cst_170 = arith.constant 0.000000e+00 : f32
    %434 = vector.broadcast %cst_170 : f32 to vector<16x128xf32>
    %435 = arith.subf %434, %433 : vector<16x128xf32>
    %436 = math.exp %435 : vector<16x128xf32>
    %cst_171 = arith.constant 1.000000e+00 : f32
    %437 = vector.broadcast %cst_171 : f32 to vector<16x128xf32>
    %438 = arith.addf %437, %436 : vector<16x128xf32>
    %cst_172 = arith.constant 1.000000e+00 : f32
    %439 = vector.broadcast %cst_172 : f32 to vector<16x128xf32>
    %440 = arith.divf %439, %438 : vector<16x128xf32>
    %441 = vector.extract_strided_slice %432 {offsets = [0, 0], sizes = [16, 128], strides = [1, 1]} : vector<32x128xf32> to vector<16x128xf32>
    %442 = arith.mulf %441, %440 : vector<16x128xf32>
    %c1_173 = arith.constant 1 : index
    %c1_174 = arith.constant 1 : index
    %c0_175 = arith.constant 0 : index
    %c0_176 = arith.constant 0 : index
    %443 = vector.load %arg7[%c1_173, %c1_174, %c0_175, %c0_176] : memref<4x4x32x1xf32, #tpu.memory_space<vmem>>, vector<1x1x32x1xf32>
    %444 = vector.shape_cast %443 : vector<1x1x32x1xf32> to vector<32x1xf32>
    %c1_177 = arith.constant 1 : index
    %c1_178 = arith.constant 1 : index
    %c0_179 = arith.constant 0 : index
    %c0_180 = arith.constant 0 : index
    %445 = vector.load %arg8[%c1_177, %c1_178, %c0_179, %c0_180] : memref<4x4x32x1xf32, #tpu.memory_space<vmem>>, vector<1x1x32x1xf32>
    %446 = vector.shape_cast %445 : vector<1x1x32x1xf32> to vector<32x1xf32>
    %cst_181 = arith.constant dense<0.000000e+00> : vector<32x128xf32>
    %447 = tpu.matmul %8, %442, %cst_181 {dimension_numbers = #tpu.dot_dimension_numbers<[1], [0], [0], [1], [0, 0, 1, 1], [], []>} : vector<32x16xf32>, vector<16x128xf32>, vector<32x128xf32> -> vector<32x128xf32>
    %cst_182 = arith.constant dense<0.000000e+00> : vector<32xf32>
    %448 = vector.multi_reduction <add>, %447, %cst_182 [1] : vector<32x128xf32> to vector<32xf32>
    %449 = vector.shape_cast %448 : vector<32xf32> to vector<32x1xf32>
    %cst_183 = arith.constant 1.280000e+02 : f32
    %450 = vector.broadcast %cst_183 : f32 to vector<32x1xf32>
    %451 = arith.divf %449, %450 : vector<32x1xf32>
    %452 = vector.broadcast %451 : vector<32x1xf32> to vector<32x128xf32>
    %453 = arith.subf %447, %452 : vector<32x128xf32>
    %454 = arith.mulf %453, %453 : vector<32x128xf32>
    %cst_184 = arith.constant dense<0.000000e+00> : vector<32xf32>
    %455 = vector.multi_reduction <add>, %454, %cst_184 [1] : vector<32x128xf32> to vector<32xf32>
    %456 = vector.shape_cast %455 : vector<32xf32> to vector<32x1xf32>
    %cst_185 = arith.constant 1.280000e+02 : f32
    %457 = vector.broadcast %cst_185 : f32 to vector<32x1xf32>
    %458 = arith.divf %456, %457 : vector<32x1xf32>
    %459 = vector.broadcast %451 : vector<32x1xf32> to vector<32x128xf32>
    %460 = arith.subf %447, %459 : vector<32x128xf32>
    %cst_186 = arith.constant 9.99999974E-6 : f32
    %461 = vector.broadcast %cst_186 : f32 to vector<32x1xf32>
    %462 = arith.addf %458, %461 : vector<32x1xf32>
    %463 = math.rsqrt %462 : vector<32x1xf32>
    %464 = vector.broadcast %463 : vector<32x1xf32> to vector<32x128xf32>
    %465 = arith.mulf %460, %464 : vector<32x128xf32>
    %466 = vector.broadcast %444 : vector<32x1xf32> to vector<32x128xf32>
    %467 = arith.mulf %465, %466 : vector<32x128xf32>
    %468 = vector.broadcast %446 : vector<32x1xf32> to vector<32x128xf32>
    %469 = arith.addf %467, %468 : vector<32x128xf32>
    %470 = vector.extract_strided_slice %469 {offsets = [16, 0], sizes = [16, 128], strides = [1, 1]} : vector<32x128xf32> to vector<16x128xf32>
    %cst_187 = arith.constant 0.000000e+00 : f32
    %471 = vector.broadcast %cst_187 : f32 to vector<16x128xf32>
    %472 = arith.subf %471, %470 : vector<16x128xf32>
    %473 = math.exp %472 : vector<16x128xf32>
    %cst_188 = arith.constant 1.000000e+00 : f32
    %474 = vector.broadcast %cst_188 : f32 to vector<16x128xf32>
    %475 = arith.addf %474, %473 : vector<16x128xf32>
    %cst_189 = arith.constant 1.000000e+00 : f32
    %476 = vector.broadcast %cst_189 : f32 to vector<16x128xf32>
    %477 = arith.divf %476, %475 : vector<16x128xf32>
    %478 = vector.extract_strided_slice %469 {offsets = [0, 0], sizes = [16, 128], strides = [1, 1]} : vector<32x128xf32> to vector<16x128xf32>
    %479 = arith.mulf %478, %477 : vector<16x128xf32>
    %480 = arith.addf %442, %479 : vector<16x128xf32>
    %cst_190 = arith.constant 0.707106769 : f32
    %481 = vector.broadcast %cst_190 : f32 to vector<16x128xf32>
    %482 = arith.mulf %480, %481 : vector<16x128xf32>
    %c1_191 = arith.constant 1 : index
    %c0_192 = arith.constant 0 : index
    %c0_193 = arith.constant 0 : index
    %c0_194 = arith.constant 0 : index
    %483 = vector.load %arg6[%c1_191, %c0_192, %c0_193, %c0_194] : memref<4x2x32x16xf32, #tpu.memory_space<vmem>>, vector<1x1x32x16xf32>
    %484 = vector.shape_cast %483 : vector<1x1x32x16xf32> to vector<32x16xf32>
    %c1_195 = arith.constant 1 : index
    %c2_196 = arith.constant 2 : index
    %c0_197 = arith.constant 0 : index
    %c0_198 = arith.constant 0 : index
    %485 = vector.load %arg7[%c1_195, %c2_196, %c0_197, %c0_198] : memref<4x4x32x1xf32, #tpu.memory_space<vmem>>, vector<1x1x32x1xf32>
    %486 = vector.shape_cast %485 : vector<1x1x32x1xf32> to vector<32x1xf32>
    %c1_199 = arith.constant 1 : index
    %c2_200 = arith.constant 2 : index
    %c0_201 = arith.constant 0 : index
    %c0_202 = arith.constant 0 : index
    %487 = vector.load %arg8[%c1_199, %c2_200, %c0_201, %c0_202] : memref<4x4x32x1xf32, #tpu.memory_space<vmem>>, vector<1x1x32x1xf32>
    %488 = vector.shape_cast %487 : vector<1x1x32x1xf32> to vector<32x1xf32>
    %cst_203 = arith.constant dense<0.000000e+00> : vector<32x128xf32>
    %489 = tpu.matmul %484, %482, %cst_203 {dimension_numbers = #tpu.dot_dimension_numbers<[1], [0], [0], [1], [0, 0, 1, 1], [], []>} : vector<32x16xf32>, vector<16x128xf32>, vector<32x128xf32> -> vector<32x128xf32>
    %cst_204 = arith.constant dense<0.000000e+00> : vector<32xf32>
    %490 = vector.multi_reduction <add>, %489, %cst_204 [1] : vector<32x128xf32> to vector<32xf32>
    %491 = vector.shape_cast %490 : vector<32xf32> to vector<32x1xf32>
    %cst_205 = arith.constant 1.280000e+02 : f32
    %492 = vector.broadcast %cst_205 : f32 to vector<32x1xf32>
    %493 = arith.divf %491, %492 : vector<32x1xf32>
    %494 = vector.broadcast %493 : vector<32x1xf32> to vector<32x128xf32>
    %495 = arith.subf %489, %494 : vector<32x128xf32>
    %496 = arith.mulf %495, %495 : vector<32x128xf32>
    %cst_206 = arith.constant dense<0.000000e+00> : vector<32xf32>
    %497 = vector.multi_reduction <add>, %496, %cst_206 [1] : vector<32x128xf32> to vector<32xf32>
    %498 = vector.shape_cast %497 : vector<32xf32> to vector<32x1xf32>
    %cst_207 = arith.constant 1.280000e+02 : f32
    %499 = vector.broadcast %cst_207 : f32 to vector<32x1xf32>
    %500 = arith.divf %498, %499 : vector<32x1xf32>
    %501 = vector.broadcast %493 : vector<32x1xf32> to vector<32x128xf32>
    %502 = arith.subf %489, %501 : vector<32x128xf32>
    %cst_208 = arith.constant 9.99999974E-6 : f32
    %503 = vector.broadcast %cst_208 : f32 to vector<32x1xf32>
    %504 = arith.addf %500, %503 : vector<32x1xf32>
    %505 = math.rsqrt %504 : vector<32x1xf32>
    %506 = vector.broadcast %505 : vector<32x1xf32> to vector<32x128xf32>
    %507 = arith.mulf %502, %506 : vector<32x128xf32>
    %508 = vector.broadcast %486 : vector<32x1xf32> to vector<32x128xf32>
    %509 = arith.mulf %507, %508 : vector<32x128xf32>
    %510 = vector.broadcast %488 : vector<32x1xf32> to vector<32x128xf32>
    %511 = arith.addf %509, %510 : vector<32x128xf32>
    %512 = vector.extract_strided_slice %511 {offsets = [16, 0], sizes = [16, 128], strides = [1, 1]} : vector<32x128xf32> to vector<16x128xf32>
    %cst_209 = arith.constant 0.000000e+00 : f32
    %513 = vector.broadcast %cst_209 : f32 to vector<16x128xf32>
    %514 = arith.subf %513, %512 : vector<16x128xf32>
    %515 = math.exp %514 : vector<16x128xf32>
    %cst_210 = arith.constant 1.000000e+00 : f32
    %516 = vector.broadcast %cst_210 : f32 to vector<16x128xf32>
    %517 = arith.addf %516, %515 : vector<16x128xf32>
    %cst_211 = arith.constant 1.000000e+00 : f32
    %518 = vector.broadcast %cst_211 : f32 to vector<16x128xf32>
    %519 = arith.divf %518, %517 : vector<16x128xf32>
    %520 = vector.extract_strided_slice %511 {offsets = [0, 0], sizes = [16, 128], strides = [1, 1]} : vector<32x128xf32> to vector<16x128xf32>
    %521 = arith.mulf %520, %519 : vector<16x128xf32>
    %522 = arith.addf %482, %521 : vector<16x128xf32>
    %cst_212 = arith.constant 0.707106769 : f32
    %523 = vector.broadcast %cst_212 : f32 to vector<16x128xf32>
    %524 = arith.mulf %522, %523 : vector<16x128xf32>
    %c1_213 = arith.constant 1 : index
    %c1_214 = arith.constant 1 : index
    %c0_215 = arith.constant 0 : index
    %c0_216 = arith.constant 0 : index
    %525 = vector.load %arg6[%c1_213, %c1_214, %c0_215, %c0_216] : memref<4x2x32x16xf32, #tpu.memory_space<vmem>>, vector<1x1x32x16xf32>
    %526 = vector.shape_cast %525 : vector<1x1x32x16xf32> to vector<32x16xf32>
    %c1_217 = arith.constant 1 : index
    %c3_218 = arith.constant 3 : index
    %c0_219 = arith.constant 0 : index
    %c0_220 = arith.constant 0 : index
    %527 = vector.load %arg7[%c1_217, %c3_218, %c0_219, %c0_220] : memref<4x4x32x1xf32, #tpu.memory_space<vmem>>, vector<1x1x32x1xf32>
    %528 = vector.shape_cast %527 : vector<1x1x32x1xf32> to vector<32x1xf32>
    %c1_221 = arith.constant 1 : index
    %c3_222 = arith.constant 3 : index
    %c0_223 = arith.constant 0 : index
    %c0_224 = arith.constant 0 : index
    %529 = vector.load %arg8[%c1_221, %c3_222, %c0_223, %c0_224] : memref<4x4x32x1xf32, #tpu.memory_space<vmem>>, vector<1x1x32x1xf32>
    %530 = vector.shape_cast %529 : vector<1x1x32x1xf32> to vector<32x1xf32>
    %cst_225 = arith.constant dense<0.000000e+00> : vector<32x128xf32>
    %531 = tpu.matmul %526, %524, %cst_225 {dimension_numbers = #tpu.dot_dimension_numbers<[1], [0], [0], [1], [0, 0, 1, 1], [], []>} : vector<32x16xf32>, vector<16x128xf32>, vector<32x128xf32> -> vector<32x128xf32>
    %cst_226 = arith.constant dense<0.000000e+00> : vector<32xf32>
    %532 = vector.multi_reduction <add>, %531, %cst_226 [1] : vector<32x128xf32> to vector<32xf32>
    %533 = vector.shape_cast %532 : vector<32xf32> to vector<32x1xf32>
    %cst_227 = arith.constant 1.280000e+02 : f32
    %534 = vector.broadcast %cst_227 : f32 to vector<32x1xf32>
    %535 = arith.divf %533, %534 : vector<32x1xf32>
    %536 = vector.broadcast %535 : vector<32x1xf32> to vector<32x128xf32>
    %537 = arith.subf %531, %536 : vector<32x128xf32>
    %538 = arith.mulf %537, %537 : vector<32x128xf32>
    %cst_228 = arith.constant dense<0.000000e+00> : vector<32xf32>
    %539 = vector.multi_reduction <add>, %538, %cst_228 [1] : vector<32x128xf32> to vector<32xf32>
    %540 = vector.shape_cast %539 : vector<32xf32> to vector<32x1xf32>
    %cst_229 = arith.constant 1.280000e+02 : f32
    %541 = vector.broadcast %cst_229 : f32 to vector<32x1xf32>
    %542 = arith.divf %540, %541 : vector<32x1xf32>
    %543 = vector.broadcast %535 : vector<32x1xf32> to vector<32x128xf32>
    %544 = arith.subf %531, %543 : vector<32x128xf32>
    %cst_230 = arith.constant 9.99999974E-6 : f32
    %545 = vector.broadcast %cst_230 : f32 to vector<32x1xf32>
    %546 = arith.addf %542, %545 : vector<32x1xf32>
    %547 = math.rsqrt %546 : vector<32x1xf32>
    %548 = vector.broadcast %547 : vector<32x1xf32> to vector<32x128xf32>
    %549 = arith.mulf %544, %548 : vector<32x128xf32>
    %550 = vector.broadcast %528 : vector<32x1xf32> to vector<32x128xf32>
    %551 = arith.mulf %549, %550 : vector<32x128xf32>
    %552 = vector.broadcast %530 : vector<32x1xf32> to vector<32x128xf32>
    %553 = arith.addf %551, %552 : vector<32x128xf32>
    %554 = vector.extract_strided_slice %553 {offsets = [16, 0], sizes = [16, 128], strides = [1, 1]} : vector<32x128xf32> to vector<16x128xf32>
    %cst_231 = arith.constant 0.000000e+00 : f32
    %555 = vector.broadcast %cst_231 : f32 to vector<16x128xf32>
    %556 = arith.subf %555, %554 : vector<16x128xf32>
    %557 = math.exp %556 : vector<16x128xf32>
    %cst_232 = arith.constant 1.000000e+00 : f32
    %558 = vector.broadcast %cst_232 : f32 to vector<16x128xf32>
    %559 = arith.addf %558, %557 : vector<16x128xf32>
    %cst_233 = arith.constant 1.000000e+00 : f32
    %560 = vector.broadcast %cst_233 : f32 to vector<16x128xf32>
    %561 = arith.divf %560, %559 : vector<16x128xf32>
    %562 = vector.extract_strided_slice %553 {offsets = [0, 0], sizes = [16, 128], strides = [1, 1]} : vector<32x128xf32> to vector<16x128xf32>
    %563 = arith.mulf %562, %561 : vector<16x128xf32>
    %564 = arith.addf %524, %563 : vector<16x128xf32>
    %cst_234 = arith.constant 0.707106769 : f32
    %565 = vector.broadcast %cst_234 : f32 to vector<16x128xf32>
    %566 = arith.mulf %564, %565 : vector<16x128xf32>
    %567 = vector.extract_strided_slice %566 {offsets = [0, 0], sizes = [8, 128], strides = [1, 1]} : vector<16x128xf32> to vector<8x128xf32>
    %cst_235 = arith.constant 0.000000e+00 : f32
    %568 = vector.broadcast %cst_235 : f32 to vector<8x128xf32>
    %569 = arith.maximumf %567, %568 : vector<8x128xf32>
    %570 = arith.addf %174, %569 : vector<8x128xf32>
    %571 = vector.extract_strided_slice %566 {offsets = [8, 0], sizes = [8, 128], strides = [1, 1]} : vector<16x128xf32> to vector<8x128xf32>
    %c1_236 = arith.constant 1 : index
    %c0_237 = arith.constant 0 : index
    %c0_238 = arith.constant 0 : index
    %572 = vector.load %arg9[%c1_236, %c0_237, %c0_238] : memref<3x16x8xf32, #tpu.memory_space<vmem>>, vector<1x16x8xf32>
    %573 = vector.shape_cast %572 : vector<1x16x8xf32> to vector<16x8xf32>
    %cst_239 = arith.constant dense<0.000000e+00> : vector<16x128xf32>
    %574 = tpu.matmul %573, %571, %cst_239 {dimension_numbers = #tpu.dot_dimension_numbers<[1], [0], [0], [1], [0, 0, 1, 1], [], []>} : vector<16x8xf32>, vector<8x128xf32>, vector<16x128xf32> -> vector<16x128xf32>
    %c1_240 = arith.constant 1 : index
    %c0_241 = arith.constant 0 : index
    %c0_242 = arith.constant 0 : index
    %575 = vector.load %arg10[%c1_240, %c0_241, %c0_242] : memref<3x16x1xf32, #tpu.memory_space<vmem>>, vector<1x16x1xf32>
    %576 = vector.shape_cast %575 : vector<1x16x1xf32> to vector<16x1xf32>
    %c1_243 = arith.constant 1 : index
    %c0_244 = arith.constant 0 : index
    %c0_245 = arith.constant 0 : index
    %577 = vector.load %arg11[%c1_243, %c0_244, %c0_245] : memref<3x16x1xf32, #tpu.memory_space<vmem>>, vector<1x16x1xf32>
    %578 = vector.shape_cast %577 : vector<1x16x1xf32> to vector<16x1xf32>
    %cst_246 = arith.constant dense<0.000000e+00> : vector<16xf32>
    %579 = vector.multi_reduction <add>, %574, %cst_246 [1] : vector<16x128xf32> to vector<16xf32>
    %580 = vector.shape_cast %579 : vector<16xf32> to vector<16x1xf32>
    %cst_247 = arith.constant 1.280000e+02 : f32
    %581 = vector.broadcast %cst_247 : f32 to vector<16x1xf32>
    %582 = arith.divf %580, %581 : vector<16x1xf32>
    %583 = vector.broadcast %582 : vector<16x1xf32> to vector<16x128xf32>
    %584 = arith.subf %574, %583 : vector<16x128xf32>
    %585 = arith.mulf %584, %584 : vector<16x128xf32>
    %cst_248 = arith.constant dense<0.000000e+00> : vector<16xf32>
    %586 = vector.multi_reduction <add>, %585, %cst_248 [1] : vector<16x128xf32> to vector<16xf32>
    %587 = vector.shape_cast %586 : vector<16xf32> to vector<16x1xf32>
    %cst_249 = arith.constant 1.280000e+02 : f32
    %588 = vector.broadcast %cst_249 : f32 to vector<16x1xf32>
    %589 = arith.divf %587, %588 : vector<16x1xf32>
    %590 = vector.broadcast %582 : vector<16x1xf32> to vector<16x128xf32>
    %591 = arith.subf %574, %590 : vector<16x128xf32>
    %cst_250 = arith.constant 9.99999974E-6 : f32
    %592 = vector.broadcast %cst_250 : f32 to vector<16x1xf32>
    %593 = arith.addf %589, %592 : vector<16x1xf32>
    %594 = math.rsqrt %593 : vector<16x1xf32>
    %595 = vector.broadcast %594 : vector<16x1xf32> to vector<16x128xf32>
    %596 = arith.mulf %591, %595 : vector<16x128xf32>
    %597 = vector.broadcast %576 : vector<16x1xf32> to vector<16x128xf32>
    %598 = arith.mulf %596, %597 : vector<16x128xf32>
    %599 = vector.broadcast %578 : vector<16x1xf32> to vector<16x128xf32>
    %600 = arith.addf %598, %599 : vector<16x128xf32>
    %601 = arith.mulf %600, %404 : vector<16x128xf32>
    %cst_251 = arith.constant dense<0.000000e+00> : vector<128xf32>
    %602 = vector.multi_reduction <add>, %601, %cst_251 [0] : vector<16x128xf32> to vector<128xf32>
    %603 = vector.shape_cast %602 : vector<128xf32> to vector<1x128xf32>
    %cst_252 = arith.constant 1.000000e+00 : f32
    %604 = vector.broadcast %cst_252 : f32 to vector<1x128xf32>
    %605 = arith.subf %603, %604 : vector<1x128xf32>
    %cst_253 = arith.constant 6.250000e-02 : f32
    %606 = vector.broadcast %cst_253 : f32 to vector<1x128xf32>
    %607 = arith.mulf %605, %606 : vector<1x128xf32>
    %608 = vector.broadcast %607 : vector<1x128xf32> to vector<16x128xf32>
    %609 = arith.cmpf ogt, %601, %608 : vector<16x128xf32>
    %610 = arith.extui %609 : vector<16x128xi1> to vector<16x128xi32>
    %611 = arith.sitofp %610 : vector<16x128xi32> to vector<16x128xf32>
    %cst_254 = arith.constant dense<0.000000e+00> : vector<128xf32>
    %612 = vector.multi_reduction <add>, %611, %cst_254 [0] : vector<16x128xf32> to vector<128xf32>
    %613 = vector.shape_cast %612 : vector<128xf32> to vector<1x128xf32>
    %614 = arith.mulf %601, %611 : vector<16x128xf32>
    %cst_255 = arith.constant dense<0.000000e+00> : vector<128xf32>
    %615 = vector.multi_reduction <add>, %614, %cst_255 [0] : vector<16x128xf32> to vector<128xf32>
    %616 = vector.shape_cast %615 : vector<128xf32> to vector<1x128xf32>
    %cst_256 = arith.constant 1.000000e+00 : f32
    %617 = vector.broadcast %cst_256 : f32 to vector<1x128xf32>
    %618 = arith.subf %616, %617 : vector<1x128xf32>
    %619 = arith.divf %618, %613 : vector<1x128xf32>
    %620 = vector.broadcast %619 : vector<1x128xf32> to vector<16x128xf32>
    %621 = arith.cmpf ogt, %601, %620 : vector<16x128xf32>
    %622 = arith.extui %621 : vector<16x128xi1> to vector<16x128xi32>
    %623 = arith.sitofp %622 : vector<16x128xi32> to vector<16x128xf32>
    %cst_257 = arith.constant dense<0.000000e+00> : vector<128xf32>
    %624 = vector.multi_reduction <add>, %623, %cst_257 [0] : vector<16x128xf32> to vector<128xf32>
    %625 = vector.shape_cast %624 : vector<128xf32> to vector<1x128xf32>
    %626 = arith.mulf %601, %623 : vector<16x128xf32>
    %cst_258 = arith.constant dense<0.000000e+00> : vector<128xf32>
    %627 = vector.multi_reduction <add>, %626, %cst_258 [0] : vector<16x128xf32> to vector<128xf32>
    %628 = vector.shape_cast %627 : vector<128xf32> to vector<1x128xf32>
    %cst_259 = arith.constant 1.000000e+00 : f32
    %629 = vector.broadcast %cst_259 : f32 to vector<1x128xf32>
    %630 = arith.subf %628, %629 : vector<1x128xf32>
    %631 = arith.divf %630, %625 : vector<1x128xf32>
    %632 = vector.broadcast %631 : vector<1x128xf32> to vector<16x128xf32>
    %633 = arith.cmpf ogt, %601, %632 : vector<16x128xf32>
    %634 = arith.extui %633 : vector<16x128xi1> to vector<16x128xi32>
    %635 = arith.sitofp %634 : vector<16x128xi32> to vector<16x128xf32>
    %cst_260 = arith.constant dense<0.000000e+00> : vector<128xf32>
    %636 = vector.multi_reduction <add>, %635, %cst_260 [0] : vector<16x128xf32> to vector<128xf32>
    %637 = vector.shape_cast %636 : vector<128xf32> to vector<1x128xf32>
    %638 = arith.mulf %601, %635 : vector<16x128xf32>
    %cst_261 = arith.constant dense<0.000000e+00> : vector<128xf32>
    %639 = vector.multi_reduction <add>, %638, %cst_261 [0] : vector<16x128xf32> to vector<128xf32>
    %640 = vector.shape_cast %639 : vector<128xf32> to vector<1x128xf32>
    %cst_262 = arith.constant 1.000000e+00 : f32
    %641 = vector.broadcast %cst_262 : f32 to vector<1x128xf32>
    %642 = arith.subf %640, %641 : vector<1x128xf32>
    %643 = arith.divf %642, %637 : vector<1x128xf32>
    %644 = vector.broadcast %643 : vector<1x128xf32> to vector<16x128xf32>
    %645 = arith.cmpf ogt, %601, %644 : vector<16x128xf32>
    %646 = arith.extui %645 : vector<16x128xi1> to vector<16x128xi32>
    %647 = arith.sitofp %646 : vector<16x128xi32> to vector<16x128xf32>
    %cst_263 = arith.constant dense<0.000000e+00> : vector<128xf32>
    %648 = vector.multi_reduction <add>, %647, %cst_263 [0] : vector<16x128xf32> to vector<128xf32>
    %649 = vector.shape_cast %648 : vector<128xf32> to vector<1x128xf32>
    %650 = arith.mulf %601, %647 : vector<16x128xf32>
    %cst_264 = arith.constant dense<0.000000e+00> : vector<128xf32>
    %651 = vector.multi_reduction <add>, %650, %cst_264 [0] : vector<16x128xf32> to vector<128xf32>
    %652 = vector.shape_cast %651 : vector<128xf32> to vector<1x128xf32>
    %cst_265 = arith.constant 1.000000e+00 : f32
    %653 = vector.broadcast %cst_265 : f32 to vector<1x128xf32>
    %654 = arith.subf %652, %653 : vector<1x128xf32>
    %655 = arith.divf %654, %649 : vector<1x128xf32>
    %656 = vector.broadcast %655 : vector<1x128xf32> to vector<16x128xf32>
    %657 = arith.cmpf ogt, %601, %656 : vector<16x128xf32>
    %658 = arith.extui %657 : vector<16x128xi1> to vector<16x128xi32>
    %659 = arith.sitofp %658 : vector<16x128xi32> to vector<16x128xf32>
    %cst_266 = arith.constant dense<0.000000e+00> : vector<128xf32>
    %660 = vector.multi_reduction <add>, %659, %cst_266 [0] : vector<16x128xf32> to vector<128xf32>
    %661 = vector.shape_cast %660 : vector<128xf32> to vector<1x128xf32>
    %662 = arith.mulf %601, %659 : vector<16x128xf32>
    %cst_267 = arith.constant dense<0.000000e+00> : vector<128xf32>
    %663 = vector.multi_reduction <add>, %662, %cst_267 [0] : vector<16x128xf32> to vector<128xf32>
    %664 = vector.shape_cast %663 : vector<128xf32> to vector<1x128xf32>
    %cst_268 = arith.constant 1.000000e+00 : f32
    %665 = vector.broadcast %cst_268 : f32 to vector<1x128xf32>
    %666 = arith.subf %664, %665 : vector<1x128xf32>
    %667 = arith.divf %666, %661 : vector<1x128xf32>
    %668 = vector.broadcast %667 : vector<1x128xf32> to vector<16x128xf32>
    %669 = arith.cmpf ogt, %601, %668 : vector<16x128xf32>
    %670 = arith.extui %669 : vector<16x128xi1> to vector<16x128xi32>
    %671 = arith.sitofp %670 : vector<16x128xi32> to vector<16x128xf32>
    %cst_269 = arith.constant dense<0.000000e+00> : vector<128xf32>
    %672 = vector.multi_reduction <add>, %671, %cst_269 [0] : vector<16x128xf32> to vector<128xf32>
    %673 = vector.shape_cast %672 : vector<128xf32> to vector<1x128xf32>
    %674 = arith.mulf %601, %671 : vector<16x128xf32>
    %cst_270 = arith.constant dense<0.000000e+00> : vector<128xf32>
    %675 = vector.multi_reduction <add>, %674, %cst_270 [0] : vector<16x128xf32> to vector<128xf32>
    %676 = vector.shape_cast %675 : vector<128xf32> to vector<1x128xf32>
    %cst_271 = arith.constant 1.000000e+00 : f32
    %677 = vector.broadcast %cst_271 : f32 to vector<1x128xf32>
    %678 = arith.subf %676, %677 : vector<1x128xf32>
    %679 = arith.divf %678, %673 : vector<1x128xf32>
    %680 = vector.broadcast %679 : vector<1x128xf32> to vector<16x128xf32>
    %681 = arith.cmpf ogt, %601, %680 : vector<16x128xf32>
    %682 = arith.extui %681 : vector<16x128xi1> to vector<16x128xi32>
    %683 = arith.sitofp %682 : vector<16x128xi32> to vector<16x128xf32>
    %cst_272 = arith.constant dense<0.000000e+00> : vector<128xf32>
    %684 = vector.multi_reduction <add>, %683, %cst_272 [0] : vector<16x128xf32> to vector<128xf32>
    %685 = vector.shape_cast %684 : vector<128xf32> to vector<1x128xf32>
    %686 = arith.mulf %601, %683 : vector<16x128xf32>
    %cst_273 = arith.constant dense<0.000000e+00> : vector<128xf32>
    %687 = vector.multi_reduction <add>, %686, %cst_273 [0] : vector<16x128xf32> to vector<128xf32>
    %688 = vector.shape_cast %687 : vector<128xf32> to vector<1x128xf32>
    %cst_274 = arith.constant 1.000000e+00 : f32
    %689 = vector.broadcast %cst_274 : f32 to vector<1x128xf32>
    %690 = arith.subf %688, %689 : vector<1x128xf32>
    %691 = arith.divf %690, %685 : vector<1x128xf32>
    %692 = vector.broadcast %691 : vector<1x128xf32> to vector<16x128xf32>
    %693 = arith.cmpf ogt, %601, %692 : vector<16x128xf32>
    %694 = arith.extui %693 : vector<16x128xi1> to vector<16x128xi32>
    %695 = arith.sitofp %694 : vector<16x128xi32> to vector<16x128xf32>
    %cst_275 = arith.constant dense<0.000000e+00> : vector<128xf32>
    %696 = vector.multi_reduction <add>, %695, %cst_275 [0] : vector<16x128xf32> to vector<128xf32>
    %697 = vector.shape_cast %696 : vector<128xf32> to vector<1x128xf32>
    %698 = arith.mulf %601, %695 : vector<16x128xf32>
    %cst_276 = arith.constant dense<0.000000e+00> : vector<128xf32>
    %699 = vector.multi_reduction <add>, %698, %cst_276 [0] : vector<16x128xf32> to vector<128xf32>
    %700 = vector.shape_cast %699 : vector<128xf32> to vector<1x128xf32>
    %cst_277 = arith.constant 1.000000e+00 : f32
    %701 = vector.broadcast %cst_277 : f32 to vector<1x128xf32>
    %702 = arith.subf %700, %701 : vector<1x128xf32>
    %703 = arith.divf %702, %697 : vector<1x128xf32>
    %704 = vector.broadcast %703 : vector<1x128xf32> to vector<16x128xf32>
    %705 = arith.cmpf ogt, %601, %704 : vector<16x128xf32>
    %706 = arith.extui %705 : vector<16x128xi1> to vector<16x128xi32>
    %707 = arith.sitofp %706 : vector<16x128xi32> to vector<16x128xf32>
    %cst_278 = arith.constant dense<0.000000e+00> : vector<128xf32>
    %708 = vector.multi_reduction <add>, %707, %cst_278 [0] : vector<16x128xf32> to vector<128xf32>
    %709 = vector.shape_cast %708 : vector<128xf32> to vector<1x128xf32>
    %710 = arith.mulf %601, %707 : vector<16x128xf32>
    %cst_279 = arith.constant dense<0.000000e+00> : vector<128xf32>
    %711 = vector.multi_reduction <add>, %710, %cst_279 [0] : vector<16x128xf32> to vector<128xf32>
    %712 = vector.shape_cast %711 : vector<128xf32> to vector<1x128xf32>
    %cst_280 = arith.constant 1.000000e+00 : f32
    %713 = vector.broadcast %cst_280 : f32 to vector<1x128xf32>
    %714 = arith.subf %712, %713 : vector<1x128xf32>
    %715 = arith.divf %714, %709 : vector<1x128xf32>
    %716 = vector.broadcast %715 : vector<1x128xf32> to vector<16x128xf32>
    %717 = arith.cmpf ogt, %601, %716 : vector<16x128xf32>
    %718 = arith.extui %717 : vector<16x128xi1> to vector<16x128xi32>
    %719 = arith.sitofp %718 : vector<16x128xi32> to vector<16x128xf32>
    %cst_281 = arith.constant dense<0.000000e+00> : vector<128xf32>
    %720 = vector.multi_reduction <add>, %719, %cst_281 [0] : vector<16x128xf32> to vector<128xf32>
    %721 = vector.shape_cast %720 : vector<128xf32> to vector<1x128xf32>
    %722 = arith.mulf %601, %719 : vector<16x128xf32>
    %cst_282 = arith.constant dense<0.000000e+00> : vector<128xf32>
    %723 = vector.multi_reduction <add>, %722, %cst_282 [0] : vector<16x128xf32> to vector<128xf32>
    %724 = vector.shape_cast %723 : vector<128xf32> to vector<1x128xf32>
    %cst_283 = arith.constant 1.000000e+00 : f32
    %725 = vector.broadcast %cst_283 : f32 to vector<1x128xf32>
    %726 = arith.subf %724, %725 : vector<1x128xf32>
    %727 = arith.divf %726, %721 : vector<1x128xf32>
    %728 = vector.broadcast %727 : vector<1x128xf32> to vector<16x128xf32>
    %729 = arith.cmpf ogt, %601, %728 : vector<16x128xf32>
    %730 = arith.extui %729 : vector<16x128xi1> to vector<16x128xi32>
    %731 = arith.sitofp %730 : vector<16x128xi32> to vector<16x128xf32>
    %cst_284 = arith.constant dense<0.000000e+00> : vector<128xf32>
    %732 = vector.multi_reduction <add>, %731, %cst_284 [0] : vector<16x128xf32> to vector<128xf32>
    %733 = vector.shape_cast %732 : vector<128xf32> to vector<1x128xf32>
    %734 = arith.mulf %601, %731 : vector<16x128xf32>
    %cst_285 = arith.constant dense<0.000000e+00> : vector<128xf32>
    %735 = vector.multi_reduction <add>, %734, %cst_285 [0] : vector<16x128xf32> to vector<128xf32>
    %736 = vector.shape_cast %735 : vector<128xf32> to vector<1x128xf32>
    %cst_286 = arith.constant 1.000000e+00 : f32
    %737 = vector.broadcast %cst_286 : f32 to vector<1x128xf32>
    %738 = arith.subf %736, %737 : vector<1x128xf32>
    %739 = arith.divf %738, %733 : vector<1x128xf32>
    %740 = vector.broadcast %739 : vector<1x128xf32> to vector<16x128xf32>
    %741 = arith.cmpf ogt, %601, %740 : vector<16x128xf32>
    %742 = arith.extui %741 : vector<16x128xi1> to vector<16x128xi32>
    %743 = arith.sitofp %742 : vector<16x128xi32> to vector<16x128xf32>
    %cst_287 = arith.constant dense<0.000000e+00> : vector<128xf32>
    %744 = vector.multi_reduction <add>, %743, %cst_287 [0] : vector<16x128xf32> to vector<128xf32>
    %745 = vector.shape_cast %744 : vector<128xf32> to vector<1x128xf32>
    %746 = arith.mulf %601, %743 : vector<16x128xf32>
    %cst_288 = arith.constant dense<0.000000e+00> : vector<128xf32>
    %747 = vector.multi_reduction <add>, %746, %cst_288 [0] : vector<16x128xf32> to vector<128xf32>
    %748 = vector.shape_cast %747 : vector<128xf32> to vector<1x128xf32>
    %cst_289 = arith.constant 1.000000e+00 : f32
    %749 = vector.broadcast %cst_289 : f32 to vector<1x128xf32>
    %750 = arith.subf %748, %749 : vector<1x128xf32>
    %751 = arith.divf %750, %745 : vector<1x128xf32>
    %752 = vector.broadcast %751 : vector<1x128xf32> to vector<16x128xf32>
    %753 = arith.cmpf ogt, %601, %752 : vector<16x128xf32>
    %754 = arith.extui %753 : vector<16x128xi1> to vector<16x128xi32>
    %755 = arith.sitofp %754 : vector<16x128xi32> to vector<16x128xf32>
    %cst_290 = arith.constant dense<0.000000e+00> : vector<128xf32>
    %756 = vector.multi_reduction <add>, %755, %cst_290 [0] : vector<16x128xf32> to vector<128xf32>
    %757 = vector.shape_cast %756 : vector<128xf32> to vector<1x128xf32>
    %758 = arith.mulf %601, %755 : vector<16x128xf32>
    %cst_291 = arith.constant dense<0.000000e+00> : vector<128xf32>
    %759 = vector.multi_reduction <add>, %758, %cst_291 [0] : vector<16x128xf32> to vector<128xf32>
    %760 = vector.shape_cast %759 : vector<128xf32> to vector<1x128xf32>
    %cst_292 = arith.constant 1.000000e+00 : f32
    %761 = vector.broadcast %cst_292 : f32 to vector<1x128xf32>
    %762 = arith.subf %760, %761 : vector<1x128xf32>
    %763 = arith.divf %762, %757 : vector<1x128xf32>
    %764 = vector.broadcast %763 : vector<1x128xf32> to vector<16x128xf32>
    %765 = arith.cmpf ogt, %601, %764 : vector<16x128xf32>
    %766 = arith.extui %765 : vector<16x128xi1> to vector<16x128xi32>
    %767 = arith.sitofp %766 : vector<16x128xi32> to vector<16x128xf32>
    %cst_293 = arith.constant dense<0.000000e+00> : vector<128xf32>
    %768 = vector.multi_reduction <add>, %767, %cst_293 [0] : vector<16x128xf32> to vector<128xf32>
    %769 = vector.shape_cast %768 : vector<128xf32> to vector<1x128xf32>
    %770 = arith.mulf %601, %767 : vector<16x128xf32>
    %cst_294 = arith.constant dense<0.000000e+00> : vector<128xf32>
    %771 = vector.multi_reduction <add>, %770, %cst_294 [0] : vector<16x128xf32> to vector<128xf32>
    %772 = vector.shape_cast %771 : vector<128xf32> to vector<1x128xf32>
    %cst_295 = arith.constant 1.000000e+00 : f32
    %773 = vector.broadcast %cst_295 : f32 to vector<1x128xf32>
    %774 = arith.subf %772, %773 : vector<1x128xf32>
    %775 = arith.divf %774, %769 : vector<1x128xf32>
    %776 = vector.broadcast %775 : vector<1x128xf32> to vector<16x128xf32>
    %777 = arith.cmpf ogt, %601, %776 : vector<16x128xf32>
    %778 = arith.extui %777 : vector<16x128xi1> to vector<16x128xi32>
    %779 = arith.sitofp %778 : vector<16x128xi32> to vector<16x128xf32>
    %cst_296 = arith.constant dense<0.000000e+00> : vector<128xf32>
    %780 = vector.multi_reduction <add>, %779, %cst_296 [0] : vector<16x128xf32> to vector<128xf32>
    %781 = vector.shape_cast %780 : vector<128xf32> to vector<1x128xf32>
    %782 = arith.mulf %601, %779 : vector<16x128xf32>
    %cst_297 = arith.constant dense<0.000000e+00> : vector<128xf32>
    %783 = vector.multi_reduction <add>, %782, %cst_297 [0] : vector<16x128xf32> to vector<128xf32>
    %784 = vector.shape_cast %783 : vector<128xf32> to vector<1x128xf32>
    %cst_298 = arith.constant 1.000000e+00 : f32
    %785 = vector.broadcast %cst_298 : f32 to vector<1x128xf32>
    %786 = arith.subf %784, %785 : vector<1x128xf32>
    %787 = arith.divf %786, %781 : vector<1x128xf32>
    %788 = vector.broadcast %787 : vector<1x128xf32> to vector<16x128xf32>
    %789 = arith.subf %601, %788 : vector<16x128xf32>
    %cst_299 = arith.constant 0.000000e+00 : f32
    %790 = vector.broadcast %cst_299 : f32 to vector<16x128xf32>
    %791 = arith.maximumf %789, %790 : vector<16x128xf32>
    %cst_300 = arith.constant 1.000000e-15 : f32
    %792 = vector.broadcast %cst_300 : f32 to vector<16x128xf32>
    %793 = arith.addf %791, %792 : vector<16x128xf32>
    %794 = math.log %793 : vector<16x128xf32>
    %795 = arith.mulf %791, %794 : vector<16x128xf32>
    %cst_301 = arith.constant dense<0.000000e+00> : vector<128xf32>
    %796 = vector.multi_reduction <add>, %795, %cst_301 [0] : vector<16x128xf32> to vector<128xf32>
    %797 = vector.shape_cast %796 : vector<128xf32> to vector<1x128xf32>
    %798 = arith.addf %401, %797 : vector<1x128xf32>
    %cst_302 = arith.constant 1.300000e+00 : f32
    %799 = vector.broadcast %cst_302 : f32 to vector<16x128xf32>
    %800 = arith.subf %799, %791 : vector<16x128xf32>
    %801 = arith.mulf %800, %404 : vector<16x128xf32>
    %802 = arith.mulf %791, %6 : vector<16x128xf32>
    %c2_303 = arith.constant 2 : index
    %c0_304 = arith.constant 0 : index
    %c0_305 = arith.constant 0 : index
    %c0_306 = arith.constant 0 : index
    %803 = vector.load %arg7[%c2_303, %c0_304, %c0_305, %c0_306] : memref<4x4x32x1xf32, #tpu.memory_space<vmem>>, vector<1x1x32x1xf32>
    %804 = vector.shape_cast %803 : vector<1x1x32x1xf32> to vector<32x1xf32>
    %c2_307 = arith.constant 2 : index
    %c0_308 = arith.constant 0 : index
    %c0_309 = arith.constant 0 : index
    %c0_310 = arith.constant 0 : index
    %805 = vector.load %arg8[%c2_307, %c0_308, %c0_309, %c0_310] : memref<4x4x32x1xf32, #tpu.memory_space<vmem>>, vector<1x1x32x1xf32>
    %806 = vector.shape_cast %805 : vector<1x1x32x1xf32> to vector<32x1xf32>
    %cst_311 = arith.constant dense<0.000000e+00> : vector<32x128xf32>
    %807 = tpu.matmul %7, %802, %cst_311 {dimension_numbers = #tpu.dot_dimension_numbers<[1], [0], [0], [1], [0, 0, 1, 1], [], []>} : vector<32x16xf32>, vector<16x128xf32>, vector<32x128xf32> -> vector<32x128xf32>
    %cst_312 = arith.constant dense<0.000000e+00> : vector<32xf32>
    %808 = vector.multi_reduction <add>, %807, %cst_312 [1] : vector<32x128xf32> to vector<32xf32>
    %809 = vector.shape_cast %808 : vector<32xf32> to vector<32x1xf32>
    %cst_313 = arith.constant 1.280000e+02 : f32
    %810 = vector.broadcast %cst_313 : f32 to vector<32x1xf32>
    %811 = arith.divf %809, %810 : vector<32x1xf32>
    %812 = vector.broadcast %811 : vector<32x1xf32> to vector<32x128xf32>
    %813 = arith.subf %807, %812 : vector<32x128xf32>
    %814 = arith.mulf %813, %813 : vector<32x128xf32>
    %cst_314 = arith.constant dense<0.000000e+00> : vector<32xf32>
    %815 = vector.multi_reduction <add>, %814, %cst_314 [1] : vector<32x128xf32> to vector<32xf32>
    %816 = vector.shape_cast %815 : vector<32xf32> to vector<32x1xf32>
    %cst_315 = arith.constant 1.280000e+02 : f32
    %817 = vector.broadcast %cst_315 : f32 to vector<32x1xf32>
    %818 = arith.divf %816, %817 : vector<32x1xf32>
    %819 = vector.broadcast %811 : vector<32x1xf32> to vector<32x128xf32>
    %820 = arith.subf %807, %819 : vector<32x128xf32>
    %cst_316 = arith.constant 9.99999974E-6 : f32
    %821 = vector.broadcast %cst_316 : f32 to vector<32x1xf32>
    %822 = arith.addf %818, %821 : vector<32x1xf32>
    %823 = math.rsqrt %822 : vector<32x1xf32>
    %824 = vector.broadcast %823 : vector<32x1xf32> to vector<32x128xf32>
    %825 = arith.mulf %820, %824 : vector<32x128xf32>
    %826 = vector.broadcast %804 : vector<32x1xf32> to vector<32x128xf32>
    %827 = arith.mulf %825, %826 : vector<32x128xf32>
    %828 = vector.broadcast %806 : vector<32x1xf32> to vector<32x128xf32>
    %829 = arith.addf %827, %828 : vector<32x128xf32>
    %830 = vector.extract_strided_slice %829 {offsets = [16, 0], sizes = [16, 128], strides = [1, 1]} : vector<32x128xf32> to vector<16x128xf32>
    %cst_317 = arith.constant 0.000000e+00 : f32
    %831 = vector.broadcast %cst_317 : f32 to vector<16x128xf32>
    %832 = arith.subf %831, %830 : vector<16x128xf32>
    %833 = math.exp %832 : vector<16x128xf32>
    %cst_318 = arith.constant 1.000000e+00 : f32
    %834 = vector.broadcast %cst_318 : f32 to vector<16x128xf32>
    %835 = arith.addf %834, %833 : vector<16x128xf32>
    %cst_319 = arith.constant 1.000000e+00 : f32
    %836 = vector.broadcast %cst_319 : f32 to vector<16x128xf32>
    %837 = arith.divf %836, %835 : vector<16x128xf32>
    %838 = vector.extract_strided_slice %829 {offsets = [0, 0], sizes = [16, 128], strides = [1, 1]} : vector<32x128xf32> to vector<16x128xf32>
    %839 = arith.mulf %838, %837 : vector<16x128xf32>
    %c2_320 = arith.constant 2 : index
    %c1_321 = arith.constant 1 : index
    %c0_322 = arith.constant 0 : index
    %c0_323 = arith.constant 0 : index
    %840 = vector.load %arg7[%c2_320, %c1_321, %c0_322, %c0_323] : memref<4x4x32x1xf32, #tpu.memory_space<vmem>>, vector<1x1x32x1xf32>
    %841 = vector.shape_cast %840 : vector<1x1x32x1xf32> to vector<32x1xf32>
    %c2_324 = arith.constant 2 : index
    %c1_325 = arith.constant 1 : index
    %c0_326 = arith.constant 0 : index
    %c0_327 = arith.constant 0 : index
    %842 = vector.load %arg8[%c2_324, %c1_325, %c0_326, %c0_327] : memref<4x4x32x1xf32, #tpu.memory_space<vmem>>, vector<1x1x32x1xf32>
    %843 = vector.shape_cast %842 : vector<1x1x32x1xf32> to vector<32x1xf32>
    %cst_328 = arith.constant dense<0.000000e+00> : vector<32x128xf32>
    %844 = tpu.matmul %8, %839, %cst_328 {dimension_numbers = #tpu.dot_dimension_numbers<[1], [0], [0], [1], [0, 0, 1, 1], [], []>} : vector<32x16xf32>, vector<16x128xf32>, vector<32x128xf32> -> vector<32x128xf32>
    %cst_329 = arith.constant dense<0.000000e+00> : vector<32xf32>
    %845 = vector.multi_reduction <add>, %844, %cst_329 [1] : vector<32x128xf32> to vector<32xf32>
    %846 = vector.shape_cast %845 : vector<32xf32> to vector<32x1xf32>
    %cst_330 = arith.constant 1.280000e+02 : f32
    %847 = vector.broadcast %cst_330 : f32 to vector<32x1xf32>
    %848 = arith.divf %846, %847 : vector<32x1xf32>
    %849 = vector.broadcast %848 : vector<32x1xf32> to vector<32x128xf32>
    %850 = arith.subf %844, %849 : vector<32x128xf32>
    %851 = arith.mulf %850, %850 : vector<32x128xf32>
    %cst_331 = arith.constant dense<0.000000e+00> : vector<32xf32>
    %852 = vector.multi_reduction <add>, %851, %cst_331 [1] : vector<32x128xf32> to vector<32xf32>
    %853 = vector.shape_cast %852 : vector<32xf32> to vector<32x1xf32>
    %cst_332 = arith.constant 1.280000e+02 : f32
    %854 = vector.broadcast %cst_332 : f32 to vector<32x1xf32>
    %855 = arith.divf %853, %854 : vector<32x1xf32>
    %856 = vector.broadcast %848 : vector<32x1xf32> to vector<32x128xf32>
    %857 = arith.subf %844, %856 : vector<32x128xf32>
    %cst_333 = arith.constant 9.99999974E-6 : f32
    %858 = vector.broadcast %cst_333 : f32 to vector<32x1xf32>
    %859 = arith.addf %855, %858 : vector<32x1xf32>
    %860 = math.rsqrt %859 : vector<32x1xf32>
    %861 = vector.broadcast %860 : vector<32x1xf32> to vector<32x128xf32>
    %862 = arith.mulf %857, %861 : vector<32x128xf32>
    %863 = vector.broadcast %841 : vector<32x1xf32> to vector<32x128xf32>
    %864 = arith.mulf %862, %863 : vector<32x128xf32>
    %865 = vector.broadcast %843 : vector<32x1xf32> to vector<32x128xf32>
    %866 = arith.addf %864, %865 : vector<32x128xf32>
    %867 = vector.extract_strided_slice %866 {offsets = [16, 0], sizes = [16, 128], strides = [1, 1]} : vector<32x128xf32> to vector<16x128xf32>
    %cst_334 = arith.constant 0.000000e+00 : f32
    %868 = vector.broadcast %cst_334 : f32 to vector<16x128xf32>
    %869 = arith.subf %868, %867 : vector<16x128xf32>
    %870 = math.exp %869 : vector<16x128xf32>
    %cst_335 = arith.constant 1.000000e+00 : f32
    %871 = vector.broadcast %cst_335 : f32 to vector<16x128xf32>
    %872 = arith.addf %871, %870 : vector<16x128xf32>
    %cst_336 = arith.constant 1.000000e+00 : f32
    %873 = vector.broadcast %cst_336 : f32 to vector<16x128xf32>
    %874 = arith.divf %873, %872 : vector<16x128xf32>
    %875 = vector.extract_strided_slice %866 {offsets = [0, 0], sizes = [16, 128], strides = [1, 1]} : vector<32x128xf32> to vector<16x128xf32>
    %876 = arith.mulf %875, %874 : vector<16x128xf32>
    %877 = arith.addf %839, %876 : vector<16x128xf32>
    %cst_337 = arith.constant 0.707106769 : f32
    %878 = vector.broadcast %cst_337 : f32 to vector<16x128xf32>
    %879 = arith.mulf %877, %878 : vector<16x128xf32>
    %c2_338 = arith.constant 2 : index
    %c0_339 = arith.constant 0 : index
    %c0_340 = arith.constant 0 : index
    %c0_341 = arith.constant 0 : index
    %880 = vector.load %arg6[%c2_338, %c0_339, %c0_340, %c0_341] : memref<4x2x32x16xf32, #tpu.memory_space<vmem>>, vector<1x1x32x16xf32>
    %881 = vector.shape_cast %880 : vector<1x1x32x16xf32> to vector<32x16xf32>
    %c2_342 = arith.constant 2 : index
    %c2_343 = arith.constant 2 : index
    %c0_344 = arith.constant 0 : index
    %c0_345 = arith.constant 0 : index
    %882 = vector.load %arg7[%c2_342, %c2_343, %c0_344, %c0_345] : memref<4x4x32x1xf32, #tpu.memory_space<vmem>>, vector<1x1x32x1xf32>
    %883 = vector.shape_cast %882 : vector<1x1x32x1xf32> to vector<32x1xf32>
    %c2_346 = arith.constant 2 : index
    %c2_347 = arith.constant 2 : index
    %c0_348 = arith.constant 0 : index
    %c0_349 = arith.constant 0 : index
    %884 = vector.load %arg8[%c2_346, %c2_347, %c0_348, %c0_349] : memref<4x4x32x1xf32, #tpu.memory_space<vmem>>, vector<1x1x32x1xf32>
    %885 = vector.shape_cast %884 : vector<1x1x32x1xf32> to vector<32x1xf32>
    %cst_350 = arith.constant dense<0.000000e+00> : vector<32x128xf32>
    %886 = tpu.matmul %881, %879, %cst_350 {dimension_numbers = #tpu.dot_dimension_numbers<[1], [0], [0], [1], [0, 0, 1, 1], [], []>} : vector<32x16xf32>, vector<16x128xf32>, vector<32x128xf32> -> vector<32x128xf32>
    %cst_351 = arith.constant dense<0.000000e+00> : vector<32xf32>
    %887 = vector.multi_reduction <add>, %886, %cst_351 [1] : vector<32x128xf32> to vector<32xf32>
    %888 = vector.shape_cast %887 : vector<32xf32> to vector<32x1xf32>
    %cst_352 = arith.constant 1.280000e+02 : f32
    %889 = vector.broadcast %cst_352 : f32 to vector<32x1xf32>
    %890 = arith.divf %888, %889 : vector<32x1xf32>
    %891 = vector.broadcast %890 : vector<32x1xf32> to vector<32x128xf32>
    %892 = arith.subf %886, %891 : vector<32x128xf32>
    %893 = arith.mulf %892, %892 : vector<32x128xf32>
    %cst_353 = arith.constant dense<0.000000e+00> : vector<32xf32>
    %894 = vector.multi_reduction <add>, %893, %cst_353 [1] : vector<32x128xf32> to vector<32xf32>
    %895 = vector.shape_cast %894 : vector<32xf32> to vector<32x1xf32>
    %cst_354 = arith.constant 1.280000e+02 : f32
    %896 = vector.broadcast %cst_354 : f32 to vector<32x1xf32>
    %897 = arith.divf %895, %896 : vector<32x1xf32>
    %898 = vector.broadcast %890 : vector<32x1xf32> to vector<32x128xf32>
    %899 = arith.subf %886, %898 : vector<32x128xf32>
    %cst_355 = arith.constant 9.99999974E-6 : f32
    %900 = vector.broadcast %cst_355 : f32 to vector<32x1xf32>
    %901 = arith.addf %897, %900 : vector<32x1xf32>
    %902 = math.rsqrt %901 : vector<32x1xf32>
    %903 = vector.broadcast %902 : vector<32x1xf32> to vector<32x128xf32>
    %904 = arith.mulf %899, %903 : vector<32x128xf32>
    %905 = vector.broadcast %883 : vector<32x1xf32> to vector<32x128xf32>
    %906 = arith.mulf %904, %905 : vector<32x128xf32>
    %907 = vector.broadcast %885 : vector<32x1xf32> to vector<32x128xf32>
    %908 = arith.addf %906, %907 : vector<32x128xf32>
    %909 = vector.extract_strided_slice %908 {offsets = [16, 0], sizes = [16, 128], strides = [1, 1]} : vector<32x128xf32> to vector<16x128xf32>
    %cst_356 = arith.constant 0.000000e+00 : f32
    %910 = vector.broadcast %cst_356 : f32 to vector<16x128xf32>
    %911 = arith.subf %910, %909 : vector<16x128xf32>
    %912 = math.exp %911 : vector<16x128xf32>
    %cst_357 = arith.constant 1.000000e+00 : f32
    %913 = vector.broadcast %cst_357 : f32 to vector<16x128xf32>
    %914 = arith.addf %913, %912 : vector<16x128xf32>
    %cst_358 = arith.constant 1.000000e+00 : f32
    %915 = vector.broadcast %cst_358 : f32 to vector<16x128xf32>
    %916 = arith.divf %915, %914 : vector<16x128xf32>
    %917 = vector.extract_strided_slice %908 {offsets = [0, 0], sizes = [16, 128], strides = [1, 1]} : vector<32x128xf32> to vector<16x128xf32>
    %918 = arith.mulf %917, %916 : vector<16x128xf32>
    %919 = arith.addf %879, %918 : vector<16x128xf32>
    %cst_359 = arith.constant 0.707106769 : f32
    %920 = vector.broadcast %cst_359 : f32 to vector<16x128xf32>
    %921 = arith.mulf %919, %920 : vector<16x128xf32>
    %c2_360 = arith.constant 2 : index
    %c1_361 = arith.constant 1 : index
    %c0_362 = arith.constant 0 : index
    %c0_363 = arith.constant 0 : index
    %922 = vector.load %arg6[%c2_360, %c1_361, %c0_362, %c0_363] : memref<4x2x32x16xf32, #tpu.memory_space<vmem>>, vector<1x1x32x16xf32>
    %923 = vector.shape_cast %922 : vector<1x1x32x16xf32> to vector<32x16xf32>
    %c2_364 = arith.constant 2 : index
    %c3_365 = arith.constant 3 : index
    %c0_366 = arith.constant 0 : index
    %c0_367 = arith.constant 0 : index
    %924 = vector.load %arg7[%c2_364, %c3_365, %c0_366, %c0_367] : memref<4x4x32x1xf32, #tpu.memory_space<vmem>>, vector<1x1x32x1xf32>
    %925 = vector.shape_cast %924 : vector<1x1x32x1xf32> to vector<32x1xf32>
    %c2_368 = arith.constant 2 : index
    %c3_369 = arith.constant 3 : index
    %c0_370 = arith.constant 0 : index
    %c0_371 = arith.constant 0 : index
    %926 = vector.load %arg8[%c2_368, %c3_369, %c0_370, %c0_371] : memref<4x4x32x1xf32, #tpu.memory_space<vmem>>, vector<1x1x32x1xf32>
    %927 = vector.shape_cast %926 : vector<1x1x32x1xf32> to vector<32x1xf32>
    %cst_372 = arith.constant dense<0.000000e+00> : vector<32x128xf32>
    %928 = tpu.matmul %923, %921, %cst_372 {dimension_numbers = #tpu.dot_dimension_numbers<[1], [0], [0], [1], [0, 0, 1, 1], [], []>} : vector<32x16xf32>, vector<16x128xf32>, vector<32x128xf32> -> vector<32x128xf32>
    %cst_373 = arith.constant dense<0.000000e+00> : vector<32xf32>
    %929 = vector.multi_reduction <add>, %928, %cst_373 [1] : vector<32x128xf32> to vector<32xf32>
    %930 = vector.shape_cast %929 : vector<32xf32> to vector<32x1xf32>
    %cst_374 = arith.constant 1.280000e+02 : f32
    %931 = vector.broadcast %cst_374 : f32 to vector<32x1xf32>
    %932 = arith.divf %930, %931 : vector<32x1xf32>
    %933 = vector.broadcast %932 : vector<32x1xf32> to vector<32x128xf32>
    %934 = arith.subf %928, %933 : vector<32x128xf32>
    %935 = arith.mulf %934, %934 : vector<32x128xf32>
    %cst_375 = arith.constant dense<0.000000e+00> : vector<32xf32>
    %936 = vector.multi_reduction <add>, %935, %cst_375 [1] : vector<32x128xf32> to vector<32xf32>
    %937 = vector.shape_cast %936 : vector<32xf32> to vector<32x1xf32>
    %cst_376 = arith.constant 1.280000e+02 : f32
    %938 = vector.broadcast %cst_376 : f32 to vector<32x1xf32>
    %939 = arith.divf %937, %938 : vector<32x1xf32>
    %940 = vector.broadcast %932 : vector<32x1xf32> to vector<32x128xf32>
    %941 = arith.subf %928, %940 : vector<32x128xf32>
    %cst_377 = arith.constant 9.99999974E-6 : f32
    %942 = vector.broadcast %cst_377 : f32 to vector<32x1xf32>
    %943 = arith.addf %939, %942 : vector<32x1xf32>
    %944 = math.rsqrt %943 : vector<32x1xf32>
    %945 = vector.broadcast %944 : vector<32x1xf32> to vector<32x128xf32>
    %946 = arith.mulf %941, %945 : vector<32x128xf32>
    %947 = vector.broadcast %925 : vector<32x1xf32> to vector<32x128xf32>
    %948 = arith.mulf %946, %947 : vector<32x128xf32>
    %949 = vector.broadcast %927 : vector<32x1xf32> to vector<32x128xf32>
    %950 = arith.addf %948, %949 : vector<32x128xf32>
    %951 = vector.extract_strided_slice %950 {offsets = [16, 0], sizes = [16, 128], strides = [1, 1]} : vector<32x128xf32> to vector<16x128xf32>
    %cst_378 = arith.constant 0.000000e+00 : f32
    %952 = vector.broadcast %cst_378 : f32 to vector<16x128xf32>
    %953 = arith.subf %952, %951 : vector<16x128xf32>
    %954 = math.exp %953 : vector<16x128xf32>
    %cst_379 = arith.constant 1.000000e+00 : f32
    %955 = vector.broadcast %cst_379 : f32 to vector<16x128xf32>
    %956 = arith.addf %955, %954 : vector<16x128xf32>
    %cst_380 = arith.constant 1.000000e+00 : f32
    %957 = vector.broadcast %cst_380 : f32 to vector<16x128xf32>
    %958 = arith.divf %957, %956 : vector<16x128xf32>
    %959 = vector.extract_strided_slice %950 {offsets = [0, 0], sizes = [16, 128], strides = [1, 1]} : vector<32x128xf32> to vector<16x128xf32>
    %960 = arith.mulf %959, %958 : vector<16x128xf32>
    %961 = arith.addf %921, %960 : vector<16x128xf32>
    %cst_381 = arith.constant 0.707106769 : f32
    %962 = vector.broadcast %cst_381 : f32 to vector<16x128xf32>
    %963 = arith.mulf %961, %962 : vector<16x128xf32>
    %964 = vector.extract_strided_slice %963 {offsets = [0, 0], sizes = [8, 128], strides = [1, 1]} : vector<16x128xf32> to vector<8x128xf32>
    %cst_382 = arith.constant 0.000000e+00 : f32
    %965 = vector.broadcast %cst_382 : f32 to vector<8x128xf32>
    %966 = arith.maximumf %964, %965 : vector<8x128xf32>
    %967 = arith.addf %570, %966 : vector<8x128xf32>
    %968 = vector.extract_strided_slice %963 {offsets = [8, 0], sizes = [8, 128], strides = [1, 1]} : vector<16x128xf32> to vector<8x128xf32>
    %c2_383 = arith.constant 2 : index
    %c0_384 = arith.constant 0 : index
    %c0_385 = arith.constant 0 : index
    %969 = vector.load %arg9[%c2_383, %c0_384, %c0_385] : memref<3x16x8xf32, #tpu.memory_space<vmem>>, vector<1x16x8xf32>
    %970 = vector.shape_cast %969 : vector<1x16x8xf32> to vector<16x8xf32>
    %cst_386 = arith.constant dense<0.000000e+00> : vector<16x128xf32>
    %971 = tpu.matmul %970, %968, %cst_386 {dimension_numbers = #tpu.dot_dimension_numbers<[1], [0], [0], [1], [0, 0, 1, 1], [], []>} : vector<16x8xf32>, vector<8x128xf32>, vector<16x128xf32> -> vector<16x128xf32>
    %c2_387 = arith.constant 2 : index
    %c0_388 = arith.constant 0 : index
    %c0_389 = arith.constant 0 : index
    %972 = vector.load %arg10[%c2_387, %c0_388, %c0_389] : memref<3x16x1xf32, #tpu.memory_space<vmem>>, vector<1x16x1xf32>
    %973 = vector.shape_cast %972 : vector<1x16x1xf32> to vector<16x1xf32>
    %c2_390 = arith.constant 2 : index
    %c0_391 = arith.constant 0 : index
    %c0_392 = arith.constant 0 : index
    %974 = vector.load %arg11[%c2_390, %c0_391, %c0_392] : memref<3x16x1xf32, #tpu.memory_space<vmem>>, vector<1x16x1xf32>
    %975 = vector.shape_cast %974 : vector<1x16x1xf32> to vector<16x1xf32>
    %cst_393 = arith.constant dense<0.000000e+00> : vector<16xf32>
    %976 = vector.multi_reduction <add>, %971, %cst_393 [1] : vector<16x128xf32> to vector<16xf32>
    %977 = vector.shape_cast %976 : vector<16xf32> to vector<16x1xf32>
    %cst_394 = arith.constant 1.280000e+02 : f32
    %978 = vector.broadcast %cst_394 : f32 to vector<16x1xf32>
    %979 = arith.divf %977, %978 : vector<16x1xf32>
    %980 = vector.broadcast %979 : vector<16x1xf32> to vector<16x128xf32>
    %981 = arith.subf %971, %980 : vector<16x128xf32>
    %982 = arith.mulf %981, %981 : vector<16x128xf32>
    %cst_395 = arith.constant dense<0.000000e+00> : vector<16xf32>
    %983 = vector.multi_reduction <add>, %982, %cst_395 [1] : vector<16x128xf32> to vector<16xf32>
    %984 = vector.shape_cast %983 : vector<16xf32> to vector<16x1xf32>
    %cst_396 = arith.constant 1.280000e+02 : f32
    %985 = vector.broadcast %cst_396 : f32 to vector<16x1xf32>
    %986 = arith.divf %984, %985 : vector<16x1xf32>
    %987 = vector.broadcast %979 : vector<16x1xf32> to vector<16x128xf32>
    %988 = arith.subf %971, %987 : vector<16x128xf32>
    %cst_397 = arith.constant 9.99999974E-6 : f32
    %989 = vector.broadcast %cst_397 : f32 to vector<16x1xf32>
    %990 = arith.addf %986, %989 : vector<16x1xf32>
    %991 = math.rsqrt %990 : vector<16x1xf32>
    %992 = vector.broadcast %991 : vector<16x1xf32> to vector<16x128xf32>
    %993 = arith.mulf %988, %992 : vector<16x128xf32>
    %994 = vector.broadcast %973 : vector<16x1xf32> to vector<16x128xf32>
    %995 = arith.mulf %993, %994 : vector<16x128xf32>
    %996 = vector.broadcast %975 : vector<16x1xf32> to vector<16x128xf32>
    %997 = arith.addf %995, %996 : vector<16x128xf32>
    %998 = arith.mulf %997, %801 : vector<16x128xf32>
    %cst_398 = arith.constant dense<0.000000e+00> : vector<128xf32>
    %999 = vector.multi_reduction <add>, %998, %cst_398 [0] : vector<16x128xf32> to vector<128xf32>
    %1000 = vector.shape_cast %999 : vector<128xf32> to vector<1x128xf32>
    %cst_399 = arith.constant 1.000000e+00 : f32
    %1001 = vector.broadcast %cst_399 : f32 to vector<1x128xf32>
    %1002 = arith.subf %1000, %1001 : vector<1x128xf32>
    %cst_400 = arith.constant 6.250000e-02 : f32
    %1003 = vector.broadcast %cst_400 : f32 to vector<1x128xf32>
    %1004 = arith.mulf %1002, %1003 : vector<1x128xf32>
    %1005 = vector.broadcast %1004 : vector<1x128xf32> to vector<16x128xf32>
    %1006 = arith.cmpf ogt, %998, %1005 : vector<16x128xf32>
    %1007 = arith.extui %1006 : vector<16x128xi1> to vector<16x128xi32>
    %1008 = arith.sitofp %1007 : vector<16x128xi32> to vector<16x128xf32>
    %cst_401 = arith.constant dense<0.000000e+00> : vector<128xf32>
    %1009 = vector.multi_reduction <add>, %1008, %cst_401 [0] : vector<16x128xf32> to vector<128xf32>
    %1010 = vector.shape_cast %1009 : vector<128xf32> to vector<1x128xf32>
    %1011 = arith.mulf %998, %1008 : vector<16x128xf32>
    %cst_402 = arith.constant dense<0.000000e+00> : vector<128xf32>
    %1012 = vector.multi_reduction <add>, %1011, %cst_402 [0] : vector<16x128xf32> to vector<128xf32>
    %1013 = vector.shape_cast %1012 : vector<128xf32> to vector<1x128xf32>
    %cst_403 = arith.constant 1.000000e+00 : f32
    %1014 = vector.broadcast %cst_403 : f32 to vector<1x128xf32>
    %1015 = arith.subf %1013, %1014 : vector<1x128xf32>
    %1016 = arith.divf %1015, %1010 : vector<1x128xf32>
    %1017 = vector.broadcast %1016 : vector<1x128xf32> to vector<16x128xf32>
    %1018 = arith.cmpf ogt, %998, %1017 : vector<16x128xf32>
    %1019 = arith.extui %1018 : vector<16x128xi1> to vector<16x128xi32>
    %1020 = arith.sitofp %1019 : vector<16x128xi32> to vector<16x128xf32>
    %cst_404 = arith.constant dense<0.000000e+00> : vector<128xf32>
    %1021 = vector.multi_reduction <add>, %1020, %cst_404 [0] : vector<16x128xf32> to vector<128xf32>
    %1022 = vector.shape_cast %1021 : vector<128xf32> to vector<1x128xf32>
    %1023 = arith.mulf %998, %1020 : vector<16x128xf32>
    %cst_405 = arith.constant dense<0.000000e+00> : vector<128xf32>
    %1024 = vector.multi_reduction <add>, %1023, %cst_405 [0] : vector<16x128xf32> to vector<128xf32>
    %1025 = vector.shape_cast %1024 : vector<128xf32> to vector<1x128xf32>
    %cst_406 = arith.constant 1.000000e+00 : f32
    %1026 = vector.broadcast %cst_406 : f32 to vector<1x128xf32>
    %1027 = arith.subf %1025, %1026 : vector<1x128xf32>
    %1028 = arith.divf %1027, %1022 : vector<1x128xf32>
    %1029 = vector.broadcast %1028 : vector<1x128xf32> to vector<16x128xf32>
    %1030 = arith.cmpf ogt, %998, %1029 : vector<16x128xf32>
    %1031 = arith.extui %1030 : vector<16x128xi1> to vector<16x128xi32>
    %1032 = arith.sitofp %1031 : vector<16x128xi32> to vector<16x128xf32>
    %cst_407 = arith.constant dense<0.000000e+00> : vector<128xf32>
    %1033 = vector.multi_reduction <add>, %1032, %cst_407 [0] : vector<16x128xf32> to vector<128xf32>
    %1034 = vector.shape_cast %1033 : vector<128xf32> to vector<1x128xf32>
    %1035 = arith.mulf %998, %1032 : vector<16x128xf32>
    %cst_408 = arith.constant dense<0.000000e+00> : vector<128xf32>
    %1036 = vector.multi_reduction <add>, %1035, %cst_408 [0] : vector<16x128xf32> to vector<128xf32>
    %1037 = vector.shape_cast %1036 : vector<128xf32> to vector<1x128xf32>
    %cst_409 = arith.constant 1.000000e+00 : f32
    %1038 = vector.broadcast %cst_409 : f32 to vector<1x128xf32>
    %1039 = arith.subf %1037, %1038 : vector<1x128xf32>
    %1040 = arith.divf %1039, %1034 : vector<1x128xf32>
    %1041 = vector.broadcast %1040 : vector<1x128xf32> to vector<16x128xf32>
    %1042 = arith.cmpf ogt, %998, %1041 : vector<16x128xf32>
    %1043 = arith.extui %1042 : vector<16x128xi1> to vector<16x128xi32>
    %1044 = arith.sitofp %1043 : vector<16x128xi32> to vector<16x128xf32>
    %cst_410 = arith.constant dense<0.000000e+00> : vector<128xf32>
    %1045 = vector.multi_reduction <add>, %1044, %cst_410 [0] : vector<16x128xf32> to vector<128xf32>
    %1046 = vector.shape_cast %1045 : vector<128xf32> to vector<1x128xf32>
    %1047 = arith.mulf %998, %1044 : vector<16x128xf32>
    %cst_411 = arith.constant dense<0.000000e+00> : vector<128xf32>
    %1048 = vector.multi_reduction <add>, %1047, %cst_411 [0] : vector<16x128xf32> to vector<128xf32>
    %1049 = vector.shape_cast %1048 : vector<128xf32> to vector<1x128xf32>
    %cst_412 = arith.constant 1.000000e+00 : f32
    %1050 = vector.broadcast %cst_412 : f32 to vector<1x128xf32>
    %1051 = arith.subf %1049, %1050 : vector<1x128xf32>
    %1052 = arith.divf %1051, %1046 : vector<1x128xf32>
    %1053 = vector.broadcast %1052 : vector<1x128xf32> to vector<16x128xf32>
    %1054 = arith.cmpf ogt, %998, %1053 : vector<16x128xf32>
    %1055 = arith.extui %1054 : vector<16x128xi1> to vector<16x128xi32>
    %1056 = arith.sitofp %1055 : vector<16x128xi32> to vector<16x128xf32>
    %cst_413 = arith.constant dense<0.000000e+00> : vector<128xf32>
    %1057 = vector.multi_reduction <add>, %1056, %cst_413 [0] : vector<16x128xf32> to vector<128xf32>
    %1058 = vector.shape_cast %1057 : vector<128xf32> to vector<1x128xf32>
    %1059 = arith.mulf %998, %1056 : vector<16x128xf32>
    %cst_414 = arith.constant dense<0.000000e+00> : vector<128xf32>
    %1060 = vector.multi_reduction <add>, %1059, %cst_414 [0] : vector<16x128xf32> to vector<128xf32>
    %1061 = vector.shape_cast %1060 : vector<128xf32> to vector<1x128xf32>
    %cst_415 = arith.constant 1.000000e+00 : f32
    %1062 = vector.broadcast %cst_415 : f32 to vector<1x128xf32>
    %1063 = arith.subf %1061, %1062 : vector<1x128xf32>
    %1064 = arith.divf %1063, %1058 : vector<1x128xf32>
    %1065 = vector.broadcast %1064 : vector<1x128xf32> to vector<16x128xf32>
    %1066 = arith.cmpf ogt, %998, %1065 : vector<16x128xf32>
    %1067 = arith.extui %1066 : vector<16x128xi1> to vector<16x128xi32>
    %1068 = arith.sitofp %1067 : vector<16x128xi32> to vector<16x128xf32>
    %cst_416 = arith.constant dense<0.000000e+00> : vector<128xf32>
    %1069 = vector.multi_reduction <add>, %1068, %cst_416 [0] : vector<16x128xf32> to vector<128xf32>
    %1070 = vector.shape_cast %1069 : vector<128xf32> to vector<1x128xf32>
    %1071 = arith.mulf %998, %1068 : vector<16x128xf32>
    %cst_417 = arith.constant dense<0.000000e+00> : vector<128xf32>
    %1072 = vector.multi_reduction <add>, %1071, %cst_417 [0] : vector<16x128xf32> to vector<128xf32>
    %1073 = vector.shape_cast %1072 : vector<128xf32> to vector<1x128xf32>
    %cst_418 = arith.constant 1.000000e+00 : f32
    %1074 = vector.broadcast %cst_418 : f32 to vector<1x128xf32>
    %1075 = arith.subf %1073, %1074 : vector<1x128xf32>
    %1076 = arith.divf %1075, %1070 : vector<1x128xf32>
    %1077 = vector.broadcast %1076 : vector<1x128xf32> to vector<16x128xf32>
    %1078 = arith.cmpf ogt, %998, %1077 : vector<16x128xf32>
    %1079 = arith.extui %1078 : vector<16x128xi1> to vector<16x128xi32>
    %1080 = arith.sitofp %1079 : vector<16x128xi32> to vector<16x128xf32>
    %cst_419 = arith.constant dense<0.000000e+00> : vector<128xf32>
    %1081 = vector.multi_reduction <add>, %1080, %cst_419 [0] : vector<16x128xf32> to vector<128xf32>
    %1082 = vector.shape_cast %1081 : vector<128xf32> to vector<1x128xf32>
    %1083 = arith.mulf %998, %1080 : vector<16x128xf32>
    %cst_420 = arith.constant dense<0.000000e+00> : vector<128xf32>
    %1084 = vector.multi_reduction <add>, %1083, %cst_420 [0] : vector<16x128xf32> to vector<128xf32>
    %1085 = vector.shape_cast %1084 : vector<128xf32> to vector<1x128xf32>
    %cst_421 = arith.constant 1.000000e+00 : f32
    %1086 = vector.broadcast %cst_421 : f32 to vector<1x128xf32>
    %1087 = arith.subf %1085, %1086 : vector<1x128xf32>
    %1088 = arith.divf %1087, %1082 : vector<1x128xf32>
    %1089 = vector.broadcast %1088 : vector<1x128xf32> to vector<16x128xf32>
    %1090 = arith.cmpf ogt, %998, %1089 : vector<16x128xf32>
    %1091 = arith.extui %1090 : vector<16x128xi1> to vector<16x128xi32>
    %1092 = arith.sitofp %1091 : vector<16x128xi32> to vector<16x128xf32>
    %cst_422 = arith.constant dense<0.000000e+00> : vector<128xf32>
    %1093 = vector.multi_reduction <add>, %1092, %cst_422 [0] : vector<16x128xf32> to vector<128xf32>
    %1094 = vector.shape_cast %1093 : vector<128xf32> to vector<1x128xf32>
    %1095 = arith.mulf %998, %1092 : vector<16x128xf32>
    %cst_423 = arith.constant dense<0.000000e+00> : vector<128xf32>
    %1096 = vector.multi_reduction <add>, %1095, %cst_423 [0] : vector<16x128xf32> to vector<128xf32>
    %1097 = vector.shape_cast %1096 : vector<128xf32> to vector<1x128xf32>
    %cst_424 = arith.constant 1.000000e+00 : f32
    %1098 = vector.broadcast %cst_424 : f32 to vector<1x128xf32>
    %1099 = arith.subf %1097, %1098 : vector<1x128xf32>
    %1100 = arith.divf %1099, %1094 : vector<1x128xf32>
    %1101 = vector.broadcast %1100 : vector<1x128xf32> to vector<16x128xf32>
    %1102 = arith.cmpf ogt, %998, %1101 : vector<16x128xf32>
    %1103 = arith.extui %1102 : vector<16x128xi1> to vector<16x128xi32>
    %1104 = arith.sitofp %1103 : vector<16x128xi32> to vector<16x128xf32>
    %cst_425 = arith.constant dense<0.000000e+00> : vector<128xf32>
    %1105 = vector.multi_reduction <add>, %1104, %cst_425 [0] : vector<16x128xf32> to vector<128xf32>
    %1106 = vector.shape_cast %1105 : vector<128xf32> to vector<1x128xf32>
    %1107 = arith.mulf %998, %1104 : vector<16x128xf32>
    %cst_426 = arith.constant dense<0.000000e+00> : vector<128xf32>
    %1108 = vector.multi_reduction <add>, %1107, %cst_426 [0] : vector<16x128xf32> to vector<128xf32>
    %1109 = vector.shape_cast %1108 : vector<128xf32> to vector<1x128xf32>
    %cst_427 = arith.constant 1.000000e+00 : f32
    %1110 = vector.broadcast %cst_427 : f32 to vector<1x128xf32>
    %1111 = arith.subf %1109, %1110 : vector<1x128xf32>
    %1112 = arith.divf %1111, %1106 : vector<1x128xf32>
    %1113 = vector.broadcast %1112 : vector<1x128xf32> to vector<16x128xf32>
    %1114 = arith.cmpf ogt, %998, %1113 : vector<16x128xf32>
    %1115 = arith.extui %1114 : vector<16x128xi1> to vector<16x128xi32>
    %1116 = arith.sitofp %1115 : vector<16x128xi32> to vector<16x128xf32>
    %cst_428 = arith.constant dense<0.000000e+00> : vector<128xf32>
    %1117 = vector.multi_reduction <add>, %1116, %cst_428 [0] : vector<16x128xf32> to vector<128xf32>
    %1118 = vector.shape_cast %1117 : vector<128xf32> to vector<1x128xf32>
    %1119 = arith.mulf %998, %1116 : vector<16x128xf32>
    %cst_429 = arith.constant dense<0.000000e+00> : vector<128xf32>
    %1120 = vector.multi_reduction <add>, %1119, %cst_429 [0] : vector<16x128xf32> to vector<128xf32>
    %1121 = vector.shape_cast %1120 : vector<128xf32> to vector<1x128xf32>
    %cst_430 = arith.constant 1.000000e+00 : f32
    %1122 = vector.broadcast %cst_430 : f32 to vector<1x128xf32>
    %1123 = arith.subf %1121, %1122 : vector<1x128xf32>
    %1124 = arith.divf %1123, %1118 : vector<1x128xf32>
    %1125 = vector.broadcast %1124 : vector<1x128xf32> to vector<16x128xf32>
    %1126 = arith.cmpf ogt, %998, %1125 : vector<16x128xf32>
    %1127 = arith.extui %1126 : vector<16x128xi1> to vector<16x128xi32>
    %1128 = arith.sitofp %1127 : vector<16x128xi32> to vector<16x128xf32>
    %cst_431 = arith.constant dense<0.000000e+00> : vector<128xf32>
    %1129 = vector.multi_reduction <add>, %1128, %cst_431 [0] : vector<16x128xf32> to vector<128xf32>
    %1130 = vector.shape_cast %1129 : vector<128xf32> to vector<1x128xf32>
    %1131 = arith.mulf %998, %1128 : vector<16x128xf32>
    %cst_432 = arith.constant dense<0.000000e+00> : vector<128xf32>
    %1132 = vector.multi_reduction <add>, %1131, %cst_432 [0] : vector<16x128xf32> to vector<128xf32>
    %1133 = vector.shape_cast %1132 : vector<128xf32> to vector<1x128xf32>
    %cst_433 = arith.constant 1.000000e+00 : f32
    %1134 = vector.broadcast %cst_433 : f32 to vector<1x128xf32>
    %1135 = arith.subf %1133, %1134 : vector<1x128xf32>
    %1136 = arith.divf %1135, %1130 : vector<1x128xf32>
    %1137 = vector.broadcast %1136 : vector<1x128xf32> to vector<16x128xf32>
    %1138 = arith.cmpf ogt, %998, %1137 : vector<16x128xf32>
    %1139 = arith.extui %1138 : vector<16x128xi1> to vector<16x128xi32>
    %1140 = arith.sitofp %1139 : vector<16x128xi32> to vector<16x128xf32>
    %cst_434 = arith.constant dense<0.000000e+00> : vector<128xf32>
    %1141 = vector.multi_reduction <add>, %1140, %cst_434 [0] : vector<16x128xf32> to vector<128xf32>
    %1142 = vector.shape_cast %1141 : vector<128xf32> to vector<1x128xf32>
    %1143 = arith.mulf %998, %1140 : vector<16x128xf32>
    %cst_435 = arith.constant dense<0.000000e+00> : vector<128xf32>
    %1144 = vector.multi_reduction <add>, %1143, %cst_435 [0] : vector<16x128xf32> to vector<128xf32>
    %1145 = vector.shape_cast %1144 : vector<128xf32> to vector<1x128xf32>
    %cst_436 = arith.constant 1.000000e+00 : f32
    %1146 = vector.broadcast %cst_436 : f32 to vector<1x128xf32>
    %1147 = arith.subf %1145, %1146 : vector<1x128xf32>
    %1148 = arith.divf %1147, %1142 : vector<1x128xf32>
    %1149 = vector.broadcast %1148 : vector<1x128xf32> to vector<16x128xf32>
    %1150 = arith.cmpf ogt, %998, %1149 : vector<16x128xf32>
    %1151 = arith.extui %1150 : vector<16x128xi1> to vector<16x128xi32>
    %1152 = arith.sitofp %1151 : vector<16x128xi32> to vector<16x128xf32>
    %cst_437 = arith.constant dense<0.000000e+00> : vector<128xf32>
    %1153 = vector.multi_reduction <add>, %1152, %cst_437 [0] : vector<16x128xf32> to vector<128xf32>
    %1154 = vector.shape_cast %1153 : vector<128xf32> to vector<1x128xf32>
    %1155 = arith.mulf %998, %1152 : vector<16x128xf32>
    %cst_438 = arith.constant dense<0.000000e+00> : vector<128xf32>
    %1156 = vector.multi_reduction <add>, %1155, %cst_438 [0] : vector<16x128xf32> to vector<128xf32>
    %1157 = vector.shape_cast %1156 : vector<128xf32> to vector<1x128xf32>
    %cst_439 = arith.constant 1.000000e+00 : f32
    %1158 = vector.broadcast %cst_439 : f32 to vector<1x128xf32>
    %1159 = arith.subf %1157, %1158 : vector<1x128xf32>
    %1160 = arith.divf %1159, %1154 : vector<1x128xf32>
    %1161 = vector.broadcast %1160 : vector<1x128xf32> to vector<16x128xf32>
    %1162 = arith.cmpf ogt, %998, %1161 : vector<16x128xf32>
    %1163 = arith.extui %1162 : vector<16x128xi1> to vector<16x128xi32>
    %1164 = arith.sitofp %1163 : vector<16x128xi32> to vector<16x128xf32>
    %cst_440 = arith.constant dense<0.000000e+00> : vector<128xf32>
    %1165 = vector.multi_reduction <add>, %1164, %cst_440 [0] : vector<16x128xf32> to vector<128xf32>
    %1166 = vector.shape_cast %1165 : vector<128xf32> to vector<1x128xf32>
    %1167 = arith.mulf %998, %1164 : vector<16x128xf32>
    %cst_441 = arith.constant dense<0.000000e+00> : vector<128xf32>
    %1168 = vector.multi_reduction <add>, %1167, %cst_441 [0] : vector<16x128xf32> to vector<128xf32>
    %1169 = vector.shape_cast %1168 : vector<128xf32> to vector<1x128xf32>
    %cst_442 = arith.constant 1.000000e+00 : f32
    %1170 = vector.broadcast %cst_442 : f32 to vector<1x128xf32>
    %1171 = arith.subf %1169, %1170 : vector<1x128xf32>
    %1172 = arith.divf %1171, %1166 : vector<1x128xf32>
    %1173 = vector.broadcast %1172 : vector<1x128xf32> to vector<16x128xf32>
    %1174 = arith.cmpf ogt, %998, %1173 : vector<16x128xf32>
    %1175 = arith.extui %1174 : vector<16x128xi1> to vector<16x128xi32>
    %1176 = arith.sitofp %1175 : vector<16x128xi32> to vector<16x128xf32>
    %cst_443 = arith.constant dense<0.000000e+00> : vector<128xf32>
    %1177 = vector.multi_reduction <add>, %1176, %cst_443 [0] : vector<16x128xf32> to vector<128xf32>
    %1178 = vector.shape_cast %1177 : vector<128xf32> to vector<1x128xf32>
    %1179 = arith.mulf %998, %1176 : vector<16x128xf32>
    %cst_444 = arith.constant dense<0.000000e+00> : vector<128xf32>
    %1180 = vector.multi_reduction <add>, %1179, %cst_444 [0] : vector<16x128xf32> to vector<128xf32>
    %1181 = vector.shape_cast %1180 : vector<128xf32> to vector<1x128xf32>
    %cst_445 = arith.constant 1.000000e+00 : f32
    %1182 = vector.broadcast %cst_445 : f32 to vector<1x128xf32>
    %1183 = arith.subf %1181, %1182 : vector<1x128xf32>
    %1184 = arith.divf %1183, %1178 : vector<1x128xf32>
    %1185 = vector.broadcast %1184 : vector<1x128xf32> to vector<16x128xf32>
    %1186 = arith.subf %998, %1185 : vector<16x128xf32>
    %cst_446 = arith.constant 0.000000e+00 : f32
    %1187 = vector.broadcast %cst_446 : f32 to vector<16x128xf32>
    %1188 = arith.maximumf %1186, %1187 : vector<16x128xf32>
    %cst_447 = arith.constant 1.000000e-15 : f32
    %1189 = vector.broadcast %cst_447 : f32 to vector<16x128xf32>
    %1190 = arith.addf %1188, %1189 : vector<16x128xf32>
    %1191 = math.log %1190 : vector<16x128xf32>
    %1192 = arith.mulf %1188, %1191 : vector<16x128xf32>
    %cst_448 = arith.constant dense<0.000000e+00> : vector<128xf32>
    %1193 = vector.multi_reduction <add>, %1192, %cst_448 [0] : vector<16x128xf32> to vector<128xf32>
    %1194 = vector.shape_cast %1193 : vector<128xf32> to vector<1x128xf32>
    %1195 = arith.addf %798, %1194 : vector<1x128xf32>
    %1196 = arith.mulf %1188, %6 : vector<16x128xf32>
    %c3_449 = arith.constant 3 : index
    %c0_450 = arith.constant 0 : index
    %c0_451 = arith.constant 0 : index
    %c0_452 = arith.constant 0 : index
    %1197 = vector.load %arg7[%c3_449, %c0_450, %c0_451, %c0_452] : memref<4x4x32x1xf32, #tpu.memory_space<vmem>>, vector<1x1x32x1xf32>
    %1198 = vector.shape_cast %1197 : vector<1x1x32x1xf32> to vector<32x1xf32>
    %c3_453 = arith.constant 3 : index
    %c0_454 = arith.constant 0 : index
    %c0_455 = arith.constant 0 : index
    %c0_456 = arith.constant 0 : index
    %1199 = vector.load %arg8[%c3_453, %c0_454, %c0_455, %c0_456] : memref<4x4x32x1xf32, #tpu.memory_space<vmem>>, vector<1x1x32x1xf32>
    %1200 = vector.shape_cast %1199 : vector<1x1x32x1xf32> to vector<32x1xf32>
    %cst_457 = arith.constant dense<0.000000e+00> : vector<32x128xf32>
    %1201 = tpu.matmul %7, %1196, %cst_457 {dimension_numbers = #tpu.dot_dimension_numbers<[1], [0], [0], [1], [0, 0, 1, 1], [], []>} : vector<32x16xf32>, vector<16x128xf32>, vector<32x128xf32> -> vector<32x128xf32>
    %cst_458 = arith.constant dense<0.000000e+00> : vector<32xf32>
    %1202 = vector.multi_reduction <add>, %1201, %cst_458 [1] : vector<32x128xf32> to vector<32xf32>
    %1203 = vector.shape_cast %1202 : vector<32xf32> to vector<32x1xf32>
    %cst_459 = arith.constant 1.280000e+02 : f32
    %1204 = vector.broadcast %cst_459 : f32 to vector<32x1xf32>
    %1205 = arith.divf %1203, %1204 : vector<32x1xf32>
    %1206 = vector.broadcast %1205 : vector<32x1xf32> to vector<32x128xf32>
    %1207 = arith.subf %1201, %1206 : vector<32x128xf32>
    %1208 = arith.mulf %1207, %1207 : vector<32x128xf32>
    %cst_460 = arith.constant dense<0.000000e+00> : vector<32xf32>
    %1209 = vector.multi_reduction <add>, %1208, %cst_460 [1] : vector<32x128xf32> to vector<32xf32>
    %1210 = vector.shape_cast %1209 : vector<32xf32> to vector<32x1xf32>
    %cst_461 = arith.constant 1.280000e+02 : f32
    %1211 = vector.broadcast %cst_461 : f32 to vector<32x1xf32>
    %1212 = arith.divf %1210, %1211 : vector<32x1xf32>
    %1213 = vector.broadcast %1205 : vector<32x1xf32> to vector<32x128xf32>
    %1214 = arith.subf %1201, %1213 : vector<32x128xf32>
    %cst_462 = arith.constant 9.99999974E-6 : f32
    %1215 = vector.broadcast %cst_462 : f32 to vector<32x1xf32>
    %1216 = arith.addf %1212, %1215 : vector<32x1xf32>
    %1217 = math.rsqrt %1216 : vector<32x1xf32>
    %1218 = vector.broadcast %1217 : vector<32x1xf32> to vector<32x128xf32>
    %1219 = arith.mulf %1214, %1218 : vector<32x128xf32>
    %1220 = vector.broadcast %1198 : vector<32x1xf32> to vector<32x128xf32>
    %1221 = arith.mulf %1219, %1220 : vector<32x128xf32>
    %1222 = vector.broadcast %1200 : vector<32x1xf32> to vector<32x128xf32>
    %1223 = arith.addf %1221, %1222 : vector<32x128xf32>
    %1224 = vector.extract_strided_slice %1223 {offsets = [16, 0], sizes = [16, 128], strides = [1, 1]} : vector<32x128xf32> to vector<16x128xf32>
    %cst_463 = arith.constant 0.000000e+00 : f32
    %1225 = vector.broadcast %cst_463 : f32 to vector<16x128xf32>
    %1226 = arith.subf %1225, %1224 : vector<16x128xf32>
    %1227 = math.exp %1226 : vector<16x128xf32>
    %cst_464 = arith.constant 1.000000e+00 : f32
    %1228 = vector.broadcast %cst_464 : f32 to vector<16x128xf32>
    %1229 = arith.addf %1228, %1227 : vector<16x128xf32>
    %cst_465 = arith.constant 1.000000e+00 : f32
    %1230 = vector.broadcast %cst_465 : f32 to vector<16x128xf32>
    %1231 = arith.divf %1230, %1229 : vector<16x128xf32>
    %1232 = vector.extract_strided_slice %1223 {offsets = [0, 0], sizes = [16, 128], strides = [1, 1]} : vector<32x128xf32> to vector<16x128xf32>
    %1233 = arith.mulf %1232, %1231 : vector<16x128xf32>
    %c3_466 = arith.constant 3 : index
    %c1_467 = arith.constant 1 : index
    %c0_468 = arith.constant 0 : index
    %c0_469 = arith.constant 0 : index
    %1234 = vector.load %arg7[%c3_466, %c1_467, %c0_468, %c0_469] : memref<4x4x32x1xf32, #tpu.memory_space<vmem>>, vector<1x1x32x1xf32>
    %1235 = vector.shape_cast %1234 : vector<1x1x32x1xf32> to vector<32x1xf32>
    %c3_470 = arith.constant 3 : index
    %c1_471 = arith.constant 1 : index
    %c0_472 = arith.constant 0 : index
    %c0_473 = arith.constant 0 : index
    %1236 = vector.load %arg8[%c3_470, %c1_471, %c0_472, %c0_473] : memref<4x4x32x1xf32, #tpu.memory_space<vmem>>, vector<1x1x32x1xf32>
    %1237 = vector.shape_cast %1236 : vector<1x1x32x1xf32> to vector<32x1xf32>
    %cst_474 = arith.constant dense<0.000000e+00> : vector<32x128xf32>
    %1238 = tpu.matmul %8, %1233, %cst_474 {dimension_numbers = #tpu.dot_dimension_numbers<[1], [0], [0], [1], [0, 0, 1, 1], [], []>} : vector<32x16xf32>, vector<16x128xf32>, vector<32x128xf32> -> vector<32x128xf32>
    %cst_475 = arith.constant dense<0.000000e+00> : vector<32xf32>
    %1239 = vector.multi_reduction <add>, %1238, %cst_475 [1] : vector<32x128xf32> to vector<32xf32>
    %1240 = vector.shape_cast %1239 : vector<32xf32> to vector<32x1xf32>
    %cst_476 = arith.constant 1.280000e+02 : f32
    %1241 = vector.broadcast %cst_476 : f32 to vector<32x1xf32>
    %1242 = arith.divf %1240, %1241 : vector<32x1xf32>
    %1243 = vector.broadcast %1242 : vector<32x1xf32> to vector<32x128xf32>
    %1244 = arith.subf %1238, %1243 : vector<32x128xf32>
    %1245 = arith.mulf %1244, %1244 : vector<32x128xf32>
    %cst_477 = arith.constant dense<0.000000e+00> : vector<32xf32>
    %1246 = vector.multi_reduction <add>, %1245, %cst_477 [1] : vector<32x128xf32> to vector<32xf32>
    %1247 = vector.shape_cast %1246 : vector<32xf32> to vector<32x1xf32>
    %cst_478 = arith.constant 1.280000e+02 : f32
    %1248 = vector.broadcast %cst_478 : f32 to vector<32x1xf32>
    %1249 = arith.divf %1247, %1248 : vector<32x1xf32>
    %1250 = vector.broadcast %1242 : vector<32x1xf32> to vector<32x128xf32>
    %1251 = arith.subf %1238, %1250 : vector<32x128xf32>
    %cst_479 = arith.constant 9.99999974E-6 : f32
    %1252 = vector.broadcast %cst_479 : f32 to vector<32x1xf32>
    %1253 = arith.addf %1249, %1252 : vector<32x1xf32>
    %1254 = math.rsqrt %1253 : vector<32x1xf32>
    %1255 = vector.broadcast %1254 : vector<32x1xf32> to vector<32x128xf32>
    %1256 = arith.mulf %1251, %1255 : vector<32x128xf32>
    %1257 = vector.broadcast %1235 : vector<32x1xf32> to vector<32x128xf32>
    %1258 = arith.mulf %1256, %1257 : vector<32x128xf32>
    %1259 = vector.broadcast %1237 : vector<32x1xf32> to vector<32x128xf32>
    %1260 = arith.addf %1258, %1259 : vector<32x128xf32>
    %1261 = vector.extract_strided_slice %1260 {offsets = [16, 0], sizes = [16, 128], strides = [1, 1]} : vector<32x128xf32> to vector<16x128xf32>
    %cst_480 = arith.constant 0.000000e+00 : f32
    %1262 = vector.broadcast %cst_480 : f32 to vector<16x128xf32>
    %1263 = arith.subf %1262, %1261 : vector<16x128xf32>
    %1264 = math.exp %1263 : vector<16x128xf32>
    %cst_481 = arith.constant 1.000000e+00 : f32
    %1265 = vector.broadcast %cst_481 : f32 to vector<16x128xf32>
    %1266 = arith.addf %1265, %1264 : vector<16x128xf32>
    %cst_482 = arith.constant 1.000000e+00 : f32
    %1267 = vector.broadcast %cst_482 : f32 to vector<16x128xf32>
    %1268 = arith.divf %1267, %1266 : vector<16x128xf32>
    %1269 = vector.extract_strided_slice %1260 {offsets = [0, 0], sizes = [16, 128], strides = [1, 1]} : vector<32x128xf32> to vector<16x128xf32>
    %1270 = arith.mulf %1269, %1268 : vector<16x128xf32>
    %1271 = arith.addf %1233, %1270 : vector<16x128xf32>
    %cst_483 = arith.constant 0.707106769 : f32
    %1272 = vector.broadcast %cst_483 : f32 to vector<16x128xf32>
    %1273 = arith.mulf %1271, %1272 : vector<16x128xf32>
    %c3_484 = arith.constant 3 : index
    %c0_485 = arith.constant 0 : index
    %c0_486 = arith.constant 0 : index
    %c0_487 = arith.constant 0 : index
    %1274 = vector.load %arg6[%c3_484, %c0_485, %c0_486, %c0_487] : memref<4x2x32x16xf32, #tpu.memory_space<vmem>>, vector<1x1x32x16xf32>
    %1275 = vector.shape_cast %1274 : vector<1x1x32x16xf32> to vector<32x16xf32>
    %c3_488 = arith.constant 3 : index
    %c2_489 = arith.constant 2 : index
    %c0_490 = arith.constant 0 : index
    %c0_491 = arith.constant 0 : index
    %1276 = vector.load %arg7[%c3_488, %c2_489, %c0_490, %c0_491] : memref<4x4x32x1xf32, #tpu.memory_space<vmem>>, vector<1x1x32x1xf32>
    %1277 = vector.shape_cast %1276 : vector<1x1x32x1xf32> to vector<32x1xf32>
    %c3_492 = arith.constant 3 : index
    %c2_493 = arith.constant 2 : index
    %c0_494 = arith.constant 0 : index
    %c0_495 = arith.constant 0 : index
    %1278 = vector.load %arg8[%c3_492, %c2_493, %c0_494, %c0_495] : memref<4x4x32x1xf32, #tpu.memory_space<vmem>>, vector<1x1x32x1xf32>
    %1279 = vector.shape_cast %1278 : vector<1x1x32x1xf32> to vector<32x1xf32>
    %cst_496 = arith.constant dense<0.000000e+00> : vector<32x128xf32>
    %1280 = tpu.matmul %1275, %1273, %cst_496 {dimension_numbers = #tpu.dot_dimension_numbers<[1], [0], [0], [1], [0, 0, 1, 1], [], []>} : vector<32x16xf32>, vector<16x128xf32>, vector<32x128xf32> -> vector<32x128xf32>
    %cst_497 = arith.constant dense<0.000000e+00> : vector<32xf32>
    %1281 = vector.multi_reduction <add>, %1280, %cst_497 [1] : vector<32x128xf32> to vector<32xf32>
    %1282 = vector.shape_cast %1281 : vector<32xf32> to vector<32x1xf32>
    %cst_498 = arith.constant 1.280000e+02 : f32
    %1283 = vector.broadcast %cst_498 : f32 to vector<32x1xf32>
    %1284 = arith.divf %1282, %1283 : vector<32x1xf32>
    %1285 = vector.broadcast %1284 : vector<32x1xf32> to vector<32x128xf32>
    %1286 = arith.subf %1280, %1285 : vector<32x128xf32>
    %1287 = arith.mulf %1286, %1286 : vector<32x128xf32>
    %cst_499 = arith.constant dense<0.000000e+00> : vector<32xf32>
    %1288 = vector.multi_reduction <add>, %1287, %cst_499 [1] : vector<32x128xf32> to vector<32xf32>
    %1289 = vector.shape_cast %1288 : vector<32xf32> to vector<32x1xf32>
    %cst_500 = arith.constant 1.280000e+02 : f32
    %1290 = vector.broadcast %cst_500 : f32 to vector<32x1xf32>
    %1291 = arith.divf %1289, %1290 : vector<32x1xf32>
    %1292 = vector.broadcast %1284 : vector<32x1xf32> to vector<32x128xf32>
    %1293 = arith.subf %1280, %1292 : vector<32x128xf32>
    %cst_501 = arith.constant 9.99999974E-6 : f32
    %1294 = vector.broadcast %cst_501 : f32 to vector<32x1xf32>
    %1295 = arith.addf %1291, %1294 : vector<32x1xf32>
    %1296 = math.rsqrt %1295 : vector<32x1xf32>
    %1297 = vector.broadcast %1296 : vector<32x1xf32> to vector<32x128xf32>
    %1298 = arith.mulf %1293, %1297 : vector<32x128xf32>
    %1299 = vector.broadcast %1277 : vector<32x1xf32> to vector<32x128xf32>
    %1300 = arith.mulf %1298, %1299 : vector<32x128xf32>
    %1301 = vector.broadcast %1279 : vector<32x1xf32> to vector<32x128xf32>
    %1302 = arith.addf %1300, %1301 : vector<32x128xf32>
    %1303 = vector.extract_strided_slice %1302 {offsets = [16, 0], sizes = [16, 128], strides = [1, 1]} : vector<32x128xf32> to vector<16x128xf32>
    %cst_502 = arith.constant 0.000000e+00 : f32
    %1304 = vector.broadcast %cst_502 : f32 to vector<16x128xf32>
    %1305 = arith.subf %1304, %1303 : vector<16x128xf32>
    %1306 = math.exp %1305 : vector<16x128xf32>
    %cst_503 = arith.constant 1.000000e+00 : f32
    %1307 = vector.broadcast %cst_503 : f32 to vector<16x128xf32>
    %1308 = arith.addf %1307, %1306 : vector<16x128xf32>
    %cst_504 = arith.constant 1.000000e+00 : f32
    %1309 = vector.broadcast %cst_504 : f32 to vector<16x128xf32>
    %1310 = arith.divf %1309, %1308 : vector<16x128xf32>
    %1311 = vector.extract_strided_slice %1302 {offsets = [0, 0], sizes = [16, 128], strides = [1, 1]} : vector<32x128xf32> to vector<16x128xf32>
    %1312 = arith.mulf %1311, %1310 : vector<16x128xf32>
    %1313 = arith.addf %1273, %1312 : vector<16x128xf32>
    %cst_505 = arith.constant 0.707106769 : f32
    %1314 = vector.broadcast %cst_505 : f32 to vector<16x128xf32>
    %1315 = arith.mulf %1313, %1314 : vector<16x128xf32>
    %c3_506 = arith.constant 3 : index
    %c1_507 = arith.constant 1 : index
    %c0_508 = arith.constant 0 : index
    %c0_509 = arith.constant 0 : index
    %1316 = vector.load %arg6[%c3_506, %c1_507, %c0_508, %c0_509] : memref<4x2x32x16xf32, #tpu.memory_space<vmem>>, vector<1x1x32x16xf32>
    %1317 = vector.shape_cast %1316 : vector<1x1x32x16xf32> to vector<32x16xf32>
    %c3_510 = arith.constant 3 : index
    %c3_511 = arith.constant 3 : index
    %c0_512 = arith.constant 0 : index
    %c0_513 = arith.constant 0 : index
    %1318 = vector.load %arg7[%c3_510, %c3_511, %c0_512, %c0_513] : memref<4x4x32x1xf32, #tpu.memory_space<vmem>>, vector<1x1x32x1xf32>
    %1319 = vector.shape_cast %1318 : vector<1x1x32x1xf32> to vector<32x1xf32>
    %c3_514 = arith.constant 3 : index
    %c3_515 = arith.constant 3 : index
    %c0_516 = arith.constant 0 : index
    %c0_517 = arith.constant 0 : index
    %1320 = vector.load %arg8[%c3_514, %c3_515, %c0_516, %c0_517] : memref<4x4x32x1xf32, #tpu.memory_space<vmem>>, vector<1x1x32x1xf32>
    %1321 = vector.shape_cast %1320 : vector<1x1x32x1xf32> to vector<32x1xf32>
    %cst_518 = arith.constant dense<0.000000e+00> : vector<32x128xf32>
    %1322 = tpu.matmul %1317, %1315, %cst_518 {dimension_numbers = #tpu.dot_dimension_numbers<[1], [0], [0], [1], [0, 0, 1, 1], [], []>} : vector<32x16xf32>, vector<16x128xf32>, vector<32x128xf32> -> vector<32x128xf32>
    %cst_519 = arith.constant dense<0.000000e+00> : vector<32xf32>
    %1323 = vector.multi_reduction <add>, %1322, %cst_519 [1] : vector<32x128xf32> to vector<32xf32>
    %1324 = vector.shape_cast %1323 : vector<32xf32> to vector<32x1xf32>
    %cst_520 = arith.constant 1.280000e+02 : f32
    %1325 = vector.broadcast %cst_520 : f32 to vector<32x1xf32>
    %1326 = arith.divf %1324, %1325 : vector<32x1xf32>
    %1327 = vector.broadcast %1326 : vector<32x1xf32> to vector<32x128xf32>
    %1328 = arith.subf %1322, %1327 : vector<32x128xf32>
    %1329 = arith.mulf %1328, %1328 : vector<32x128xf32>
    %cst_521 = arith.constant dense<0.000000e+00> : vector<32xf32>
    %1330 = vector.multi_reduction <add>, %1329, %cst_521 [1] : vector<32x128xf32> to vector<32xf32>
    %1331 = vector.shape_cast %1330 : vector<32xf32> to vector<32x1xf32>
    %cst_522 = arith.constant 1.280000e+02 : f32
    %1332 = vector.broadcast %cst_522 : f32 to vector<32x1xf32>
    %1333 = arith.divf %1331, %1332 : vector<32x1xf32>
    %1334 = vector.broadcast %1326 : vector<32x1xf32> to vector<32x128xf32>
    %1335 = arith.subf %1322, %1334 : vector<32x128xf32>
    %cst_523 = arith.constant 9.99999974E-6 : f32
    %1336 = vector.broadcast %cst_523 : f32 to vector<32x1xf32>
    %1337 = arith.addf %1333, %1336 : vector<32x1xf32>
    %1338 = math.rsqrt %1337 : vector<32x1xf32>
    %1339 = vector.broadcast %1338 : vector<32x1xf32> to vector<32x128xf32>
    %1340 = arith.mulf %1335, %1339 : vector<32x128xf32>
    %1341 = vector.broadcast %1319 : vector<32x1xf32> to vector<32x128xf32>
    %1342 = arith.mulf %1340, %1341 : vector<32x128xf32>
    %1343 = vector.broadcast %1321 : vector<32x1xf32> to vector<32x128xf32>
    %1344 = arith.addf %1342, %1343 : vector<32x128xf32>
    %1345 = vector.extract_strided_slice %1344 {offsets = [16, 0], sizes = [16, 128], strides = [1, 1]} : vector<32x128xf32> to vector<16x128xf32>
    %cst_524 = arith.constant 0.000000e+00 : f32
    %1346 = vector.broadcast %cst_524 : f32 to vector<16x128xf32>
    %1347 = arith.subf %1346, %1345 : vector<16x128xf32>
    %1348 = math.exp %1347 : vector<16x128xf32>
    %cst_525 = arith.constant 1.000000e+00 : f32
    %1349 = vector.broadcast %cst_525 : f32 to vector<16x128xf32>
    %1350 = arith.addf %1349, %1348 : vector<16x128xf32>
    %cst_526 = arith.constant 1.000000e+00 : f32
    %1351 = vector.broadcast %cst_526 : f32 to vector<16x128xf32>
    %1352 = arith.divf %1351, %1350 : vector<16x128xf32>
    %1353 = vector.extract_strided_slice %1344 {offsets = [0, 0], sizes = [16, 128], strides = [1, 1]} : vector<32x128xf32> to vector<16x128xf32>
    %1354 = arith.mulf %1353, %1352 : vector<16x128xf32>
    %1355 = arith.addf %1315, %1354 : vector<16x128xf32>
    %cst_527 = arith.constant 0.707106769 : f32
    %1356 = vector.broadcast %cst_527 : f32 to vector<16x128xf32>
    %1357 = arith.mulf %1355, %1356 : vector<16x128xf32>
    %1358 = vector.extract_strided_slice %1357 {offsets = [0, 0], sizes = [8, 128], strides = [1, 1]} : vector<16x128xf32> to vector<8x128xf32>
    %cst_528 = arith.constant 0.000000e+00 : f32
    %1359 = vector.broadcast %cst_528 : f32 to vector<8x128xf32>
    %1360 = arith.maximumf %1358, %1359 : vector<8x128xf32>
    %1361 = arith.addf %967, %1360 : vector<8x128xf32>
    %cst_529 = arith.constant dense<0.000000e+00> : vector<4x128xf32>
    %1362 = tpu.matmul %9, %1361, %cst_529 {dimension_numbers = #tpu.dot_dimension_numbers<[1], [0], [0], [1], [0, 0, 1, 1], [], []>} : vector<4x8xf32>, vector<8x128xf32>, vector<4x128xf32> -> vector<4x128xf32>
    %c0_530 = arith.constant 0 : index
    %c0_531 = arith.constant 0 : index
    %1363 = vector.load %arg13[%c0_530, %c0_531] : memref<4x128xf32, #tpu.memory_space<vmem>>, vector<4x128xf32>
    tpu.vector_store %arg13[%c0_530, %c0_531], %1362 {strides = array<i32>} : memref<4x128xf32, #tpu.memory_space<vmem>>, vector<4x128xf32>,
    %cst_532 = arith.constant 0.333333343 : f32
    %1364 = vector.broadcast %cst_532 : f32 to vector<1x128xf32>
    %1365 = arith.mulf %1195, %1364 : vector<1x128xf32>
    %c0_533 = arith.constant 0 : index
    %c0_534 = arith.constant 0 : index
    %1366 = vector.load %arg14[%c0_533, %c0_534] : memref<1x128xf32, #tpu.memory_space<vmem>>, vector<1x128xf32>
    tpu.vector_store %arg14[%c0_533, %c0_534], %1365 {strides = array<i32>} : memref<1x128xf32, #tpu.memory_space<vmem>>, vector<1x128xf32>,
    return
  }
  func.func @transform_0(%arg0: i32) -> (i32, i32) {
    %c0_i32 = arith.constant 0 : i32
    %c0_i32_0 = arith.constant 0 : i32
    return %c0_i32, %arg0 : i32, i32
  }
  func.func @transform_1(%arg0: i32) -> (i32, i32) {
    %c0_i32 = arith.constant 0 : i32
    %c0_i32_0 = arith.constant 0 : i32
    %c0_i32_1 = arith.constant 0 : i32
    return %c0_i32, %c0_i32_0 : i32, i32
  }
  func.func @transform_2(%arg0: i32) -> (i32, i32) {
    %c0_i32 = arith.constant 0 : i32
    %c0_i32_0 = arith.constant 0 : i32
    %c0_i32_1 = arith.constant 0 : i32
    return %c0_i32, %c0_i32_0 : i32, i32
  }
  func.func @transform_3(%arg0: i32) -> (i32, i32) {
    %c0_i32 = arith.constant 0 : i32
    %c0_i32_0 = arith.constant 0 : i32
    %c0_i32_1 = arith.constant 0 : i32
    return %c0_i32, %c0_i32_0 : i32, i32
  }
  func.func @transform_4(%arg0: i32) -> (i32, i32) {
    %c0_i32 = arith.constant 0 : i32
    %c0_i32_0 = arith.constant 0 : i32
    %c0_i32_1 = arith.constant 0 : i32
    return %c0_i32, %c0_i32_0 : i32, i32
  }
  func.func @transform_5(%arg0: i32) -> (i32, i32, i32, i32) {
    %c0_i32 = arith.constant 0 : i32
    %c0_i32_0 = arith.constant 0 : i32
    %c0_i32_1 = arith.constant 0 : i32
    %c0_i32_2 = arith.constant 0 : i32
    %c0_i32_3 = arith.constant 0 : i32
    return %c0_i32, %c0_i32_0, %c0_i32_1, %c0_i32_2 : i32, i32, i32, i32
  }
  func.func @transform_6(%arg0: i32) -> (i32, i32, i32, i32) {
    %c0_i32 = arith.constant 0 : i32
    %c0_i32_0 = arith.constant 0 : i32
    %c0_i32_1 = arith.constant 0 : i32
    %c0_i32_2 = arith.constant 0 : i32
    %c0_i32_3 = arith.constant 0 : i32
    return %c0_i32, %c0_i32_0, %c0_i32_1, %c0_i32_2 : i32, i32, i32, i32
  }
  func.func @transform_7(%arg0: i32) -> (i32, i32, i32, i32) {
    %c0_i32 = arith.constant 0 : i32
    %c0_i32_0 = arith.constant 0 : i32
    %c0_i32_1 = arith.constant 0 : i32
    %c0_i32_2 = arith.constant 0 : i32
    %c0_i32_3 = arith.constant 0 : i32
    return %c0_i32, %c0_i32_0, %c0_i32_1, %c0_i32_2 : i32, i32, i32, i32
  }
  func.func @transform_8(%arg0: i32) -> (i32, i32, i32) {
    %c0_i32 = arith.constant 0 : i32
    %c0_i32_0 = arith.constant 0 : i32
    %c0_i32_1 = arith.constant 0 : i32
    %c0_i32_2 = arith.constant 0 : i32
    return %c0_i32, %c0_i32_0, %c0_i32_1 : i32, i32, i32
  }
  func.func @transform_9(%arg0: i32) -> (i32, i32, i32) {
    %c0_i32 = arith.constant 0 : i32
    %c0_i32_0 = arith.constant 0 : i32
    %c0_i32_1 = arith.constant 0 : i32
    %c0_i32_2 = arith.constant 0 : i32
    return %c0_i32, %c0_i32_0, %c0_i32_1 : i32, i32, i32
  }
  func.func @transform_10(%arg0: i32) -> (i32, i32, i32) {
    %c0_i32 = arith.constant 0 : i32
    %c0_i32_0 = arith.constant 0 : i32
    %c0_i32_1 = arith.constant 0 : i32
    %c0_i32_2 = arith.constant 0 : i32
    return %c0_i32, %c0_i32_0, %c0_i32_1 : i32, i32, i32
  }
  func.func @transform_11(%arg0: i32) -> (i32, i32) {
    %c0_i32 = arith.constant 0 : i32
    %c0_i32_0 = arith.constant 0 : i32
    %c0_i32_1 = arith.constant 0 : i32
    return %c0_i32, %c0_i32_0 : i32, i32
  }
  func.func @transform_12(%arg0: i32) -> (i32, i32) {
    %c0_i32 = arith.constant 0 : i32
    %c0_i32_0 = arith.constant 0 : i32
    return %c0_i32, %arg0 : i32, i32
  }
  func.func @transform_13(%arg0: i32) -> (i32, i32) {
    %c0_i32 = arith.constant 0 : i32
    %c0_i32_0 = arith.constant 0 : i32
    return %c0_i32, %arg0 : i32, i32
  }
}

</mosaic_0001>

<bundles_post_ra>
// kernel: tpu_custom_call.1
= control target key start
LH: loop header
LB: loop body
LE: loop exit
PB: predicated region body
PF: predicated region fallthrough
CT: control target
= control target key end

     0   :  { %s8790_s0 = inlined_call_operand.vmem [shape: f32[16,256], index: 0, kind: input, shape index: {}]   ;;  %s8791_s1 = inlined_call_operand.vmem [shape: f32[16,1], index: 1, kind: input, shape index: {}]   ;;  %s8792_s2 = inlined_call_operand.vmem [shape: f32[16,1], index: 2, kind: input, shape index: {}]   ;;  %s8793_s3 = inlined_call_operand.vmem [shape: f32[32,16], index: 3, kind: input, shape index: {}]   ;;  %s8794_s4 = inlined_call_operand.vmem [shape: f32[32,16], index: 4, kind: input, shape index: {}]   ;;  %s8795_s5 = inlined_call_operand.vmem [shape: f32[4,2,32,16], index: 5, kind: input, shape index: {}]   ;;  %s8796_s6 = inlined_call_operand.vmem [shape: f32[4,4,32,1], index: 6, kind: input, shape index: {}]   ;;  %s8797_s7 = inlined_call_operand.vmem [shape: f32[4,4,32,1], index: 7, kind: input, shape index: {}]   ;;  %s8798_s8 = inlined_call_operand.vmem [shape: f32[3,16,8], index: 8, kind: input, shape index: {}]   ;;  %s8799_s9 = inlined_call_operand.vmem [shape: f32[3,16,1], index: 9, kind: input, shape index: {}]   ;;  %s8800_s10 = inlined_call_operand.vmem [shape: f32[3,16,1], index: 10, kind: input, shape index: {}]   ;;  %s8801_s11 = inlined_call_operand.vmem [shape: f32[4,8], index: 11, kind: input, shape index: {}]   ;;  %s8802_s12 = inlined_call_operand.hbm [shape: f32[4,256], index: 12, kind: output, shape index: {0}]   ;;  %s8803_s13 = inlined_call_operand.hbm [shape: f32[1,256], index: 13, kind: output, shape index: {1}]  }
   0x1   :  { %8805 = sst [smem:[#allocation10_spill]] %s8790_s0 }
   0x2   :  { %8806 = sst [smem:[#allocation11_spill]] %s8791_s1 }
   0x3   :  { %8807 = sst [smem:[#allocation12_spill]] %s8792_s2 }
   0x4   :  { %8808 = sst [smem:[#allocation13_spill]] %s8793_s3 }
   0x5   :  { %8809 = sst [smem:[#allocation14_spill]] %s8794_s4 }
   0x6   :  { %8810 = sst [smem:[#allocation15_spill]] %s8795_s5 }
   0x7   :  { %19 = vsyncpa [#allocation4], 0 }
   0x8   :  { %21 = vsyncpa [#allocation4 + $0x1], 0 }
   0x9   :  { %22 = vsyncpa [#allocation6], 0 }
   0xa   :  { %24 = vsyncpa [#allocation6 + $0x1], 0  ;;  %s7115_s25 = smov 0   ;;  %s7117_s26 = smov 0  }
   0xb   :  { %s7119_s27 = smov 0   ;;  %s7121_s28 = smov 0  }
   0xc LB: > { %s7136_s29 = sadd.s32 4294967295, %s7040_s28   ;;  %s6143_s30 = sadd.s32 4294967294, %s7040_s28   ;;  %s7040_s28 = sphi %s7121_s28, %s8835_s28   ;;  %s7036_s27 = sphi %s7119_s27, %s8834_s27   ;;  %s7032_s26 = sphi %s7117_s26, %s8833_s26   ;;  %s7028_s25 = sphi %s7115_s25, %s8832_s25  }
   0xd   : > { %s7140_s14 = sadd.s32 1, %s7040_s28   ;;  %s37_s15 = sadd.s32 1, %s7036_s27 }
   0xe   : > { %s34_s16 = ssub.s32 %s7040_s28, %s7140_s14  ;;  %p44_p0 = scmp.ne.s32.totalorder %s7036_s27, %s7032_s26 }
   0xf   : > { %p35_p1 = scmp.eq.s32.totalorder %s34_s16, 0  ;;  %p45_p2 = scmp.eq.s32.totalorder %s7040_s28, 0 }
  0x10   : > { %p305_p3 = scmp.eq.s32.totalorder %s7136_s29, 1  ;;  %p310_p4 = scmp.ne.s32.totalorder %s7032_s26, %s7028_s25 }
  0x11   : > { %s7152_s17 = scalar_select %p35_p1, %s7036_s27, %s37_s15  }
  0x12   : > { %p46_p5 = por %p45_p2, %p44_p0  ;;  %p7154_p6 = por %p305_p3, %p44_p0 }
  0x13   : > { %8811 = sst [smem:[#allocation9_spill]] %s7152_s17  ;;  %p311_p7 = scmp.eq.s32.totalorder %s6143_s30, 1 }
  0x14   : > { %p6145_p9 = scmp.ge.s32.totalorder %s7040_s28, 2 }
  0x15   : > { %p7158_p8 = por %p311_p7, %p310_p4 }
  0x16   : > { %386 = sbr.rel (%p6145_p9) target bundleno = 39 (0x27), region = 60 }
  0x1b   : > { %389 = sbr.rel (!%p46_p5) target bundleno = 39 (0x27), region = 64  ;;  %s391_s20 = sand.u32 (%p46_p5), 1, %s7036_s27  }
  0x1c   : > { %s6147_s21 = sshll.u32 (%p46_p5), %s7040_s28, 3  ;;  %s6146_s22 = sshll.u32 (%p46_p5), %s391_s20, 4 }
  0x1d   : > { %s8814_s0 = sld [smem:[#allocation10_spill]] (%p46_p5)  ;;  %s393_s30 = scalar_lea.vmem (%p46_p5), [#allocation2], %s6146_s22 }
  0x23   : > { %s395_s15 = scalar_lea.vmem %s8814_s0, %s6147_s21 }
  0x24   : > { %v426_v0 = vld [vmem:[%s395_s15] sm:$0xff]  ;;  %v428_v1 = vld [vmem:[%s395_s15 + $0x10] sm:$0xff] }
  0x25   : > { %427 = vst [vmem:[%s393_s30] sm:$0xff] %v426_v0 }
  0x26   : > { %429 = vst [vmem:[%s393_s30 + $0x8] sm:$0xff] %v428_v1 }
  0x27 PF: > { %p6148_p10 = scmp.ge.s32.totalorder %s7040_s28, 1  ;;  %p434_p11 = scmp.lt.s32.totalorder %s7040_s28, 3 }
  0x29   : > { %p435_p12 = pnand %p6148_p10, %p434_p11 }
  0x2a   : > { %s8815_s2 = sld [smem:[#allocation12_spill]] (!%p435_p12)  ;;  %s7185_s17 = sand.u32 (!%p435_p12), 1, %s7032_s26  }
  0x2b   : > { %438 = sbr.rel (%p435_p12) target bundleno = 10825 (0x2a49), region = 102  ;;  %s8816_s1 = sld [smem:[#allocation11_spill]] (!%p435_p12) }
  0x2c   : > { %s6149_s30 = sshll.u32 (!%p435_p12), %s7185_s17, 4  ;;  %s8817_s3 = sld [smem:[#allocation13_spill]] (!%p435_p12) }
  0x2d   : > { %s443_s16 = scalar_lea.vmem (!%p435_p12), [#allocation2], %s6149_s30  ;;  %s8818_s4 = sld [smem:[#allocation14_spill]] (!%p435_p12) }
  0x2e   : > { %s8819_s5 = sld [smem:[#allocation15_spill]] (!%p435_p12)  ;;  %s8804_s24 = scalar_lea.vmem (!%p435_p12), [#allocation5], %s7185_s17 }
  0x2f   : > { %s6045_s0 = scalar_lea.hbm (!%p435_p12), %s8803_s13, %s7136_s29 }
  0x30   : > { %v505_v2 = vld [vmem:[%s8815_s2 + $0x8] sm:$0xff]  ;;  %v7042_v4 = vmov 0   ;;  %v504_v5 = vld [vmem:[%s8815_s2] sm:$0xff]  ;;  %v530_v13 = vld [vmem:[%s8796_s6 + $0x18] sm:$0xff]  ;;  %vm535_vm0 = vcmask 130048   ;;  %v7043_v31 = vmov 128.0  }
  0x31   : > { %v491_v3 = vld [vmem:[%s8816_s1 + $0x8] sm:$0xff]  ;;  %6564 = vset.pattern.permute.xlu1 %v7042_v4  ;;  %6563 = vset.pattern.permute.xlu0 %v7042_v4  ;;  %v490_v6 = vld [vmem:[%s8816_s1] sm:$0xff]  ;;  %v533_v25 = vld [vmem:[%s8797_s7 + $0x10] sm:$0xff]  ;;  %6566 = vrcp.f32 %v7043_v31  ;;  %s8830_s1 = scalar_lea.vmem [#allocation5], %s7185_s17  ;;  %s6049_s23 = sshll.u32 %s6045_s0, 4  ;;  %s6050_s23 = int_to_ptr.hbm [resolvable:$true] %s6049_s23 }
  0x32   : > { %513 = vperm.xlu1 %6564, %v505_v2   ;;  %499 = vperm.xlu0 %6563, %v491_v3   ;;  %v489_v7 = vld [vmem:[%s443_s16 + $0x8] sm:$0xff]  ;;  %v488_v12 = vld [vmem:[%s443_s16] sm:$0xff]  ;;  %s6047_s22 = sshll.u32 %s8830_s1, 4  ;;  %s6960_s15 = sshra.s32 %s6050_s23, 4  ;;  %s6048_s22 = int_to_ptr.vmem [resolvable:$true] %s6047_s22  ;;  %s6961_s15 = int_to_ptr.hbm [resolvable:$true] %s6960_s15 }
  0x33   : > { %6565 = vset.pattern.permute.xlu2 %v7042_v4  ;;  %v518_v18 = vld [vmem:[%s8817_s3] sm:$0xff]  ;;  %v519_v19 = vld [vmem:[%s8817_s3 + $0x8] sm:$0xff]  ;;  %v520_v20 = vld [vmem:[%s8817_s3 + $0x10] sm:$0xff]  ;;  %s6962_s2 = scalar_lea.hbm %s6961_s15, 1  ;;  %p6967_p2 = scmp.lt.s32.totalorder %s6961_s15, %s8803_s13 }
  0x34   : > { %681 = vperm.xlu2 %6565, %v530_v13   ;;  %v521_v21 = vld [vmem:[%s8817_s3 + $0x18] sm:$0xff]  ;;  %v528_v28 = vld [vmem:[%s8796_s6 + $0x8] sm:$0xff]  ;;  %v527_v29 = vld [vmem:[%s8796_s6] sm:$0xff]  ;;  %p6963_p13 = scmp.ne.s32.totalorder %s6961_s15, %s6962_s2 }
  0x35   : > { %v534_v27 = vld [vmem:[%s8797_s7 + $0x18] sm:$0xff]  ;;  %v532_v30 = vld [vmem:[%s8797_s7 + $0x8] sm:$0xff]  ;;  %v529_v51 = vld [vmem:[%s8796_s6 + $0x10] sm:$0xff] }
  0x36   : > { %v531_v56 = vld [vmem:[%s8797_s7] sm:$0xff]  ;;  %p6964_p0 = pnand %p6963_p13, %p7154_p6 }
  0x37   : > { %v6567_v32 = vpop.eup %6566 }
  0x38   : > { %v586_v33 = vmul.f32 128.0, %v6567_v32  ;;  %vm590_vm1 = vweird.f32 %v6567_v32  ;;  %p6965_p1 = pneg %p6964_p0 }
  0x3a   : > { %508 = vperm.xlu1 %6564, %v504_v5   ;;  %494 = vperm.xlu0 %6563, %v490_v6   ;;  %v587_v34 = vsub.f32 1.0, %v586_v33 }
  0x3c   : > { %v588_v35 = vmul.f32 %v6567_v32, %v587_v34 }
  0x3e   : > { %v589_v36 = vadd.f32 %v6567_v32, %v588_v35 }
  0x40   : > { %v7228_v37 = vsel %vm590_vm1, %v6567_v32, %v589_v36 }
  0x8e   : > { %v682_v42 = vpop.permute.xlu2 %681 }
  0xa4   : > { %v514_v8 = vpop.permute.xlu1 %513  ;;  %v500_v9 = vpop.permute.xlu0 %499 }
  0xa5   : > { %v503_v10 = vmul.f32 %v500_v9, %v489_v7 }
  0xa7   : > { %v7188_v11 = vadd.f32 %v514_v8, %v503_v10 }
  0xa9   : > { %562 = vmatpush.msra.mxu0 %v7188_v11 }
  0xac   : > { %v495_v14 = vpop.permute.xlu0 %494  ;;  %v509_v16 = vpop.permute.xlu1 %508 }
  0xad   : > { %v502_v15 = vmul.f32 %v495_v14, %v488_v12 }
  0xaf   : > { %v7194_v17 = vadd.f32 %v509_v16, %v502_v15 }
  0xb1   : > { %563 = vmatpush.msra.mxu0 %v7194_v17 }
  0xb2   : > { %6151 = vmatmul.msk.f32.vlgmr.msra.gmra.mxu0 %vm535_vm0, %v518_v18 }
  0xba   : > { %6152 = vmatmul.msk.f32.gmra.mxu0 %vm535_vm0, %v519_v19 }
  0xc2   : > { %6153 = vmatmul.msk.f32.gmra.mxu0 %vm535_vm0, %v520_v20 }
  0xca   : > { %6154 = vmatmul.msk.f32.gmra.mxu0 %vm535_vm0, %v521_v21 }
 0x12f   : > { %v565_v22 = vpop.f32.mrf.mxu0 }
 0x130   : > { %577 = vadd.xlane.f32.xlu1 %v565_v22 }
 0x137   : > { %v568_v23 = vpop.f32.mrf.mxu0 }
 0x138   : > { %579 = vadd.xlane.f32.xlu0 %v568_v23 }
 0x13f   : > { %v571_v24 = vpop.f32.mrf.mxu0 }
 0x140   : > { %581 = vadd.xlane.f32.xlu2 %v571_v24 }
 0x147   : > { %v574_v26 = vpop.f32.mrf.mxu0 }
 0x148   : > { %583 = vadd.xlane.f32.xlu2 %v574_v26 }
 0x149   : > { %700 = vperm.xlu1 %6564, %v533_v25  }
 0x14c   : > { %705 = vperm.xlu0 %6563, %v534_v27  }
 0x151   : > { %671 = vperm.xlu1 %6564, %v528_v28  }
 0x159   : > { %666 = vperm.xlu1 %6564, %v527_v29  }
 0x161   : > { %695 = vperm.xlu1 %6564, %v532_v30  }
 0x1a3   : > { %v578_v38 = vpop.xlane.xlu1 %577 }
 0x1a4   : > { %v592_v39 = vmul.f32 %v7228_v37, %v578_v38 }
 0x1a6   : > { %v7231_v40 = vsub.f32 %v565_v22, %v592_v39 }
 0x1a8   : > { %v600_v41 = vmul.f32 %v7231_v40, %v7231_v40 }
 0x1aa   : > { %604 = vadd.xlane.f32.xlu0 %v600_v41 }
 0x1ab   : > { %v580_v52 = vpop.xlane.xlu0 %579 }
 0x1ac   : > { %v593_v53 = vmul.f32 %v7228_v37, %v580_v52 }
 0x1ae   : > { %v7241_v54 = vsub.f32 %v568_v23, %v593_v53 }
 0x1b0   : > { %v601_v55 = vmul.f32 %v7241_v54, %v7241_v54 }
 0x1b3   : > { %v582_v43 = vpop.xlane.xlu2 %581 }
 0x1b4   : > { %v594_v44 = vmul.f32 %v7228_v37, %v582_v43 }
 0x1b6   : > { %v598_v45 = vsub.f32 %v571_v24, %v594_v44 }
 0x1b8   : > { %v602_v46 = vmul.f32 %v598_v45, %v598_v45 }
 0x1ba   : > { %608 = vadd.xlane.f32.xlu2 %v602_v46 }
 0x1bb   : > { %v584_v47 = vpop.xlane.xlu2 %583  ;;  %v701_v22 = vpop.permute.xlu1 %700 }
 0x1bc   : > { %v595_v48 = vmul.f32 %v7228_v37, %v584_v47 }
 0x1be   : > { %v599_v49 = vsub.f32 %v574_v26, %v595_v48  ;;  %v706_v15 = vpop.permute.xlu0 %705 }
 0x1c0   : > { %v603_v50 = vmul.f32 %v599_v49, %v599_v49 }
 0x1c2   : > { %610 = vadd.xlane.f32.xlu2 %v603_v50 }
 0x1da   : > { %676 = vperm.xlu2 %6565, %v529_v51  }
 0x203   : > { %606 = vadd.xlane.f32.xlu2 %v601_v55 }
 0x21b   : > { %690 = vperm.xlu2 %6565, %v531_v56  }
 0x21d   : > { %v605_v23 = vpop.xlane.xlu0 %604 }
 0x21e   : > { %v612_v26 = vmul.f32 %v605_v23, %v7228_v37  ;;  %v522_v23 = vld [vmem:[%s8818_s4] sm:$0xff] }
 0x220   : > { %v616_v29 = vadd.f32 1e-05, %v612_v26  ;;  %v525_v26 = vld [vmem:[%s8818_s4 + $0x18] sm:$0xff] }
 0x222   : > { %vm626_vm9 = vweird.f32 %v616_v29 }
 0x22d   : > { %v609_v57 = vpop.xlane.xlu2 %608 }
 0x22e   : > { %v614_v58 = vmul.f32 %v609_v57, %v7228_v37 }
 0x230   : > { %v618_v59 = vadd.f32 1e-05, %v614_v58 }
 0x232   : > { %6568 = vrsqrt.f32 %v618_v59  ;;  %vm646_vm6 = vweird.f32 %v618_v59 }
 0x235   : > { %v611_v60 = vpop.xlane.xlu2 %610 }
 0x236   : > { %v615_v61 = vmul.f32 %v611_v60, %v7228_v37 }
 0x238   : > { %v619_v62 = vadd.f32 1e-05, %v615_v61  ;;  %v6569_v63 = vpop.eup %6568 }
 0x239   : > { %v641_v1 = vmul.f32 %v6569_v63, %v618_v59  ;;  %vm647_vm4 = vweird.f32 %v6569_v63 }
 0x23a   : > { %6570 = vrsqrt.f32 %v619_v62  ;;  %vm656_vm3 = vweird.f32 %v619_v62  ;;  %vm648_vm7 = vmor %vm646_vm6, %vm647_vm4 }
 0x23b   : > { %v642_v4 = vmul.f32 %v6569_v63, %v641_v1 }
 0x23d   : > { %v643_v6 = vmul.f32 0.5, %v642_v4  ;;  %v677_v19 = vpop.permute.xlu2 %676 }
 0x23f   : > { %v644_v8 = vsub.f32 1.5, %v643_v6 }
 0x240   : > { %v6571_v0 = vpop.eup %6570 }
 0x241   : > { %v651_v2 = vmul.f32 %v6571_v0, %v619_v62  ;;  %vm657_vm2 = vweird.f32 %v6571_v0  ;;  %v645_v10 = vmul.f32 %v6569_v63, %v644_v8 }
 0x242   : > { %vm658_vm5 = vmor %vm656_vm3, %vm657_vm2 }
 0x243   : > { %v652_v3 = vmul.f32 %v6571_v0, %v651_v2  ;;  %v649_v13 = vsel %vm648_vm7, %v6569_v63, %v645_v10 }
 0x244   : > { %v662_v16 = vmul.f32 %v649_v13, %v598_v45  ;;  %v672_v45 = vpop.permute.xlu1 %671 }
 0x245   : > { %v653_v5 = vmul.f32 0.5, %v652_v3 }
 0x246   : > { %v686_v20 = vmul.f32 %v677_v19, %v662_v16 }
 0x247   : > { %v654_v7 = vsub.f32 1.5, %v653_v5 }
 0x248   : > { %v710_v24 = vadd.f32 %v701_v22, %v686_v20 }
 0x249   : > { %v655_v9 = vmul.f32 %v6571_v0, %v654_v7 }
 0x24a   : > { %v712_v27 = vsub.f32 0.0, %v710_v24  ;;  %v523_v24 = vld [vmem:[%s8818_s4 + $0x8] sm:$0xff] }
 0x24b   : > { %v659_v12 = vsel %vm658_vm5, %v6571_v0, %v655_v9 }
 0x24c   : > { %v663_v14 = vmul.f32 %v659_v12, %v599_v49  ;;  %v714_v30 = vmul.f32 1.442695, %v712_v27  ;;  %v667_v57 = vpop.permute.xlu1 %666 }
 0x24e   : > { %v687_v18 = vmul.f32 %v682_v42, %v663_v14 }
 0x250   : > { %v711_v21 = vadd.f32 %v706_v15, %v687_v18 }
 0x252   : > { %v713_v25 = vsub.f32 0.0, %v711_v21 }
 0x254   : > { %v716_v28 = vmul.f32 1.442695, %v713_v25  ;;  %v524_v25 = vld [vmem:[%s8818_s4 + $0x10] sm:$0xff] }
 0x256   : > { %6572 = vpow2.f32 %v716_v28 }
 0x257   : > { %6574 = vrsqrt.f32 %v616_v29 }
 0x258   : > { %6576 = vpow2.f32 %v714_v30  ;;  %v6162_v30 = vld [vmem:[%s8797_s7 + $0x38] sm:$0xff] }
 0x25c   : > { %v6573_v31 = vpop.eup %6572 }
 0x25d   : > { %v6575_v32 = vpop.eup %6574  ;;  %v719_v34 = vadd.f32 1.0, %v6573_v31 }
 0x25e   : > { %v6577_v33 = vpop.eup %6576  ;;  %v621_v35 = vmul.f32 %v6575_v32, %v616_v29  ;;  %vm627_vm8 = vweird.f32 %v6575_v32 }
 0x25f   : > { %v718_v36 = vadd.f32 1.0, %v6577_v33  ;;  %6578 = vrcp.f32 %v719_v34  ;;  %vm628_vm10 = vmor %vm626_vm9, %vm627_vm8  ;;  %v746_v3 = vand.u32 2147483648, %v719_v34  ;;  %vm740_vm1 = vweird.f32 %v719_v34  ;;  %v6157_v33 = vld [vmem:[%s8796_s6 + $0x30] sm:$0xff] }
 0x260   : > { %v622_v39 = vmul.f32 %v6575_v32, %v621_v35  ;;  %v744_v5 = vand.u32 2147483647, %v719_v34  ;;  %v6160_v35 = vld [vmem:[%s8797_s7 + $0x28] sm:$0xff] }
 0x261   : > { %6580 = vrcp.f32 %v718_v36  ;;  %v731_v9 = vand.u32 2147483648, %v718_v36  ;;  %vm725_vm3 = vweird.f32 %v718_v36  ;;  %v729_v13 = vand.u32 2147483647, %v718_v36 }
 0x262   : > { %v623_v43 = vmul.f32 0.5, %v622_v39  ;;  %v747_v14 = vor.u32 1.1754944e-38, %v746_v3  ;;  %vm745_vm5 = vcmp.eq.f32.partialorder %v744_v5, 8.507059e+37 }
 0x263   : > { %v732_v19 = vor.u32 1.1754944e-38, %v731_v9  ;;  %vm730_vm6 = vcmp.eq.f32.partialorder %v729_v13, 8.507059e+37 }
 0x264   : > { %v624_v47 = vsub.f32 1.5, %v623_v43 }
 0x265   : > { %v6579_v44 = vpop.eup %6578 }
 0x266   : > { %v736_v48 = vmul.f32 %v6579_v44, %v719_v34  ;;  %v625_v52 = vmul.f32 %v6575_v32, %v624_v47  ;;  %vm741_vm14 = vweird.f32 %v6579_v44  ;;  %v6155_v34 = vld [vmem:[%s8796_s6 + $0x20] sm:$0xff] }
 0x267   : > { %v6581_v46 = vpop.eup %6580  ;;  %vm742_vm2 = vmor %vm740_vm1, %vm741_vm14 }
 0x268   : > { %v721_v50 = vmul.f32 %v6581_v46, %v718_v36  ;;  %v737_v53 = vsub.f32 1.0, %v736_v48  ;;  %v629_v59 = vsel %vm628_vm10, %v6575_v32, %v625_v52  ;;  %vm726_vm15 = vweird.f32 %v6581_v46  ;;  %v6156_v32 = vld [vmem:[%s8796_s6 + $0x28] sm:$0xff]  ;;  %v6158_v36 = vld [vmem:[%s8796_s6 + $0x38] sm:$0xff]  ;;  %v6161_v52 = vld [vmem:[%s8797_s7 + $0x30] sm:$0xff] }
 0x269   : > { %v660_v0 = vmul.f32 %v629_v59, %v7231_v40  ;;  %v696_v40 = vpop.permute.xlu1 %695  ;;  %vm727_vm4 = vmor %vm725_vm3, %vm726_vm15 }
 0x26a   : > { %v722_v56 = vsub.f32 1.0, %v721_v50  ;;  %v738_v60 = vmul.f32 %v6579_v44, %v737_v53 }
 0x26b   : > { %v684_v7 = vmul.f32 %v667_v57, %v660_v0 }
 0x26c   : > { %v723_v62 = vmul.f32 %v6581_v46, %v722_v56  ;;  %v739_v1 = vadd.f32 %v6579_v44, %v738_v60 }
 0x26e   : > { %v724_v6 = vadd.f32 %v6581_v46, %v723_v62  ;;  %v743_v12 = vsel %vm742_vm2, %v6579_v44, %v739_v1 }
 0x270   : > { %v728_v18 = vsel %vm727_vm4, %v6581_v46, %v724_v6 }
 0x271   : > { %v733_v21 = vsel %vm730_vm6, %v732_v19, %v728_v18 }
 0x276   : > { %v607_v38 = vpop.xlane.xlu2 %606 }
 0x277   : > { %v613_v41 = vmul.f32 %v607_v38, %v7228_v37 }
 0x279   : > { %v617_v42 = vadd.f32 1e-05, %v613_v41 }
 0x27b   : > { %6582 = vrsqrt.f32 %v617_v42  ;;  %vm636_vm12 = vweird.f32 %v617_v42 }
 0x27e   : > { %v691_v8 = vpop.permute.xlu2 %690 }
 0x27f   : > { %v708_v15 = vadd.f32 %v691_v8, %v684_v7 }
 0x281   : > { %v6583_v49 = vpop.eup %6582  ;;  %v7258_v22 = vmul.f32 %v733_v21, %v708_v15 }
 0x282   : > { %v631_v51 = vmul.f32 %v6583_v49, %v617_v42  ;;  %vm637_vm11 = vweird.f32 %v6583_v49 }
 0x283   : > { %vm638_vm13 = vmor %vm636_vm12, %vm637_vm11 }
 0x284   : > { %v632_v55 = vmul.f32 %v6583_v49, %v631_v51  ;;  %v6159_v51 = vld [vmem:[%s8797_s7 + $0x20] sm:$0xff] }
 0x286   : > { %v633_v58 = vmul.f32 0.5, %v632_v55 }
 0x288   : > { %v634_v61 = vsub.f32 1.5, %v633_v58 }
 0x28a   : > { %v635_v63 = vmul.f32 %v6583_v49, %v634_v61 }
 0x28c   : > { %v639_v2 = vsel %vm638_vm13, %v6583_v49, %v635_v63 }
 0x28d   : > { %v661_v4 = vmul.f32 %v639_v2, %v7241_v54  ;;  %v748_v54 = vsel %vm745_vm5, %v747_v14, %v743_v12 }
 0x28f   : > { %v685_v10 = vmul.f32 %v672_v45, %v661_v4 }
 0x291   : > { %v709_v16 = vadd.f32 %v696_v40, %v685_v10 }
 0x293   : > { %v7255_v20 = vmul.f32 %v748_v54, %v709_v16 }
 0x295   : > { %788 = vmatpush.msra.mxu1 %v7255_v20 }
 0x297   : > { %789 = vmatpush.msra.mxu1 %v7258_v22 }
 0x298   : > { %6163 = vmatmul.msk.f32.vlgmr.msra.gmra.mxu1 %vm535_vm0, %v522_v23 }
 0x2a0   : > { %6164 = vmatmul.msk.f32.gmra.mxu1 %vm535_vm0, %v523_v24 }
 0x2a8   : > { %6165 = vmatmul.msk.f32.gmra.mxu1 %vm535_vm0, %v524_v25 }
 0x2b0   : > { %6166 = vmatmul.msk.f32.gmra.mxu1 %vm535_vm0, %v525_v26 }
 0x315   : > { %v791_v27 = vpop.f32.mrf.mxu1 }
 0x316   : > { %803 = vadd.xlane.f32.xlu2 %v791_v27 }
 0x31d   : > { %v794_v28 = vpop.f32.mrf.mxu1 }
 0x31e   : > { %805 = vadd.xlane.f32.xlu0 %v794_v28 }
 0x325   : > { %v797_v29 = vpop.f32.mrf.mxu1 }
 0x326   : > { %807 = vadd.xlane.f32.xlu0 %v797_v29 }
 0x32d   : > { %v800_v31 = vpop.f32.mrf.mxu1 }
 0x32e   : > { %924 = vperm.xlu2 %6565, %v6162_v30   ;;  %809 = vadd.xlane.f32.xlu1 %v800_v31 }
 0x336   : > { %890 = vperm.xlu2 %6565, %v6156_v32  }
 0x33a   : > { %895 = vperm.xlu0 %6563, %v6157_v33  }
 0x33e   : > { %885 = vperm.xlu2 %6565, %v6155_v34  }
 0x346   : > { %914 = vperm.xlu2 %6565, %v6160_v35  }
 0x347   : > { %900 = vperm.xlu1 %6564, %v6158_v36  }
 0x389   : > { %v804_v53 = vpop.xlane.xlu2 %803 }
 0x38a   : > { %v811_v55 = vmul.f32 %v804_v53, %v7228_v37 }
 0x38c   : > { %v7309_v56 = vsub.f32 %v791_v27, %v811_v55 }
 0x38e   : > { %v819_v57 = vmul.f32 %v7309_v56, %v7309_v56 }
 0x391   : > { %v806_v38 = vpop.xlane.xlu0 %805  ;;  %v925_v23 = vpop.permute.xlu2 %924 }
 0x392   : > { %v812_v39 = vmul.f32 %v806_v38, %v7228_v37 }
 0x394   : > { %v7296_v41 = vsub.f32 %v794_v28, %v812_v39 }
 0x396   : > { %v820_v42 = vmul.f32 %v7296_v41, %v7296_v41 }
 0x398   : > { %825 = vadd.xlane.f32.xlu1 %v820_v42 }
 0x399   : > { %v808_v43 = vpop.xlane.xlu0 %807  ;;  %v891_v34 = vpop.permute.xlu2 %890 }
 0x39a   : > { %v813_v44 = vmul.f32 %v808_v43, %v7228_v37 }
 0x39c   : > { %v817_v45 = vsub.f32 %v797_v29, %v813_v44 }
 0x39e   : > { %v821_v46 = vmul.f32 %v817_v45, %v817_v45 }
 0x3a0   : > { %827 = vadd.xlane.f32.xlu0 %v821_v46 }
 0x3a1   : > { %v810_v47 = vpop.xlane.xlu1 %809  ;;  %v886_v46 = vpop.permute.xlu2 %885 }
 0x3a2   : > { %v814_v48 = vmul.f32 %v810_v47, %v7228_v37 }
 0x3a4   : > { %v818_v49 = vsub.f32 %v800_v31, %v814_v48 }
 0x3a6   : > { %v822_v50 = vmul.f32 %v818_v49, %v818_v49 }
 0x3a8   : > { %829 = vadd.xlane.f32.xlu0 %v822_v50 }
 0x3ac   : > { %v896_v58 = vpop.permute.xlu0 %895 }
 0x3b1   : > { %909 = vperm.xlu1 %6564, %v6159_v51  }
 0x3b9   : > { %v901_v62 = vpop.permute.xlu1 %900 }
 0x3bc   : > { %919 = vperm.xlu0 %6563, %v6161_v52  }
 0x3e6   : > { %823 = vadd.xlane.f32.xlu0 %v819_v57 }
 0x40b   : > { %v826_v3 = vpop.xlane.xlu1 %825 }
 0x40c   : > { %v832_v5 = vmul.f32 %v826_v3, %v7228_v37 }
 0x40e   : > { %v836_v9 = vadd.f32 1e-05, %v832_v5 }
 0x410   : > { %vm855_vm14 = vweird.f32 %v836_v9 }
 0x413   : > { %v828_v59 = vpop.xlane.xlu0 %827 }
 0x414   : > { %v833_v60 = vmul.f32 %v828_v59, %v7228_v37  ;;  %v915_v59 = vpop.permute.xlu2 %914 }
 0x416   : > { %v837_v61 = vadd.f32 1e-05, %v833_v60 }
 0x418   : > { %6584 = vrsqrt.f32 %v837_v61  ;;  %vm865_vm11 = vweird.f32 %v837_v61 }
 0x41b   : > { %v830_v63 = vpop.xlane.xlu0 %829 }
 0x41c   : > { %v834_v0 = vmul.f32 %v830_v63, %v7228_v37 }
 0x41e   : > { %v6585_v1 = vpop.eup %6584  ;;  %v838_v2 = vadd.f32 1e-05, %v834_v0 }
 0x41f   : > { %v860_v4 = vmul.f32 %v6585_v1, %v837_v61  ;;  %vm866_vm10 = vweird.f32 %v6585_v1 }
 0x420   : > { %6586 = vrsqrt.f32 %v838_v2  ;;  %vm875_vm8 = vweird.f32 %v838_v2  ;;  %vm867_vm12 = vmor %vm865_vm11, %vm866_vm10 }
 0x421   : > { %v861_v6 = vmul.f32 %v6585_v1, %v860_v4  ;;  %6588 = vrsqrt.f32 %v836_v9 }
 0x423   : > { %v862_v10 = vmul.f32 0.5, %v861_v6 }
 0x425   : > { %v863_v40 = vsub.f32 1.5, %v862_v10 }
 0x426   : > { %v6587_v7 = vpop.eup %6586 }
 0x427   : > { %v870_v8 = vmul.f32 %v6587_v7, %v838_v2  ;;  %vm876_vm7 = vweird.f32 %v6587_v7  ;;  %v864_v18 = vmul.f32 %v6585_v1, %v863_v40  ;;  %v6589_v54 = vpop.eup %6588 }
 0x428   : > { %vm877_vm9 = vmor %vm875_vm8, %vm876_vm7  ;;  %v850_v24 = vmul.f32 %v6589_v54, %v836_v9  ;;  %vm856_vm13 = vweird.f32 %v6589_v54 }
 0x429   : > { %v871_v12 = vmul.f32 %v6587_v7, %v870_v8  ;;  %v868_v25 = vsel %vm867_vm12, %v6585_v1, %v864_v18  ;;  %vm857_vm15 = vmor %vm855_vm14, %vm856_vm13 }
 0x42a   : > { %v881_v28 = vmul.f32 %v868_v25, %v817_v45  ;;  %v851_v29 = vmul.f32 %v6589_v54, %v850_v24  ;;  %v910_v24 = vpop.permute.xlu1 %909 }
 0x42b   : > { %v872_v13 = vmul.f32 0.5, %v871_v12 }
 0x42c   : > { %v905_v31 = vmul.f32 %v896_v58, %v881_v28  ;;  %v852_v32 = vmul.f32 0.5, %v851_v29 }
 0x42d   : > { %v873_v14 = vsub.f32 1.5, %v872_v13 }
 0x42e   : > { %v920_v33 = vpop.permute.xlu0 %919  ;;  %v853_v36 = vsub.f32 1.5, %v852_v32  ;;  %v978_v32 = vld [vmem:[%s8819_s5 + $0x18] sm:$0xff] }
 0x42f   : > { %v874_v15 = vmul.f32 %v6587_v7, %v873_v14  ;;  %v929_v35 = vadd.f32 %v920_v33, %v905_v31  ;;  %v975_v31 = vld [vmem:[%s8819_s5] sm:$0xff] }
 0x430   : > { %v854_v43 = vmul.f32 %v6589_v54, %v853_v36 }
 0x431   : > { %v878_v16 = vsel %vm877_vm9, %v6587_v7, %v874_v15  ;;  %v931_v42 = vsub.f32 0.0, %v929_v35 }
 0x432   : > { %v882_v19 = vmul.f32 %v878_v16, %v818_v49  ;;  %v858_v45 = vsel %vm857_vm15, %v6589_v54, %v854_v43 }
 0x433   : > { %v933_v44 = vmul.f32 1.442695, %v931_v42  ;;  %v880_v48 = vmul.f32 %v858_v45, %v7296_v41 }
 0x434   : > { %v906_v21 = vmul.f32 %v901_v62, %v882_v19 }
 0x435   : > { %v904_v52 = vmul.f32 %v891_v34, %v880_v48 }
 0x436   : > { %v930_v26 = vadd.f32 %v925_v23, %v906_v21 }
 0x437   : > { %v928_v61 = vadd.f32 %v915_v59, %v904_v52  ;;  %v6170_v59 = vld [vmem:[%s8796_s6 + $0x58] sm:$0xff] }
 0x438   : > { %v932_v27 = vsub.f32 0.0, %v930_v26 }
 0x43a   : > { %v935_v30 = vmul.f32 1.442695, %v932_v27 }
 0x43c   : > { %6590 = vpow2.f32 %v935_v30 }
 0x442   : > { %v6591_v38 = vpop.eup %6590 }
 0x443   : > { %v938_v39 = vadd.f32 1.0, %v6591_v38  ;;  %v6169_v38 = vld [vmem:[%s8796_s6 + $0x50] sm:$0xff] }
 0x445   : > { %6592 = vrcp.f32 %v938_v39  ;;  %v965_v51 = vand.u32 2147483648, %v938_v39  ;;  %v963_v55 = vand.u32 2147483647, %v938_v39  ;;  %vm959_vm2 = vweird.f32 %v938_v39 }
 0x446   : > { %6594 = vpow2.f32 %v933_v44 }
 0x447   : > { %v966_v60 = vor.u32 1.1754944e-38, %v965_v51  ;;  %vm964_vm4 = vcmp.eq.f32.partialorder %v963_v55, 8.507059e+37 }
 0x44b   : > { %v6593_v47 = vpop.eup %6592 }
 0x44c   : > { %v955_v49 = vmul.f32 %v6593_v47, %v938_v39  ;;  %vm960_vm1 = vweird.f32 %v6593_v47  ;;  %v6595_v57 = vpop.eup %6594 }
 0x44d   : > { %vm961_vm3 = vmor %vm959_vm2, %vm960_vm1  ;;  %v937_v63 = vadd.f32 1.0, %v6595_v57 }
 0x44e   : > { %v956_v50 = vsub.f32 1.0, %v955_v49 }
 0x44f   : > { %6596 = vrcp.f32 %v937_v63  ;;  %v950_v18 = vand.u32 2147483648, %v937_v63  ;;  %vm944_vm9 = vweird.f32 %v937_v63  ;;  %v948_v19 = vand.u32 2147483647, %v937_v63 }
 0x450   : > { %v957_v53 = vmul.f32 %v6593_v47, %v956_v50 }
 0x451   : > { %v951_v25 = vor.u32 1.1754944e-38, %v950_v18  ;;  %vm949_vm11 = vcmp.eq.f32.partialorder %v948_v19, 8.507059e+37 }
 0x452   : > { %v958_v58 = vadd.f32 %v6593_v47, %v957_v53 }
 0x454   : > { %v962_v62 = vsel %vm961_vm3, %v6593_v47, %v958_v58 }
 0x455   : > { %v967_v0 = vsel %vm964_vm4, %v966_v60, %v962_v62  ;;  %v6597_v6 = vpop.eup %6596  ;;  %v6174_v60 = vld [vmem:[%s8797_s7 + $0x58] sm:$0xff]  ;;  %v6167_v62 = vld [vmem:[%s8796_s6 + $0x40] sm:$0xff] }
 0x456   : > { %v970_v1 = vmul.f32 %v967_v0, %v928_v61  ;;  %v940_v7 = vmul.f32 %v6597_v6, %v937_v63  ;;  %vm945_vm8 = vweird.f32 %v6597_v6  ;;  %v6173_v61 = vld [vmem:[%s8797_s7 + $0x50] sm:$0xff]  ;;  %v6168_v63 = vld [vmem:[%s8796_s6 + $0x48] sm:$0xff] }
 0x457   : > { %vm946_vm10 = vmor %vm944_vm9, %vm945_vm8  ;;  %v6172_v0 = vld [vmem:[%s8797_s7 + $0x48] sm:$0xff] }
 0x458   : > { %v972_v41 = vadd.f32 %v970_v1, %v7255_v20  ;;  %v941_v10 = vsub.f32 1.0, %v940_v7  ;;  %v6171_v1 = vld [vmem:[%s8797_s7 + $0x40] sm:$0xff] }
 0x459   : > { %v824_v2 = vpop.xlane.xlu0 %823 }
 0x45a   : > { %v831_v3 = vmul.f32 %v824_v2, %v7228_v37  ;;  %v7319_v4 = vmul.f32 0.70710677, %v972_v41  ;;  %v942_v40 = vmul.f32 %v6597_v6, %v941_v10 }
 0x45c   : > { %v835_v5 = vadd.f32 1e-05, %v831_v3  ;;  %1015 = vmatpush.msra.mxu2 %v7319_v4  ;;  %v943_v15 = vadd.f32 %v6597_v6, %v942_v40 }
 0x45e   : > { %6598 = vrsqrt.f32 %v835_v5  ;;  %vm845_vm6 = vweird.f32 %v835_v5  ;;  %v947_v23 = vsel %vm946_vm10, %v6597_v6, %v943_v15 }
 0x45f   : > { %v952_v27 = vsel %vm949_vm11, %v951_v25, %v947_v23 }
 0x464   : > { %v6599_v8 = vpop.eup %6598 }
 0x465   : > { %v840_v9 = vmul.f32 %v6599_v8, %v835_v5  ;;  %vm846_vm5 = vweird.f32 %v6599_v8 }
 0x466   : > { %vm847_vm7 = vmor %vm845_vm6, %vm846_vm5 }
 0x467   : > { %v841_v12 = vmul.f32 %v6599_v8, %v840_v9 }
 0x469   : > { %v842_v13 = vmul.f32 0.5, %v841_v12 }
 0x46b   : > { %v843_v14 = vsub.f32 1.5, %v842_v13 }
 0x46d   : > { %v844_v20 = vmul.f32 %v6599_v8, %v843_v14 }
 0x46f   : > { %v848_v16 = vsel %vm847_vm7, %v6599_v8, %v844_v20 }
 0x470   : > { %v879_v54 = vmul.f32 %v848_v16, %v7309_v56  ;;  %v976_v56 = vld [vmem:[%s8819_s5 + $0x8] sm:$0xff] }
 0x472   : > { %v903_v21 = vmul.f32 %v886_v46, %v879_v54 }
 0x474   : > { %v927_v26 = vadd.f32 %v910_v24, %v903_v21 }
 0x476   : > { %v969_v28 = vmul.f32 %v952_v27, %v927_v26 }
 0x478   : > { %v971_v29 = vadd.f32 %v969_v28, %v7258_v22  ;;  %v977_v22 = vld [vmem:[%s8819_s5 + $0x10] sm:$0xff] }
 0x47a   : > { %v7324_v30 = vmul.f32 0.70710677, %v971_v29 }
 0x47c   : > { %1016 = vmatpush.msra.mxu2 %v7324_v30 }
 0x47d   : > { %6175 = vmatmul.msk.f32.vlgmr.msra.gmra.mxu2 %vm535_vm0, %v975_v31 }
 0x485   : > { %6176 = vmatmul.msk.f32.gmra.mxu2 %vm535_vm0, %v976_v56 }
 0x48d   : > { %6177 = vmatmul.msk.f32.gmra.mxu2 %vm535_vm0, %v977_v22 }
 0x495   : > { %6178 = vmatmul.msk.f32.gmra.mxu2 %vm535_vm0, %v978_v32 }
 0x500   : > { %v1018_v33 = vpop.f32.mrf.mxu2 }
 0x508   : > { %v1021_v34 = vpop.f32.mrf.mxu2 }
 0x510   : > { %v1024_v35 = vpop.f32.mrf.mxu2 }
 0x511   : > { %1034 = vadd.xlane.f32.xlu0 %v1024_v35 }
 0x518   : > { %v1027_v36 = vpop.f32.mrf.mxu2 }
 0x519   : > { %1032 = vadd.xlane.f32.xlu0 %v1021_v34  ;;  %1036 = vadd.xlane.f32.xlu2 %v1027_v36 }
 0x521   : > { %1030 = vadd.xlane.f32.xlu0 %v1018_v33 }
 0x531   : > { %1122 = vperm.xlu2 %6565, %v6169_v38  }
 0x584   : > { %v1035_v39 = vpop.xlane.xlu0 %1034 }
 0x585   : > { %v1040_v42 = vmul.f32 %v1035_v39, %v7228_v37 }
 0x587   : > { %v7347_v43 = vsub.f32 %v1024_v35, %v1040_v42 }
 0x589   : > { %v1048_v44 = vmul.f32 %v7347_v43, %v7347_v43 }
 0x58b   : > { %1054 = vadd.xlane.f32.xlu0 %v1048_v44 }
 0x58c   : > { %v1033_v46 = vpop.xlane.xlu0 %1032  ;;  %v1037_v45 = vpop.xlane.xlu2 %1036 }
 0x58d   : > { %v1041_v47 = vmul.f32 %v1037_v45, %v7228_v37  ;;  %v1039_v49 = vmul.f32 %v1033_v46, %v7228_v37 }
 0x58f   : > { %v7352_v48 = vsub.f32 %v1027_v36, %v1041_v47  ;;  %v7358_v53 = vsub.f32 %v1021_v34, %v1039_v49 }
 0x591   : > { %v1049_v50 = vmul.f32 %v7352_v48, %v7352_v48  ;;  %v1047_v58 = vmul.f32 %v7358_v53, %v7358_v53 }
 0x593   : > { %1056 = vadd.xlane.f32.xlu1 %v1049_v50 }
 0x594   : > { %v1031_v51 = vpop.xlane.xlu0 %1030  ;;  %v1123_v6 = vpop.permute.xlu2 %1122 }
 0x595   : > { %v1038_v52 = vmul.f32 %v1031_v51, %v7228_v37 }
 0x597   : > { %v7360_v55 = vsub.f32 %v1018_v33, %v1038_v52 }
 0x599   : > { %v1046_v57 = vmul.f32 %v7360_v55, %v7360_v55 }
 0x59b   : > { %1050 = vadd.xlane.f32.xlu2 %v1046_v57  ;;  %1052 = vadd.xlane.f32.xlu1 %v1047_v58 }
 0x59f   : > { %1127 = vperm.xlu0 %6563, %v6170_v59  }
 0x5a7   : > { %1151 = vperm.xlu0 %6563, %v6174_v60  }
 0x5af   : > { %1146 = vperm.xlu0 %6563, %v6173_v61  }
 0x5b4   : > { %1112 = vperm.xlu1 %6564, %v6167_v62  }
 0x5b7   : > { %1117 = vperm.xlu0 %6563, %v6168_v63  }
 0x5bf   : > { %1141 = vperm.xlu0 %6563, %v6172_v0  }
 0x5c7   : > { %1136 = vperm.xlu0 %6563, %v6171_v1  }
 0x5fe   : > { %v1055_v41 = vpop.xlane.xlu0 %1054 }
 0x5ff   : > { %v1060_v2 = vmul.f32 %v1055_v41, %v7228_v37 }
 0x601   : > { %v1064_v3 = vadd.f32 1e-05, %v1060_v2 }
 0x603   : > { %6600 = vrsqrt.f32 %v1064_v3  ;;  %vm1092_vm13 = vweird.f32 %v1064_v3 }
 0x606   : > { %v1057_v5 = vpop.xlane.xlu1 %1056 }
 0x607   : > { %v1061_v7 = vmul.f32 %v1057_v5, %v7228_v37 }
 0x609   : > { %v6601_v8 = vpop.eup %6600  ;;  %v1065_v9 = vadd.f32 1e-05, %v1061_v7 }
 0x60a   : > { %v1087_v10 = vmul.f32 %v6601_v8, %v1064_v3  ;;  %vm1093_vm12 = vweird.f32 %v6601_v8 }
 0x60b   : > { %6602 = vrsqrt.f32 %v1065_v9  ;;  %vm1094_vm14 = vmor %vm1092_vm13, %vm1093_vm12  ;;  %vm1102_vm1 = vweird.f32 %v1065_v9 }
 0x60c   : > { %v1088_v12 = vmul.f32 %v6601_v8, %v1087_v10 }
 0x60e   : > { %v1089_v13 = vmul.f32 0.5, %v1088_v12  ;;  %v1053_v40 = vpop.xlane.xlu1 %1052  ;;  %v1051_v14 = vpop.xlane.xlu2 %1050 }
 0x60f   : > { %v1059_v16 = vmul.f32 %v1053_v40, %v7228_v37  ;;  %v1058_v19 = vmul.f32 %v1051_v14, %v7228_v37 }
 0x610   : > { %v1090_v15 = vsub.f32 1.5, %v1089_v13 }
 0x611   : > { %v6603_v20 = vpop.eup %6602  ;;  %v1128_v18 = vpop.permute.xlu0 %1127  ;;  %v1063_v23 = vadd.f32 1e-05, %v1059_v16  ;;  %v1062_v26 = vadd.f32 1e-05, %v1058_v19 }
 0x612   : > { %v1097_v54 = vmul.f32 %v6603_v20, %v1065_v9  ;;  %v1091_v24 = vmul.f32 %v6601_v8, %v1090_v15  ;;  %vm1103_vm15 = vweird.f32 %v6603_v20 }
 0x613   : > { %6604 = vrsqrt.f32 %v1063_v23  ;;  %vm1104_vm2 = vmor %vm1102_vm1, %vm1103_vm15  ;;  %vm1082_vm5 = vweird.f32 %v1063_v23  ;;  %vm1072_vm6 = vweird.f32 %v1062_v26 }
 0x614   : > { %v1098_v21 = vmul.f32 %v6603_v20, %v1097_v54  ;;  %v1095_v29 = vsel %vm1094_vm14, %v6601_v8, %v1091_v24  ;;  %6606 = vrsqrt.f32 %v1062_v26 }
 0x615   : > { %v1108_v22 = vmul.f32 %v1095_v29, %v7347_v43 }
 0x616   : > { %v1099_v25 = vmul.f32 0.5, %v1098_v21 }
 0x617   : > { %v1132_v36 = vmul.f32 %v1123_v6, %v1108_v22 }
 0x618   : > { %v1100_v27 = vsub.f32 1.5, %v1099_v25 }
 0x619   : > { %v1152_v28 = vpop.permute.xlu0 %1151  ;;  %v6605_v33 = vpop.eup %6604 }
 0x61a   : > { %v1101_v31 = vmul.f32 %v6603_v20, %v1100_v27  ;;  %v6607_v35 = vpop.eup %6606  ;;  %v1077_v44 = vmul.f32 %v6605_v33, %v1063_v23  ;;  %vm1083_vm3 = vweird.f32 %v6605_v33 }
 0x61b   : > { %v1067_v46 = vmul.f32 %v6607_v35, %v1062_v26  ;;  %vm1073_vm4 = vweird.f32 %v6607_v35  ;;  %vm1084_vm7 = vmor %vm1082_vm5, %vm1083_vm3 }
 0x61c   : > { %v1105_v56 = vsel %vm1104_vm2, %v6603_v20, %v1101_v31  ;;  %v1078_v51 = vmul.f32 %v6605_v33, %v1077_v44  ;;  %vm1074_vm8 = vmor %vm1072_vm6, %vm1073_vm4 }
 0x61d   : > { %v1109_v32 = vmul.f32 %v1105_v56, %v7352_v48  ;;  %v1068_v52 = vmul.f32 %v6607_v35, %v1067_v46 }
 0x61e   : > { %v1079_v57 = vmul.f32 0.5, %v1078_v51 }
 0x61f   : > { %v1133_v34 = vmul.f32 %v1128_v18, %v1109_v32  ;;  %v1069_v48 = vmul.f32 0.5, %v1068_v52 }
 0x620   : > { %v1080_v61 = vsub.f32 1.5, %v1079_v57 }
 0x621   : > { %v1157_v38 = vadd.f32 %v1152_v28, %v1133_v34  ;;  %v1147_v39 = vpop.permute.xlu0 %1146  ;;  %v1070_v62 = vsub.f32 1.5, %v1069_v48  ;;  %v6184_v48 = vld [vmem:[%s8796_s6 + $0x78] sm:$0xff] }
 0x622   : > { %v1156_v42 = vadd.f32 %v1147_v39, %v1132_v36  ;;  %v1081_v1 = vmul.f32 %v6605_v33, %v1080_v61  ;;  %v6180_v39 = vld [vmem:[%s8819_s5 + $0x28] sm:$0xff] }
 0x623   : > { %v1159_v45 = vsub.f32 0.0, %v1157_v38  ;;  %v1071_v0 = vmul.f32 %v6607_v35, %v1070_v62  ;;  %v6179_v38 = vld [vmem:[%s8819_s5 + $0x20] sm:$0xff] }
 0x624   : > { %v1158_v47 = vsub.f32 0.0, %v1156_v42  ;;  %v1085_v6 = vsel %vm1084_vm7, %v6605_v33, %v1081_v1  ;;  %v1370_v62 = vld [vmem:[%s8799_s9] sm:$0xff] }
 0x625   : > { %v1162_v49 = vmul.f32 1.442695, %v1159_v45  ;;  %v1075_v5 = vsel %vm1074_vm8, %v6607_v35, %v1071_v0  ;;  %v1107_v12 = vmul.f32 %v1085_v6, %v7358_v53 }
 0x626   : > { %v1160_v50 = vmul.f32 1.442695, %v1158_v47  ;;  %v1106_v10 = vmul.f32 %v1075_v5, %v7360_v55  ;;  %v1113_v14 = vpop.permute.xlu1 %1112  ;;  %v6183_v47 = vld [vmem:[%s8796_s6 + $0x68] sm:$0xff] }
 0x627   : > { %6608 = vpow2.f32 %v1162_v49  ;;  %v6186_v49 = vld [vmem:[%s8797_s7 + $0x78] sm:$0xff] }
 0x628   : > { %6610 = vpow2.f32 %v1160_v50  ;;  %v1130_v24 = vmul.f32 %v1113_v14, %v1106_v10  ;;  %v6185_v50 = vld [vmem:[%s8797_s7 + $0x68] sm:$0xff] }
 0x629   : > { %v1118_v43 = vpop.permute.xlu0 %1117 }
 0x62a   : > { %v1131_v19 = vmul.f32 %v1118_v43, %v1107_v12 }
 0x62d   : > { %v6609_v58 = vpop.eup %6608 }
 0x62e   : > { %v6611_v59 = vpop.eup %6610  ;;  %v1165_v60 = vadd.f32 1.0, %v6609_v58 }
 0x62f   : > { %v1164_v63 = vadd.f32 1.0, %v6611_v59 }
 0x630   : > { %6612 = vrcp.f32 %v1165_v60  ;;  %v1192_v13 = vand.u32 2147483648, %v1165_v60  ;;  %v1190_v15 = vand.u32 2147483647, %v1165_v60  ;;  %vm1186_vm11 = vweird.f32 %v1165_v60 }
 0x631   : > { %6614 = vrcp.f32 %v1164_v63  ;;  %v1142_v41 = vpop.permute.xlu0 %1141  ;;  %v1177_v16 = vand.u32 2147483648, %v1164_v63  ;;  %v1175_v54 = vand.u32 2147483647, %v1164_v63  ;;  %vm1171_vm13 = vweird.f32 %v1164_v63 }
 0x632   : > { %v1193_v25 = vor.u32 1.1754944e-38, %v1192_v13  ;;  %v1155_v53 = vadd.f32 %v1142_v41, %v1131_v19  ;;  %vm1191_vm14 = vcmp.eq.f32.partialorder %v1190_v15, 8.507059e+37 }
 0x633   : > { %v1178_v27 = vor.u32 1.1754944e-38, %v1177_v16  ;;  %vm1176_vm1 = vcmp.eq.f32.partialorder %v1175_v54, 8.507059e+37 }
 0x636   : > { %v6613_v2 = vpop.eup %6612 }
 0x637   : > { %v6615_v3 = vpop.eup %6614  ;;  %v1182_v7 = vmul.f32 %v6613_v2, %v1165_v60  ;;  %vm1187_vm9 = vweird.f32 %v6613_v2 }
 0x638   : > { %v1167_v8 = vmul.f32 %v6615_v3, %v1164_v63  ;;  %vm1172_vm10 = vweird.f32 %v6615_v3  ;;  %vm1188_vm12 = vmor %vm1186_vm11, %vm1187_vm9 }
 0x639   : > { %v1183_v9 = vsub.f32 1.0, %v1182_v7  ;;  %v1137_v23 = vpop.permute.xlu0 %1136  ;;  %vm1173_vm15 = vmor %vm1171_vm13, %vm1172_vm10 }
 0x63a   : > { %v1168_v40 = vsub.f32 1.0, %v1167_v8  ;;  %v1154_v29 = vadd.f32 %v1137_v23, %v1130_v24 }
 0x63b   : > { %v1184_v20 = vmul.f32 %v6613_v2, %v1183_v9 }
 0x63c   : > { %v1169_v18 = vmul.f32 %v6615_v3, %v1168_v40 }
 0x63d   : > { %v1185_v21 = vadd.f32 %v6613_v2, %v1184_v20 }
 0x63e   : > { %v1170_v55 = vadd.f32 %v6615_v3, %v1169_v18 }
 0x63f   : > { %v1189_v26 = vsel %vm1188_vm12, %v6613_v2, %v1185_v21  ;;  %vm1340_vm12 = vcmask 64512  }
 0x640   : > { %v1194_v28 = vsel %vm1191_vm14, %v1193_v25, %v1189_v26  ;;  %v1174_v31 = vsel %vm1173_vm15, %v6615_v3, %v1170_v55 }
 0x641   : > { %v1197_v56 = vmul.f32 %v1194_v28, %v1155_v53  ;;  %v1179_v22 = vsel %vm1176_vm1, %v1178_v27, %v1174_v31 }
 0x642   : > { %v1196_v32 = vmul.f32 %v1179_v22, %v1154_v29 }
 0x643   : > { %v1199_v33 = vadd.f32 %v1197_v56, %v7319_v4  ;;  %v6181_v4 = vld [vmem:[%s8819_s5 + $0x30] sm:$0xff] }
 0x644   : > { %v1198_v34 = vadd.f32 %v1196_v32, %v7324_v30  ;;  %v6182_v30 = vld [vmem:[%s8819_s5 + $0x38] sm:$0xff] }
 0x645   : > { %v7397_v35 = vmul.f32 0.70710677, %v1199_v33 }
 0x646   : > { %v1200_v36 = vmul.f32 0.70710677, %v1198_v34 }
 0x647   : > { %1239 = vmatpush.msra.mxu3 %v7397_v35 }
 0x649   : > { %1240 = vmatpush.msra.mxu3 %v1200_v36 }
 0x64a   : > { %6187 = vmatmul.msk.f32.vlgmr.msra.gmra.mxu3 %vm535_vm0, %v6179_v38 }
 0x652   : > { %6188 = vmatmul.msk.f32.gmra.mxu3 %vm535_vm0, %v6180_v39 }
 0x65a   : > { %6189 = vmatmul.msk.f32.gmra.mxu3 %vm535_vm0, %v6181_v4 }
 0x662   : > { %6190 = vmatmul.msk.f32.gmra.mxu3 %vm535_vm0, %v6182_v30 }
 0x6cd   : > { %v1242_v42 = vpop.f32.mrf.mxu3 }
 0x6d5   : > { %v1244_v44 = vpop.f32.mrf.mxu3 }
 0x6d6   : > { %1252 = vadd.xlane.f32.xlu1 %v1244_v44 }
 0x6dd   : > { %v1247_v46 = vpop.f32.mrf.mxu3 }
 0x6e5   : > { %v1249_v45 = vpop.f32.mrf.mxu3 }
 0x6e6   : > { %1254 = vadd.xlane.f32.xlu0 %v1249_v45 }
 0x6ef   : > { %1294 = vperm.xlu1 %6564, %v6183_v47   ;;  %v1338_v47 = vld [vmem:[%s8798_s8] sm:$0xff] }
 0x6fa   : > { %1311 = vperm.xlu0 %6563, %v6186_v49   ;;  %v1339_v49 = vld [vmem:[%s8798_s8 + $0x8] sm:$0xff] }
 0x702   : > { %1306 = vperm.xlu0 %6563, %v6185_v50  }
 0x749   : > { %v1253_v58 = vpop.xlane.xlu1 %1252 }
 0x74a   : > { %v1256_v59 = vmul.f32 %v1253_v58, %v7228_v37 }
 0x74c   : > { %v1258_v60 = vsub.f32 %v1244_v44, %v1256_v59 }
 0x74e   : > { %v1260_v61 = vmul.f32 %v1258_v60, %v1258_v60 }
 0x759   : > { %v1255_v51 = vpop.xlane.xlu0 %1254 }
 0x75a   : > { %v1257_v52 = vmul.f32 %v1255_v51, %v7228_v37 }
 0x75c   : > { %v1259_v43 = vsub.f32 %v1249_v45, %v1257_v52  ;;  %v1372_v52 = vld [vmem:[%s8800_s10] sm:$0xff] }
 0x75e   : > { %v1261_v57 = vmul.f32 %v1259_v43, %v1259_v43 }
 0x760   : > { %1264 = vadd.xlane.f32.xlu2 %v1261_v57 }
 0x761   : > { %v1295_v34 = vpop.permute.xlu1 %1294 }
 0x76c   : > { %v1312_v13 = vpop.permute.xlu0 %1311 }
 0x774   : > { %v1307_v39 = vpop.permute.xlu0 %1306 }
 0x778   : > { %1299 = vperm.xlu2 %6565, %v6184_v48  }
 0x7a1   : > { %1262 = vadd.xlane.f32.xlu2 %v1260_v61 }
 0x7b9   : > { %1416 = vperm.xlu2 %6565, %v1370_v62  }
 0x7d3   : > { %v1265_v63 = vpop.xlane.xlu2 %1264 }
 0x7d4   : > { %v1267_v0 = vmul.f32 %v1265_v63, %v7228_v37  ;;  %v1373_v63 = vld [vmem:[%s8800_s10 + $0x8] sm:$0xff] }
 0x7d6   : > { %v1269_v1 = vadd.f32 1e-05, %v1267_v0 }
 0x7d8   : > { %6616 = vrsqrt.f32 %v1269_v1  ;;  %vm1286_vm3 = vweird.f32 %v1269_v1 }
 0x7db   : > { %v1300_v10 = vpop.permute.xlu2 %1299 }
 0x7de   : > { %v6617_v41 = vpop.eup %6616 }
 0x7df   : > { %v1281_v2 = vmul.f32 %v6617_v41, %v1269_v1  ;;  %vm1287_vm2 = vweird.f32 %v6617_v41 }
 0x7e0   : > { %vm1288_vm4 = vmor %vm1286_vm3, %vm1287_vm2 }
 0x7e1   : > { %v1282_v3 = vmul.f32 %v6617_v41, %v1281_v2 }
 0x7e3   : > { %v1283_v5 = vmul.f32 0.5, %v1282_v3 }
 0x7e5   : > { %v1284_v6 = vsub.f32 1.5, %v1283_v5 }
 0x7e7   : > { %v1285_v7 = vmul.f32 %v6617_v41, %v1284_v6 }
 0x7e9   : > { %v1289_v8 = vsel %vm1288_vm4, %v6617_v41, %v1285_v7 }
 0x7ea   : > { %v1291_v9 = vmul.f32 %v1289_v8, %v1259_v43 }
 0x7ec   : > { %v1303_v12 = vmul.f32 %v1300_v10, %v1291_v9 }
 0x7ee   : > { %v1315_v40 = vadd.f32 %v1312_v13, %v1303_v12 }
 0x7f0   : > { %v1316_v14 = vsub.f32 0.0, %v1315_v40 }
 0x7f2   : > { %v1317_v20 = vmul.f32 1.442695, %v1316_v14 }
 0x7f4   : > { %6618 = vpow2.f32 %v1317_v20 }
 0x7fa   : > { %v6619_v15 = vpop.eup %6618 }
 0x7fb   : > { %v1319_v16 = vadd.f32 1.0, %v6619_v15 }
 0x7fd   : > { %6620 = vrcp.f32 %v1319_v16  ;;  %v1331_v22 = vand.u32 2147483648, %v1319_v16  ;;  %vm1325_vm9 = vweird.f32 %v1319_v16  ;;  %v1329_v33 = vand.u32 2147483647, %v1319_v16 }
 0x7ff   : > { %v1332_v4 = vor.u32 1.1754944e-38, %v1331_v22  ;;  %vm1330_vm11 = vcmp.eq.f32.partialorder %v1329_v33, 8.507059e+37 }
 0x803   : > { %v6621_v21 = vpop.eup %6620 }
 0x804   : > { %v1321_v23 = vmul.f32 %v6621_v21, %v1319_v16  ;;  %vm1326_vm8 = vweird.f32 %v6621_v21 }
 0x805   : > { %vm1327_vm10 = vmor %vm1325_vm9, %vm1326_vm8 }
 0x806   : > { %v1322_v55 = vsub.f32 1.0, %v1321_v23 }
 0x808   : > { %v1323_v27 = vmul.f32 %v6621_v21, %v1322_v55 }
 0x80a   : > { %v1324_v31 = vadd.f32 %v6621_v21, %v1323_v27 }
 0x80c   : > { %v1328_v38 = vsel %vm1327_vm10, %v6621_v21, %v1324_v31 }
 0x80d   : > { %v1333_v42 = vsel %vm1330_vm11, %v1332_v4, %v1328_v38 }
 0x814   : > { %v1263_v18 = vpop.xlane.xlu2 %1262 }
 0x815   : > { %v1266_v54 = vmul.f32 %v1263_v18, %v7228_v37 }
 0x817   : > { %v1268_v19 = vadd.f32 1e-05, %v1266_v54 }
 0x819   : > { %6622 = vrsqrt.f32 %v1268_v19  ;;  %vm1276_vm6 = vweird.f32 %v1268_v19 }
 0x81c   : > { %v1417_v0 = vpop.permute.xlu2 %1416 }
 0x81f   : > { %v6623_v24 = vpop.eup %6622 }
 0x820   : > { %v1271_v25 = vmul.f32 %v6623_v24, %v1268_v19  ;;  %vm1277_vm5 = vweird.f32 %v6623_v24 }
 0x821   : > { %vm1278_vm7 = vmor %vm1276_vm6, %vm1277_vm5 }
 0x822   : > { %v1272_v53 = vmul.f32 %v6623_v24, %v1271_v25 }
 0x824   : > { %v1273_v26 = vmul.f32 0.5, %v1272_v53 }
 0x826   : > { %v1274_v28 = vsub.f32 1.5, %v1273_v26 }
 0x828   : > { %v1275_v29 = vmul.f32 %v6623_v24, %v1274_v28 }
 0x82a   : > { %v1279_v56 = vsel %vm1278_vm7, %v6623_v24, %v1275_v29 }
 0x82b   : > { %v1290_v32 = vmul.f32 %v1279_v56, %v1258_v60 }
 0x82d   : > { %v1302_v36 = vmul.f32 %v1295_v34, %v1290_v32 }
 0x82f   : > { %v1314_v30 = vadd.f32 %v1307_v39, %v1302_v36  ;;  %v7044_v39 = vmov 0.0  }
 0x831   : > { %v1335_v44 = vmul.f32 %v1333_v42, %v1314_v30 }
 0x833   : > { %v1336_v46 = vadd.f32 %v1335_v44, %v7397_v35  ;;  %v1371_v35 = vld [vmem:[%s8799_s9 + $0x8] sm:$0xff] }
 0x835   : > { %v1337_v45 = vmul.f32 0.70710677, %v1336_v46 }
 0x837   : > { %1362 = vmatpush.msrb.mxu0 %v1337_v45 }
 0x838   : > { %6191 = vmatmul.msk.f32.vlgmr.msrb.gmra.mxu0 %vm1340_vm12, %v1338_v47 }
 0x840   : > { %6192 = vmatmul.msk.f32.gmra.mxu0 %vm1340_vm12, %v1339_v49 }
 0x8b5   : > { %v1364_v50 = vpop.f32.mrf.mxu0 }
 0x8b6   : > { %1374 = vadd.xlane.f32.xlu1 %v1364_v50 }
 0x8bd   : > { %v1367_v51 = vpop.f32.mrf.mxu0 }
 0x8be   : > { %1376 = vadd.xlane.f32.xlu0 %v1367_v51 }
 0x8cf   : > { %1421 = vperm.xlu1 %6564, %v1371_v35  }
 0x8d2   : > { %1428 = vperm.xlu0 %6563, %v1372_v52  }
 0x929   : > { %v1375_v43 = vpop.xlane.xlu1 %1374 }
 0x92a   : > { %v1378_v57 = vmul.f32 %v1375_v43, %v7228_v37 }
 0x92c   : > { %v1380_v48 = vsub.f32 %v1364_v50, %v1378_v57 }
 0x92e   : > { %v1382_v58 = vmul.f32 %v1380_v48, %v1380_v48 }
 0x930   : > { %1384 = vadd.xlane.f32.xlu2 %v1382_v58 }
 0x931   : > { %v1377_v59 = vpop.xlane.xlu0 %1376 }
 0x932   : > { %v1379_v60 = vmul.f32 %v1377_v59, %v7228_v37 }
 0x934   : > { %v1381_v61 = vsub.f32 %v1367_v51, %v1379_v60 }
 0x936   : > { %v1383_v62 = vmul.f32 %v1381_v61, %v1381_v61 }
 0x938   : > { %1386 = vadd.xlane.f32.xlu2 %v1383_v62 }
 0x941   : > { %v1422_v25 = vpop.permute.xlu1 %1421 }
 0x944   : > { %v1429_v53 = vpop.permute.xlu0 %1428 }
 0x950   : > { %1433 = vperm.xlu2 %6565, %v1373_v63  }
 0x9a3   : > { %v1385_v1 = vpop.xlane.xlu2 %1384 }
 0x9a4   : > { %v1388_v41 = vmul.f32 %v1385_v1, %v7228_v37 }
 0x9a6   : > { %v1390_v2 = vadd.f32 1e-05, %v1388_v41 }
 0x9a8   : > { %6624 = vrsqrt.f32 %v1390_v2  ;;  %vm1398_vm14 = vweird.f32 %v1390_v2 }
 0x9ab   : > { %v1387_v3 = vpop.xlane.xlu2 %1386 }
 0x9ac   : > { %v1389_v5 = vmul.f32 %v1387_v3, %v7228_v37 }
 0x9ae   : > { %v6625_v6 = vpop.eup %6624  ;;  %v1391_v7 = vadd.f32 1e-05, %v1389_v5 }
 0x9af   : > { %v1393_v8 = vmul.f32 %v6625_v6, %v1390_v2  ;;  %vm1399_vm13 = vweird.f32 %v6625_v6 }
 0x9b0   : > { %6626 = vrsqrt.f32 %v1391_v7  ;;  %vm1400_vm15 = vmor %vm1398_vm14, %vm1399_vm13  ;;  %vm1408_vm2 = vweird.f32 %v1391_v7 }
 0x9b1   : > { %v1394_v9 = vmul.f32 %v6625_v6, %v1393_v8 }
 0x9b3   : > { %v1395_v10 = vmul.f32 0.5, %v1394_v9  ;;  %v1434_v26 = vpop.permute.xlu2 %1433 }
 0x9b5   : > { %v1396_v12 = vsub.f32 1.5, %v1395_v10 }
 0x9b6   : > { %v6627_v13 = vpop.eup %6626 }
 0x9b7   : > { %v1397_v40 = vmul.f32 %v6625_v6, %v1396_v12  ;;  %v1403_v14 = vmul.f32 %v6627_v13, %v1391_v7  ;;  %vm1409_vm1 = vweird.f32 %v6627_v13 }
 0x9b8   : > { %vm1410_vm3 = vmor %vm1408_vm2, %vm1409_vm1 }
 0x9b9   : > { %v1404_v20 = vmul.f32 %v6627_v13, %v1403_v14  ;;  %v1401_v15 = vsel %vm1400_vm15, %v6625_v6, %v1397_v40 }
 0x9ba   : > { %v1412_v54 = vmul.f32 %v1401_v15, %v1380_v48 }
 0x9bb   : > { %v1405_v16 = vmul.f32 0.5, %v1404_v20 }
 0x9bc   : > { %v1424_v23 = vmul.f32 %v1417_v0, %v1412_v54 }
 0x9bd   : > { %v1406_v18 = vsub.f32 1.5, %v1405_v16 }
 0x9be   : > { %v7457_v27 = vadd.f32 %v1429_v53, %v1424_v23 }
 0x9bf   : > { %v1407_v19 = vmul.f32 %v6627_v13, %v1406_v18 }
 0x9c1   : > { %v1411_v21 = vsel %vm1410_vm3, %v6627_v13, %v1407_v19 }
 0x9c2   : > { %v1413_v24 = vmul.f32 %v1411_v21, %v1381_v61 }
 0x9c4   : > { %v1425_v55 = vmul.f32 %v1422_v25, %v1413_v24 }
 0x9c6   : > { %v7459_v28 = vadd.f32 %v1434_v26, %v1425_v55 }
 0x9c8   : > { %v1438_v29 = vadd.f32 %v7459_v28, %v7457_v27 }
 0x9ca   : > { %v1439_v31 = vrot.slane %v1438_v29, 4 }
 0x9cc   : > { %v1440_v56 = vadd.f32 %v1439_v31, %v1438_v29 }
 0x9ce   : > { %v1441_v22 = vrot.slane %v1440_v56, 2 }
 0x9d0   : > { %v1442_v32 = vadd.f32 %v1441_v22, %v1440_v56 }
 0x9d2   : > { %v1443_v33 = vrot.slane %v1442_v32, 1 }
 0x9d4   : > { %v1444_v34 = vadd.f32 %v1443_v33, %v1442_v32 }
 0x9d6   : > { %v6193_v36 = vadd.f32 -1.0, %v1444_v34 }
 0x9d8   : > { %v1446_v38 = vmul.f32 0.0625, %v6193_v36 }
 0x9da   : > { %vm1447_vm4 = vcmp.gt.f32.partialorder %v7457_v27, %v1446_v38  ;;  %vm1448_vm5 = vcmp.gt.f32.partialorder %v7459_v28, %v1446_v38 }
 0x9db   : > { %v6194_v4 = vsel %vm1447_vm4, 1.0, %v7044_v39  ;;  %v6195_v30 = vsel %vm1448_vm5, 1.0, %v7044_v39 }
 0x9dc   : > { %v1453_v42 = vadd.f32 %v6195_v30, %v6194_v4  ;;  %v1460_v44 = vmul.f32 %v6194_v4, %v7457_v27  ;;  %v1461_v46 = vmul.f32 %v6195_v30, %v7459_v28 }
 0x9de   : > { %v1454_v45 = vrot.slane %v1453_v42, 4  ;;  %v1462_v47 = vadd.f32 %v1461_v46, %v1460_v44 }
 0x9e0   : > { %v1455_v49 = vadd.f32 %v1454_v45, %v1453_v42  ;;  %v1463_v50 = vrot.slane %v1462_v47, 4 }
 0x9e2   : > { %v1456_v51 = vrot.slane %v1455_v49, 2  ;;  %v1464_v52 = vadd.f32 %v1463_v50, %v1462_v47 }
 0x9e4   : > { %v1457_v35 = vadd.f32 %v1456_v51, %v1455_v49  ;;  %v1465_v48 = vrot.slane %v1464_v52, 2 }
 0x9e6   : > { %v1458_v43 = vrot.slane %v1457_v35, 1  ;;  %v1466_v58 = vadd.f32 %v1465_v48, %v1464_v52 }
 0x9e8   : > { %v1459_v57 = vadd.f32 %v1458_v43, %v1457_v35  ;;  %v1467_v60 = vrot.slane %v1466_v58, 1 }
 0x9ea   : > { %6628 = vrcp.f32 %v1459_v57  ;;  %v1481_v63 = vand.u32 2147483648, %v1459_v57  ;;  %v1468_v0 = vadd.f32 %v1467_v60, %v1466_v58  ;;  %v1479_v41 = vand.u32 2147483647, %v1459_v57 }
 0x9eb   : > { %vm1475_vm7 = vweird.f32 %v1459_v57 }
 0x9ec   : > { %v1482_v3 = vor.u32 1.1754944e-38, %v1481_v63  ;;  %v6196_v5 = vadd.f32 -1.0, %v1468_v0  ;;  %vm1480_vm9 = vcmp.eq.f32.partialorder %v1479_v41, 8.507059e+37 }
 0x9f0   : > { %v6629_v59 = vpop.eup %6628 }
 0x9f1   : > { %v1471_v61 = vmul.f32 %v6629_v59, %v1459_v57  ;;  %vm1476_vm6 = vweird.f32 %v6629_v59 }
 0x9f2   : > { %vm1477_vm8 = vmor %vm1475_vm7, %vm1476_vm6 }
 0x9f3   : > { %v1472_v62 = vsub.f32 1.0, %v1471_v61 }
 0x9f5   : > { %v1473_v1 = vmul.f32 %v6629_v59, %v1472_v62 }
 0x9f7   : > { %v1474_v2 = vadd.f32 %v6629_v59, %v1473_v1 }
 0x9f9   : > { %v1478_v6 = vsel %vm1477_vm8, %v6629_v59, %v1474_v2 }
 0x9fa   : > { %v1483_v7 = vsel %vm1480_vm9, %v1482_v3, %v1478_v6 }
 0x9fb   : > { %v1484_v8 = vmul.f32 %v6196_v5, %v1483_v7 }
 0x9fd   : > { %vm1485_vm10 = vcmp.gt.f32.partialorder %v7457_v27, %v1484_v8  ;;  %vm1486_vm11 = vcmp.gt.f32.partialorder %v7459_v28, %v1484_v8 }
 0x9fe   : > { %v6197_v9 = vsel %vm1485_vm10, 1.0, %v7044_v39  ;;  %v6198_v10 = vsel %vm1486_vm11, 1.0, %v7044_v39 }
 0x9ff   : > { %v1491_v12 = vadd.f32 %v6198_v10, %v6197_v9  ;;  %v1498_v13 = vmul.f32 %v6197_v9, %v7457_v27  ;;  %v1499_v40 = vmul.f32 %v6198_v10, %v7459_v28 }
 0xa01   : > { %v1492_v14 = vrot.slane %v1491_v12, 4  ;;  %v1500_v20 = vadd.f32 %v1499_v40, %v1498_v13 }
 0xa03   : > { %v1493_v15 = vadd.f32 %v1492_v14, %v1491_v12  ;;  %v1501_v16 = vrot.slane %v1500_v20, 4 }
 0xa05   : > { %v1494_v18 = vrot.slane %v1493_v15, 2  ;;  %v1502_v19 = vadd.f32 %v1501_v16, %v1500_v20 }
 0xa07   : > { %v1495_v54 = vadd.f32 %v1494_v18, %v1493_v15  ;;  %v1503_v24 = vrot.slane %v1502_v19, 2 }
 0xa09   : > { %v1496_v21 = vrot.slane %v1495_v54, 1  ;;  %v1504_v25 = vadd.f32 %v1503_v24, %v1502_v19 }
 0xa0b   : > { %v1497_v23 = vadd.f32 %v1496_v21, %v1495_v54  ;;  %v1505_v53 = vrot.slane %v1504_v25, 1 }
 0xa0d   : > { %6630 = vrcp.f32 %v1497_v23  ;;  %v1519_v31 = vand.u32 2147483648, %v1497_v23  ;;  %v1506_v56 = vadd.f32 %v1505_v53, %v1504_v25  ;;  %v1517_v32 = vand.u32 2147483647, %v1497_v23 }
 0xa0e   : > { %vm1513_vm14 = vweird.f32 %v1497_v23 }
 0xa0f   : > { %v1520_v34 = vor.u32 1.1754944e-38, %v1519_v31  ;;  %v6199_v36 = vadd.f32 -1.0, %v1506_v56  ;;  %vm1518_vm1 = vcmp.eq.f32.partialorder %v1517_v32, 8.507059e+37 }
 0xa13   : > { %v6631_v55 = vpop.eup %6630 }
 0xa14   : > { %v1509_v26 = vmul.f32 %v6631_v55, %v1497_v23  ;;  %vm1514_vm13 = vweird.f32 %v6631_v55 }
 0xa15   : > { %vm1515_vm15 = vmor %vm1513_vm14, %vm1514_vm13 }
 0xa16   : > { %v1510_v29 = vsub.f32 1.0, %v1509_v26 }
 0xa18   : > { %v1511_v22 = vmul.f32 %v6631_v55, %v1510_v29 }
 0xa1a   : > { %v1512_v33 = vadd.f32 %v6631_v55, %v1511_v22 }
 0xa1c   : > { %v1516_v38 = vsel %vm1515_vm15, %v6631_v55, %v1512_v33 }
 0xa1d   : > { %v1521_v4 = vsel %vm1518_vm1, %v1520_v34, %v1516_v38 }
 0xa1e   : > { %v1522_v30 = vmul.f32 %v6199_v36, %v1521_v4 }
 0xa20   : > { %vm1523_vm2 = vcmp.gt.f32.partialorder %v7457_v27, %v1522_v30  ;;  %vm1524_vm3 = vcmp.gt.f32.partialorder %v7459_v28, %v1522_v30 }
 0xa21   : > { %v6200_v42 = vsel %vm1523_vm2, 1.0, %v7044_v39  ;;  %v6201_v44 = vsel %vm1524_vm3, 1.0, %v7044_v39 }
 0xa22   : > { %v1529_v46 = vadd.f32 %v6201_v44, %v6200_v42  ;;  %v1536_v45 = vmul.f32 %v6200_v42, %v7457_v27  ;;  %v1537_v47 = vmul.f32 %v6201_v44, %v7459_v28 }
 0xa24   : > { %v1530_v49 = vrot.slane %v1529_v46, 4  ;;  %v1538_v50 = vadd.f32 %v1537_v47, %v1536_v45 }
 0xa26   : > { %v1531_v51 = vadd.f32 %v1530_v49, %v1529_v46  ;;  %v1539_v35 = vrot.slane %v1538_v50, 4 }
 0xa28   : > { %v1532_v52 = vrot.slane %v1531_v51, 2  ;;  %v1540_v57 = vadd.f32 %v1539_v35, %v1538_v50 }
 0xa2a   : > { %v1533_v43 = vadd.f32 %v1532_v52, %v1531_v51  ;;  %v1541_v59 = vrot.slane %v1540_v57, 2 }
 0xa2c   : > { %v1534_v48 = vrot.slane %v1533_v43, 1  ;;  %v1542_v60 = vadd.f32 %v1541_v59, %v1540_v57 }
 0xa2e   : > { %v1535_v58 = vadd.f32 %v1534_v48, %v1533_v43  ;;  %v1543_v62 = vrot.slane %v1542_v60, 1 }
 0xa30   : > { %6632 = vrcp.f32 %v1535_v58  ;;  %v1557_v1 = vand.u32 2147483648, %v1535_v58  ;;  %v1544_v41 = vadd.f32 %v1543_v62, %v1542_v60  ;;  %v1555_v3 = vand.u32 2147483647, %v1535_v58 }
 0xa31   : > { %vm1551_vm5 = vweird.f32 %v1535_v58 }
 0xa32   : > { %v1558_v6 = vor.u32 1.1754944e-38, %v1557_v1  ;;  %v6202_v7 = vadd.f32 -1.0, %v1544_v41  ;;  %vm1556_vm7 = vcmp.eq.f32.partialorder %v1555_v3, 8.507059e+37 }
 0xa36   : > { %v6633_v61 = vpop.eup %6632 }
 0xa37   : > { %v1547_v63 = vmul.f32 %v6633_v61, %v1535_v58  ;;  %vm1552_vm4 = vweird.f32 %v6633_v61 }
 0xa38   : > { %vm1553_vm6 = vmor %vm1551_vm5, %vm1552_vm4 }
 0xa39   : > { %v1548_v0 = vsub.f32 1.0, %v1547_v63 }
 0xa3b   : > { %v1549_v2 = vmul.f32 %v6633_v61, %v1548_v0 }
 0xa3d   : > { %v1550_v5 = vadd.f32 %v6633_v61, %v1549_v2 }
 0xa3f   : > { %v1554_v8 = vsel %vm1553_vm6, %v6633_v61, %v1550_v5 }
 0xa40   : > { %v1559_v9 = vsel %vm1556_vm7, %v1558_v6, %v1554_v8 }
 0xa41   : > { %v1560_v10 = vmul.f32 %v6202_v7, %v1559_v9 }
 0xa43   : > { %vm1561_vm8 = vcmp.gt.f32.partialorder %v7457_v27, %v1560_v10  ;;  %vm1562_vm9 = vcmp.gt.f32.partialorder %v7459_v28, %v1560_v10 }
 0xa44   : > { %v6203_v12 = vsel %vm1561_vm8, 1.0, %v7044_v39  ;;  %v6204_v13 = vsel %vm1562_vm9, 1.0, %v7044_v39 }
 0xa45   : > { %v1567_v40 = vadd.f32 %v6204_v13, %v6203_v12  ;;  %v1574_v14 = vmul.f32 %v6203_v12, %v7457_v27  ;;  %v1575_v20 = vmul.f32 %v6204_v13, %v7459_v28 }
 0xa47   : > { %v1568_v15 = vrot.slane %v1567_v40, 4  ;;  %v1576_v16 = vadd.f32 %v1575_v20, %v1574_v14 }
 0xa49   : > { %v1569_v18 = vadd.f32 %v1568_v15, %v1567_v40  ;;  %v1577_v54 = vrot.slane %v1576_v16, 4 }
 0xa4b   : > { %v1570_v19 = vrot.slane %v1569_v18, 2  ;;  %v1578_v23 = vadd.f32 %v1577_v54, %v1576_v16 }
 0xa4d   : > { %v1571_v21 = vadd.f32 %v1570_v19, %v1569_v18  ;;  %v1579_v55 = vrot.slane %v1578_v23, 2 }
 0xa4f   : > { %v1572_v24 = vrot.slane %v1571_v21, 1  ;;  %v1580_v53 = vadd.f32 %v1579_v55, %v1578_v23 }
 0xa51   : > { %v1573_v25 = vadd.f32 %v1572_v24, %v1571_v21  ;;  %v1581_v29 = vrot.slane %v1580_v53, 1 }
 0xa53   : > { %6634 = vrcp.f32 %v1573_v25  ;;  %v1595_v22 = vand.u32 2147483648, %v1573_v25  ;;  %v1582_v32 = vadd.f32 %v1581_v29, %v1580_v53  ;;  %v1593_v34 = vand.u32 2147483647, %v1573_v25 }
 0xa54   : > { %vm1589_vm11 = vweird.f32 %v1573_v25 }
 0xa55   : > { %v1596_v38 = vor.u32 1.1754944e-38, %v1595_v22  ;;  %v6205_v4 = vadd.f32 -1.0, %v1582_v32  ;;  %vm1594_vm14 = vcmp.eq.f32.partialorder %v1593_v34, 8.507059e+37 }
 0xa59   : > { %v6635_v26 = vpop.eup %6634 }
 0xa5a   : > { %v1585_v31 = vmul.f32 %v6635_v26, %v1573_v25  ;;  %vm1590_vm10 = vweird.f32 %v6635_v26 }
 0xa5b   : > { %vm1591_vm13 = vmor %vm1589_vm11, %vm1590_vm10 }
 0xa5c   : > { %v1586_v56 = vsub.f32 1.0, %v1585_v31 }
 0xa5e   : > { %v1587_v33 = vmul.f32 %v6635_v26, %v1586_v56 }
 0xa60   : > { %v1588_v36 = vadd.f32 %v6635_v26, %v1587_v33 }
 0xa62   : > { %v1592_v30 = vsel %vm1591_vm13, %v6635_v26, %v1588_v36 }
 0xa63   : > { %v1597_v42 = vsel %vm1594_vm14, %v1596_v38, %v1592_v30 }
 0xa64   : > { %v1598_v44 = vmul.f32 %v6205_v4, %v1597_v42 }
 0xa66   : > { %vm1599_vm15 = vcmp.gt.f32.partialorder %v7457_v27, %v1598_v44  ;;  %vm1600_vm1 = vcmp.gt.f32.partialorder %v7459_v28, %v1598_v44 }
 0xa67   : > { %v6206_v46 = vsel %vm1599_vm15, 1.0, %v7044_v39  ;;  %v6207_v45 = vsel %vm1600_vm1, 1.0, %v7044_v39 }
 0xa68   : > { %v1605_v47 = vadd.f32 %v6207_v45, %v6206_v46  ;;  %v1612_v49 = vmul.f32 %v6206_v46, %v7457_v27  ;;  %v1613_v50 = vmul.f32 %v6207_v45, %v7459_v28 }
 0xa6a   : > { %v1606_v51 = vrot.slane %v1605_v47, 4  ;;  %v1614_v35 = vadd.f32 %v1613_v50, %v1612_v49 }
 0xa6c   : > { %v1607_v52 = vadd.f32 %v1606_v51, %v1605_v47  ;;  %v1615_v43 = vrot.slane %v1614_v35, 4 }
 0xa6e   : > { %v1608_v57 = vrot.slane %v1607_v52, 2  ;;  %v1616_v58 = vadd.f32 %v1615_v43, %v1614_v35 }
 0xa70   : > { %v1609_v48 = vadd.f32 %v1608_v57, %v1607_v52  ;;  %v1617_v61 = vrot.slane %v1616_v58, 2 }
 0xa72   : > { %v1610_v59 = vrot.slane %v1609_v48, 1  ;;  %v1618_v62 = vadd.f32 %v1617_v61, %v1616_v58 }
 0xa74   : > { %v1611_v60 = vadd.f32 %v1610_v59, %v1609_v48  ;;  %v1619_v0 = vrot.slane %v1618_v62, 1 }
 0xa76   : > { %6636 = vrcp.f32 %v1611_v60  ;;  %v1633_v2 = vand.u32 2147483648, %v1611_v60  ;;  %v1620_v3 = vadd.f32 %v1619_v0, %v1618_v62  ;;  %v1631_v6 = vand.u32 2147483647, %v1611_v60 }
 0xa77   : > { %vm1627_vm3 = vweird.f32 %v1611_v60 }
 0xa78   : > { %v1634_v8 = vor.u32 1.1754944e-38, %v1633_v2  ;;  %v6208_v9 = vadd.f32 -1.0, %v1620_v3  ;;  %vm1632_vm5 = vcmp.eq.f32.partialorder %v1631_v6, 8.507059e+37 }
 0xa7c   : > { %v6637_v63 = vpop.eup %6636 }
 0xa7d   : > { %v1623_v1 = vmul.f32 %v6637_v63, %v1611_v60  ;;  %vm1628_vm2 = vweird.f32 %v6637_v63 }
 0xa7e   : > { %vm1629_vm4 = vmor %vm1627_vm3, %vm1628_vm2 }
 0xa7f   : > { %v1624_v41 = vsub.f32 1.0, %v1623_v1 }
 0xa81   : > { %v1625_v5 = vmul.f32 %v6637_v63, %v1624_v41 }
 0xa83   : > { %v1626_v7 = vadd.f32 %v6637_v63, %v1625_v5 }
 0xa85   : > { %v1630_v10 = vsel %vm1629_vm4, %v6637_v63, %v1626_v7 }
 0xa86   : > { %v1635_v12 = vsel %vm1632_vm5, %v1634_v8, %v1630_v10 }
 0xa87   : > { %v1636_v13 = vmul.f32 %v6208_v9, %v1635_v12 }
 0xa89   : > { %vm1637_vm6 = vcmp.gt.f32.partialorder %v7457_v27, %v1636_v13  ;;  %vm1638_vm7 = vcmp.gt.f32.partialorder %v7459_v28, %v1636_v13 }
 0xa8a   : > { %v6209_v40 = vsel %vm1637_vm6, 1.0, %v7044_v39  ;;  %v6210_v14 = vsel %vm1638_vm7, 1.0, %v7044_v39 }
 0xa8b   : > { %v1643_v20 = vadd.f32 %v6210_v14, %v6209_v40  ;;  %v1650_v15 = vmul.f32 %v6209_v40, %v7457_v27  ;;  %v1651_v16 = vmul.f32 %v6210_v14, %v7459_v28 }
 0xa8d   : > { %v1644_v18 = vrot.slane %v1643_v20, 4  ;;  %v1652_v54 = vadd.f32 %v1651_v16, %v1650_v15 }
 0xa8f   : > { %v1645_v19 = vadd.f32 %v1644_v18, %v1643_v20  ;;  %v1653_v21 = vrot.slane %v1652_v54, 4 }
 0xa91   : > { %v1646_v23 = vrot.slane %v1645_v19, 2  ;;  %v1654_v25 = vadd.f32 %v1653_v21, %v1652_v54 }
 0xa93   : > { %v1647_v24 = vadd.f32 %v1646_v23, %v1645_v19  ;;  %v1655_v26 = vrot.slane %v1654_v25, 2 }
 0xa95   : > { %v1648_v55 = vrot.slane %v1647_v24, 1  ;;  %v1656_v29 = vadd.f32 %v1655_v26, %v1654_v25 }
 0xa97   : > { %v1649_v53 = vadd.f32 %v1648_v55, %v1647_v24  ;;  %v1657_v56 = vrot.slane %v1656_v29, 1 }
 0xa99   : > { %6638 = vrcp.f32 %v1649_v53  ;;  %v1671_v33 = vand.u32 2147483648, %v1649_v53  ;;  %v1658_v34 = vadd.f32 %v1657_v56, %v1656_v29  ;;  %v1669_v38 = vand.u32 2147483647, %v1649_v53 }
 0xa9a   : > { %vm1665_vm9 = vweird.f32 %v1649_v53 }
 0xa9b   : > { %v1672_v30 = vor.u32 1.1754944e-38, %v1671_v33  ;;  %v6211_v42 = vadd.f32 -1.0, %v1658_v34  ;;  %vm1670_vm11 = vcmp.eq.f32.partialorder %v1669_v38, 8.507059e+37 }
 0xa9f   : > { %v6639_v31 = vpop.eup %6638 }
 0xaa0   : > { %v1661_v22 = vmul.f32 %v6639_v31, %v1649_v53  ;;  %vm1666_vm8 = vweird.f32 %v6639_v31 }
 0xaa1   : > { %vm1667_vm10 = vmor %vm1665_vm9, %vm1666_vm8 }
 0xaa2   : > { %v1662_v32 = vsub.f32 1.0, %v1661_v22 }
 0xaa4   : > { %v1663_v36 = vmul.f32 %v6639_v31, %v1662_v32 }
 0xaa6   : > { %v1664_v4 = vadd.f32 %v6639_v31, %v1663_v36 }
 0xaa8   : > { %v1668_v44 = vsel %vm1667_vm10, %v6639_v31, %v1664_v4 }
 0xaa9   : > { %v1673_v46 = vsel %vm1670_vm11, %v1672_v30, %v1668_v44 }
 0xaaa   : > { %v1674_v45 = vmul.f32 %v6211_v42, %v1673_v46 }
 0xaac   : > { %vm1675_vm13 = vcmp.gt.f32.partialorder %v7457_v27, %v1674_v45  ;;  %vm1676_vm14 = vcmp.gt.f32.partialorder %v7459_v28, %v1674_v45 }
 0xaad   : > { %v6212_v47 = vsel %vm1675_vm13, 1.0, %v7044_v39  ;;  %v6213_v49 = vsel %vm1676_vm14, 1.0, %v7044_v39 }
 0xaae   : > { %v1681_v50 = vadd.f32 %v6213_v49, %v6212_v47  ;;  %v1688_v51 = vmul.f32 %v6212_v47, %v7457_v27  ;;  %v1689_v35 = vmul.f32 %v6213_v49, %v7459_v28 }
 0xab0   : > { %v1682_v52 = vrot.slane %v1681_v50, 4  ;;  %v1690_v43 = vadd.f32 %v1689_v35, %v1688_v51 }
 0xab2   : > { %v1683_v57 = vadd.f32 %v1682_v52, %v1681_v50  ;;  %v1691_v48 = vrot.slane %v1690_v43, 4 }
 0xab4   : > { %v1684_v58 = vrot.slane %v1683_v57, 2  ;;  %v1692_v60 = vadd.f32 %v1691_v48, %v1690_v43 }
 0xab6   : > { %v1685_v59 = vadd.f32 %v1684_v58, %v1683_v57  ;;  %v1693_v63 = vrot.slane %v1692_v60, 2 }
 0xab8   : > { %v1686_v61 = vrot.slane %v1685_v59, 1  ;;  %v1694_v0 = vadd.f32 %v1693_v63, %v1692_v60 }
 0xaba   : > { %v1687_v62 = vadd.f32 %v1686_v61, %v1685_v59  ;;  %v1695_v41 = vrot.slane %v1694_v0, 1 }
 0xabc   : > { %6640 = vrcp.f32 %v1687_v62  ;;  %v1709_v5 = vand.u32 2147483648, %v1687_v62  ;;  %v1696_v6 = vadd.f32 %v1695_v41, %v1694_v0  ;;  %v1707_v8 = vand.u32 2147483647, %v1687_v62 }
 0xabd   : > { %vm1703_vm1 = vweird.f32 %v1687_v62 }
 0xabe   : > { %v1710_v10 = vor.u32 1.1754944e-38, %v1709_v5  ;;  %v6214_v12 = vadd.f32 -1.0, %v1696_v6  ;;  %vm1708_vm3 = vcmp.eq.f32.partialorder %v1707_v8, 8.507059e+37 }
 0xac2   : > { %v6641_v1 = vpop.eup %6640 }
 0xac3   : > { %v1699_v2 = vmul.f32 %v6641_v1, %v1687_v62  ;;  %vm1704_vm15 = vweird.f32 %v6641_v1 }
 0xac4   : > { %vm1705_vm2 = vmor %vm1703_vm1, %vm1704_vm15 }
 0xac5   : > { %v1700_v3 = vsub.f32 1.0, %v1699_v2 }
 0xac7   : > { %v1701_v7 = vmul.f32 %v6641_v1, %v1700_v3 }
 0xac9   : > { %v1702_v9 = vadd.f32 %v6641_v1, %v1701_v7 }
 0xacb   : > { %v1706_v13 = vsel %vm1705_vm2, %v6641_v1, %v1702_v9 }
 0xacc   : > { %v1711_v40 = vsel %vm1708_vm3, %v1710_v10, %v1706_v13 }
 0xacd   : > { %v1712_v14 = vmul.f32 %v6214_v12, %v1711_v40 }
 0xacf   : > { %vm1713_vm4 = vcmp.gt.f32.partialorder %v7457_v27, %v1712_v14  ;;  %vm1714_vm5 = vcmp.gt.f32.partialorder %v7459_v28, %v1712_v14 }
 0xad0   : > { %v6215_v20 = vsel %vm1713_vm4, 1.0, %v7044_v39  ;;  %v6216_v15 = vsel %vm1714_vm5, 1.0, %v7044_v39 }
 0xad1   : > { %v1719_v16 = vadd.f32 %v6216_v15, %v6215_v20  ;;  %v1726_v18 = vmul.f32 %v6215_v20, %v7457_v27  ;;  %v1727_v54 = vmul.f32 %v6216_v15, %v7459_v28 }
 0xad3   : > { %v1720_v19 = vrot.slane %v1719_v16, 4  ;;  %v1728_v21 = vadd.f32 %v1727_v54, %v1726_v18 }
 0xad5   : > { %v1721_v23 = vadd.f32 %v1720_v19, %v1719_v16  ;;  %v1729_v24 = vrot.slane %v1728_v21, 4 }
 0xad7   : > { %v1722_v25 = vrot.slane %v1721_v23, 2  ;;  %v1730_v53 = vadd.f32 %v1729_v24, %v1728_v21 }
 0xad9   : > { %v1723_v55 = vadd.f32 %v1722_v25, %v1721_v23  ;;  %v1731_v31 = vrot.slane %v1730_v53, 2 }
 0xadb   : > { %v1724_v26 = vrot.slane %v1723_v55, 1  ;;  %v1732_v56 = vadd.f32 %v1731_v31, %v1730_v53 }
 0xadd   : > { %v1725_v29 = vadd.f32 %v1724_v26, %v1723_v55  ;;  %v1733_v32 = vrot.slane %v1732_v56, 1 }
 0xadf   : > { %6642 = vrcp.f32 %v1725_v29  ;;  %v1747_v36 = vand.u32 2147483648, %v1725_v29  ;;  %v1734_v38 = vadd.f32 %v1733_v32, %v1732_v56  ;;  %v1745_v30 = vand.u32 2147483647, %v1725_v29 }
 0xae0   : > { %vm1741_vm7 = vweird.f32 %v1725_v29 }
 0xae1   : > { %v1748_v44 = vor.u32 1.1754944e-38, %v1747_v36  ;;  %v6217_v46 = vadd.f32 -1.0, %v1734_v38  ;;  %vm1746_vm9 = vcmp.eq.f32.partialorder %v1745_v30, 8.507059e+37 }
 0xae5   : > { %v6643_v22 = vpop.eup %6642 }
 0xae6   : > { %v1737_v33 = vmul.f32 %v6643_v22, %v1725_v29  ;;  %vm1742_vm6 = vweird.f32 %v6643_v22 }
 0xae7   : > { %vm1743_vm8 = vmor %vm1741_vm7, %vm1742_vm6 }
 0xae8   : > { %v1738_v34 = vsub.f32 1.0, %v1737_v33 }
 0xaea   : > { %v1739_v4 = vmul.f32 %v6643_v22, %v1738_v34 }
 0xaec   : > { %v1740_v42 = vadd.f32 %v6643_v22, %v1739_v4 }
 0xaee   : > { %v1744_v45 = vsel %vm1743_vm8, %v6643_v22, %v1740_v42 }
 0xaef   : > { %v1749_v47 = vsel %vm1746_vm9, %v1748_v44, %v1744_v45 }
 0xaf0   : > { %v1750_v49 = vmul.f32 %v6217_v46, %v1749_v47 }
 0xaf2   : > { %vm1751_vm10 = vcmp.gt.f32.partialorder %v7457_v27, %v1750_v49  ;;  %vm1752_vm11 = vcmp.gt.f32.partialorder %v7459_v28, %v1750_v49 }
 0xaf3   : > { %v6218_v50 = vsel %vm1751_vm10, 1.0, %v7044_v39  ;;  %v6219_v51 = vsel %vm1752_vm11, 1.0, %v7044_v39 }
 0xaf4   : > { %v1757_v35 = vadd.f32 %v6219_v51, %v6218_v50  ;;  %v1764_v52 = vmul.f32 %v6218_v50, %v7457_v27  ;;  %v1765_v43 = vmul.f32 %v6219_v51, %v7459_v28 }
 0xaf6   : > { %v1758_v57 = vrot.slane %v1757_v35, 4  ;;  %v1766_v48 = vadd.f32 %v1765_v43, %v1764_v52 }
 0xaf8   : > { %v1759_v58 = vadd.f32 %v1758_v57, %v1757_v35  ;;  %v1767_v59 = vrot.slane %v1766_v48, 4 }
 0xafa   : > { %v1760_v60 = vrot.slane %v1759_v58, 2  ;;  %v1768_v62 = vadd.f32 %v1767_v59, %v1766_v48 }
 0xafc   : > { %v1761_v61 = vadd.f32 %v1760_v60, %v1759_v58  ;;  %v1769_v1 = vrot.slane %v1768_v62, 2 }
 0xafe   : > { %v1762_v63 = vrot.slane %v1761_v61, 1  ;;  %v1770_v41 = vadd.f32 %v1769_v1, %v1768_v62 }
 0xb00   : > { %v1763_v0 = vadd.f32 %v1762_v63, %v1761_v61  ;;  %v1771_v3 = vrot.slane %v1770_v41, 1 }
 0xb02   : > { %6644 = vrcp.f32 %v1763_v0  ;;  %v1785_v7 = vand.u32 2147483648, %v1763_v0  ;;  %v1772_v8 = vadd.f32 %v1771_v3, %v1770_v41  ;;  %v1783_v10 = vand.u32 2147483647, %v1763_v0 }
 0xb03   : > { %vm1779_vm14 = vweird.f32 %v1763_v0 }
 0xb04   : > { %v1786_v13 = vor.u32 1.1754944e-38, %v1785_v7  ;;  %v6220_v40 = vadd.f32 -1.0, %v1772_v8  ;;  %vm1784_vm1 = vcmp.eq.f32.partialorder %v1783_v10, 8.507059e+37 }
 0xb08   : > { %v6645_v2 = vpop.eup %6644 }
 0xb09   : > { %v1775_v5 = vmul.f32 %v6645_v2, %v1763_v0  ;;  %vm1780_vm13 = vweird.f32 %v6645_v2 }
 0xb0a   : > { %vm1781_vm15 = vmor %vm1779_vm14, %vm1780_vm13 }
 0xb0b   : > { %v1776_v6 = vsub.f32 1.0, %v1775_v5 }
 0xb0d   : > { %v1777_v9 = vmul.f32 %v6645_v2, %v1776_v6 }
 0xb0f   : > { %v1778_v12 = vadd.f32 %v6645_v2, %v1777_v9 }
 0xb11   : > { %v1782_v14 = vsel %vm1781_vm15, %v6645_v2, %v1778_v12 }
 0xb12   : > { %v1787_v20 = vsel %vm1784_vm1, %v1786_v13, %v1782_v14 }
 0xb13   : > { %v1788_v15 = vmul.f32 %v6220_v40, %v1787_v20 }
 0xb15   : > { %vm1789_vm2 = vcmp.gt.f32.partialorder %v7457_v27, %v1788_v15  ;;  %vm1790_vm3 = vcmp.gt.f32.partialorder %v7459_v28, %v1788_v15 }
 0xb16   : > { %v6221_v16 = vsel %vm1789_vm2, 1.0, %v7044_v39  ;;  %v6222_v18 = vsel %vm1790_vm3, 1.0, %v7044_v39 }
 0xb17   : > { %v1795_v54 = vadd.f32 %v6222_v18, %v6221_v16  ;;  %v1802_v19 = vmul.f32 %v6221_v16, %v7457_v27  ;;  %v1803_v21 = vmul.f32 %v6222_v18, %v7459_v28 }
 0xb19   : > { %v1796_v23 = vrot.slane %v1795_v54, 4  ;;  %v1804_v24 = vadd.f32 %v1803_v21, %v1802_v19 }
 0xb1b   : > { %v1797_v25 = vadd.f32 %v1796_v23, %v1795_v54  ;;  %v1805_v55 = vrot.slane %v1804_v24, 4 }
 0xb1d   : > { %v1798_v53 = vrot.slane %v1797_v25, 2  ;;  %v1806_v29 = vadd.f32 %v1805_v55, %v1804_v24 }
 0xb1f   : > { %v1799_v26 = vadd.f32 %v1798_v53, %v1797_v25  ;;  %v1807_v22 = vrot.slane %v1806_v29, 2 }
 0xb21   : > { %v1800_v31 = vrot.slane %v1799_v26, 1  ;;  %v1808_v32 = vadd.f32 %v1807_v22, %v1806_v29 }
 0xb23   : > { %v1801_v56 = vadd.f32 %v1800_v31, %v1799_v26  ;;  %v1809_v34 = vrot.slane %v1808_v32, 1 }
 0xb25   : > { %6646 = vrcp.f32 %v1801_v56  ;;  %v1823_v4 = vand.u32 2147483648, %v1801_v56  ;;  %v1810_v30 = vadd.f32 %v1809_v34, %v1808_v32  ;;  %v1821_v44 = vand.u32 2147483647, %v1801_v56 }
 0xb26   : > { %vm1817_vm5 = vweird.f32 %v1801_v56 }
 0xb27   : > { %v1824_v45 = vor.u32 1.1754944e-38, %v1823_v4  ;;  %v6223_v47 = vadd.f32 -1.0, %v1810_v30  ;;  %vm1822_vm7 = vcmp.eq.f32.partialorder %v1821_v44, 8.507059e+37 }
 0xb2b   : > { %v6647_v33 = vpop.eup %6646 }
 0xb2c   : > { %v1813_v36 = vmul.f32 %v6647_v33, %v1801_v56  ;;  %vm1818_vm4 = vweird.f32 %v6647_v33 }
 0xb2d   : > { %vm1819_vm6 = vmor %vm1817_vm5, %vm1818_vm4 }
 0xb2e   : > { %v1814_v38 = vsub.f32 1.0, %v1813_v36 }
 0xb30   : > { %v1815_v42 = vmul.f32 %v6647_v33, %v1814_v38 }
 0xb32   : > { %v1816_v46 = vadd.f32 %v6647_v33, %v1815_v42 }
 0xb34   : > { %v1820_v49 = vsel %vm1819_vm6, %v6647_v33, %v1816_v46 }
 0xb35   : > { %v1825_v50 = vsel %vm1822_vm7, %v1824_v45, %v1820_v49 }
 0xb36   : > { %v1826_v51 = vmul.f32 %v6223_v47, %v1825_v50 }
 0xb38   : > { %vm1827_vm8 = vcmp.gt.f32.partialorder %v7457_v27, %v1826_v51  ;;  %vm1828_vm9 = vcmp.gt.f32.partialorder %v7459_v28, %v1826_v51 }
 0xb39   : > { %v6224_v35 = vsel %vm1827_vm8, 1.0, %v7044_v39  ;;  %v6225_v52 = vsel %vm1828_vm9, 1.0, %v7044_v39 }
 0xb3a   : > { %v1833_v43 = vadd.f32 %v6225_v52, %v6224_v35  ;;  %v1840_v57 = vmul.f32 %v6224_v35, %v7457_v27  ;;  %v1841_v48 = vmul.f32 %v6225_v52, %v7459_v28 }
 0xb3c   : > { %v1834_v58 = vrot.slane %v1833_v43, 4  ;;  %v1842_v59 = vadd.f32 %v1841_v48, %v1840_v57 }
 0xb3e   : > { %v1835_v60 = vadd.f32 %v1834_v58, %v1833_v43  ;;  %v1843_v61 = vrot.slane %v1842_v59, 4 }
 0xb40   : > { %v1836_v62 = vrot.slane %v1835_v60, 2  ;;  %v1844_v0 = vadd.f32 %v1843_v61, %v1842_v59 }
 0xb42   : > { %v1837_v63 = vadd.f32 %v1836_v62, %v1835_v60  ;;  %v1845_v2 = vrot.slane %v1844_v0, 2 }
 0xb44   : > { %v1838_v1 = vrot.slane %v1837_v63, 1  ;;  %v1846_v3 = vadd.f32 %v1845_v2, %v1844_v0 }
 0xb46   : > { %v1839_v41 = vadd.f32 %v1838_v1, %v1837_v63  ;;  %v1847_v6 = vrot.slane %v1846_v3, 1 }
 0xb48   : > { %6648 = vrcp.f32 %v1839_v41  ;;  %v1861_v9 = vand.u32 2147483648, %v1839_v41  ;;  %v1848_v10 = vadd.f32 %v1847_v6, %v1846_v3  ;;  %v1859_v13 = vand.u32 2147483647, %v1839_v41 }
 0xb49   : > { %vm1855_vm11 = vweird.f32 %v1839_v41 }
 0xb4a   : > { %v1862_v14 = vor.u32 1.1754944e-38, %v1861_v9  ;;  %v6226_v20 = vadd.f32 -1.0, %v1848_v10  ;;  %vm1860_vm14 = vcmp.eq.f32.partialorder %v1859_v13, 8.507059e+37 }
 0xb4e   : > { %v6649_v5 = vpop.eup %6648 }
 0xb4f   : > { %v1851_v7 = vmul.f32 %v6649_v5, %v1839_v41  ;;  %vm1856_vm10 = vweird.f32 %v6649_v5 }
 0xb50   : > { %vm1857_vm13 = vmor %vm1855_vm11, %vm1856_vm10 }
 0xb51   : > { %v1852_v8 = vsub.f32 1.0, %v1851_v7 }
 0xb53   : > { %v1853_v12 = vmul.f32 %v6649_v5, %v1852_v8 }
 0xb55   : > { %v1854_v40 = vadd.f32 %v6649_v5, %v1853_v12 }
 0xb57   : > { %v1858_v15 = vsel %vm1857_vm13, %v6649_v5, %v1854_v40 }
 0xb58   : > { %v1863_v16 = vsel %vm1860_vm14, %v1862_v14, %v1858_v15 }
 0xb59   : > { %v1864_v18 = vmul.f32 %v6226_v20, %v1863_v16 }
 0xb5b   : > { %vm1865_vm15 = vcmp.gt.f32.partialorder %v7457_v27, %v1864_v18  ;;  %vm1866_vm1 = vcmp.gt.f32.partialorder %v7459_v28, %v1864_v18 }
 0xb5c   : > { %v6227_v54 = vsel %vm1865_vm15, 1.0, %v7044_v39  ;;  %v6228_v19 = vsel %vm1866_vm1, 1.0, %v7044_v39 }
 0xb5d   : > { %v1871_v21 = vadd.f32 %v6228_v19, %v6227_v54  ;;  %v1878_v23 = vmul.f32 %v6227_v54, %v7457_v27  ;;  %v1879_v24 = vmul.f32 %v6228_v19, %v7459_v28 }
 0xb5f   : > { %v1872_v25 = vrot.slane %v1871_v21, 4  ;;  %v1880_v55 = vadd.f32 %v1879_v24, %v1878_v23 }
 0xb61   : > { %v1873_v53 = vadd.f32 %v1872_v25, %v1871_v21  ;;  %v1881_v26 = vrot.slane %v1880_v55, 4 }
 0xb63   : > { %v1874_v29 = vrot.slane %v1873_v53, 2  ;;  %v1882_v56 = vadd.f32 %v1881_v26, %v1880_v55 }
 0xb65   : > { %v1875_v31 = vadd.f32 %v1874_v29, %v1873_v53  ;;  %v1883_v33 = vrot.slane %v1882_v56, 2 }
 0xb67   : > { %v1876_v22 = vrot.slane %v1875_v31, 1  ;;  %v1884_v34 = vadd.f32 %v1883_v33, %v1882_v56 }
 0xb69   : > { %v1877_v32 = vadd.f32 %v1876_v22, %v1875_v31  ;;  %v1885_v38 = vrot.slane %v1884_v34, 1 }
 0xb6b   : > { %6650 = vrcp.f32 %v1877_v32  ;;  %v1899_v42 = vand.u32 2147483648, %v1877_v32  ;;  %v1886_v44 = vadd.f32 %v1885_v38, %v1884_v34  ;;  %v1897_v45 = vand.u32 2147483647, %v1877_v32 }
 0xb6c   : > { %vm1893_vm3 = vweird.f32 %v1877_v32 }
 0xb6d   : > { %v1900_v49 = vor.u32 1.1754944e-38, %v1899_v42  ;;  %v6229_v50 = vadd.f32 -1.0, %v1886_v44  ;;  %vm1898_vm5 = vcmp.eq.f32.partialorder %v1897_v45, 8.507059e+37 }
 0xb71   : > { %v6651_v36 = vpop.eup %6650 }
 0xb72   : > { %v1889_v4 = vmul.f32 %v6651_v36, %v1877_v32  ;;  %vm1894_vm2 = vweird.f32 %v6651_v36 }
 0xb73   : > { %vm1895_vm4 = vmor %vm1893_vm3, %vm1894_vm2 }
 0xb74   : > { %v1890_v30 = vsub.f32 1.0, %v1889_v4 }
 0xb76   : > { %v1891_v46 = vmul.f32 %v6651_v36, %v1890_v30 }
 0xb78   : > { %v1892_v47 = vadd.f32 %v6651_v36, %v1891_v46 }
 0xb7a   : > { %v1896_v51 = vsel %vm1895_vm4, %v6651_v36, %v1892_v47 }
 0xb7b   : > { %v1901_v35 = vsel %vm1898_vm5, %v1900_v49, %v1896_v51 }
 0xb7c   : > { %v1902_v52 = vmul.f32 %v6229_v50, %v1901_v35 }
 0xb7e   : > { %vm1903_vm6 = vcmp.gt.f32.partialorder %v7457_v27, %v1902_v52  ;;  %vm1904_vm7 = vcmp.gt.f32.partialorder %v7459_v28, %v1902_v52 }
 0xb7f   : > { %v6230_v43 = vsel %vm1903_vm6, 1.0, %v7044_v39  ;;  %v6231_v57 = vsel %vm1904_vm7, 1.0, %v7044_v39 }
 0xb80   : > { %v1909_v48 = vadd.f32 %v6231_v57, %v6230_v43  ;;  %v1916_v58 = vmul.f32 %v6230_v43, %v7457_v27  ;;  %v1917_v59 = vmul.f32 %v6231_v57, %v7459_v28 }
 0xb82   : > { %v1910_v60 = vrot.slane %v1909_v48, 4  ;;  %v1918_v61 = vadd.f32 %v1917_v59, %v1916_v58 }
 0xb84   : > { %v1911_v62 = vadd.f32 %v1910_v60, %v1909_v48  ;;  %v1919_v63 = vrot.slane %v1918_v61, 4 }
 0xb86   : > { %v1912_v0 = vrot.slane %v1911_v62, 2  ;;  %v1920_v41 = vadd.f32 %v1919_v63, %v1918_v61 }
 0xb88   : > { %v1913_v1 = vadd.f32 %v1912_v0, %v1911_v62  ;;  %v1921_v5 = vrot.slane %v1920_v41, 2 }
 0xb8a   : > { %v1914_v2 = vrot.slane %v1913_v1, 1  ;;  %v1922_v6 = vadd.f32 %v1921_v5, %v1920_v41 }
 0xb8c   : > { %v1915_v3 = vadd.f32 %v1914_v2, %v1913_v1  ;;  %v1923_v8 = vrot.slane %v1922_v6, 1 }
 0xb8e   : > { %6652 = vrcp.f32 %v1915_v3  ;;  %v1937_v12 = vand.u32 2147483648, %v1915_v3  ;;  %v1924_v13 = vadd.f32 %v1923_v8, %v1922_v6  ;;  %v1935_v14 = vand.u32 2147483647, %v1915_v3 }
 0xb8f   : > { %vm1931_vm9 = vweird.f32 %v1915_v3 }
 0xb90   : > { %v1938_v15 = vor.u32 1.1754944e-38, %v1937_v12  ;;  %v6232_v16 = vadd.f32 -1.0, %v1924_v13  ;;  %vm1936_vm11 = vcmp.eq.f32.partialorder %v1935_v14, 8.507059e+37 }
 0xb94   : > { %v6653_v7 = vpop.eup %6652 }
 0xb95   : > { %v1927_v9 = vmul.f32 %v6653_v7, %v1915_v3  ;;  %vm1932_vm8 = vweird.f32 %v6653_v7 }
 0xb96   : > { %vm1933_vm10 = vmor %vm1931_vm9, %vm1932_vm8 }
 0xb97   : > { %v1928_v10 = vsub.f32 1.0, %v1927_v9 }
 0xb99   : > { %v1929_v40 = vmul.f32 %v6653_v7, %v1928_v10 }
 0xb9b   : > { %v1930_v20 = vadd.f32 %v6653_v7, %v1929_v40 }
 0xb9d   : > { %v1934_v18 = vsel %vm1933_vm10, %v6653_v7, %v1930_v20 }
 0xb9e   : > { %v1939_v54 = vsel %vm1936_vm11, %v1938_v15, %v1934_v18 }
 0xb9f   : > { %v1940_v19 = vmul.f32 %v6232_v16, %v1939_v54 }
 0xba1   : > { %vm1941_vm13 = vcmp.gt.f32.partialorder %v7457_v27, %v1940_v19  ;;  %vm1942_vm14 = vcmp.gt.f32.partialorder %v7459_v28, %v1940_v19 }
 0xba2   : > { %v6233_v21 = vsel %vm1941_vm13, 1.0, %v7044_v39  ;;  %v6234_v23 = vsel %vm1942_vm14, 1.0, %v7044_v39 }
 0xba3   : > { %v1947_v24 = vadd.f32 %v6234_v23, %v6233_v21  ;;  %v1954_v25 = vmul.f32 %v6233_v21, %v7457_v27  ;;  %v1955_v55 = vmul.f32 %v6234_v23, %v7459_v28 }
 0xba5   : > { %v1948_v53 = vrot.slane %v1947_v24, 4  ;;  %v1956_v26 = vadd.f32 %v1955_v55, %v1954_v25 }
 0xba7   : > { %v1949_v29 = vadd.f32 %v1948_v53, %v1947_v24  ;;  %v1957_v31 = vrot.slane %v1956_v26, 4 }
 0xba9   : > { %v1950_v56 = vrot.slane %v1949_v29, 2  ;;  %v1958_v32 = vadd.f32 %v1957_v31, %v1956_v26 }
 0xbab   : > { %v1951_v22 = vadd.f32 %v1950_v56, %v1949_v29  ;;  %v1959_v36 = vrot.slane %v1958_v32, 2 }
 0xbad   : > { %v1952_v33 = vrot.slane %v1951_v22, 1  ;;  %v1960_v38 = vadd.f32 %v1959_v36, %v1958_v32 }
 0xbaf   : > { %v1953_v34 = vadd.f32 %v1952_v33, %v1951_v22  ;;  %v1961_v30 = vrot.slane %v1960_v38, 1 }
 0xbb1   : > { %6654 = vrcp.f32 %v1953_v34  ;;  %v1975_v46 = vand.u32 2147483648, %v1953_v34  ;;  %v1962_v45 = vadd.f32 %v1961_v30, %v1960_v38  ;;  %v1973_v49 = vand.u32 2147483647, %v1953_v34  ;;  %v6923_v38 = vld [vmem:[%s8817_s3 + $0x8] sm:$0xff]  ;;  %v6924_v30 = vld [vmem:[%s8817_s3 + $0x10] sm:$0xff] }
 0xbb2   : > { %vm1969_vm1 = vweird.f32 %v1953_v34 }
 0xbb3   : > { %v1976_v51 = vor.u32 1.1754944e-38, %v1975_v46  ;;  %v6235_v35 = vadd.f32 -1.0, %v1962_v45  ;;  %vm1974_vm3 = vcmp.eq.f32.partialorder %v1973_v49, 8.507059e+37  ;;  %v6246_v49 = vld [vmem:[%s8797_s7 + $0x98] sm:$0xff] }
 0xbb7   : > { %v6655_v4 = vpop.eup %6654 }
 0xbb8   : > { %v1965_v42 = vmul.f32 %v6655_v4, %v1953_v34  ;;  %vm1970_vm15 = vweird.f32 %v6655_v4 }
 0xbb9   : > { %vm1971_vm2 = vmor %vm1969_vm1, %vm1970_vm15 }
 0xbba   : > { %v1966_v44 = vsub.f32 1.0, %v1965_v42  ;;  %v6925_v42 = vld [vmem:[%s8817_s3 + $0x18] sm:$0xff] }
 0xbbc   : > { %v1967_v47 = vmul.f32 %v6655_v4, %v1966_v44 }
 0xbbe   : > { %v1968_v50 = vadd.f32 %v6655_v4, %v1967_v47 }
 0xbc0   : > { %v1972_v52 = vsel %vm1971_vm2, %v6655_v4, %v1968_v50  ;;  %v6241_v50 = vld [vmem:[%s8796_s6 + $0x90] sm:$0xff] }
 0xbc1   : > { %v1977_v43 = vsel %vm1974_vm3, %v1976_v51, %v1972_v52  ;;  %v6242_v51 = vld [vmem:[%s8796_s6 + $0x98] sm:$0xff] }
 0xbc2   : > { %v1978_v57 = vmul.f32 %v6235_v35, %v1977_v43 }
 0xbc4   : > { %vm1979_vm4 = vcmp.gt.f32.partialorder %v7457_v27, %v1978_v57  ;;  %vm1980_vm5 = vcmp.gt.f32.partialorder %v7459_v28, %v1978_v57 }
 0xbc5   : > { %v6236_v48 = vsel %vm1979_vm4, 1.0, %v7044_v39  ;;  %v6237_v58 = vsel %vm1980_vm5, 1.0, %v7044_v39 }
 0xbc6   : > { %v1985_v59 = vadd.f32 %v6237_v58, %v6236_v48  ;;  %v1992_v60 = vmul.f32 %v6236_v48, %v7457_v27  ;;  %v1993_v61 = vmul.f32 %v6237_v58, %v7459_v28 }
 0xbc8   : > { %v1986_v62 = vrot.slane %v1985_v59, 4  ;;  %v1994_v63 = vadd.f32 %v1993_v61, %v1992_v60 }
 0xbca   : > { %v1987_v0 = vadd.f32 %v1986_v62, %v1985_v59  ;;  %v1995_v1 = vrot.slane %v1994_v63, 4 }
 0xbcc   : > { %v1988_v41 = vrot.slane %v1987_v0, 2  ;;  %v1996_v3 = vadd.f32 %v1995_v1, %v1994_v63  ;;  %v6240_v1 = vld [vmem:[%s8796_s6 + $0x88] sm:$0xff] }
 0xbce   : > { %v1989_v2 = vadd.f32 %v1988_v41, %v1987_v0  ;;  %v1997_v7 = vrot.slane %v1996_v3, 2  ;;  %v6245_v41 = vld [vmem:[%s8797_s7 + $0x90] sm:$0xff] }
 0xbd0   : > { %v1990_v5 = vrot.slane %v1989_v2, 1  ;;  %v1998_v8 = vadd.f32 %v1997_v7, %v1996_v3  ;;  %v6244_v3 = vld [vmem:[%s8797_s7 + $0x88] sm:$0xff] }
 0xbd2   : > { %v1991_v6 = vadd.f32 %v1990_v5, %v1989_v2  ;;  %v1999_v10 = vrot.slane %v1998_v8, 1  ;;  %v6239_v2 = vld [vmem:[%s8796_s6 + $0x80] sm:$0xff] }
 0xbd3   : > { %v6243_v5 = vld [vmem:[%s8797_s7 + $0x80] sm:$0xff] }
 0xbd4   : > { %6656 = vrcp.f32 %v1991_v6  ;;  %v2013_v40 = vand.u32 2147483648, %v1991_v6  ;;  %v2000_v14 = vadd.f32 %v1999_v10, %v1998_v8  ;;  %v2011_v15 = vand.u32 2147483647, %v1991_v6 }
 0xbd5   : > { %vm2007_vm7 = vweird.f32 %v1991_v6 }
 0xbd6   : > { %v2014_v18 = vor.u32 1.1754944e-38, %v2013_v40  ;;  %v6238_v54 = vadd.f32 -1.0, %v2000_v14  ;;  %vm2012_vm9 = vcmp.eq.f32.partialorder %v2011_v15, 8.507059e+37 }
 0xbda   : > { %v6657_v9 = vpop.eup %6656 }
 0xbdb   : > { %v2003_v12 = vmul.f32 %v6657_v9, %v1991_v6  ;;  %vm2008_vm6 = vweird.f32 %v6657_v9 }
 0xbdc   : > { %vm2009_vm8 = vmor %vm2007_vm7, %vm2008_vm6 }
 0xbdd   : > { %v2004_v13 = vsub.f32 1.0, %v2003_v12 }
 0xbdf   : > { %v2005_v20 = vmul.f32 %v6657_v9, %v2004_v13 }
 0xbe1   : > { %v2006_v16 = vadd.f32 %v6657_v9, %v2005_v20 }
 0xbe3   : > { %v2010_v19 = vsel %vm2009_vm8, %v6657_v9, %v2006_v16 }
 0xbe4   : > { %v2015_v21 = vsel %vm2012_vm9, %v2014_v18, %v2010_v19 }
 0xbe5   : > { %v2016_v23 = vmul.f32 %v6238_v54, %v2015_v21 }
 0xbe7   : > { %v2018_v24 = vsub.f32 %v7459_v28, %v2016_v23  ;;  %v2017_v25 = vsub.f32 %v7457_v27, %v2016_v23  ;;  %v6922_v27 = vld [vmem:[%s8817_s3] sm:$0xff] }
 0xbe9   : > { %v7555_v55 = vmax.f32 %v2018_v24, 0.0  ;;  %v7557_v53 = vmax.f32 %v2017_v25, 0.0 }
 0xbeb   : > { %v2022_v26 = vadd.f32 1e-15, %v7555_v55  ;;  %v2040_v29 = vmul.f32 %v7555_v55, %v7188_v11  ;;  %v2021_v31 = vadd.f32 1e-15, %v7557_v53  ;;  %v2039_v56 = vmul.f32 %v7557_v53, %v7194_v17 }
 0xbed   : > { %6658 = vlog2.f32 %v2022_v26  ;;  %2065 = vmatpush.msrb.mxu1 %v2040_v29 }
 0xbee   : > { %6660 = vlog2.f32 %v2021_v31 }
 0xbef   : > { %2066 = vmatpush.msrb.mxu1 %v2039_v56 }
 0xbf0   : > { %6247 = vmatmul.msk.f32.vlgmr.msrb.gmra.mxu1 %vm535_vm0, %v6922_v27 }
 0xbf3   : > { %v6659_v28 = vpop.eup %6658 }
 0xbf4   : > { %v6661_v22 = vpop.eup %6660  ;;  %v2026_v32 = vmul.f32 0.6931472, %v6659_v28 }
 0xbf5   : > { %v2024_v33 = vmul.f32 0.6931472, %v6661_v22 }
 0xbf6   : > { %v2028_v34 = vmul.f32 %v2026_v32, %v7555_v55 }
 0xbf7   : > { %v2027_v36 = vmul.f32 %v2024_v33, %v7557_v53 }
 0xbf8   : > { %6248 = vmatmul.msk.f32.gmra.mxu1 %vm535_vm0, %v6923_v38 }
 0xbf9   : > { %v7575_v4 = vadd.f32 %v2028_v34, %v2027_v36 }
 0xc00   : > { %6249 = vmatmul.msk.f32.gmra.mxu1 %vm535_vm0, %v6924_v30 }
 0xc08   : > { %6250 = vmatmul.msk.f32.gmra.mxu1 %vm535_vm0, %v6925_v42 }
 0xc6d   : > { %v2068_v44 = vpop.f32.mrf.mxu1 }
 0xc75   : > { %v2071_v46 = vpop.f32.mrf.mxu1 }
 0xc76   : > { %2082 = vadd.xlane.f32.xlu1 %v2071_v46 }
 0xc7d   : > { %v2074_v45 = vpop.f32.mrf.mxu1 }
 0xc7e   : > { %2084 = vadd.xlane.f32.xlu0 %v2074_v45 }
 0xc85   : > { %v2077_v47 = vpop.f32.mrf.mxu1 }
 0xc86   : > { %2086 = vadd.xlane.f32.xlu2 %v2077_v47 }
 0xc8e   : > { %2080 = vadd.xlane.f32.xlu2 %v2068_v44 }
 0xc8f   : > { %2201 = vperm.xlu1 %6564, %v6246_v49  }
 0xc92   : > { %2172 = vperm.xlu0 %6563, %v6241_v50  }
 0xca6   : > { %2177 = vperm.xlu2 %6565, %v6242_v51  }
 0xce9   : > { %v2083_v35 = vpop.xlane.xlu1 %2082 }
 0xcea   : > { %v2089_v52 = vmul.f32 %v2083_v35, %v7228_v37 }
 0xcec   : > { %v7595_v43 = vsub.f32 %v2071_v46, %v2089_v52 }
 0xcee   : > { %v2097_v57 = vmul.f32 %v7595_v43, %v7595_v43 }
 0xcf0   : > { %2102 = vadd.xlane.f32.xlu2 %v2097_v57 }
 0xcf1   : > { %v2085_v48 = vpop.xlane.xlu0 %2084 }
 0xcf2   : > { %v2090_v58 = vmul.f32 %v2085_v48, %v7228_v37 }
 0xcf4   : > { %v7600_v59 = vsub.f32 %v2074_v45, %v2090_v58 }
 0xcf6   : > { %v2098_v60 = vmul.f32 %v7600_v59, %v7600_v59 }
 0xcf8   : > { %2104 = vadd.xlane.f32.xlu1 %v2098_v60 }
 0xcf9   : > { %v2087_v61 = vpop.xlane.xlu2 %2086 }
 0xcfa   : > { %v2091_v62 = vmul.f32 %v2087_v61, %v7228_v37 }
 0xcfc   : > { %v2095_v63 = vsub.f32 %v2077_v47, %v2091_v62 }
 0xcfe   : > { %v2099_v0 = vmul.f32 %v2095_v63, %v2095_v63 }
 0xd00   : > { %2106 = vadd.xlane.f32.xlu0 %v2099_v0 }
 0xd01   : > { %v2081_v6 = vpop.xlane.xlu2 %2080  ;;  %v2202_v10 = vpop.permute.xlu1 %2201 }
 0xd02   : > { %v2088_v7 = vmul.f32 %v2081_v6, %v7228_v37 }
 0xd04   : > { %v7621_v8 = vsub.f32 %v2068_v44, %v2088_v7  ;;  %v2173_v12 = vpop.permute.xlu0 %2172 }
 0xd06   : > { %v2096_v9 = vmul.f32 %v7621_v8, %v7621_v8 }
 0xd09   : > { %v2178_v16 = vpop.permute.xlu2 %2177 }
 0xd11   : > { %2167 = vperm.xlu1 %6564, %v6240_v1  }
 0xd14   : > { %2196 = vperm.xlu0 %6563, %v6245_v41  }
 0xd19   : > { %2162 = vperm.xlu1 %6564, %v6239_v2  }
 0xd21   : > { %2191 = vperm.xlu1 %6564, %v6244_v3  }
 0xd29   : > { %2186 = vperm.xlu1 %6564, %v6243_v5  }
 0xd3e   : > { %2100 = vadd.xlane.f32.xlu0 %v2096_v9 }
 0xd63   : > { %v2103_v21 = vpop.xlane.xlu2 %2102 }
 0xd64   : > { %v2109_v26 = vmul.f32 %v2103_v21, %v7228_v37 }
 0xd66   : > { %v2113_v27 = vadd.f32 1e-05, %v2109_v26 }
 0xd68   : > { %vm2132_vm3 = vweird.f32 %v2113_v27 }
 0xd6b   : > { %v2105_v13 = vpop.xlane.xlu1 %2104 }
 0xd6c   : > { %v2110_v40 = vmul.f32 %v2105_v13, %v7228_v37 }
 0xd6e   : > { %v2114_v14 = vadd.f32 1e-05, %v2110_v40 }
 0xd70   : > { %6662 = vrsqrt.f32 %v2114_v14  ;;  %vm2142_vm15 = vweird.f32 %v2114_v14 }
 0xd73   : > { %v2107_v20 = vpop.xlane.xlu0 %2106 }
 0xd74   : > { %v2111_v15 = vmul.f32 %v2107_v20, %v7228_v37 }
 0xd76   : > { %v6663_v18 = vpop.eup %6662  ;;  %v2115_v54 = vadd.f32 1e-05, %v2111_v15 }
 0xd77   : > { %v2137_v19 = vmul.f32 %v6663_v18, %v2114_v14  ;;  %vm2143_vm14 = vweird.f32 %v6663_v18 }
 0xd78   : > { %6664 = vrsqrt.f32 %v2115_v54  ;;  %vm2152_vm11 = vweird.f32 %v2115_v54  ;;  %vm2144_vm1 = vmor %vm2142_vm15, %vm2143_vm14 }
 0xd79   : > { %v2138_v23 = vmul.f32 %v6663_v18, %v2137_v19  ;;  %6666 = vrsqrt.f32 %v2113_v27 }
 0xd7b   : > { %v2139_v29 = vmul.f32 0.5, %v2138_v23 }
 0xd7d   : > { %v2140_v28 = vsub.f32 1.5, %v2139_v29 }
 0xd7e   : > { %v6665_v24 = vpop.eup %6664 }
 0xd7f   : > { %v2147_v25 = vmul.f32 %v6665_v24, %v2115_v54  ;;  %vm2153_vm10 = vweird.f32 %v6665_v24  ;;  %v2141_v34 = vmul.f32 %v6663_v18, %v2140_v28  ;;  %v6667_v42 = vpop.eup %6666 }
 0xd80   : > { %vm2154_vm13 = vmor %vm2152_vm11, %vm2153_vm10  ;;  %v2127_v47 = vmul.f32 %v6667_v42, %v2113_v27  ;;  %vm2133_vm2 = vweird.f32 %v6667_v42 }
 0xd81   : > { %v2148_v31 = vmul.f32 %v6665_v24, %v2147_v25  ;;  %v2145_v30 = vsel %vm2144_vm1, %v6663_v18, %v2141_v34  ;;  %vm2134_vm4 = vmor %vm2132_vm3, %vm2133_vm2 }
 0xd82   : > { %v2158_v45 = vmul.f32 %v2145_v30, %v7600_v59  ;;  %v2128_v51 = vmul.f32 %v6667_v42, %v2127_v47 }
 0xd83   : > { %v2149_v56 = vmul.f32 0.5, %v2148_v31  ;;  %v2168_v35 = vpop.permute.xlu1 %2167 }
 0xd84   : > { %v2182_v50 = vmul.f32 %v2173_v12, %v2158_v45  ;;  %v2129_v48 = vmul.f32 0.5, %v2128_v51  ;;  %v6928_v51 = vld [vmem:[%s8818_s4 + $0x10] sm:$0xff] }
 0xd85   : > { %v2150_v22 = vsub.f32 1.5, %v2149_v56 }
 0xd86   : > { %v2197_v52 = vpop.permute.xlu0 %2196  ;;  %v2130_v62 = vsub.f32 1.5, %v2129_v48 }
 0xd87   : > { %v2151_v32 = vmul.f32 %v6665_v24, %v2150_v22  ;;  %v2206_v57 = vadd.f32 %v2197_v52, %v2182_v50  ;;  %v6926_v50 = vld [vmem:[%s8818_s4] sm:$0xff] }
 0xd88   : > { %v2131_v1 = vmul.f32 %v6667_v42, %v2130_v62  ;;  %v6252_v62 = vld [vmem:[%s8796_s6 + $0xa8] sm:$0xff] }
 0xd89   : > { %v2155_v33 = vsel %vm2154_vm13, %v6665_v24, %v2151_v32  ;;  %v2208_v61 = vsub.f32 0.0, %v2206_v57 }
 0xd8a   : > { %v2159_v36 = vmul.f32 %v2155_v33, %v2095_v63  ;;  %v2135_v2 = vsel %vm2134_vm4, %v6667_v42, %v2131_v1  ;;  %v6255_v1 = vld [vmem:[%s8797_s7 + $0xa0] sm:$0xff] }
 0xd8b   : > { %v2163_v63 = vpop.permute.xlu1 %2162  ;;  %v2210_v0 = vmul.f32 1.442695, %v2208_v61  ;;  %v2157_v6 = vmul.f32 %v2135_v2, %v7595_v43  ;;  %v6258_v61 = vld [vmem:[%s8797_s7 + $0xb8] sm:$0xff] }
 0xd8c   : > { %v2183_v38 = vmul.f32 %v2178_v16, %v2159_v36 }
 0xd8d   : > { %v2181_v13 = vmul.f32 %v2168_v35, %v2157_v6  ;;  %v6929_v35 = vld [vmem:[%s8818_s4 + $0x18] sm:$0xff] }
 0xd8e   : > { %v2207_v44 = vadd.f32 %v2202_v10, %v2183_v38 }
 0xd90   : > { %v2209_v46 = vsub.f32 0.0, %v2207_v44 }
 0xd92   : > { %v2212_v49 = vmul.f32 1.442695, %v2209_v46 }
 0xd93   : > { %v2192_v10 = vpop.permute.xlu1 %2191 }
 0xd94   : > { %6668 = vpow2.f32 %v2212_v49  ;;  %v2205_v20 = vadd.f32 %v2192_v10, %v2181_v13  ;;  %v6253_v10 = vld [vmem:[%s8796_s6 + $0xb0] sm:$0xff] }
 0xd9a   : > { %v6669_v58 = vpop.eup %6668 }
 0xd9b   : > { %v2215_v60 = vadd.f32 1.0, %v6669_v58  ;;  %v2187_v44 = vpop.permute.xlu1 %2186 }
 0xd9d   : > { %6670 = vrcp.f32 %v2215_v60  ;;  %v2242_v5 = vand.u32 2147483648, %v2215_v60  ;;  %v2240_v9 = vand.u32 2147483647, %v2215_v60  ;;  %vm2236_vm6 = vweird.f32 %v2215_v60 }
 0xd9e   : > { %6672 = vpow2.f32 %v2210_v0  ;;  %v6256_v0 = vld [vmem:[%s8797_s7 + $0xa8] sm:$0xff] }
 0xd9f   : > { %v2243_v14 = vor.u32 1.1754944e-38, %v2242_v5  ;;  %vm2241_vm8 = vcmp.eq.f32.partialorder %v2240_v9, 8.507059e+37 }
 0xda3   : > { %v6671_v41 = vpop.eup %6670 }
 0xda4   : > { %v2232_v59 = vmul.f32 %v6671_v41, %v2215_v60  ;;  %vm2237_vm5 = vweird.f32 %v6671_v41  ;;  %v6673_v12 = vpop.eup %6672  ;;  %v6254_v60 = vld [vmem:[%s8796_s6 + $0xb8] sm:$0xff] }
 0xda5   : > { %vm2238_vm7 = vmor %vm2236_vm6, %vm2237_vm5  ;;  %v2214_v16 = vadd.f32 1.0, %v6673_v12  ;;  %v6257_v12 = vld [vmem:[%s8797_s7 + $0xb0] sm:$0xff] }
 0xda6   : > { %v2233_v3 = vsub.f32 1.0, %v2232_v59 }
 0xda7   : > { %6674 = vrcp.f32 %v2214_v16  ;;  %v2227_v34 = vand.u32 2147483648, %v2214_v16  ;;  %vm2221_vm14 = vweird.f32 %v2214_v16  ;;  %v2225_v38 = vand.u32 2147483647, %v2214_v16 }
 0xda8   : > { %v2234_v7 = vmul.f32 %v6671_v41, %v2233_v3 }
 0xda9   : > { %v2228_v46 = vor.u32 1.1754944e-38, %v2227_v34  ;;  %vm2226_vm1 = vcmp.eq.f32.partialorder %v2225_v38, 8.507059e+37 }
 0xdaa   : > { %v2235_v40 = vadd.f32 %v6671_v41, %v2234_v7 }
 0xdac   : > { %v2239_v15 = vsel %vm2238_vm7, %v6671_v41, %v2235_v40 }
 0xdad   : > { %v2244_v18 = vsel %vm2241_vm8, %v2243_v14, %v2239_v15  ;;  %v6675_v23 = vpop.eup %6674 }
 0xdae   : > { %v7630_v54 = vmul.f32 %v2244_v18, %v2205_v20  ;;  %v2217_v24 = vmul.f32 %v6675_v23, %v2214_v16  ;;  %vm2222_vm13 = vweird.f32 %v6675_v23 }
 0xdaf   : > { %vm2223_vm15 = vmor %vm2221_vm14, %vm2222_vm13 }
 0xdb0   : > { %2272 = vmatpush.msrb.mxu2 %v7630_v54  ;;  %v2218_v29 = vsub.f32 1.0, %v2217_v24 }
 0xdb1   : > { %v2101_v43 = vpop.xlane.xlu0 %2100 }
 0xdb2   : > { %v2108_v19 = vmul.f32 %v2101_v43, %v7228_v37  ;;  %v2219_v27 = vmul.f32 %v6675_v23, %v2218_v29 }
 0xdb4   : > { %v2112_v21 = vadd.f32 1e-05, %v2108_v19  ;;  %v2220_v32 = vadd.f32 %v6675_v23, %v2219_v27 }
 0xdb6   : > { %6676 = vrsqrt.f32 %v2112_v21  ;;  %vm2122_vm10 = vweird.f32 %v2112_v21  ;;  %v2224_v42 = vsel %vm2223_vm15, %v6675_v23, %v2220_v32 }
 0xdb7   : > { %v2229_v47 = vsel %vm2226_vm1, %v2228_v46, %v2224_v42 }
 0xdbc   : > { %v6677_v25 = vpop.eup %6676 }
 0xdbd   : > { %v2117_v26 = vmul.f32 %v6677_v25, %v2112_v21  ;;  %vm2123_vm9 = vweird.f32 %v6677_v25 }
 0xdbe   : > { %vm2124_vm11 = vmor %vm2122_vm10, %vm2123_vm9 }
 0xdbf   : > { %v2118_v31 = vmul.f32 %v6677_v25, %v2117_v26 }
 0xdc1   : > { %v2119_v56 = vmul.f32 0.5, %v2118_v31 }
 0xdc3   : > { %v2120_v28 = vsub.f32 1.5, %v2119_v56 }
 0xdc5   : > { %v2121_v22 = vmul.f32 %v6677_v25, %v2120_v28 }
 0xdc7   : > { %v2125_v33 = vsel %vm2124_vm11, %v6677_v25, %v2121_v22 }
 0xdc8   : > { %v2156_v36 = vmul.f32 %v2125_v33, %v7621_v8  ;;  %v6927_v8 = vld [vmem:[%s8818_s4 + $0x8] sm:$0xff] }
 0xdca   : > { %v2180_v30 = vmul.f32 %v2163_v63, %v2156_v36  ;;  %v6251_v63 = vld [vmem:[%s8796_s6 + $0xa0] sm:$0xff] }
 0xdcc   : > { %v2204_v45 = vadd.f32 %v2187_v44, %v2180_v30 }
 0xdce   : > { %v7635_v49 = vmul.f32 %v2229_v47, %v2204_v45 }
 0xdd0   : > { %2273 = vmatpush.msrb.mxu2 %v7635_v49 }
 0xdd1   : > { %6259 = vmatmul.msk.f32.vlgmr.msrb.gmra.mxu2 %vm535_vm0, %v6926_v50 }
 0xdd9   : > { %6260 = vmatmul.msk.f32.gmra.mxu2 %vm535_vm0, %v6927_v8 }
 0xde1   : > { %6261 = vmatmul.msk.f32.gmra.mxu2 %vm535_vm0, %v6928_v51 }
 0xde9   : > { %6262 = vmatmul.msk.f32.gmra.mxu2 %vm535_vm0, %v6929_v35 }
 0xe54   : > { %v2275_v52 = vpop.f32.mrf.mxu2 }
 0xe5c   : > { %v2278_v57 = vpop.f32.mrf.mxu2 }
 0xe5d   : > { %2289 = vadd.xlane.f32.xlu0 %v2278_v57 }
 0xe64   : > { %v2281_v48 = vpop.f32.mrf.mxu2 }
 0xe65   : > { %2291 = vadd.xlane.f32.xlu2 %v2281_v48 }
 0xe6c   : > { %v2284_v58 = vpop.f32.mrf.mxu2 }
 0xe6d   : > { %2287 = vadd.xlane.f32.xlu2 %v2275_v52  ;;  %2293 = vadd.xlane.f32.xlu1 %v2284_v58 }
 0xe71   : > { %2384 = vperm.xlu0 %6563, %v6254_v60  }
 0xe86   : > { %2408 = vperm.xlu1 %6564, %v6258_v61  }
 0xe8e   : > { %2374 = vperm.xlu1 %6564, %v6252_v62  }
 0xe96   : > { %2369 = vperm.xlu1 %6564, %v6251_v63  }
 0xe9e   : > { %2398 = vperm.xlu1 %6564, %v6256_v0  }
 0xea6   : > { %2393 = vperm.xlu1 %6564, %v6255_v1  }
 0xed0   : > { %v2290_v13 = vpop.xlane.xlu0 %2289 }
 0xed1   : > { %v2296_v40 = vmul.f32 %v2290_v13, %v7228_v37 }
 0xed3   : > { %v7681_v20 = vsub.f32 %v2278_v57, %v2296_v40 }
 0xed5   : > { %v2304_v16 = vmul.f32 %v7681_v20, %v7681_v20 }
 0xed8   : > { %v2292_v41 = vpop.xlane.xlu2 %2291 }
 0xed9   : > { %v2297_v59 = vmul.f32 %v2292_v41, %v7228_v37 }
 0xedb   : > { %v2301_v2 = vsub.f32 %v2281_v48, %v2297_v59 }
 0xedd   : > { %v2305_v3 = vmul.f32 %v2301_v2, %v2301_v2 }
 0xedf   : > { %2311 = vadd.xlane.f32.xlu2 %v2305_v3 }
 0xee0   : > { %v2294_v5 = vpop.xlane.xlu1 %2293  ;;  %v2288_v14 = vpop.xlane.xlu2 %2287 }
 0xee1   : > { %v2298_v6 = vmul.f32 %v2294_v5, %v7228_v37  ;;  %v2295_v15 = vmul.f32 %v2288_v14, %v7228_v37 }
 0xee3   : > { %v2302_v7 = vsub.f32 %v2284_v58, %v2298_v6  ;;  %v7686_v18 = vsub.f32 %v2275_v52, %v2295_v15  ;;  %v2385_v19 = vpop.permute.xlu0 %2384 }
 0xee5   : > { %v2306_v9 = vmul.f32 %v2302_v7, %v2302_v7  ;;  %v2303_v43 = vmul.f32 %v7686_v18, %v7686_v18 }
 0xee7   : > { %2313 = vadd.xlane.f32.xlu0 %v2306_v9 }
 0xef7   : > { %2379 = vperm.xlu2 %6565, %v6253_v10  }
 0xef8   : > { %v2409_v8 = vpop.permute.xlu1 %2408 }
 0xefb   : > { %2403 = vperm.xlu0 %6563, %v6257_v12  }
 0xf20   : > { %2309 = vadd.xlane.f32.xlu2 %v2304_v16 }
 0xf25   : > { %2307 = vadd.xlane.f32.xlu0 %v2303_v43 }
 0xf52   : > { %v2312_v21 = vpop.xlane.xlu2 %2311 }
 0xf53   : > { %v2317_v23 = vmul.f32 %v2312_v21, %v7228_v37 }
 0xf55   : > { %v2321_v24 = vadd.f32 1e-05, %v2317_v23 }
 0xf57   : > { %6678 = vrsqrt.f32 %v2321_v24  ;;  %vm2349_vm6 = vweird.f32 %v2321_v24 }
 0xf5a   : > { %v2314_v25 = vpop.xlane.xlu0 %2313  ;;  %v2380_v51 = vpop.permute.xlu2 %2379 }
 0xf5b   : > { %v2318_v26 = vmul.f32 %v2314_v25, %v7228_v37 }
 0xf5d   : > { %v6679_v29 = vpop.eup %6678  ;;  %v2322_v31 = vadd.f32 1e-05, %v2318_v26 }
 0xf5e   : > { %v2344_v56 = vmul.f32 %v6679_v29, %v2321_v24  ;;  %vm2350_vm4 = vweird.f32 %v6679_v29 }
 0xf5f   : > { %6680 = vrsqrt.f32 %v2322_v31  ;;  %vm2359_vm3 = vweird.f32 %v2322_v31  ;;  %vm2351_vm7 = vmor %vm2349_vm6, %vm2350_vm4 }
 0xf60   : > { %v2345_v27 = vmul.f32 %v6679_v29, %v2344_v56 }
 0xf62   : > { %v2346_v32 = vmul.f32 0.5, %v2345_v27 }
 0xf64   : > { %v2347_v36 = vsub.f32 1.5, %v2346_v32 }
 0xf65   : > { %v6681_v28 = vpop.eup %6680 }
 0xf66   : > { %v2354_v22 = vmul.f32 %v6681_v28, %v2322_v31  ;;  %vm2360_vm2 = vweird.f32 %v6681_v28  ;;  %v2348_v42 = vmul.f32 %v6679_v29, %v2347_v36 }
 0xf67   : > { %vm2361_vm5 = vmor %vm2359_vm3, %vm2360_vm2 }
 0xf68   : > { %v2355_v33 = vmul.f32 %v6681_v28, %v2354_v22  ;;  %v2352_v45 = vsel %vm2351_vm7, %v6679_v29, %v2348_v42 }
 0xf69   : > { %v2365_v47 = vmul.f32 %v2352_v45, %v2301_v2  ;;  %v2375_v2 = vpop.permute.xlu1 %2374 }
 0xf6a   : > { %v2356_v34 = vmul.f32 0.5, %v2355_v33 }
 0xf6b   : > { %v2389_v35 = vmul.f32 %v2380_v51, %v2365_v47 }
 0xf6c   : > { %v2357_v38 = vsub.f32 1.5, %v2356_v34 }
 0xf6d   : > { %v2404_v57 = vpop.permute.xlu0 %2403 }
 0xf6e   : > { %v2358_v30 = vmul.f32 %v6681_v28, %v2357_v38  ;;  %v2413_v58 = vadd.f32 %v2404_v57, %v2389_v35 }
 0xf70   : > { %v2362_v44 = vsel %vm2361_vm5, %v6681_v28, %v2358_v30  ;;  %v2415_v61 = vsub.f32 0.0, %v2413_v58 }
 0xf71   : > { %v2366_v46 = vmul.f32 %v2362_v44, %v2302_v7  ;;  %v2370_v14 = vpop.permute.xlu1 %2369 }
 0xf72   : > { %v2417_v62 = vmul.f32 1.442695, %v2415_v61 }
 0xf73   : > { %v2390_v50 = vmul.f32 %v2385_v19, %v2366_v46 }
 0xf75   : > { %v2414_v52 = vadd.f32 %v2409_v8, %v2390_v50 }
 0xf77   : > { %v2416_v48 = vsub.f32 0.0, %v2414_v52 }
 0xf79   : > { %v2419_v60 = vmul.f32 1.442695, %v2416_v48  ;;  %v2399_v27 = vpop.permute.xlu1 %2398 }
 0xf7b   : > { %6682 = vpow2.f32 %v2419_v60 }
 0xf7c   : > { %6684 = vpow2.f32 %v2417_v62 }
 0xf81   : > { %v6683_v63 = vpop.eup %6682  ;;  %v2394_v60 = vpop.permute.xlu1 %2393 }
 0xf82   : > { %v2422_v0 = vadd.f32 1.0, %v6683_v63  ;;  %v6685_v1 = vpop.eup %6684 }
 0xf83   : > { %v7692_v41 = vadd.f32 1.0, %v6685_v1 }
 0xf84   : > { %6686 = vrcp.f32 %v2422_v0  ;;  %vm2443_vm13 = vweird.f32 %v2422_v0  ;;  %v2449_v33 = vand.u32 2147483648, %v2422_v0  ;;  %v2447_v30 = vand.u32 2147483647, %v2422_v0 }
 0xf85   : > { %6688 = vrcp.f32 %v7692_v41  ;;  %v2434_v51 = vand.u32 2147483648, %v7692_v41  ;;  %vm2428_vm5 = vweird.f32 %v7692_v41 }
 0xf86   : > { %v2450_v45 = vor.u32 1.1754944e-38, %v2449_v33  ;;  %vm2448_vm4 = vcmp.eq.f32.partialorder %v2447_v30, 8.507059e+37 }
 0xf87   : > { %v2435_v62 = vor.u32 1.1754944e-38, %v2434_v51 }
 0xf8a   : > { %v6687_v7 = vpop.eup %6686 }
 0xf8b   : > { %v2439_v12 = vmul.f32 %v6687_v7, %v2422_v0  ;;  %v6689_v13 = vpop.eup %6688  ;;  %vm2444_vm11 = vweird.f32 %v6687_v7 }
 0xf8c   : > { %v2424_v19 = vmul.f32 %v6689_v13, %v7692_v41  ;;  %vm2445_vm15 = vmor %vm2443_vm13, %vm2444_vm11  ;;  %vm2429_vm3 = vweird.f32 %v6689_v13 }
 0xf8d   : > { %v2440_v16 = vsub.f32 1.0, %v2439_v12  ;;  %vm2430_vm6 = vmor %vm2428_vm5, %vm2429_vm3  ;;  %v6274_v12 = vld [vmem:[%s8797_s7 + $0xd8] sm:$0xff] }
 0xf8e   : > { %v2425_v29 = vsub.f32 1.0, %v2424_v19 }
 0xf8f   : > { %v2441_v25 = vmul.f32 %v6687_v7, %v2440_v16 }
 0xf90   : > { %v2426_v34 = vmul.f32 %v6689_v13, %v2425_v29  ;;  %v6269_v29 = vld [vmem:[%s8796_s6 + $0xd0] sm:$0xff] }
 0xf91   : > { %v2442_v22 = vadd.f32 %v6687_v7, %v2441_v25 }
 0xf92   : > { %v2427_v47 = vadd.f32 %v6689_v13, %v2426_v34 }
 0xf93   : > { %v2310_v59 = vpop.xlane.xlu2 %2309  ;;  %v2446_v46 = vsel %vm2445_vm15, %v6687_v7, %v2442_v22  ;;  %v6271_v22 = vld [vmem:[%s8797_s7 + $0xc0] sm:$0xff] }
 0xf94   : > { %v2316_v3 = vmul.f32 %v2310_v59, %v7228_v37  ;;  %v2451_v35 = vsel %vm2448_vm4, %v2450_v45, %v2446_v46  ;;  %v2431_v58 = vsel %vm2430_vm6, %v6689_v13, %v2427_v47 }
 0xf96   : > { %v2320_v5 = vadd.f32 1e-05, %v2316_v3  ;;  %v6266_v3 = vld [vmem:[%s8819_s5 + $0x58] sm:$0xff] }
 0xf98   : > { %6690 = vrsqrt.f32 %v2320_v5  ;;  %v2308_v6 = vpop.xlane.xlu0 %2307  ;;  %vm2339_vm9 = vweird.f32 %v2320_v5 }
 0xf99   : > { %v2315_v9 = vmul.f32 %v2308_v6, %v7228_v37 }
 0xf9b   : > { %v2319_v10 = vadd.f32 1e-05, %v2315_v9 }
 0xf9d   : > { %6692 = vrsqrt.f32 %v2319_v10  ;;  %vm2329_vm1 = vweird.f32 %v2319_v10 }
 0xf9e   : > { %v6691_v40 = vpop.eup %6690 }
 0xf9f   : > { %v2334_v15 = vmul.f32 %v6691_v40, %v2320_v5  ;;  %vm2340_vm8 = vweird.f32 %v6691_v40 }
 0xfa0   : > { %vm2341_vm10 = vmor %vm2339_vm9, %vm2340_vm8 }
 0xfa1   : > { %v2335_v43 = vmul.f32 %v6691_v40, %v2334_v15 }
 0xfa3   : > { %v6693_v21 = vpop.eup %6692  ;;  %v2336_v23 = vmul.f32 0.5, %v2335_v43 }
 0xfa4   : > { %v2324_v24 = vmul.f32 %v6693_v21, %v2319_v10  ;;  %vm2330_vm14 = vweird.f32 %v6693_v21  ;;  %v6270_v10 = vld [vmem:[%s8796_s6 + $0xd8] sm:$0xff] }
 0xfa5   : > { %v2337_v26 = vsub.f32 1.5, %v2336_v23  ;;  %vm2331_vm2 = vmor %vm2329_vm1, %vm2330_vm14 }
 0xfa6   : > { %v2325_v31 = vmul.f32 %v6693_v21, %v2324_v24 }
 0xfa7   : > { %v2338_v56 = vmul.f32 %v6691_v40, %v2337_v26 }
 0xfa8   : > { %v2326_v28 = vmul.f32 0.5, %v2325_v31  ;;  %v6273_v31 = vld [vmem:[%s8797_s7 + $0xd0] sm:$0xff] }
 0xfa9   : > { %v2342_v32 = vsel %vm2341_vm10, %v6691_v40, %v2338_v56  ;;  %v6268_v56 = vld [vmem:[%s8796_s6 + $0xc8] sm:$0xff] }
 0xfaa   : > { %v2327_v36 = vsub.f32 1.5, %v2326_v28  ;;  %v2364_v38 = vmul.f32 %v2342_v32, %v7681_v20  ;;  %v2432_v20 = vand.u32 2147483647, %v7692_v41  ;;  %v6263_v41 = vld [vmem:[%s8819_s5 + $0x40] sm:$0xff]  ;;  %v6272_v28 = vld [vmem:[%s8797_s7 + $0xc8] sm:$0xff] }
 0xfac   : > { %v2328_v42 = vmul.f32 %v6693_v21, %v2327_v36  ;;  %v2388_v44 = vmul.f32 %v2375_v2, %v2364_v38  ;;  %vm2433_vm7 = vcmp.eq.f32.partialorder %v2432_v20, 8.507059e+37  ;;  %v6286_v38 = vld [vmem:[%s8796_s6 + $0xf8] sm:$0xff] }
 0xfad   : > { %v2436_v1 = vsel %vm2433_vm7, %v2435_v62, %v2431_v58 }
 0xfae   : > { %v2332_v50 = vsel %vm2331_vm2, %v6693_v21, %v2328_v42  ;;  %v2412_v8 = vadd.f32 %v2399_v27, %v2388_v44  ;;  %v6267_v27 = vld [vmem:[%s8796_s6 + $0xc0] sm:$0xff] }
 0xfaf   : > { %v2363_v52 = vmul.f32 %v2332_v50, %v7686_v18 }
 0xfb0   : > { %v2454_v57 = vmul.f32 %v2451_v35, %v2412_v8 }
 0xfb1   : > { %v2387_v48 = vmul.f32 %v2370_v14, %v2363_v52 }
 0xfb2   : > { %v2456_v61 = vadd.f32 %v2454_v57, %v7630_v54  ;;  %v6264_v54 = vld [vmem:[%s8819_s5 + $0x48] sm:$0xff] }
 0xfb3   : > { %v2411_v63 = vadd.f32 %v2394_v60, %v2387_v48 }
 0xfb4   : > { %v7704_v0 = vmul.f32 0.70710677, %v2456_v61 }
 0xfb5   : > { %v2453_v59 = vmul.f32 %v2436_v1, %v2411_v63 }
 0xfb6   : > { %2500 = vmatpush.msrb.mxu3 %v7704_v0 }
 0xfb7   : > { %v2455_v18 = vadd.f32 %v2453_v59, %v7635_v49  ;;  %v6265_v49 = vld [vmem:[%s8819_s5 + $0x50] sm:$0xff] }
 0xfb9   : > { %v7708_v2 = vmul.f32 0.70710677, %v2455_v18 }
 0xfbb   : > { %2501 = vmatpush.msrb.mxu3 %v7708_v2 }
 0xfbc   : > { %6275 = vmatmul.msk.f32.vlgmr.msrb.gmra.mxu3 %vm535_vm0, %v6263_v41 }
 0xfc4   : > { %6276 = vmatmul.msk.f32.gmra.mxu3 %vm535_vm0, %v6264_v54 }
 0xfcc   : > { %6277 = vmatmul.msk.f32.gmra.mxu3 %vm535_vm0, %v6265_v49 }
 0xfd4   : > { %6278 = vmatmul.msk.f32.gmra.mxu3 %vm535_vm0, %v6266_v3 }
0x103f   : > { %v2503_v5 = vpop.f32.mrf.mxu3 }
0x1047   : > { %v2506_v6 = vpop.f32.mrf.mxu3 }
0x1048   : > { %2517 = vadd.xlane.f32.xlu1 %v2506_v6 }
0x104f   : > { %v2509_v7 = vpop.f32.mrf.mxu3 }
0x1050   : > { %2519 = vadd.xlane.f32.xlu0 %v2509_v7 }
0x1057   : > { %v2512_v9 = vpop.f32.mrf.mxu3 }
0x1058   : > { %2521 = vadd.xlane.f32.xlu2 %v2512_v9 }
0x1060   : > { %2515 = vadd.xlane.f32.xlu2 %v2503_v5 }
0x1064   : > { %2612 = vperm.xlu0 %6563, %v6270_v10  }
0x106c   : > { %2636 = vperm.xlu0 %6563, %v6274_v12  }
0x10bb   : > { %v2518_v32 = vpop.xlane.xlu1 %2517 }
0x10bc   : > { %v2524_v33 = vmul.f32 %v2518_v32, %v7228_v37 }
0x10be   : > { %v7759_v34 = vsub.f32 %v2506_v6, %v2524_v33 }
0x10c0   : > { %v2532_v36 = vmul.f32 %v7759_v34, %v7759_v34 }
0x10c3   : > { %v2520_v13 = vpop.xlane.xlu0 %2519 }
0x10c4   : > { %v2525_v40 = vmul.f32 %v2520_v13, %v7228_v37 }
0x10c6   : > { %v2529_v14 = vsub.f32 %v2509_v7, %v2525_v40 }
0x10c8   : > { %v2533_v15 = vmul.f32 %v2529_v14, %v2529_v14 }
0x10ca   : > { %2539 = vadd.xlane.f32.xlu2 %v2533_v15 }
0x10cb   : > { %v2522_v16 = vpop.xlane.xlu2 %2521 }
0x10cc   : > { %v2526_v43 = vmul.f32 %v2522_v16, %v7228_v37 }
0x10ce   : > { %v2530_v19 = vsub.f32 %v2512_v9, %v2526_v43 }
0x10d0   : > { %v2534_v21 = vmul.f32 %v2530_v19, %v2530_v19 }
0x10d2   : > { %2541 = vadd.xlane.f32.xlu0 %v2534_v21 }
0x10d3   : > { %v2516_v23 = vpop.xlane.xlu2 %2515 }
0x10d4   : > { %v2523_v24 = vmul.f32 %v2516_v23, %v7228_v37 }
0x10d6   : > { %v7736_v25 = vsub.f32 %v2503_v5, %v2523_v24  ;;  %v2613_v30 = vpop.permute.xlu0 %2612 }
0x10d8   : > { %v2531_v26 = vmul.f32 %v7736_v25, %v7736_v25 }
0x10da   : > { %2535 = vadd.xlane.f32.xlu1 %v2531_v26 }
0x10de   : > { %v2637_v42 = vpop.permute.xlu0 %2636 }
0x10e2   : > { %2607 = vperm.xlu2 %6565, %v6269_v29  }
0x10e6   : > { %2631 = vperm.xlu0 %6563, %v6273_v31  }
0x10ee   : > { %2602 = vperm.xlu0 %6563, %v6268_v56  }
0x10f3   : > { %2597 = vperm.xlu1 %6564, %v6267_v27  }
0x10f6   : > { %2626 = vperm.xlu0 %6563, %v6272_v28  }
0x10fe   : > { %2621 = vperm.xlu0 %6563, %v6271_v22  }
0x110b   : > { %2537 = vadd.xlane.f32.xlu2 %v2532_v36 }
0x1123   : > { %2840 = vperm.xlu2 %6565, %v6286_v38  }
0x113d   : > { %v2540_v44 = vpop.xlane.xlu2 %2539 }
0x113e   : > { %v2545_v46 = vmul.f32 %v2540_v44, %v7228_v37 }
0x1140   : > { %v2549_v45 = vadd.f32 1e-05, %v2545_v46 }
0x1142   : > { %6694 = vrsqrt.f32 %v2549_v45  ;;  %vm2577_vm9 = vweird.f32 %v2549_v45 }
0x1145   : > { %v2542_v47 = vpop.xlane.xlu0 %2541  ;;  %v2608_v54 = vpop.permute.xlu2 %2607 }
0x1146   : > { %v2546_v50 = vmul.f32 %v2542_v47, %v7228_v37 }
0x1148   : > { %v6695_v8 = vpop.eup %6694  ;;  %v2550_v51 = vadd.f32 1e-05, %v2546_v50 }
0x1149   : > { %v2572_v35 = vmul.f32 %v6695_v8, %v2549_v45  ;;  %vm2578_vm8 = vweird.f32 %v6695_v8 }
0x114a   : > { %6696 = vrsqrt.f32 %v2550_v51  ;;  %vm2579_vm10 = vmor %vm2577_vm9, %vm2578_vm8  ;;  %vm2587_vm13 = vweird.f32 %v2550_v51 }
0x114b   : > { %v2573_v52 = vmul.f32 %v6695_v8, %v2572_v35 }
0x114d   : > { %v2574_v20 = vmul.f32 0.5, %v2573_v52  ;;  %v2536_v10 = vpop.xlane.xlu1 %2535 }
0x114e   : > { %v2543_v13 = vmul.f32 %v2536_v10, %v7228_v37 }
0x114f   : > { %v2575_v57 = vsub.f32 1.5, %v2574_v20 }
0x1150   : > { %v6697_v48 = vpop.eup %6696  ;;  %v2547_v16 = vadd.f32 1e-05, %v2543_v13 }
0x1151   : > { %v2582_v58 = vmul.f32 %v6697_v48, %v2550_v51  ;;  %v2576_v60 = vmul.f32 %v6695_v8, %v2575_v57  ;;  %vm2588_vm11 = vweird.f32 %v6697_v48 }
0x1152   : > { %vm2589_vm14 = vmor %vm2587_vm13, %vm2588_vm11  ;;  %vm2557_vm1 = vweird.f32 %v2547_v16 }
0x1153   : > { %v2583_v61 = vmul.f32 %v6697_v48, %v2582_v58  ;;  %v2580_v63 = vsel %vm2579_vm10, %v6695_v8, %v2576_v60 }
0x1154   : > { %v2593_v18 = vmul.f32 %v2580_v63, %v2529_v14 }
0x1155   : > { %v2584_v62 = vmul.f32 0.5, %v2583_v61 }
0x1156   : > { %v2617_v3 = vmul.f32 %v2608_v54, %v2593_v18 }
0x1157   : > { %v2585_v1 = vsub.f32 1.5, %v2584_v62 }
0x1158   : > { %v2632_v5 = vpop.permute.xlu0 %2631 }
0x1159   : > { %v2586_v59 = vmul.f32 %v6697_v48, %v2585_v1  ;;  %v2641_v7 = vadd.f32 %v2632_v5, %v2617_v3 }
0x115b   : > { %v2590_v41 = vsel %vm2589_vm14, %v6697_v48, %v2586_v59  ;;  %v2643_v12 = vsub.f32 0.0, %v2641_v7 }
0x115c   : > { %v2594_v49 = vmul.f32 %v2590_v41, %v2530_v19 }
0x115d   : > { %v2645_v15 = vmul.f32 1.442695, %v2643_v12 }
0x115e   : > { %v2618_v6 = vmul.f32 %v2613_v30, %v2594_v49 }
0x115f   : > { %6698 = vpow2.f32 %v2645_v15 }
0x1160   : > { %v2642_v9 = vadd.f32 %v2637_v42, %v2618_v6  ;;  %6700 = vrsqrt.f32 %v2547_v16  ;;  %v2603_v28 = vpop.permute.xlu0 %2602 }
0x1162   : > { %v2644_v40 = vsub.f32 0.0, %v2642_v9 }
0x1164   : > { %v2647_v43 = vmul.f32 1.442695, %v2644_v40 }
0x1165   : > { %v6699_v14 = vpop.eup %6698  ;;  %v2598_v61 = vpop.permute.xlu1 %2597 }
0x1166   : > { %6702 = vpow2.f32 %v2647_v43  ;;  %v6701_v21 = vpop.eup %6700  ;;  %v2649_v23 = vadd.f32 1.0, %v6699_v14 }
0x1167   : > { %v2552_v24 = vmul.f32 %v6701_v21, %v2547_v16  ;;  %vm2558_vm15 = vweird.f32 %v6701_v21 }
0x1168   : > { %6704 = vrcp.f32 %v2649_v23  ;;  %v2627_v45 = vpop.permute.xlu0 %2626  ;;  %vm2559_vm2 = vmor %vm2557_vm1, %vm2558_vm15  ;;  %v2662_v58 = vand.u32 2147483648, %v2649_v23  ;;  %vm2656_vm5 = vweird.f32 %v2649_v23  ;;  %v2660_v62 = vand.u32 2147483647, %v2649_v23 }
0x1169   : > { %v2553_v29 = vmul.f32 %v6701_v21, %v2552_v24  ;;  %v6282_v24 = vld [vmem:[%s8819_s5 + $0x78] sm:$0xff] }
0x116a   : > { %v2663_v54 = vor.u32 1.1754944e-38, %v2662_v58  ;;  %vm2661_vm10 = vcmp.eq.f32.partialorder %v2660_v62, 8.507059e+37 }
0x116b   : > { %v2554_v22 = vmul.f32 0.5, %v2553_v29 }
0x116c   : > { %v6703_v19 = vpop.eup %6702 }
0x116d   : > { %v2650_v26 = vadd.f32 1.0, %v6703_v19  ;;  %v2555_v38 = vsub.f32 1.5, %v2554_v22  ;;  %v6279_v19 = vld [vmem:[%s8819_s5 + $0x60] sm:$0xff]  ;;  %v6301_v22 = vld [vmem:[%s8800_s10 + $0x10] sm:$0xff] }
0x116e   : > { %v6705_v27 = vpop.eup %6704 }
0x116f   : > { %6706 = vrcp.f32 %v2650_v26  ;;  %v2652_v33 = vmul.f32 %v6705_v27, %v2649_v23  ;;  %v2556_v46 = vmul.f32 %v6701_v21, %v2555_v38  ;;  %vm2657_vm3 = vweird.f32 %v6705_v27 }
0x1170   : > { %vm7771_vm6 = vmor %vm2656_vm5, %vm2657_vm3  ;;  %v2677_v3 = vand.u32 2147483648, %v2650_v26  ;;  %vm2671_vm11 = vweird.f32 %v2650_v26  ;;  %v2675_v6 = vand.u32 2147483647, %v2650_v26 }
0x1171   : > { %v2653_v30 = vsub.f32 1.0, %v2652_v33  ;;  %v2560_v35 = vsel %vm2559_vm2, %v6701_v21, %v2556_v46 }
0x1172   : > { %v2591_v48 = vmul.f32 %v2560_v35, %v7736_v25  ;;  %v2622_v25 = vpop.permute.xlu0 %2621  ;;  %v2678_v13 = vor.u32 1.1754944e-38, %v2677_v3  ;;  %vm2676_vm14 = vcmp.eq.f32.partialorder %v2675_v6, 8.507059e+37 }
0x1173   : > { %v2654_v50 = vmul.f32 %v6705_v27, %v2653_v30 }
0x1174   : > { %v2615_v41 = vmul.f32 %v2598_v61, %v2591_v48 }
0x1175   : > { %v6707_v36 = vpop.eup %6706  ;;  %v2655_v20 = vadd.f32 %v6705_v27, %v2654_v50  ;;  %v6288_v50 = vld [vmem:[%s8797_s7 + $0xe8] sm:$0xff] }
0x1176   : > { %v2667_v42 = vmul.f32 %v6707_v36, %v2650_v26  ;;  %vm2672_vm9 = vweird.f32 %v6707_v36  ;;  %v2639_v9 = vadd.f32 %v2622_v25, %v2615_v41 }
0x1177   : > { %v2659_v59 = vsel %vm7771_vm6, %v6705_v27, %v2655_v20  ;;  %vm2673_vm13 = vmor %vm2671_vm11, %vm2672_vm9  ;;  %v6284_v27 = vld [vmem:[%s8796_s6 + $0xe8] sm:$0xff] }
0x1178   : > { %v2668_v8 = vsub.f32 1.0, %v2667_v42  ;;  %v2664_v7 = vsel %vm2661_vm10, %v2663_v54, %v2659_v59 }
0x1179   : > { %v2681_v40 = vmul.f32 %v2664_v7, %v2639_v9 }
0x117a   : > { %v2669_v57 = vmul.f32 %v6707_v36, %v2668_v8 }
0x117b   : > { %v2683_v21 = vadd.f32 %v2681_v40, %v7708_v2  ;;  %v6281_v2 = vld [vmem:[%s8819_s5 + $0x70] sm:$0xff] }
0x117c   : > { %v2670_v18 = vadd.f32 %v6707_v36, %v2669_v57 }
0x117e   : > { %v2538_v31 = vpop.xlane.xlu2 %2537  ;;  %v2674_v12 = vsel %vm2673_vm13, %v6707_v36, %v2670_v18 }
0x117f   : > { %v2544_v56 = vmul.f32 %v2538_v31, %v7228_v37  ;;  %v2679_v16 = vsel %vm2676_vm14, %v2678_v13, %v2674_v12 }
0x1181   : > { %v2548_v32 = vadd.f32 1e-05, %v2544_v56 }
0x1183   : > { %6708 = vrsqrt.f32 %v2548_v32  ;;  %vm2567_vm7 = vweird.f32 %v2548_v32 }
0x1186   : > { %v2841_v8 = vpop.permute.xlu2 %2840 }
0x1189   : > { %v6709_v44 = vpop.eup %6708 }
0x118a   : > { %v2562_v47 = vmul.f32 %v6709_v44, %v2548_v32  ;;  %vm2568_vm4 = vweird.f32 %v6709_v44  ;;  %v6302_v32 = vld [vmem:[%s8800_s10 + $0x18] sm:$0xff] }
0x118b   : > { %vm2569_vm8 = vmor %vm2567_vm7, %vm2568_vm4 }
0x118c   : > { %v2563_v51 = vmul.f32 %v6709_v44, %v2562_v47  ;;  %v6290_v47 = vld [vmem:[%s8797_s7 + $0xf8] sm:$0xff] }
0x118e   : > { %v2564_v52 = vmul.f32 0.5, %v2563_v51 }
0x1190   : > { %v2565_v60 = vsub.f32 1.5, %v2564_v52 }
0x1192   : > { %v2566_v1 = vmul.f32 %v6709_v44, %v2565_v60 }
0x1194   : > { %v2570_v49 = vsel %vm2569_vm8, %v6709_v44, %v2566_v1 }
0x1195   : > { %v2592_v5 = vmul.f32 %v2570_v49, %v7759_v34  ;;  %v7783_v34 = vmul.f32 0.70710677, %v2683_v21 }
0x1197   : > { %v2616_v10 = vmul.f32 %v2603_v28, %v2592_v5  ;;  %v6299_v28 = vld [vmem:[%s8799_s9 + $0x10] sm:$0xff] }
0x1199   : > { %v2640_v15 = vadd.f32 %v2627_v45, %v2616_v10 }
0x119b   : > { %v2682_v43 = vmul.f32 %v2679_v16, %v2640_v15 }
0x119d   : > { %v2684_v14 = vadd.f32 %v2682_v43, %v7704_v0  ;;  %v6280_v0 = vld [vmem:[%s8819_s5 + $0x68] sm:$0xff] }
0x119f   : > { %v7780_v23 = vmul.f32 0.70710677, %v2684_v14 }
0x11a1   : > { %2728 = vmatpush.msra.mxu0 %v7780_v23 }
0x11a3   : > { %2729 = vmatpush.msra.mxu0 %v7783_v34 }
0x11a4   : > { %6291 = vmatmul.msk.f32.vlgmr.msra.gmra.mxu0 %vm535_vm0, %v6279_v19 }
0x11ac   : > { %6292 = vmatmul.msk.f32.gmra.mxu0 %vm535_vm0, %v6280_v0 }
0x11b4   : > { %6293 = vmatmul.msk.f32.gmra.mxu0 %vm535_vm0, %v6281_v2 }
0x11bc   : > { %6294 = vmatmul.msk.f32.gmra.mxu0 %vm535_vm0, %v6282_v24 }
0x1221   : > { %v7802_v26 = vpop.f32.mrf.mxu0 }
0x1229   : > { %v2734_v29 = vpop.f32.mrf.mxu0 }
0x122a   : > { %2745 = vadd.xlane.f32.xlu1 %v2734_v29 }
0x1231   : > { %v7804_v31 = vpop.f32.mrf.mxu0 }
0x1239   : > { %v2740_v56 = vpop.f32.mrf.mxu0 }
0x123a   : > { %2749 = vadd.xlane.f32.xlu0 %v2740_v56 }
0x1243   : > { %2830 = vperm.xlu1 %6564, %v6284_v27  }
0x124b   : > { %2997 = vperm.xlu1 %6564, %v6299_v28  }
0x1253   : > { %3009 = vperm.xlu1 %6564, %v6301_v22  }
0x125b   : > { %3014 = vperm.xlu1 %6564, %v6302_v32  }
0x129d   : > { %v2746_v33 = vpop.xlane.xlu1 %2745 }
0x129e   : > { %v2752_v36 = vmul.f32 %v2746_v33, %v7228_v37 }
0x12a0   : > { %v2756_v38 = vsub.f32 %v2734_v29, %v2752_v36 }
0x12a2   : > { %v2760_v30 = vmul.f32 %v2756_v38, %v2756_v38 }
0x12a4   : > { %2765 = vadd.xlane.f32.xlu0 %v2760_v30 }
0x12ad   : > { %v2750_v42 = vpop.xlane.xlu0 %2749 }
0x12ae   : > { %v2754_v44 = vmul.f32 %v2750_v42, %v7228_v37  ;;  %v6295_v42 = vld [vmem:[%s8798_s8 + $0x10] sm:$0xff] }
0x12b0   : > { %v2758_v46 = vsub.f32 %v2740_v56, %v2754_v44  ;;  %v6296_v44 = vld [vmem:[%s8798_s8 + $0x18] sm:$0xff] }
0x12b2   : > { %v2762_v45 = vmul.f32 %v2758_v46, %v2758_v46 }
0x12b4   : > { %2769 = vadd.xlane.f32.xlu2 %v2762_v45 }
0x12b5   : > { %v2831_v24 = vpop.permute.xlu1 %2830 }
0x12cc   : > { %2864 = vperm.xlu2 %6565, %v6290_v47  }
0x12d4   : > { %2854 = vperm.xlu2 %6565, %v6288_v50  }
0x1317   : > { %v2766_v20 = vpop.xlane.xlu0 %2765 }
0x1318   : > { %v2772_v48 = vmul.f32 %v2766_v20, %v7228_v37 }
0x131a   : > { %v2776_v61 = vadd.f32 1e-05, %v2772_v48 }
0x131c   : > { %vm2795_vm4 = vweird.f32 %v2776_v61 }
0x1327   : > { %v2770_v51 = vpop.xlane.xlu2 %2769 }
0x1328   : > { %v2774_v35 = vmul.f32 %v2770_v51, %v7228_v37 }
0x132a   : > { %v2778_v52 = vadd.f32 1e-05, %v2774_v35 }
0x132c   : > { %6710 = vrsqrt.f32 %v2778_v52  ;;  %vm2815_vm1 = vweird.f32 %v2778_v52 }
0x132d   : > { %6712 = vrsqrt.f32 %v2776_v61 }
0x132f   : > { %v2865_v54 = vpop.permute.xlu2 %2864 }
0x1332   : > { %v6711_v57 = vpop.eup %6710 }
0x1333   : > { %v2810_v58 = vmul.f32 %v6711_v57, %v2778_v52  ;;  %vm2816_vm15 = vweird.f32 %v6711_v57  ;;  %v6713_v41 = vpop.eup %6712 }
0x1334   : > { %vm2817_vm2 = vmor %vm2815_vm1, %vm2816_vm15  ;;  %v2790_v3 = vmul.f32 %v6713_v41, %v2776_v61  ;;  %vm2796_vm3 = vweird.f32 %v6713_v41 }
0x1335   : > { %v2811_v60 = vmul.f32 %v6711_v57, %v2810_v58  ;;  %vm2797_vm5 = vmor %vm2795_vm4, %vm2796_vm3 }
0x1336   : > { %v2791_v7 = vmul.f32 %v6713_v41, %v2790_v3 }
0x1337   : > { %v2812_v62 = vmul.f32 0.5, %v2811_v60  ;;  %v2855_v29 = vpop.permute.xlu2 %2854 }
0x1338   : > { %v2792_v9 = vmul.f32 0.5, %v2791_v7 }
0x1339   : > { %v2813_v63 = vsub.f32 1.5, %v2812_v62 }
0x133a   : > { %v2793_v12 = vsub.f32 1.5, %v2792_v9 }
0x133b   : > { %v2814_v1 = vmul.f32 %v6711_v57, %v2813_v63 }
0x133c   : > { %v2794_v40 = vmul.f32 %v6713_v41, %v2793_v12 }
0x133d   : > { %v2818_v59 = vsel %vm2817_vm2, %v6711_v57, %v2814_v1  ;;  %v6300_v57 = vld [vmem:[%s8799_s9 + $0x18] sm:$0xff] }
0x133e   : > { %v2822_v18 = vmul.f32 %v2818_v59, %v2758_v46  ;;  %v2798_v16 = vsel %vm2797_vm5, %v6713_v41, %v2794_v40 }
0x133f   : > { %v2820_v14 = vmul.f32 %v2798_v16, %v2756_v38 }
0x1340   : > { %v2846_v25 = vmul.f32 %v2841_v8, %v2822_v18  ;;  %v2998_v18 = vpop.permute.xlu1 %2997 }
0x1341   : > { %v2844_v56 = vmul.f32 %v2831_v24, %v2820_v14  ;;  %v2037_v24 = vsub.f32 1.3, %v7557_v53 }
0x1342   : > { %v2870_v49 = vadd.f32 %v2865_v54, %v2846_v25 }
0x1343   : > { %v2868_v32 = vadd.f32 %v2855_v29, %v2844_v56 }
0x1344   : > { %v2872_v5 = vsub.f32 0.0, %v2870_v49 }
0x1346   : > { %v2875_v6 = vmul.f32 1.442695, %v2872_v5 }
0x1348   : > { %6714 = vpow2.f32 %v2875_v6  ;;  %v3010_v9 = vpop.permute.xlu1 %3009 }
0x134e   : > { %v6715_v10 = vpop.eup %6714 }
0x134f   : > { %v2878_v13 = vadd.f32 1.0, %v6715_v10 }
0x1351   : > { %6716 = vrcp.f32 %v2878_v13  ;;  %v2905_v19 = vand.u32 2147483648, %v2878_v13  ;;  %v2903_v2 = vand.u32 2147483647, %v2878_v13  ;;  %vm2899_vm7 = vweird.f32 %v2878_v13 }
0x1353   : > { %v2906_v28 = vor.u32 1.1754944e-38, %v2905_v19  ;;  %vm2904_vm9 = vcmp.eq.f32.partialorder %v2903_v2, 8.507059e+37  ;;  %v2038_v2 = vsub.f32 1.3, %v7555_v55 }
0x1357   : > { %v6717_v15 = vpop.eup %6716 }
0x1358   : > { %v2895_v43 = vmul.f32 %v6717_v15, %v2878_v13  ;;  %vm2900_vm6 = vweird.f32 %v6717_v15 }
0x1359   : > { %vm2901_vm8 = vmor %vm2899_vm7, %vm2900_vm6 }
0x135a   : > { %v2896_v21 = vsub.f32 1.0, %v2895_v43 }
0x135c   : > { %v2897_v0 = vmul.f32 %v6717_v15, %v2896_v21 }
0x135e   : > { %v2898_v27 = vadd.f32 %v6717_v15, %v2897_v0  ;;  %v3015_v0 = vpop.permute.xlu1 %3014 }
0x1360   : > { %v2902_v22 = vsel %vm2901_vm8, %v6717_v15, %v2898_v27 }
0x1361   : > { %v2907_v33 = vsel %vm2904_vm9, %v2906_v28, %v2902_v22 }
0x1362   : > { %v2910_v36 = vmul.f32 %v2907_v33, %v2868_v32 }
0x1364   : > { %v2912_v30 = vadd.f32 %v2910_v36, %v7780_v23 }
0x1366   : > { %v2914_v38 = vmul.f32 0.70710677, %v2912_v30 }
0x1368   : > { %2941 = vmatpush.msra.mxu1 %v2914_v38 }
0x1369   : > { %6297 = vmatmul.msk.f32.vlgmr.msra.gmra.mxu1 %vm1340_vm12, %v6295_v42 }
0x1371   : > { %6298 = vmatmul.msk.f32.gmra.mxu1 %vm1340_vm12, %v6296_v44 }
0x13e6   : > { %v2943_v46 = vpop.f32.mrf.mxu1 }
0x13e7   : > { %2955 = vadd.xlane.f32.xlu0 %v2943_v46 }
0x13ee   : > { %v2946_v45 = vpop.f32.mrf.mxu1 }
0x13ef   : > { %2957 = vadd.xlane.f32.xlu2 %v2946_v45 }
0x145a   : > { %v2956_v47 = vpop.xlane.xlu0 %2955 }
0x145b   : > { %v2959_v23 = vmul.f32 %v2956_v47, %v7228_v37 }
0x145d   : > { %v2961_v50 = vsub.f32 %v2943_v46, %v2959_v23 }
0x145f   : > { %v2963_v8 = vmul.f32 %v2961_v50, %v2961_v50 }
0x1461   : > { %2965 = vadd.xlane.f32.xlu0 %v2963_v8 }
0x1462   : > { %v2958_v51 = vpop.xlane.xlu2 %2957 }
0x1463   : > { %v2960_v35 = vmul.f32 %v2958_v51, %v7228_v37 }
0x1465   : > { %v2962_v52 = vsub.f32 %v2946_v45, %v2960_v35 }
0x1467   : > { %v2964_v20 = vmul.f32 %v2962_v52, %v2962_v52 }
0x1469   : > { %2967 = vadd.xlane.f32.xlu0 %v2964_v20 }
0x147d   : > { %3002 = vperm.xlu0 %6563, %v6300_v57  }
0x14d4   : > { %v2966_v48 = vpop.xlane.xlu0 %2965 }
0x14d5   : > { %v2969_v58 = vmul.f32 %v2966_v48, %v7228_v37 }
0x14d7   : > { %v2971_v60 = vadd.f32 1e-05, %v2969_v58 }
0x14d9   : > { %6718 = vrsqrt.f32 %v2971_v60  ;;  %vm2979_vm11 = vweird.f32 %v2971_v60 }
0x14dc   : > { %v2968_v61 = vpop.xlane.xlu0 %2967 }
0x14dd   : > { %v2970_v62 = vmul.f32 %v2968_v61, %v7228_v37 }
0x14df   : > { %v6719_v63 = vpop.eup %6718  ;;  %v2972_v1 = vadd.f32 1e-05, %v2970_v62 }
0x14e0   : > { %v2974_v59 = vmul.f32 %v6719_v63, %v2971_v60  ;;  %vm2980_vm10 = vweird.f32 %v6719_v63 }
0x14e1   : > { %6720 = vrsqrt.f32 %v2972_v1  ;;  %vm2981_vm13 = vmor %vm2979_vm11, %vm2980_vm10  ;;  %vm2989_vm15 = vweird.f32 %v2972_v1 }
0x14e2   : > { %v2975_v41 = vmul.f32 %v6719_v63, %v2974_v59 }
0x14e4   : > { %v2976_v25 = vmul.f32 0.5, %v2975_v41 }
0x14e6   : > { %v2977_v54 = vsub.f32 1.5, %v2976_v25 }
0x14e7   : > { %v6721_v49 = vpop.eup %6720 }
0x14e8   : > { %v2978_v3 = vmul.f32 %v6719_v63, %v2977_v54  ;;  %v2984_v5 = vmul.f32 %v6721_v49, %v2972_v1  ;;  %vm2990_vm14 = vweird.f32 %v6721_v49 }
0x14e9   : > { %vm2991_vm1 = vmor %vm2989_vm15, %vm2990_vm14 }
0x14ea   : > { %v2982_v6 = vsel %vm2981_vm13, %v6719_v63, %v2978_v3  ;;  %v2985_v7 = vmul.f32 %v6721_v49, %v2984_v5 }
0x14eb   : > { %v2993_v12 = vmul.f32 %v2982_v6, %v2961_v50 }
0x14ec   : > { %v2986_v10 = vmul.f32 0.5, %v2985_v7 }
0x14ed   : > { %v3005_v15 = vmul.f32 %v2998_v18, %v2993_v12 }
0x14ee   : > { %v2987_v13 = vsub.f32 1.5, %v2986_v10 }
0x14ef   : > { %v3003_v14 = vpop.permute.xlu0 %3002  ;;  %v3017_v21 = vadd.f32 %v3010_v9, %v3005_v15 }
0x14f0   : > { %v2988_v40 = vmul.f32 %v6721_v49, %v2987_v13 }
0x14f1   : > { %v7848_v56 = vmul.f32 %v3017_v21, %v2037_v24 }
0x14f2   : > { %v2992_v16 = vsel %vm2991_vm1, %v6721_v49, %v2988_v40 }
0x14f3   : > { %v2994_v43 = vmul.f32 %v2992_v16, %v2962_v52 }
0x14f5   : > { %v3006_v19 = vmul.f32 %v3003_v14, %v2994_v43 }
0x14f7   : > { %v3018_v29 = vadd.f32 %v3015_v0, %v3006_v19 }
0x14f9   : > { %v7852_v27 = vmul.f32 %v3018_v29, %v2038_v2 }
0x14fb   : > { %v3021_v28 = vadd.f32 %v7852_v27, %v7848_v56 }
0x14fd   : > { %v3022_v22 = vrot.slane %v3021_v28, 4 }
0x14ff   : > { %v3023_v32 = vadd.f32 %v3022_v22, %v3021_v28 }
0x1501   : > { %v3024_v33 = vrot.slane %v3023_v32, 2 }
0x1503   : > { %v3025_v36 = vadd.f32 %v3024_v33, %v3023_v32 }
0x1505   : > { %v3026_v30 = vrot.slane %v3025_v36, 1 }
0x1507   : > { %v3027_v38 = vadd.f32 %v3026_v30, %v3025_v36 }
0x1509   : > { %v6303_v42 = vadd.f32 -1.0, %v3027_v38 }
0x150b   : > { %v3029_v44 = vmul.f32 0.0625, %v6303_v42 }
0x150d   : > { %vm3030_vm2 = vcmp.gt.f32.partialorder %v7848_v56, %v3029_v44  ;;  %vm3031_vm3 = vcmp.gt.f32.partialorder %v7852_v27, %v3029_v44 }
0x150e   : > { %v6304_v46 = vsel %vm3030_vm2, 1.0, %v7044_v39  ;;  %v6305_v45 = vsel %vm3031_vm3, 1.0, %v7044_v39 }
0x150f   : > { %v3036_v47 = vadd.f32 %v6305_v45, %v6304_v46  ;;  %v3043_v23 = vmul.f32 %v6304_v46, %v7848_v56  ;;  %v3044_v50 = vmul.f32 %v6305_v45, %v7852_v27 }
0x1511   : > { %v3037_v8 = vrot.slane %v3036_v47, 4  ;;  %v3045_v51 = vadd.f32 %v3044_v50, %v3043_v23 }
0x1513   : > { %v3038_v35 = vadd.f32 %v3037_v8, %v3036_v47  ;;  %v3046_v52 = vrot.slane %v3045_v51, 4 }
0x1515   : > { %v3039_v20 = vrot.slane %v3038_v35, 2  ;;  %v3047_v48 = vadd.f32 %v3046_v52, %v3045_v51 }
0x1517   : > { %v3040_v57 = vadd.f32 %v3039_v20, %v3038_v35  ;;  %v3048_v61 = vrot.slane %v3047_v48, 2 }
0x1519   : > { %v3041_v58 = vrot.slane %v3040_v57, 1  ;;  %v3049_v62 = vadd.f32 %v3048_v61, %v3047_v48 }
0x151b   : > { %v3042_v60 = vadd.f32 %v3041_v58, %v3040_v57  ;;  %v3050_v1 = vrot.slane %v3049_v62, 1 }
0x151d   : > { %6722 = vrcp.f32 %v3042_v60  ;;  %v3064_v41 = vand.u32 2147483648, %v3042_v60  ;;  %v3051_v25 = vadd.f32 %v3050_v1, %v3049_v62  ;;  %v3062_v49 = vand.u32 2147483647, %v3042_v60 }
0x151e   : > { %vm3058_vm5 = vweird.f32 %v3042_v60 }
0x151f   : > { %v3065_v5 = vor.u32 1.1754944e-38, %v3064_v41  ;;  %v6306_v6 = vadd.f32 -1.0, %v3051_v25  ;;  %vm3063_vm7 = vcmp.eq.f32.partialorder %v3062_v49, 8.507059e+37 }
0x1523   : > { %v6723_v63 = vpop.eup %6722 }
0x1524   : > { %v3054_v59 = vmul.f32 %v6723_v63, %v3042_v60  ;;  %vm3059_vm4 = vweird.f32 %v6723_v63 }
0x1525   : > { %vm3060_vm6 = vmor %vm3058_vm5, %vm3059_vm4 }
0x1526   : > { %v3055_v18 = vsub.f32 1.0, %v3054_v59 }
0x1528   : > { %v3056_v54 = vmul.f32 %v6723_v63, %v3055_v18 }
0x152a   : > { %v3057_v3 = vadd.f32 %v6723_v63, %v3056_v54 }
0x152c   : > { %v3061_v7 = vsel %vm3060_vm6, %v6723_v63, %v3057_v3 }
0x152d   : > { %v3066_v9 = vsel %vm3063_vm7, %v3065_v5, %v3061_v7 }
0x152e   : > { %v3067_v10 = vmul.f32 %v6306_v6, %v3066_v9 }
0x1530   : > { %vm3068_vm8 = vcmp.gt.f32.partialorder %v7848_v56, %v3067_v10  ;;  %vm3069_vm9 = vcmp.gt.f32.partialorder %v7852_v27, %v3067_v10 }
0x1531   : > { %v6307_v12 = vsel %vm3068_vm8, 1.0, %v7044_v39  ;;  %v6308_v13 = vsel %vm3069_vm9, 1.0, %v7044_v39 }
0x1532   : > { %v3074_v40 = vadd.f32 %v6308_v13, %v6307_v12  ;;  %v3081_v15 = vmul.f32 %v6307_v12, %v7848_v56  ;;  %v3082_v16 = vmul.f32 %v6308_v13, %v7852_v27 }
0x1534   : > { %v3075_v43 = vrot.slane %v3074_v40, 4  ;;  %v3083_v14 = vadd.f32 %v3082_v16, %v3081_v15 }
0x1536   : > { %v3076_v21 = vadd.f32 %v3075_v43, %v3074_v40  ;;  %v3084_v19 = vrot.slane %v3083_v14, 4 }
0x1538   : > { %v3077_v0 = vrot.slane %v3076_v21, 2  ;;  %v3085_v28 = vadd.f32 %v3084_v19, %v3083_v14 }
0x153a   : > { %v3078_v29 = vadd.f32 %v3077_v0, %v3076_v21  ;;  %v3086_v33 = vrot.slane %v3085_v28, 2 }
0x153c   : > { %v3079_v22 = vrot.slane %v3078_v29, 1  ;;  %v3087_v36 = vadd.f32 %v3086_v33, %v3085_v28 }
0x153e   : > { %v3080_v32 = vadd.f32 %v3079_v22, %v3078_v29  ;;  %v3088_v38 = vrot.slane %v3087_v36, 1 }
0x1540   : > { %6724 = vrcp.f32 %v3080_v32  ;;  %v3102_v46 = vand.u32 2147483648, %v3080_v32  ;;  %v3089_v45 = vadd.f32 %v3088_v38, %v3087_v36  ;;  %v3100_v23 = vand.u32 2147483647, %v3080_v32 }
0x1541   : > { %vm3096_vm11 = vweird.f32 %v3080_v32 }
0x1542   : > { %v3103_v8 = vor.u32 1.1754944e-38, %v3102_v46  ;;  %v6309_v51 = vadd.f32 -1.0, %v3089_v45  ;;  %vm3101_vm14 = vcmp.eq.f32.partialorder %v3100_v23, 8.507059e+37 }
0x1546   : > { %v6725_v30 = vpop.eup %6724 }
0x1547   : > { %v3092_v42 = vmul.f32 %v6725_v30, %v3080_v32  ;;  %vm3097_vm10 = vweird.f32 %v6725_v30 }
0x1548   : > { %vm3098_vm13 = vmor %vm3096_vm11, %vm3097_vm10 }
0x1549   : > { %v3093_v44 = vsub.f32 1.0, %v3092_v42 }
0x154b   : > { %v3094_v47 = vmul.f32 %v6725_v30, %v3093_v44 }
0x154d   : > { %v3095_v50 = vadd.f32 %v6725_v30, %v3094_v47 }
0x154f   : > { %v3099_v35 = vsel %vm3098_vm13, %v6725_v30, %v3095_v50 }
0x1550   : > { %v3104_v52 = vsel %vm3101_vm14, %v3103_v8, %v3099_v35 }
0x1551   : > { %v3105_v20 = vmul.f32 %v6309_v51, %v3104_v52 }
0x1553   : > { %vm3106_vm15 = vcmp.gt.f32.partialorder %v7848_v56, %v3105_v20  ;;  %vm3107_vm1 = vcmp.gt.f32.partialorder %v7852_v27, %v3105_v20 }
0x1554   : > { %v6310_v57 = vsel %vm3106_vm15, 1.0, %v7044_v39  ;;  %v6311_v48 = vsel %vm3107_vm1, 1.0, %v7044_v39 }
0x1555   : > { %v3112_v58 = vadd.f32 %v6311_v48, %v6310_v57  ;;  %v3119_v60 = vmul.f32 %v6310_v57, %v7848_v56  ;;  %v3120_v61 = vmul.f32 %v6311_v48, %v7852_v27 }
0x1557   : > { %v3113_v62 = vrot.slane %v3112_v58, 4  ;;  %v3121_v63 = vadd.f32 %v3120_v61, %v3119_v60 }
0x1559   : > { %v3114_v1 = vadd.f32 %v3113_v62, %v3112_v58  ;;  %v3122_v59 = vrot.slane %v3121_v63, 4 }
0x155b   : > { %v3115_v18 = vrot.slane %v3114_v1, 2  ;;  %v3123_v25 = vadd.f32 %v3122_v59, %v3121_v63 }
0x155d   : > { %v3116_v41 = vadd.f32 %v3115_v18, %v3114_v1  ;;  %v3124_v3 = vrot.slane %v3123_v25, 2 }
0x155f   : > { %v3117_v54 = vrot.slane %v3116_v41, 1  ;;  %v3125_v5 = vadd.f32 %v3124_v3, %v3123_v25 }
0x1561   : > { %v3118_v49 = vadd.f32 %v3117_v54, %v3116_v41  ;;  %v3126_v7 = vrot.slane %v3125_v5, 1 }
0x1563   : > { %6726 = vrcp.f32 %v3118_v49  ;;  %v3140_v12 = vand.u32 2147483648, %v3118_v49  ;;  %v3127_v13 = vadd.f32 %v3126_v7, %v3125_v5  ;;  %v3138_v15 = vand.u32 2147483647, %v3118_v49 }
0x1564   : > { %vm3134_vm3 = vweird.f32 %v3118_v49 }
0x1565   : > { %v3141_v43 = vor.u32 1.1754944e-38, %v3140_v12  ;;  %v6312_v14 = vadd.f32 -1.0, %v3127_v13  ;;  %vm3139_vm5 = vcmp.eq.f32.partialorder %v3138_v15, 8.507059e+37 }
0x1569   : > { %v6727_v6 = vpop.eup %6726 }
0x156a   : > { %v3130_v9 = vmul.f32 %v6727_v6, %v3118_v49  ;;  %vm3135_vm2 = vweird.f32 %v6727_v6 }
0x156b   : > { %vm3136_vm4 = vmor %vm3134_vm3, %vm3135_vm2 }
0x156c   : > { %v3131_v10 = vsub.f32 1.0, %v3130_v9 }
0x156e   : > { %v3132_v40 = vmul.f32 %v6727_v6, %v3131_v10 }
0x1570   : > { %v3133_v16 = vadd.f32 %v6727_v6, %v3132_v40 }
0x1572   : > { %v3137_v21 = vsel %vm3136_vm4, %v6727_v6, %v3133_v16 }
0x1573   : > { %v3142_v19 = vsel %vm3139_vm5, %v3141_v43, %v3137_v21 }
0x1574   : > { %v3143_v0 = vmul.f32 %v6312_v14, %v3142_v19 }
0x1576   : > { %vm3144_vm6 = vcmp.gt.f32.partialorder %v7848_v56, %v3143_v0  ;;  %vm3145_vm7 = vcmp.gt.f32.partialorder %v7852_v27, %v3143_v0 }
0x1577   : > { %v6313_v29 = vsel %vm3144_vm6, 1.0, %v7044_v39  ;;  %v6314_v28 = vsel %vm3145_vm7, 1.0, %v7044_v39 }
0x1578   : > { %v3150_v22 = vadd.f32 %v6314_v28, %v6313_v29  ;;  %v3157_v32 = vmul.f32 %v6313_v29, %v7848_v56  ;;  %v3158_v33 = vmul.f32 %v6314_v28, %v7852_v27 }
0x157a   : > { %v3151_v36 = vrot.slane %v3150_v22, 4  ;;  %v3159_v30 = vadd.f32 %v3158_v33, %v3157_v32 }
0x157c   : > { %v3152_v38 = vadd.f32 %v3151_v36, %v3150_v22  ;;  %v3160_v42 = vrot.slane %v3159_v30, 4 }
0x157e   : > { %v3153_v44 = vrot.slane %v3152_v38, 2  ;;  %v3161_v45 = vadd.f32 %v3160_v42, %v3159_v30 }
0x1580   : > { %v3154_v46 = vadd.f32 %v3153_v44, %v3152_v38  ;;  %v3162_v50 = vrot.slane %v3161_v45, 2 }
0x1582   : > { %v3155_v47 = vrot.slane %v3154_v46, 1  ;;  %v3163_v8 = vadd.f32 %v3162_v50, %v3161_v45 }
0x1584   : > { %v3156_v23 = vadd.f32 %v3155_v47, %v3154_v46  ;;  %v3164_v35 = vrot.slane %v3163_v8, 1 }
0x1586   : > { %6728 = vrcp.f32 %v3156_v23  ;;  %v3178_v57 = vand.u32 2147483648, %v3156_v23  ;;  %v3165_v48 = vadd.f32 %v3164_v35, %v3163_v8  ;;  %v3176_v60 = vand.u32 2147483647, %v3156_v23 }
0x1587   : > { %vm3172_vm9 = vweird.f32 %v3156_v23 }
0x1588   : > { %v3179_v62 = vor.u32 1.1754944e-38, %v3178_v57  ;;  %v6315_v63 = vadd.f32 -1.0, %v3165_v48  ;;  %vm3177_vm11 = vcmp.eq.f32.partialorder %v3176_v60, 8.507059e+37 }
0x158c   : > { %v6729_v51 = vpop.eup %6728 }
0x158d   : > { %v3168_v52 = vmul.f32 %v6729_v51, %v3156_v23  ;;  %vm3173_vm8 = vweird.f32 %v6729_v51 }
0x158e   : > { %vm3174_vm10 = vmor %vm3172_vm9, %vm3173_vm8 }
0x158f   : > { %v3169_v20 = vsub.f32 1.0, %v3168_v52 }
0x1591   : > { %v3170_v58 = vmul.f32 %v6729_v51, %v3169_v20 }
0x1593   : > { %v3171_v61 = vadd.f32 %v6729_v51, %v3170_v58 }
0x1595   : > { %v3175_v1 = vsel %vm3174_vm10, %v6729_v51, %v3171_v61 }
0x1596   : > { %v3180_v59 = vsel %vm3177_vm11, %v3179_v62, %v3175_v1 }
0x1597   : > { %v3181_v18 = vmul.f32 %v6315_v63, %v3180_v59 }
0x1599   : > { %vm3182_vm13 = vcmp.gt.f32.partialorder %v7848_v56, %v3181_v18  ;;  %vm3183_vm14 = vcmp.gt.f32.partialorder %v7852_v27, %v3181_v18 }
0x159a   : > { %v6316_v41 = vsel %vm3182_vm13, 1.0, %v7044_v39  ;;  %v6317_v25 = vsel %vm3183_vm14, 1.0, %v7044_v39 }
0x159b   : > { %v3188_v54 = vadd.f32 %v6317_v25, %v6316_v41  ;;  %v3195_v49 = vmul.f32 %v6316_v41, %v7848_v56  ;;  %v3196_v3 = vmul.f32 %v6317_v25, %v7852_v27 }
0x159d   : > { %v3189_v5 = vrot.slane %v3188_v54, 4  ;;  %v3197_v6 = vadd.f32 %v3196_v3, %v3195_v49 }
0x159f   : > { %v3190_v7 = vadd.f32 %v3189_v5, %v3188_v54  ;;  %v3198_v9 = vrot.slane %v3197_v6, 4 }
0x15a1   : > { %v3191_v10 = vrot.slane %v3190_v7, 2  ;;  %v3199_v13 = vadd.f32 %v3198_v9, %v3197_v6 }
0x15a3   : > { %v3192_v12 = vadd.f32 %v3191_v10, %v3190_v7  ;;  %v3200_v16 = vrot.slane %v3199_v13, 2 }
0x15a5   : > { %v3193_v40 = vrot.slane %v3192_v12, 1  ;;  %v3201_v43 = vadd.f32 %v3200_v16, %v3199_v13 }
0x15a7   : > { %v3194_v15 = vadd.f32 %v3193_v40, %v3192_v12  ;;  %v3202_v21 = vrot.slane %v3201_v43, 1 }
0x15a9   : > { %6730 = vrcp.f32 %v3194_v15  ;;  %v3216_v29 = vand.u32 2147483648, %v3194_v15  ;;  %v3203_v28 = vadd.f32 %v3202_v21, %v3201_v43  ;;  %v3214_v32 = vand.u32 2147483647, %v3194_v15 }
0x15aa   : > { %vm3210_vm1 = vweird.f32 %v3194_v15 }
0x15ab   : > { %v3217_v36 = vor.u32 1.1754944e-38, %v3216_v29  ;;  %v6318_v30 = vadd.f32 -1.0, %v3203_v28  ;;  %vm3215_vm3 = vcmp.eq.f32.partialorder %v3214_v32, 8.507059e+37 }
0x15af   : > { %v6731_v14 = vpop.eup %6730 }
0x15b0   : > { %v3206_v19 = vmul.f32 %v6731_v14, %v3194_v15  ;;  %vm3211_vm15 = vweird.f32 %v6731_v14 }
0x15b1   : > { %vm3212_vm2 = vmor %vm3210_vm1, %vm3211_vm15 }
0x15b2   : > { %v3207_v0 = vsub.f32 1.0, %v3206_v19 }
0x15b4   : > { %v3208_v22 = vmul.f32 %v6731_v14, %v3207_v0 }
0x15b6   : > { %v3209_v33 = vadd.f32 %v6731_v14, %v3208_v22 }
0x15b8   : > { %v3213_v38 = vsel %vm3212_vm2, %v6731_v14, %v3209_v33 }
0x15b9   : > { %v3218_v42 = vsel %vm3215_vm3, %v3217_v36, %v3213_v38 }
0x15ba   : > { %v3219_v44 = vmul.f32 %v6318_v30, %v3218_v42 }
0x15bc   : > { %vm3220_vm4 = vcmp.gt.f32.partialorder %v7848_v56, %v3219_v44  ;;  %vm3221_vm5 = vcmp.gt.f32.partialorder %v7852_v27, %v3219_v44 }
0x15bd   : > { %v6319_v46 = vsel %vm3220_vm4, 1.0, %v7044_v39  ;;  %v6320_v45 = vsel %vm3221_vm5, 1.0, %v7044_v39 }
0x15be   : > { %v3226_v47 = vadd.f32 %v6320_v45, %v6319_v46  ;;  %v3233_v23 = vmul.f32 %v6319_v46, %v7848_v56  ;;  %v3234_v50 = vmul.f32 %v6320_v45, %v7852_v27 }
0x15c0   : > { %v3227_v8 = vrot.slane %v3226_v47, 4  ;;  %v3235_v51 = vadd.f32 %v3234_v50, %v3233_v23 }
0x15c2   : > { %v3228_v35 = vadd.f32 %v3227_v8, %v3226_v47  ;;  %v3236_v52 = vrot.slane %v3235_v51, 4 }
0x15c4   : > { %v3229_v20 = vrot.slane %v3228_v35, 2  ;;  %v3237_v48 = vadd.f32 %v3236_v52, %v3235_v51 }
0x15c6   : > { %v3230_v57 = vadd.f32 %v3229_v20, %v3228_v35  ;;  %v3238_v61 = vrot.slane %v3237_v48, 2 }
0x15c8   : > { %v3231_v58 = vrot.slane %v3230_v57, 1  ;;  %v3239_v62 = vadd.f32 %v3238_v61, %v3237_v48 }
0x15ca   : > { %v3232_v60 = vadd.f32 %v3231_v58, %v3230_v57  ;;  %v3240_v1 = vrot.slane %v3239_v62, 1 }
0x15cc   : > { %6732 = vrcp.f32 %v3232_v60  ;;  %v3254_v41 = vand.u32 2147483648, %v3232_v60  ;;  %v3241_v25 = vadd.f32 %v3240_v1, %v3239_v62  ;;  %v3252_v49 = vand.u32 2147483647, %v3232_v60 }
0x15cd   : > { %vm3248_vm7 = vweird.f32 %v3232_v60 }
0x15ce   : > { %v3255_v5 = vor.u32 1.1754944e-38, %v3254_v41  ;;  %v6321_v6 = vadd.f32 -1.0, %v3241_v25  ;;  %vm3253_vm9 = vcmp.eq.f32.partialorder %v3252_v49, 8.507059e+37 }
0x15d2   : > { %v6733_v63 = vpop.eup %6732 }
0x15d3   : > { %v3244_v59 = vmul.f32 %v6733_v63, %v3232_v60  ;;  %vm3249_vm6 = vweird.f32 %v6733_v63 }
0x15d4   : > { %vm3250_vm8 = vmor %vm3248_vm7, %vm3249_vm6 }
0x15d5   : > { %v3245_v18 = vsub.f32 1.0, %v3244_v59 }
0x15d7   : > { %v3246_v54 = vmul.f32 %v6733_v63, %v3245_v18 }
0x15d9   : > { %v3247_v3 = vadd.f32 %v6733_v63, %v3246_v54 }
0x15db   : > { %v3251_v7 = vsel %vm3250_vm8, %v6733_v63, %v3247_v3 }
0x15dc   : > { %v3256_v9 = vsel %vm3253_vm9, %v3255_v5, %v3251_v7 }
0x15dd   : > { %v3257_v10 = vmul.f32 %v6321_v6, %v3256_v9 }
0x15df   : > { %vm3258_vm10 = vcmp.gt.f32.partialorder %v7848_v56, %v3257_v10  ;;  %vm3259_vm11 = vcmp.gt.f32.partialorder %v7852_v27, %v3257_v10 }
0x15e0   : > { %v6322_v12 = vsel %vm3258_vm10, 1.0, %v7044_v39  ;;  %v6323_v13 = vsel %vm3259_vm11, 1.0, %v7044_v39 }
0x15e1   : > { %v3264_v40 = vadd.f32 %v6323_v13, %v6322_v12  ;;  %v3271_v15 = vmul.f32 %v6322_v12, %v7848_v56  ;;  %v3272_v16 = vmul.f32 %v6323_v13, %v7852_v27 }
0x15e3   : > { %v3265_v43 = vrot.slane %v3264_v40, 4  ;;  %v3273_v14 = vadd.f32 %v3272_v16, %v3271_v15 }
0x15e5   : > { %v3266_v21 = vadd.f32 %v3265_v43, %v3264_v40  ;;  %v3274_v19 = vrot.slane %v3273_v14, 4 }
0x15e7   : > { %v3267_v0 = vrot.slane %v3266_v21, 2  ;;  %v3275_v28 = vadd.f32 %v3274_v19, %v3273_v14 }
0x15e9   : > { %v3268_v29 = vadd.f32 %v3267_v0, %v3266_v21  ;;  %v3276_v33 = vrot.slane %v3275_v28, 2 }
0x15eb   : > { %v3269_v22 = vrot.slane %v3268_v29, 1  ;;  %v3277_v36 = vadd.f32 %v3276_v33, %v3275_v28 }
0x15ed   : > { %v3270_v32 = vadd.f32 %v3269_v22, %v3268_v29  ;;  %v3278_v38 = vrot.slane %v3277_v36, 1 }
0x15ef   : > { %6734 = vrcp.f32 %v3270_v32  ;;  %v3292_v46 = vand.u32 2147483648, %v3270_v32  ;;  %v3279_v45 = vadd.f32 %v3278_v38, %v3277_v36  ;;  %v3290_v23 = vand.u32 2147483647, %v3270_v32 }
0x15f0   : > { %vm3286_vm14 = vweird.f32 %v3270_v32 }
0x15f1   : > { %v3293_v8 = vor.u32 1.1754944e-38, %v3292_v46  ;;  %v6324_v51 = vadd.f32 -1.0, %v3279_v45  ;;  %vm3291_vm1 = vcmp.eq.f32.partialorder %v3290_v23, 8.507059e+37 }
0x15f5   : > { %v6735_v30 = vpop.eup %6734 }
0x15f6   : > { %v3282_v42 = vmul.f32 %v6735_v30, %v3270_v32  ;;  %vm3287_vm13 = vweird.f32 %v6735_v30 }
0x15f7   : > { %vm3288_vm15 = vmor %vm3286_vm14, %vm3287_vm13 }
0x15f8   : > { %v3283_v44 = vsub.f32 1.0, %v3282_v42 }
0x15fa   : > { %v3284_v47 = vmul.f32 %v6735_v30, %v3283_v44 }
0x15fc   : > { %v3285_v50 = vadd.f32 %v6735_v30, %v3284_v47 }
0x15fe   : > { %v3289_v35 = vsel %vm3288_vm15, %v6735_v30, %v3285_v50 }
0x15ff   : > { %v3294_v52 = vsel %vm3291_vm1, %v3293_v8, %v3289_v35 }
0x1600   : > { %v3295_v20 = vmul.f32 %v6324_v51, %v3294_v52 }
0x1602   : > { %vm3296_vm2 = vcmp.gt.f32.partialorder %v7848_v56, %v3295_v20  ;;  %vm3297_vm3 = vcmp.gt.f32.partialorder %v7852_v27, %v3295_v20 }
0x1603   : > { %v6325_v57 = vsel %vm3296_vm2, 1.0, %v7044_v39  ;;  %v6326_v48 = vsel %vm3297_vm3, 1.0, %v7044_v39 }
0x1604   : > { %v3302_v58 = vadd.f32 %v6326_v48, %v6325_v57  ;;  %v3309_v60 = vmul.f32 %v6325_v57, %v7848_v56  ;;  %v3310_v61 = vmul.f32 %v6326_v48, %v7852_v27 }
0x1606   : > { %v3303_v62 = vrot.slane %v3302_v58, 4  ;;  %v3311_v63 = vadd.f32 %v3310_v61, %v3309_v60 }
0x1608   : > { %v3304_v1 = vadd.f32 %v3303_v62, %v3302_v58  ;;  %v3312_v59 = vrot.slane %v3311_v63, 4 }
0x160a   : > { %v3305_v18 = vrot.slane %v3304_v1, 2  ;;  %v3313_v25 = vadd.f32 %v3312_v59, %v3311_v63 }
0x160c   : > { %v3306_v41 = vadd.f32 %v3305_v18, %v3304_v1  ;;  %v3314_v3 = vrot.slane %v3313_v25, 2 }
0x160e   : > { %v3307_v54 = vrot.slane %v3306_v41, 1  ;;  %v3315_v5 = vadd.f32 %v3314_v3, %v3313_v25 }
0x1610   : > { %v3308_v49 = vadd.f32 %v3307_v54, %v3306_v41  ;;  %v3316_v7 = vrot.slane %v3315_v5, 1 }
0x1612   : > { %6736 = vrcp.f32 %v3308_v49  ;;  %v3330_v12 = vand.u32 2147483648, %v3308_v49  ;;  %v3317_v13 = vadd.f32 %v3316_v7, %v3315_v5  ;;  %v3328_v15 = vand.u32 2147483647, %v3308_v49 }
0x1613   : > { %vm3324_vm5 = vweird.f32 %v3308_v49 }
0x1614   : > { %v3331_v43 = vor.u32 1.1754944e-38, %v3330_v12  ;;  %v6327_v14 = vadd.f32 -1.0, %v3317_v13  ;;  %vm3329_vm7 = vcmp.eq.f32.partialorder %v3328_v15, 8.507059e+37 }
0x1618   : > { %v6737_v6 = vpop.eup %6736 }
0x1619   : > { %v3320_v9 = vmul.f32 %v6737_v6, %v3308_v49  ;;  %vm3325_vm4 = vweird.f32 %v6737_v6 }
0x161a   : > { %vm3326_vm6 = vmor %vm3324_vm5, %vm3325_vm4 }
0x161b   : > { %v3321_v10 = vsub.f32 1.0, %v3320_v9 }
0x161d   : > { %v3322_v40 = vmul.f32 %v6737_v6, %v3321_v10 }
0x161f   : > { %v3323_v16 = vadd.f32 %v6737_v6, %v3322_v40 }
0x1621   : > { %v3327_v21 = vsel %vm3326_vm6, %v6737_v6, %v3323_v16 }
0x1622   : > { %v3332_v19 = vsel %vm3329_vm7, %v3331_v43, %v3327_v21 }
0x1623   : > { %v3333_v0 = vmul.f32 %v6327_v14, %v3332_v19 }
0x1625   : > { %vm3334_vm8 = vcmp.gt.f32.partialorder %v7848_v56, %v3333_v0  ;;  %vm3335_vm9 = vcmp.gt.f32.partialorder %v7852_v27, %v3333_v0 }
0x1626   : > { %v6328_v29 = vsel %vm3334_vm8, 1.0, %v7044_v39  ;;  %v6329_v28 = vsel %vm3335_vm9, 1.0, %v7044_v39 }
0x1627   : > { %v3340_v22 = vadd.f32 %v6329_v28, %v6328_v29  ;;  %v3347_v32 = vmul.f32 %v6328_v29, %v7848_v56  ;;  %v3348_v33 = vmul.f32 %v6329_v28, %v7852_v27 }
0x1629   : > { %v3341_v36 = vrot.slane %v3340_v22, 4  ;;  %v3349_v30 = vadd.f32 %v3348_v33, %v3347_v32 }
0x162b   : > { %v3342_v38 = vadd.f32 %v3341_v36, %v3340_v22  ;;  %v3350_v42 = vrot.slane %v3349_v30, 4 }
0x162d   : > { %v3343_v44 = vrot.slane %v3342_v38, 2  ;;  %v3351_v45 = vadd.f32 %v3350_v42, %v3349_v30 }
0x162f   : > { %v3344_v46 = vadd.f32 %v3343_v44, %v3342_v38  ;;  %v3352_v50 = vrot.slane %v3351_v45, 2 }
0x1631   : > { %v3345_v47 = vrot.slane %v3344_v46, 1  ;;  %v3353_v8 = vadd.f32 %v3352_v50, %v3351_v45 }
0x1633   : > { %v3346_v23 = vadd.f32 %v3345_v47, %v3344_v46  ;;  %v3354_v35 = vrot.slane %v3353_v8, 1 }
0x1635   : > { %6738 = vrcp.f32 %v3346_v23  ;;  %v3368_v57 = vand.u32 2147483648, %v3346_v23  ;;  %v3355_v48 = vadd.f32 %v3354_v35, %v3353_v8  ;;  %v3366_v60 = vand.u32 2147483647, %v3346_v23 }
0x1636   : > { %vm3362_vm11 = vweird.f32 %v3346_v23 }
0x1637   : > { %v3369_v62 = vor.u32 1.1754944e-38, %v3368_v57  ;;  %v6330_v63 = vadd.f32 -1.0, %v3355_v48  ;;  %vm3367_vm14 = vcmp.eq.f32.partialorder %v3366_v60, 8.507059e+37 }
0x163b   : > { %v6739_v51 = vpop.eup %6738 }
0x163c   : > { %v3358_v52 = vmul.f32 %v6739_v51, %v3346_v23  ;;  %vm3363_vm10 = vweird.f32 %v6739_v51 }
0x163d   : > { %vm3364_vm13 = vmor %vm3362_vm11, %vm3363_vm10 }
0x163e   : > { %v3359_v20 = vsub.f32 1.0, %v3358_v52 }
0x1640   : > { %v3360_v58 = vmul.f32 %v6739_v51, %v3359_v20 }
0x1642   : > { %v3361_v61 = vadd.f32 %v6739_v51, %v3360_v58 }
0x1644   : > { %v3365_v1 = vsel %vm3364_vm13, %v6739_v51, %v3361_v61 }
0x1645   : > { %v3370_v59 = vsel %vm3367_vm14, %v3369_v62, %v3365_v1 }
0x1646   : > { %v3371_v18 = vmul.f32 %v6330_v63, %v3370_v59 }
0x1648   : > { %vm3372_vm15 = vcmp.gt.f32.partialorder %v7848_v56, %v3371_v18  ;;  %vm3373_vm1 = vcmp.gt.f32.partialorder %v7852_v27, %v3371_v18 }
0x1649   : > { %v6331_v41 = vsel %vm3372_vm15, 1.0, %v7044_v39  ;;  %v6332_v25 = vsel %vm3373_vm1, 1.0, %v7044_v39 }
0x164a   : > { %v3378_v54 = vadd.f32 %v6332_v25, %v6331_v41  ;;  %v3385_v49 = vmul.f32 %v6331_v41, %v7848_v56  ;;  %v3386_v3 = vmul.f32 %v6332_v25, %v7852_v27 }
0x164c   : > { %v3379_v5 = vrot.slane %v3378_v54, 4  ;;  %v3387_v6 = vadd.f32 %v3386_v3, %v3385_v49 }
0x164e   : > { %v3380_v7 = vadd.f32 %v3379_v5, %v3378_v54  ;;  %v3388_v9 = vrot.slane %v3387_v6, 4 }
0x1650   : > { %v3381_v10 = vrot.slane %v3380_v7, 2  ;;  %v3389_v13 = vadd.f32 %v3388_v9, %v3387_v6 }
0x1652   : > { %v3382_v12 = vadd.f32 %v3381_v10, %v3380_v7  ;;  %v3390_v16 = vrot.slane %v3389_v13, 2 }
0x1654   : > { %v3383_v40 = vrot.slane %v3382_v12, 1  ;;  %v3391_v43 = vadd.f32 %v3390_v16, %v3389_v13 }
0x1656   : > { %v3384_v15 = vadd.f32 %v3383_v40, %v3382_v12  ;;  %v3392_v21 = vrot.slane %v3391_v43, 1 }
0x1658   : > { %6740 = vrcp.f32 %v3384_v15  ;;  %v3406_v29 = vand.u32 2147483648, %v3384_v15  ;;  %v3393_v28 = vadd.f32 %v3392_v21, %v3391_v43  ;;  %v3404_v32 = vand.u32 2147483647, %v3384_v15 }
0x1659   : > { %vm3400_vm3 = vweird.f32 %v3384_v15 }
0x165a   : > { %v3407_v36 = vor.u32 1.1754944e-38, %v3406_v29  ;;  %v6333_v30 = vadd.f32 -1.0, %v3393_v28  ;;  %vm3405_vm5 = vcmp.eq.f32.partialorder %v3404_v32, 8.507059e+37 }
0x165e   : > { %v6741_v14 = vpop.eup %6740 }
0x165f   : > { %v3396_v19 = vmul.f32 %v6741_v14, %v3384_v15  ;;  %vm3401_vm2 = vweird.f32 %v6741_v14 }
0x1660   : > { %vm3402_vm4 = vmor %vm3400_vm3, %vm3401_vm2 }
0x1661   : > { %v3397_v0 = vsub.f32 1.0, %v3396_v19 }
0x1663   : > { %v3398_v22 = vmul.f32 %v6741_v14, %v3397_v0 }
0x1665   : > { %v3399_v33 = vadd.f32 %v6741_v14, %v3398_v22 }
0x1667   : > { %v3403_v38 = vsel %vm3402_vm4, %v6741_v14, %v3399_v33 }
0x1668   : > { %v3408_v42 = vsel %vm3405_vm5, %v3407_v36, %v3403_v38 }
0x1669   : > { %v3409_v44 = vmul.f32 %v6333_v30, %v3408_v42 }
0x166b   : > { %vm3410_vm6 = vcmp.gt.f32.partialorder %v7848_v56, %v3409_v44  ;;  %vm3411_vm7 = vcmp.gt.f32.partialorder %v7852_v27, %v3409_v44 }
0x166c   : > { %v6334_v46 = vsel %vm3410_vm6, 1.0, %v7044_v39  ;;  %v6335_v45 = vsel %vm3411_vm7, 1.0, %v7044_v39 }
0x166d   : > { %v3416_v47 = vadd.f32 %v6335_v45, %v6334_v46  ;;  %v3423_v23 = vmul.f32 %v6334_v46, %v7848_v56  ;;  %v3424_v50 = vmul.f32 %v6335_v45, %v7852_v27 }
0x166f   : > { %v3417_v8 = vrot.slane %v3416_v47, 4  ;;  %v3425_v51 = vadd.f32 %v3424_v50, %v3423_v23 }
0x1671   : > { %v3418_v35 = vadd.f32 %v3417_v8, %v3416_v47  ;;  %v3426_v52 = vrot.slane %v3425_v51, 4 }
0x1673   : > { %v3419_v20 = vrot.slane %v3418_v35, 2  ;;  %v3427_v48 = vadd.f32 %v3426_v52, %v3425_v51 }
0x1675   : > { %v3420_v57 = vadd.f32 %v3419_v20, %v3418_v35  ;;  %v3428_v61 = vrot.slane %v3427_v48, 2 }
0x1677   : > { %v3421_v58 = vrot.slane %v3420_v57, 1  ;;  %v3429_v62 = vadd.f32 %v3428_v61, %v3427_v48 }
0x1679   : > { %v3422_v60 = vadd.f32 %v3421_v58, %v3420_v57  ;;  %v3430_v1 = vrot.slane %v3429_v62, 1 }
0x167b   : > { %6742 = vrcp.f32 %v3422_v60  ;;  %v3444_v41 = vand.u32 2147483648, %v3422_v60  ;;  %v3431_v25 = vadd.f32 %v3430_v1, %v3429_v62  ;;  %v3442_v49 = vand.u32 2147483647, %v3422_v60 }
0x167c   : > { %vm3438_vm9 = vweird.f32 %v3422_v60 }
0x167d   : > { %v3445_v5 = vor.u32 1.1754944e-38, %v3444_v41  ;;  %v6336_v6 = vadd.f32 -1.0, %v3431_v25  ;;  %vm3443_vm11 = vcmp.eq.f32.partialorder %v3442_v49, 8.507059e+37 }
0x1681   : > { %v6743_v63 = vpop.eup %6742 }
0x1682   : > { %v3434_v59 = vmul.f32 %v6743_v63, %v3422_v60  ;;  %vm3439_vm8 = vweird.f32 %v6743_v63 }
0x1683   : > { %vm3440_vm10 = vmor %vm3438_vm9, %vm3439_vm8 }
0x1684   : > { %v3435_v18 = vsub.f32 1.0, %v3434_v59 }
0x1686   : > { %v3436_v54 = vmul.f32 %v6743_v63, %v3435_v18 }
0x1688   : > { %v3437_v3 = vadd.f32 %v6743_v63, %v3436_v54 }
0x168a   : > { %v3441_v7 = vsel %vm3440_vm10, %v6743_v63, %v3437_v3 }
0x168b   : > { %v3446_v9 = vsel %vm3443_vm11, %v3445_v5, %v3441_v7 }
0x168c   : > { %v3447_v10 = vmul.f32 %v6336_v6, %v3446_v9 }
0x168e   : > { %vm3448_vm13 = vcmp.gt.f32.partialorder %v7848_v56, %v3447_v10  ;;  %vm3449_vm14 = vcmp.gt.f32.partialorder %v7852_v27, %v3447_v10 }
0x168f   : > { %v6337_v12 = vsel %vm3448_vm13, 1.0, %v7044_v39  ;;  %v6338_v13 = vsel %vm3449_vm14, 1.0, %v7044_v39 }
0x1690   : > { %v3454_v40 = vadd.f32 %v6338_v13, %v6337_v12  ;;  %v3461_v15 = vmul.f32 %v6337_v12, %v7848_v56  ;;  %v3462_v16 = vmul.f32 %v6338_v13, %v7852_v27 }
0x1692   : > { %v3455_v43 = vrot.slane %v3454_v40, 4  ;;  %v3463_v14 = vadd.f32 %v3462_v16, %v3461_v15 }
0x1694   : > { %v3456_v21 = vadd.f32 %v3455_v43, %v3454_v40  ;;  %v3464_v19 = vrot.slane %v3463_v14, 4 }
0x1696   : > { %v3457_v0 = vrot.slane %v3456_v21, 2  ;;  %v3465_v28 = vadd.f32 %v3464_v19, %v3463_v14 }
0x1698   : > { %v3458_v29 = vadd.f32 %v3457_v0, %v3456_v21  ;;  %v3466_v33 = vrot.slane %v3465_v28, 2 }
0x169a   : > { %v3459_v22 = vrot.slane %v3458_v29, 1  ;;  %v3467_v36 = vadd.f32 %v3466_v33, %v3465_v28 }
0x169c   : > { %v3460_v32 = vadd.f32 %v3459_v22, %v3458_v29  ;;  %v3468_v38 = vrot.slane %v3467_v36, 1 }
0x169e   : > { %6744 = vrcp.f32 %v3460_v32  ;;  %v3482_v46 = vand.u32 2147483648, %v3460_v32  ;;  %v3469_v45 = vadd.f32 %v3468_v38, %v3467_v36  ;;  %v3480_v23 = vand.u32 2147483647, %v3460_v32 }
0x169f   : > { %vm3476_vm1 = vweird.f32 %v3460_v32 }
0x16a0   : > { %v3483_v8 = vor.u32 1.1754944e-38, %v3482_v46  ;;  %v6339_v51 = vadd.f32 -1.0, %v3469_v45  ;;  %vm3481_vm3 = vcmp.eq.f32.partialorder %v3480_v23, 8.507059e+37 }
0x16a4   : > { %v6745_v30 = vpop.eup %6744 }
0x16a5   : > { %v3472_v42 = vmul.f32 %v6745_v30, %v3460_v32  ;;  %vm3477_vm15 = vweird.f32 %v6745_v30 }
0x16a6   : > { %vm3478_vm2 = vmor %vm3476_vm1, %vm3477_vm15 }
0x16a7   : > { %v3473_v44 = vsub.f32 1.0, %v3472_v42 }
0x16a9   : > { %v3474_v47 = vmul.f32 %v6745_v30, %v3473_v44 }
0x16ab   : > { %v3475_v50 = vadd.f32 %v6745_v30, %v3474_v47 }
0x16ad   : > { %v3479_v35 = vsel %vm3478_vm2, %v6745_v30, %v3475_v50 }
0x16ae   : > { %v3484_v52 = vsel %vm3481_vm3, %v3483_v8, %v3479_v35 }
0x16af   : > { %v3485_v20 = vmul.f32 %v6339_v51, %v3484_v52 }
0x16b1   : > { %vm3486_vm4 = vcmp.gt.f32.partialorder %v7848_v56, %v3485_v20  ;;  %vm3487_vm5 = vcmp.gt.f32.partialorder %v7852_v27, %v3485_v20 }
0x16b2   : > { %v6340_v57 = vsel %vm3486_vm4, 1.0, %v7044_v39  ;;  %v6341_v48 = vsel %vm3487_vm5, 1.0, %v7044_v39 }
0x16b3   : > { %v3492_v58 = vadd.f32 %v6341_v48, %v6340_v57  ;;  %v3499_v60 = vmul.f32 %v6340_v57, %v7848_v56  ;;  %v3500_v61 = vmul.f32 %v6341_v48, %v7852_v27 }
0x16b5   : > { %v3493_v62 = vrot.slane %v3492_v58, 4  ;;  %v3501_v63 = vadd.f32 %v3500_v61, %v3499_v60 }
0x16b7   : > { %v3494_v1 = vadd.f32 %v3493_v62, %v3492_v58  ;;  %v3502_v59 = vrot.slane %v3501_v63, 4 }
0x16b9   : > { %v3495_v18 = vrot.slane %v3494_v1, 2  ;;  %v3503_v25 = vadd.f32 %v3502_v59, %v3501_v63 }
0x16bb   : > { %v3496_v41 = vadd.f32 %v3495_v18, %v3494_v1  ;;  %v3504_v3 = vrot.slane %v3503_v25, 2 }
0x16bd   : > { %v3497_v54 = vrot.slane %v3496_v41, 1  ;;  %v3505_v5 = vadd.f32 %v3504_v3, %v3503_v25 }
0x16bf   : > { %v3498_v49 = vadd.f32 %v3497_v54, %v3496_v41  ;;  %v3506_v7 = vrot.slane %v3505_v5, 1 }
0x16c1   : > { %6746 = vrcp.f32 %v3498_v49  ;;  %v3520_v12 = vand.u32 2147483648, %v3498_v49  ;;  %v3507_v13 = vadd.f32 %v3506_v7, %v3505_v5  ;;  %v3518_v15 = vand.u32 2147483647, %v3498_v49 }
0x16c2   : > { %vm3514_vm7 = vweird.f32 %v3498_v49 }
0x16c3   : > { %v3521_v43 = vor.u32 1.1754944e-38, %v3520_v12  ;;  %v6342_v14 = vadd.f32 -1.0, %v3507_v13  ;;  %vm3519_vm9 = vcmp.eq.f32.partialorder %v3518_v15, 8.507059e+37 }
0x16c7   : > { %v6747_v6 = vpop.eup %6746 }
0x16c8   : > { %v3510_v9 = vmul.f32 %v6747_v6, %v3498_v49  ;;  %vm3515_vm6 = vweird.f32 %v6747_v6 }
0x16c9   : > { %vm3516_vm8 = vmor %vm3514_vm7, %vm3515_vm6 }
0x16ca   : > { %v3511_v10 = vsub.f32 1.0, %v3510_v9 }
0x16cc   : > { %v3512_v40 = vmul.f32 %v6747_v6, %v3511_v10 }
0x16ce   : > { %v3513_v16 = vadd.f32 %v6747_v6, %v3512_v40 }
0x16d0   : > { %v3517_v21 = vsel %vm3516_vm8, %v6747_v6, %v3513_v16 }
0x16d1   : > { %v3522_v19 = vsel %vm3519_vm9, %v3521_v43, %v3517_v21 }
0x16d2   : > { %v3523_v0 = vmul.f32 %v6342_v14, %v3522_v19 }
0x16d4   : > { %vm3524_vm10 = vcmp.gt.f32.partialorder %v7848_v56, %v3523_v0  ;;  %vm3525_vm11 = vcmp.gt.f32.partialorder %v7852_v27, %v3523_v0 }
0x16d5   : > { %v6343_v29 = vsel %vm3524_vm10, 1.0, %v7044_v39  ;;  %v6344_v28 = vsel %vm3525_vm11, 1.0, %v7044_v39 }
0x16d6   : > { %v3530_v22 = vadd.f32 %v6344_v28, %v6343_v29  ;;  %v3537_v32 = vmul.f32 %v6343_v29, %v7848_v56  ;;  %v3538_v33 = vmul.f32 %v6344_v28, %v7852_v27 }
0x16d8   : > { %v3531_v36 = vrot.slane %v3530_v22, 4  ;;  %v3539_v30 = vadd.f32 %v3538_v33, %v3537_v32 }
0x16da   : > { %v3532_v38 = vadd.f32 %v3531_v36, %v3530_v22  ;;  %v3540_v42 = vrot.slane %v3539_v30, 4 }
0x16dc   : > { %v3533_v44 = vrot.slane %v3532_v38, 2  ;;  %v3541_v45 = vadd.f32 %v3540_v42, %v3539_v30 }
0x16de   : > { %v3534_v46 = vadd.f32 %v3533_v44, %v3532_v38  ;;  %v3542_v50 = vrot.slane %v3541_v45, 2 }
0x16e0   : > { %v3535_v47 = vrot.slane %v3534_v46, 1  ;;  %v3543_v8 = vadd.f32 %v3542_v50, %v3541_v45 }
0x16e2   : > { %v3536_v23 = vadd.f32 %v3535_v47, %v3534_v46  ;;  %v3544_v35 = vrot.slane %v3543_v8, 1 }
0x16e4   : > { %6748 = vrcp.f32 %v3536_v23  ;;  %v3558_v57 = vand.u32 2147483648, %v3536_v23  ;;  %v3545_v48 = vadd.f32 %v3544_v35, %v3543_v8  ;;  %v3556_v60 = vand.u32 2147483647, %v3536_v23 }
0x16e5   : > { %vm3552_vm14 = vweird.f32 %v3536_v23 }
0x16e6   : > { %v3559_v62 = vor.u32 1.1754944e-38, %v3558_v57  ;;  %v6345_v63 = vadd.f32 -1.0, %v3545_v48  ;;  %vm3557_vm1 = vcmp.eq.f32.partialorder %v3556_v60, 8.507059e+37 }
0x16ea   : > { %v6749_v51 = vpop.eup %6748 }
0x16eb   : > { %v3548_v52 = vmul.f32 %v6749_v51, %v3536_v23  ;;  %vm3553_vm13 = vweird.f32 %v6749_v51 }
0x16ec   : > { %vm3554_vm15 = vmor %vm3552_vm14, %vm3553_vm13 }
0x16ed   : > { %v3549_v20 = vsub.f32 1.0, %v3548_v52 }
0x16ef   : > { %v3550_v58 = vmul.f32 %v6749_v51, %v3549_v20 }
0x16f1   : > { %v3551_v61 = vadd.f32 %v6749_v51, %v3550_v58 }
0x16f3   : > { %v3555_v1 = vsel %vm3554_vm15, %v6749_v51, %v3551_v61 }
0x16f4   : > { %v3560_v59 = vsel %vm3557_vm1, %v3559_v62, %v3555_v1  ;;  %v6931_v62 = vld [vmem:[%s8817_s3 + $0x8] sm:$0xff] }
0x16f5   : > { %v3561_v18 = vmul.f32 %v6345_v63, %v3560_v59 }
0x16f7   : > { %vm3562_vm2 = vcmp.gt.f32.partialorder %v7848_v56, %v3561_v18  ;;  %vm3563_vm3 = vcmp.gt.f32.partialorder %v7852_v27, %v3561_v18 }
0x16f8   : > { %v6346_v41 = vsel %vm3562_vm2, 1.0, %v7044_v39  ;;  %v6347_v25 = vsel %vm3563_vm3, 1.0, %v7044_v39 }
0x16f9   : > { %v3568_v54 = vadd.f32 %v6347_v25, %v6346_v41  ;;  %v3575_v49 = vmul.f32 %v6346_v41, %v7848_v56  ;;  %v3576_v3 = vmul.f32 %v6347_v25, %v7852_v27 }
0x16fb   : > { %v3569_v5 = vrot.slane %v3568_v54, 4  ;;  %v3577_v6 = vadd.f32 %v3576_v3, %v3575_v49 }
0x16fd   : > { %v3570_v7 = vadd.f32 %v3569_v5, %v3568_v54  ;;  %v3578_v9 = vrot.slane %v3577_v6, 4 }
0x16ff   : > { %v3571_v10 = vrot.slane %v3570_v7, 2  ;;  %v3579_v13 = vadd.f32 %v3578_v9, %v3577_v6  ;;  %v6933_v9 = vld [vmem:[%s8817_s3 + $0x18] sm:$0xff] }
0x1701   : > { %v3572_v12 = vadd.f32 %v3571_v10, %v3570_v7  ;;  %v3580_v16 = vrot.slane %v3579_v13, 2 }
0x1703   : > { %v3573_v40 = vrot.slane %v3572_v12, 1  ;;  %v3581_v43 = vadd.f32 %v3580_v16, %v3579_v13  ;;  %v6356_v16 = vld [vmem:[%s8797_s7 + $0x118] sm:$0xff] }
0x1705   : > { %v3574_v15 = vadd.f32 %v3573_v40, %v3572_v12  ;;  %v3582_v21 = vrot.slane %v3581_v43, 1 }
0x1707   : > { %6750 = vrcp.f32 %v3574_v15  ;;  %v3596_v29 = vand.u32 2147483648, %v3574_v15  ;;  %v3583_v28 = vadd.f32 %v3582_v21, %v3581_v43  ;;  %v3594_v32 = vand.u32 2147483647, %v3574_v15  ;;  %v6351_v43 = vld [vmem:[%s8796_s6 + $0x110] sm:$0xff] }
0x1708   : > { %vm3590_vm5 = vweird.f32 %v3574_v15 }
0x1709   : > { %v3597_v36 = vor.u32 1.1754944e-38, %v3596_v29  ;;  %v6348_v30 = vadd.f32 -1.0, %v3583_v28  ;;  %vm3595_vm7 = vcmp.eq.f32.partialorder %v3594_v32, 8.507059e+37 }
0x170d   : > { %v6751_v14 = vpop.eup %6750 }
0x170e   : > { %v3586_v19 = vmul.f32 %v6751_v14, %v3574_v15  ;;  %vm3591_vm4 = vweird.f32 %v6751_v14  ;;  %v6352_v15 = vld [vmem:[%s8796_s6 + $0x118] sm:$0xff] }
0x170f   : > { %vm3592_vm6 = vmor %vm3590_vm5, %vm3591_vm4 }
0x1710   : > { %v3587_v0 = vsub.f32 1.0, %v3586_v19 }
0x1712   : > { %v3588_v22 = vmul.f32 %v6751_v14, %v3587_v0 }
0x1714   : > { %v3589_v33 = vadd.f32 %v6751_v14, %v3588_v22 }
0x1716   : > { %v3593_v38 = vsel %vm3592_vm6, %v6751_v14, %v3589_v33  ;;  %v6355_v14 = vld [vmem:[%s8797_s7 + $0x110] sm:$0xff] }
0x1717   : > { %v3598_v42 = vsel %vm3595_vm7, %v3597_v36, %v3593_v38 }
0x1718   : > { %v3599_v44 = vmul.f32 %v6348_v30, %v3598_v42 }
0x171a   : > { %v3601_v46 = vsub.f32 %v7852_v27, %v3599_v44  ;;  %v3600_v45 = vsub.f32 %v7848_v56, %v3599_v44  ;;  %v6930_v56 = vld [vmem:[%s8817_s3] sm:$0xff]  ;;  %v2030_v27 = vrot.slane %v7575_v4, 4 }
0x171c   : > { %v7948_v47 = vmax.f32 %v3601_v46, 0.0  ;;  %v7950_v23 = vmax.f32 %v3600_v45, 0.0  ;;  %v2031_v48 = vadd.f32 %v2030_v27, %v7575_v4  ;;  %v6932_v4 = vld [vmem:[%s8817_s3 + $0x10] sm:$0xff] }
0x171e   : > { %v3625_v50 = vmul.f32 %v7948_v47, %v7188_v11  ;;  %v3604_v8 = vadd.f32 1e-15, %v7950_v23  ;;  %v3605_v51 = vadd.f32 1e-15, %v7948_v47  ;;  %v3624_v35 = vmul.f32 %v7950_v23, %v7194_v17 }
0x171f   : > { %v2032_v63 = vrot.slane %v2031_v48, 2 }
0x1720   : > { %3650 = vmatpush.msra.mxu2 %v3625_v50  ;;  %6752 = vlog2.f32 %v3604_v8  ;;  %v6350_v8 = vld [vmem:[%s8796_s6 + $0x108] sm:$0xff] }
0x1721   : > { %6754 = vlog2.f32 %v3605_v51  ;;  %v2033_v18 = vadd.f32 %v2032_v63, %v2031_v48  ;;  %v6349_v51 = vld [vmem:[%s8796_s6 + $0x100] sm:$0xff] }
0x1722   : > { %3651 = vmatpush.msra.mxu2 %v3624_v35  ;;  %v6354_v35 = vld [vmem:[%s8797_s7 + $0x108] sm:$0xff] }
0x1723   : > { %6357 = vmatmul.msk.f32.vlgmr.msra.gmra.mxu2 %vm535_vm0, %v6930_v56  ;;  %v2034_v54 = vrot.slane %v2033_v18, 1  ;;  %v6353_v56 = vld [vmem:[%s8797_s7 + $0x100] sm:$0xff] }
0x1725   : > { %v2035_v5 = vadd.f32 %v2034_v54, %v2033_v18 }
0x1726   : > { %v6753_v52 = vpop.eup %6752 }
0x1727   : > { %v6755_v20 = vpop.eup %6754  ;;  %v3607_v57 = vmul.f32 0.6931472, %v6753_v52 }
0x1728   : > { %v3609_v58 = vmul.f32 0.6931472, %v6755_v20 }
0x1729   : > { %v3610_v60 = vmul.f32 %v3607_v57, %v7950_v23 }
0x172a   : > { %v3611_v61 = vmul.f32 %v3609_v58, %v7948_v47 }
0x172b   : > { %6358 = vmatmul.msk.f32.gmra.mxu2 %vm535_vm0, %v6931_v62 }
0x172c   : > { %v3612_v1 = vadd.f32 %v3611_v61, %v3610_v60 }
0x172e   : > { %v3613_v59 = vrot.slane %v3612_v1, 4 }
0x1730   : > { %v3614_v41 = vadd.f32 %v3613_v59, %v3612_v1 }
0x1732   : > { %v3615_v25 = vrot.slane %v3614_v41, 2 }
0x1733   : > { %6359 = vmatmul.msk.f32.gmra.mxu2 %vm535_vm0, %v6932_v4 }
0x1734   : > { %v3616_v49 = vadd.f32 %v3615_v25, %v3614_v41 }
0x1736   : > { %v3617_v3 = vrot.slane %v3616_v49, 1 }
0x1738   : > { %v3618_v6 = vadd.f32 %v3617_v3, %v3616_v49 }
0x173a   : > { %v7974_v7 = vadd.f32 %v3618_v6, %v2035_v5 }
0x173b   : > { %6360 = vmatmul.msk.f32.gmra.mxu2 %vm535_vm0, %v6933_v9 }
0x17a6   : > { %v3653_v10 = vpop.f32.mrf.mxu2 }
0x17ae   : > { %v3656_v12 = vpop.f32.mrf.mxu2 }
0x17af   : > { %3667 = vadd.xlane.f32.xlu2 %v3656_v12 }
0x17b6   : > { %v3659_v13 = vpop.f32.mrf.mxu2 }
0x17b7   : > { %3665 = vadd.xlane.f32.xlu2 %v3653_v10  ;;  %3669 = vadd.xlane.f32.xlu1 %v3659_v13 }
0x17be   : > { %v3662_v40 = vpop.f32.mrf.mxu2 }
0x17bf   : > { %3671 = vadd.xlane.f32.xlu0 %v3662_v40 }
0x17cf   : > { %3762 = vperm.xlu2 %6565, %v6352_v15  }
0x17d0   : > { %3786 = vperm.xlu1 %6564, %v6356_v16  }
0x17d3   : > { %3757 = vperm.xlu0 %6563, %v6351_v43  }
0x17d7   : > { %3781 = vperm.xlu2 %6565, %v6355_v14  }
0x1822   : > { %v3668_v21 = vpop.xlane.xlu2 %3667 }
0x1823   : > { %v3674_v19 = vmul.f32 %v3668_v21, %v7228_v37 }
0x1825   : > { %v7993_v0 = vsub.f32 %v3656_v12, %v3674_v19 }
0x1827   : > { %v3682_v29 = vmul.f32 %v7993_v0, %v7993_v0 }
0x1829   : > { %3687 = vadd.xlane.f32.xlu0 %v3682_v29 }
0x182a   : > { %v3666_v28 = vpop.xlane.xlu2 %3665  ;;  %v3670_v22 = vpop.xlane.xlu1 %3669 }
0x182b   : > { %v3673_v32 = vmul.f32 %v3666_v28, %v7228_v37  ;;  %v3675_v33 = vmul.f32 %v3670_v22, %v7228_v37 }
0x182d   : > { %v7999_v36 = vsub.f32 %v3653_v10, %v3673_v32  ;;  %v3679_v30 = vsub.f32 %v3659_v13, %v3675_v33 }
0x182f   : > { %v3681_v38 = vmul.f32 %v7999_v36, %v7999_v36  ;;  %v3683_v42 = vmul.f32 %v3679_v30, %v3679_v30 }
0x1831   : > { %3685 = vadd.xlane.f32.xlu1 %v3681_v38  ;;  %3689 = vadd.xlane.f32.xlu2 %v3683_v42 }
0x1832   : > { %v3672_v44 = vpop.xlane.xlu0 %3671  ;;  %v3763_v27 = vpop.permute.xlu2 %3762 }
0x1833   : > { %v3676_v46 = vmul.f32 %v3672_v44, %v7228_v37 }
0x1835   : > { %v3680_v45 = vsub.f32 %v3662_v40, %v3676_v46 }
0x1837   : > { %v3684_v50 = vmul.f32 %v3680_v45, %v3680_v45 }
0x1839   : > { %3691 = vadd.xlane.f32.xlu2 %v3684_v50 }
0x183a   : > { %v3782_v52 = vpop.permute.xlu2 %3781 }
0x1842   : > { %v3787_v61 = vpop.permute.xlu1 %3786 }
0x1845   : > { %v3758_v58 = vpop.permute.xlu0 %3757 }
0x1851   : > { %3752 = vperm.xlu2 %6565, %v6350_v8  }
0x1859   : > { %3747 = vperm.xlu2 %6565, %v6349_v51  }
0x1861   : > { %3776 = vperm.xlu2 %6565, %v6354_v35  }
0x1869   : > { %3771 = vperm.xlu2 %6565, %v6353_v56  }
0x189c   : > { %v3688_v41 = vpop.xlane.xlu0 %3687 }
0x189d   : > { %v3694_v3 = vmul.f32 %v3688_v41, %v7228_v37 }
0x189f   : > { %v3698_v13 = vadd.f32 1e-05, %v3694_v3 }
0x18a1   : > { %vm3717_vm2 = vweird.f32 %v3698_v13 }
0x18a4   : > { %v3690_v20 = vpop.xlane.xlu2 %3689  ;;  %v3686_v4 = vpop.xlane.xlu1 %3685 }
0x18a5   : > { %v3695_v57 = vmul.f32 %v3690_v20, %v7228_v37  ;;  %v3693_v6 = vmul.f32 %v3686_v4, %v7228_v37 }
0x18a7   : > { %v3699_v48 = vadd.f32 1e-05, %v3695_v57  ;;  %v3697_v15 = vadd.f32 1e-05, %v3693_v6 }
0x18a9   : > { %6756 = vrsqrt.f32 %v3699_v48  ;;  %vm3727_vm9 = vweird.f32 %v3699_v48  ;;  %vm3707_vm3 = vweird.f32 %v3697_v15 }
0x18ac   : > { %v3692_v60 = vpop.xlane.xlu2 %3691 }
0x18ad   : > { %v3696_v62 = vmul.f32 %v3692_v60, %v7228_v37 }
0x18af   : > { %v6757_v63 = vpop.eup %6756  ;;  %v3700_v1 = vadd.f32 1e-05, %v3696_v62 }
0x18b0   : > { %v3722_v59 = vmul.f32 %v6757_v63, %v3699_v48  ;;  %vm3728_vm8 = vweird.f32 %v6757_v63 }
0x18b1   : > { %6758 = vrsqrt.f32 %v3700_v1  ;;  %vm3729_vm10 = vmor %vm3727_vm9, %vm3728_vm8  ;;  %vm3737_vm13 = vweird.f32 %v3700_v1 }
0x18b2   : > { %v3723_v18 = vmul.f32 %v6757_v63, %v3722_v59  ;;  %6760 = vrsqrt.f32 %v3698_v13 }
0x18b3   : > { %6762 = vrsqrt.f32 %v3697_v15 }
0x18b4   : > { %v3724_v25 = vmul.f32 0.5, %v3723_v18 }
0x18b6   : > { %v3725_v54 = vsub.f32 1.5, %v3724_v25 }
0x18b7   : > { %v6759_v49 = vpop.eup %6758 }
0x18b8   : > { %v3726_v5 = vmul.f32 %v6757_v63, %v3725_v54  ;;  %v3732_v9 = vmul.f32 %v6759_v49, %v3700_v1  ;;  %vm3738_vm11 = vweird.f32 %v6759_v49  ;;  %v6761_v33 = vpop.eup %6760 }
0x18b9   : > { %vm3739_vm14 = vmor %vm3737_vm13, %vm3738_vm11  ;;  %v6763_v42 = vpop.eup %6762  ;;  %v3712_v46 = vmul.f32 %v6761_v33, %v3698_v13  ;;  %vm3718_vm15 = vweird.f32 %v6761_v33 }
0x18ba   : > { %v3730_v10 = vsel %vm3729_vm10, %v6757_v63, %v3726_v5  ;;  %v3733_v12 = vmul.f32 %v6759_v49, %v3732_v9  ;;  %v3702_v50 = vmul.f32 %v6763_v42, %v3697_v15  ;;  %vm3708_vm1 = vweird.f32 %v6763_v42  ;;  %vm3719_vm4 = vmor %vm3717_vm2, %vm3718_vm15 }
0x18bb   : > { %v3743_v40 = vmul.f32 %v3730_v10, %v3679_v30  ;;  %v3753_v30 = vpop.permute.xlu2 %3752  ;;  %v3713_v56 = vmul.f32 %v6761_v33, %v3712_v46  ;;  %vm3709_vm5 = vmor %vm3707_vm3, %vm3708_vm1  ;;  %v6934_v46 = vld [vmem:[%s8818_s4] sm:$0xff] }
0x18bc   : > { %v3734_v16 = vmul.f32 0.5, %v3733_v12  ;;  %v3703_v20 = vmul.f32 %v6763_v42, %v3702_v50  ;;  %v6935_v50 = vld [vmem:[%s8818_s4 + $0x8] sm:$0xff] }
0x18bd   : > { %v3767_v43 = vmul.f32 %v3758_v58, %v3743_v40  ;;  %v3714_v57 = vmul.f32 0.5, %v3713_v56 }
0x18be   : > { %v3735_v14 = vsub.f32 1.5, %v3734_v16  ;;  %v3704_v58 = vmul.f32 0.5, %v3703_v20 }
0x18bf   : > { %v3791_v21 = vadd.f32 %v3782_v52, %v3767_v43  ;;  %v3715_v62 = vsub.f32 1.5, %v3714_v57  ;;  %v6368_v57 = vld [vmem:[%s8797_s7 + $0x138] sm:$0xff] }
0x18c0   : > { %v3736_v19 = vmul.f32 %v6759_v49, %v3735_v14  ;;  %v3705_v63 = vsub.f32 1.5, %v3704_v58  ;;  %v6361_v58 = vld [vmem:[%s8796_s6 + $0x120] sm:$0xff] }
0x18c1   : > { %v3793_v29 = vsub.f32 0.0, %v3791_v21  ;;  %v3716_v59 = vmul.f32 %v6761_v33, %v3715_v62 }
0x18c2   : > { %v3740_v28 = vsel %vm3739_vm14, %v6759_v49, %v3736_v19  ;;  %v3706_v18 = vmul.f32 %v6763_v42, %v3705_v63 }
0x18c3   : > { %v3795_v22 = vmul.f32 1.442695, %v3793_v29  ;;  %v3744_v32 = vmul.f32 %v3740_v28, %v3680_v45  ;;  %v3748_v48 = vpop.permute.xlu2 %3747  ;;  %v3720_v54 = vsel %vm3719_vm4, %v6761_v33, %v3716_v59 }
0x18c4   : > { %v3710_v49 = vsel %vm3709_vm5, %v6763_v42, %v3706_v18  ;;  %v3742_v5 = vmul.f32 %v3720_v54, %v7993_v0  ;;  %v6364_v54 = vld [vmem:[%s8796_s6 + $0x138] sm:$0xff] }
0x18c5   : > { %6764 = vpow2.f32 %v3795_v22  ;;  %v3768_v38 = vmul.f32 %v3763_v27, %v3744_v32  ;;  %v3741_v10 = vmul.f32 %v3710_v49, %v7999_v36 }
0x18c6   : > { %v3766_v14 = vmul.f32 %v3753_v30, %v3742_v5 }
0x18c7   : > { %v3792_v44 = vadd.f32 %v3787_v61, %v3768_v38  ;;  %v3765_v19 = vmul.f32 %v3748_v48, %v3741_v10  ;;  %v6362_v48 = vld [vmem:[%s8796_s6 + $0x128] sm:$0xff] }
0x18c9   : > { %v3794_v8 = vsub.f32 0.0, %v3792_v44 }
0x18cb   : > { %v6765_v51 = vpop.eup %6764  ;;  %v3797_v35 = vmul.f32 1.442695, %v3794_v8  ;;  %v3777_v41 = vpop.permute.xlu2 %3776  ;;  %v6936_v8 = vld [vmem:[%s8818_s4 + $0x10] sm:$0xff] }
0x18cc   : > { %v3799_v52 = vadd.f32 1.0, %v6765_v51  ;;  %v3790_v32 = vadd.f32 %v3777_v41, %v3766_v14  ;;  %v6937_v51 = vld [vmem:[%s8818_s4 + $0x18] sm:$0xff] }
0x18cd   : > { %6766 = vpow2.f32 %v3797_v35 }
0x18ce   : > { %6768 = vrcp.f32 %v3799_v52  ;;  %vm3806_vm7 = vweird.f32 %v3799_v52  ;;  %v3812_v40 = vand.u32 2147483648, %v3799_v52  ;;  %v3810_v16 = vand.u32 2147483647, %v3799_v52 }
0x18d0   : > { %v3813_v28 = vor.u32 1.1754944e-38, %v3812_v40  ;;  %vm3811_vm14 = vcmp.eq.f32.partialorder %v3810_v16, 8.507059e+37 }
0x18d3   : > { %v6767_v45 = vpop.eup %6766  ;;  %v3772_v29 = vpop.permute.xlu2 %3771 }
0x18d4   : > { %v6769_v60 = vpop.eup %6768  ;;  %v3800_v27 = vadd.f32 1.0, %v6767_v45  ;;  %v3789_v44 = vadd.f32 %v3772_v29, %v3765_v19  ;;  %v6366_v45 = vld [vmem:[%s8797_s7 + $0x128] sm:$0xff] }
0x18d5   : > { %v3802_v1 = vmul.f32 %v6769_v60, %v3799_v52  ;;  %vm3807_vm6 = vweird.f32 %v6769_v60 }
0x18d6   : > { %6770 = vrcp.f32 %v3800_v27  ;;  %v3827_v12 = vand.u32 2147483648, %v3800_v27  ;;  %v3825_v15 = vand.u32 2147483647, %v3800_v27  ;;  %vm8022_vm9 = vmor %vm3806_vm7, %vm3807_vm6  ;;  %vm3821_vm10 = vweird.f32 %v3800_v27 }
0x18d7   : > { %v3803_v61 = vsub.f32 1.0, %v3802_v1 }
0x18d8   : > { %v3828_v36 = vor.u32 1.1754944e-38, %v3827_v12  ;;  %vm3826_vm13 = vcmp.eq.f32.partialorder %v3825_v15, 8.507059e+37 }
0x18d9   : > { %v3804_v25 = vmul.f32 %v6769_v60, %v3803_v61 }
0x18db   : > { %v3805_v9 = vadd.f32 %v6769_v60, %v3804_v25  ;;  %v6363_v25 = vld [vmem:[%s8796_s6 + $0x130] sm:$0xff] }
0x18dc   : > { %v6771_v4 = vpop.eup %6770 }
0x18dd   : > { %v3817_v3 = vmul.f32 %v6771_v4, %v3800_v27  ;;  %vm3822_vm8 = vweird.f32 %v6771_v4  ;;  %v3809_v0 = vsel %vm8022_vm9, %v6769_v60, %v3805_v9  ;;  %v6365_v60 = vld [vmem:[%s8797_s7 + $0x120] sm:$0xff] }
0x18de   : > { %vm3823_vm11 = vmor %vm3821_vm10, %vm3822_vm8  ;;  %v3814_v38 = vsel %vm3811_vm14, %v3813_v28, %v3809_v0 }
0x18df   : > { %v3818_v6 = vsub.f32 1.0, %v3817_v3  ;;  %v8030_v30 = vmul.f32 %v3814_v38, %v3789_v44 }
0x18e1   : > { %v3819_v13 = vmul.f32 %v6771_v4, %v3818_v6 }
0x18e3   : > { %v3820_v21 = vadd.f32 %v6771_v4, %v3819_v13 }
0x18e5   : > { %v3824_v22 = vsel %vm3823_vm11, %v6771_v4, %v3820_v21  ;;  %v6367_v4 = vld [vmem:[%s8797_s7 + $0x130] sm:$0xff] }
0x18e6   : > { %v3829_v33 = vsel %vm3826_vm13, %v3828_v36, %v3824_v22 }
0x18e7   : > { %v8028_v42 = vmul.f32 %v3829_v33, %v3790_v32 }
0x18e9   : > { %3857 = vmatpush.msra.mxu3 %v8028_v42 }
0x18eb   : > { %3858 = vmatpush.msra.mxu3 %v8030_v30 }
0x18ec   : > { %6369 = vmatmul.msk.f32.vlgmr.msra.gmra.mxu3 %vm535_vm0, %v6934_v46 }
0x18f4   : > { %6370 = vmatmul.msk.f32.gmra.mxu3 %vm535_vm0, %v6935_v50 }
0x18fc   : > { %6371 = vmatmul.msk.f32.gmra.mxu3 %vm535_vm0, %v6936_v8 }
0x1904   : > { %6372 = vmatmul.msk.f32.gmra.mxu3 %vm535_vm0, %v6937_v51 }
0x196f   : > { %v3860_v35 = vpop.f32.mrf.mxu3 }
0x1977   : > { %v3863_v56 = vpop.f32.mrf.mxu3 }
0x1978   : > { %3874 = vadd.xlane.f32.xlu1 %v3863_v56 }
0x197f   : > { %v3866_v52 = vpop.f32.mrf.mxu3 }
0x1980   : > { %3876 = vadd.xlane.f32.xlu0 %v3866_v52 }
0x1987   : > { %v3869_v20 = vpop.f32.mrf.mxu3 }
0x1988   : > { %3872 = vadd.xlane.f32.xlu0 %v3860_v35  ;;  %3878 = vadd.xlane.f32.xlu2 %v3869_v20 }
0x19a0   : > { %3993 = vperm.xlu2 %6565, %v6368_v57  }
0x19a8   : > { %3959 = vperm.xlu2 %6565, %v6362_v48  }
0x19b0   : > { %3954 = vperm.xlu2 %6565, %v6361_v58  }
0x19b8   : > { %3983 = vperm.xlu2 %6565, %v6366_v45  }
0x19c0   : > { %3978 = vperm.xlu2 %6565, %v6365_v60  }
0x19eb   : > { %v3875_v5 = vpop.xlane.xlu1 %3874 }
0x19ec   : > { %v3881_v9 = vmul.f32 %v3875_v5, %v7228_v37 }
0x19ee   : > { %v8082_v12 = vsub.f32 %v3863_v56, %v3881_v9 }
0x19f0   : > { %v3889_v40 = vmul.f32 %v8082_v12, %v8082_v12 }
0x19f3   : > { %v3877_v62 = vpop.xlane.xlu0 %3876 }
0x19f4   : > { %v3882_v27 = vmul.f32 %v3877_v62, %v7228_v37 }
0x19f6   : > { %v3886_v63 = vsub.f32 %v3866_v52, %v3882_v27 }
0x19f8   : > { %v3890_v1 = vmul.f32 %v3886_v63, %v3886_v63 }
0x19fa   : > { %3896 = vadd.xlane.f32.xlu0 %v3890_v1 }
0x19fb   : > { %v3879_v61 = vpop.xlane.xlu2 %3878  ;;  %v3873_v49 = vpop.xlane.xlu0 %3872 }
0x19fc   : > { %v3883_v59 = vmul.f32 %v3879_v61, %v7228_v37  ;;  %v3880_v3 = vmul.f32 %v3873_v49, %v7228_v37 }
0x19fe   : > { %v3887_v18 = vsub.f32 %v3869_v20, %v3883_v59  ;;  %v8077_v6 = vsub.f32 %v3860_v35, %v3880_v3 }
0x1a00   : > { %v3891_v41 = vmul.f32 %v3887_v18, %v3887_v18  ;;  %v3888_v10 = vmul.f32 %v8077_v6, %v8077_v6 }
0x1a02   : > { %3898 = vadd.xlane.f32.xlu1 %v3891_v41 }
0x1a03   : > { %v3994_v45 = vpop.permute.xlu2 %3993 }
0x1a0e   : > { %3964 = vperm.xlu0 %6563, %v6363_v25  }
0x1a16   : > { %3988 = vperm.xlu0 %6563, %v6367_v4   ;;  %v3960_v4 = vpop.permute.xlu2 %3959 }
0x1a1b   : > { %3969 = vperm.xlu1 %6564, %v6364_v54  }
0x1a40   : > { %3892 = vadd.xlane.f32.xlu0 %v3888_v10  ;;  %v3955_v10 = vpop.permute.xlu2 %3954 }
0x1a45   : > { %3894 = vadd.xlane.f32.xlu1 %v3889_v40 }
0x1a6d   : > { %v3897_v13 = vpop.xlane.xlu0 %3896 }
0x1a6e   : > { %v3902_v15 = vmul.f32 %v3897_v13, %v7228_v37 }
0x1a70   : > { %v3906_v16 = vadd.f32 1e-05, %v3902_v15 }
0x1a72   : > { %6772 = vrsqrt.f32 %v3906_v16  ;;  %vm3934_vm2 = vweird.f32 %v3906_v16 }
0x1a75   : > { %v3899_v43 = vpop.xlane.xlu1 %3898 }
0x1a76   : > { %v3903_v14 = vmul.f32 %v3899_v43, %v7228_v37 }
0x1a78   : > { %v3907_v21 = vadd.f32 1e-05, %v3903_v14  ;;  %v6773_v0 = vpop.eup %6772 }
0x1a79   : > { %v3929_v19 = vmul.f32 %v6773_v0, %v3906_v16  ;;  %vm3935_vm15 = vweird.f32 %v6773_v0 }
0x1a7a   : > { %6774 = vrsqrt.f32 %v3907_v21  ;;  %vm3944_vm3 = vweird.f32 %v3907_v21  ;;  %vm3936_vm4 = vmor %vm3934_vm2, %vm3935_vm15 }
0x1a7b   : > { %v3930_v28 = vmul.f32 %v6773_v0, %v3929_v19 }
0x1a7d   : > { %v3931_v32 = vmul.f32 0.5, %v3930_v28  ;;  %v3984_v28 = vpop.permute.xlu2 %3983 }
0x1a7f   : > { %v3932_v38 = vsub.f32 1.5, %v3931_v32 }
0x1a80   : > { %v6775_v36 = vpop.eup %6774  ;;  %v3965_v8 = vpop.permute.xlu0 %3964 }
0x1a81   : > { %v3939_v29 = vmul.f32 %v6775_v36, %v3907_v21  ;;  %v3933_v46 = vmul.f32 %v6773_v0, %v3932_v38  ;;  %vm3945_vm1 = vweird.f32 %v6775_v36 }
0x1a82   : > { %vm3946_vm5 = vmor %vm3944_vm3, %vm3945_vm1 }
0x1a83   : > { %v3940_v22 = vmul.f32 %v6775_v36, %v3939_v29  ;;  %v3937_v51 = vsel %vm3936_vm4, %v6773_v0, %v3933_v46 }
0x1a84   : > { %v3950_v56 = vmul.f32 %v3937_v51, %v3886_v63 }
0x1a85   : > { %v3941_v33 = vmul.f32 0.5, %v3940_v22 }
0x1a86   : > { %v3974_v57 = vmul.f32 %v3965_v8, %v3950_v56 }
0x1a87   : > { %v3942_v44 = vsub.f32 1.5, %v3941_v33 }
0x1a88   : > { %v3989_v48 = vpop.permute.xlu0 %3988 }
0x1a89   : > { %v3943_v50 = vmul.f32 %v6775_v36, %v3942_v44  ;;  %v3998_v60 = vadd.f32 %v3989_v48, %v3974_v57 }
0x1a8b   : > { %v3947_v35 = vsel %vm3946_vm5, %v6775_v36, %v3943_v50  ;;  %v4000_v27 = vsub.f32 0.0, %v3998_v60  ;;  %v3979_v60 = vpop.permute.xlu2 %3978 }
0x1a8c   : > { %v3951_v52 = vmul.f32 %v3947_v35, %v3887_v18 }
0x1a8d   : > { %v3970_v20 = vpop.permute.xlu1 %3969  ;;  %v4002_v61 = vmul.f32 1.442695, %v4000_v27 }
0x1a8e   : > { %v3975_v58 = vmul.f32 %v3970_v20, %v3951_v52 }
0x1a8f   : > { %6776 = vpow2.f32 %v4002_v61 }
0x1a90   : > { %v3999_v62 = vadd.f32 %v3994_v45, %v3975_v58 }
0x1a92   : > { %v4001_v1 = vsub.f32 0.0, %v3999_v62 }
0x1a94   : > { %v4004_v59 = vmul.f32 1.442695, %v4001_v1 }
0x1a95   : > { %v6777_v41 = vpop.eup %6776 }
0x1a96   : > { %6778 = vpow2.f32 %v4004_v59  ;;  %v8088_v54 = vadd.f32 1.0, %v6777_v41 }
0x1a98   : > { %6780 = vrcp.f32 %v8088_v54  ;;  %v4019_v48 = vand.u32 2147483648, %v8088_v54  ;;  %vm4013_vm15 = vweird.f32 %v8088_v54  ;;  %v4017_v45 = vand.u32 2147483647, %v8088_v54 }
0x1a9a   : > { %v4020_v41 = vor.u32 1.1754944e-38, %v4019_v48  ;;  %vm4018_vm4 = vcmp.eq.f32.partialorder %v4017_v45, 8.507059e+37 }
0x1a9c   : > { %v6779_v25 = vpop.eup %6778 }
0x1a9d   : > { %v8090_v63 = vadd.f32 1.0, %v6779_v25 }
0x1a9e   : > { %v6781_v13 = vpop.eup %6780 }
0x1a9f   : > { %6782 = vrcp.f32 %v8090_v63  ;;  %v4009_v43 = vmul.f32 %v6781_v13, %v8088_v54  ;;  %vm4014_vm10 = vweird.f32 %v6781_v13  ;;  %vm4028_vm1 = vweird.f32 %v8090_v63 }
0x1aa0   : > { %vm4015_vm2 = vmor %vm4013_vm15, %vm4014_vm10  ;;  %v4032_v1 = vand.u32 2147483647, %v8090_v63 }
0x1aa1   : > { %v4010_v36 = vsub.f32 1.0, %v4009_v43 }
0x1aa2   : > { %vm4033_vm5 = vcmp.eq.f32.partialorder %v4032_v1, 8.507059e+37 }
0x1aa3   : > { %v4011_v46 = vmul.f32 %v6781_v13, %v4010_v36  ;;  %v6378_v36 = vld [vmem:[%s8796_s6 + $0x148] sm:$0xff] }
0x1aa5   : > { %v6783_v15 = vpop.eup %6782  ;;  %v4012_v52 = vadd.f32 %v6781_v13, %v4011_v46 }
0x1aa6   : > { %v4024_v21 = vmul.f32 %v6783_v15, %v8090_v63  ;;  %vm4029_vm14 = vweird.f32 %v6783_v15 }
0x1aa7   : > { %v4016_v59 = vsel %vm4015_vm2, %v6781_v13, %v4012_v52  ;;  %vm4030_vm3 = vmor %vm4028_vm1, %vm4029_vm14  ;;  %v6376_v13 = vld [vmem:[%s8819_s5 + $0x98] sm:$0xff] }
0x1aa8   : > { %v4025_v32 = vsub.f32 1.0, %v4024_v21  ;;  %v4021_v54 = vsel %vm4018_vm4, %v4020_v41, %v4016_v59 }
0x1aaa   : > { %v4026_v51 = vmul.f32 %v6783_v15, %v4025_v32 }
0x1aac   : > { %v4027_v58 = vadd.f32 %v6783_v15, %v4026_v51 }
0x1ab3   : > { %v3893_v18 = vpop.xlane.xlu0 %3892 }
0x1ab4   : > { %v3900_v49 = vmul.f32 %v3893_v18, %v7228_v37  ;;  %v4031_v18 = vsel %vm4030_vm3, %v6783_v15, %v4027_v58 }
0x1ab6   : > { %v3904_v3 = vadd.f32 1e-05, %v3900_v49 }
0x1ab8   : > { %6784 = vrsqrt.f32 %v3904_v3  ;;  %v3895_v5 = vpop.xlane.xlu1 %3894  ;;  %vm3914_vm7 = vweird.f32 %v3904_v3 }
0x1ab9   : > { %v3901_v9 = vmul.f32 %v3895_v5, %v7228_v37 }
0x1abb   : > { %v3905_v40 = vadd.f32 1e-05, %v3901_v9 }
0x1abd   : > { %6786 = vrsqrt.f32 %v3905_v40  ;;  %vm3924_vm11 = vweird.f32 %v3905_v40 }
0x1abe   : > { %v6785_v16 = vpop.eup %6784 }
0x1abf   : > { %v3909_v14 = vmul.f32 %v6785_v16, %v3904_v3  ;;  %vm3915_vm6 = vweird.f32 %v6785_v16 }
0x1ac0   : > { %vm3916_vm8 = vmor %vm3914_vm7, %vm3915_vm6 }
0x1ac1   : > { %v3910_v0 = vmul.f32 %v6785_v16, %v3909_v14 }
0x1ac3   : > { %v6787_v19 = vpop.eup %6786  ;;  %v3911_v29 = vmul.f32 0.5, %v3910_v0  ;;  %v6380_v0 = vld [vmem:[%s8796_s6 + $0x158] sm:$0xff] }
0x1ac4   : > { %v3919_v22 = vmul.f32 %v6787_v19, %v3905_v40  ;;  %vm3925_vm9 = vweird.f32 %v6787_v19 }
0x1ac5   : > { %v3912_v33 = vsub.f32 1.5, %v3911_v29  ;;  %vm3926_vm13 = vmor %vm3924_vm11, %vm3925_vm9  ;;  %v6377_v29 = vld [vmem:[%s8796_s6 + $0x140] sm:$0xff] }
0x1ac6   : > { %v3920_v38 = vmul.f32 %v6787_v19, %v3919_v22 }
0x1ac7   : > { %v3913_v44 = vmul.f32 %v6785_v16, %v3912_v33 }
0x1ac8   : > { %v3921_v50 = vmul.f32 0.5, %v3920_v38 }
0x1ac9   : > { %v3917_v8 = vsel %vm3916_vm8, %v6785_v16, %v3913_v44 }
0x1aca   : > { %v3948_v35 = vmul.f32 %v3917_v8, %v8077_v6  ;;  %v3922_v56 = vsub.f32 1.5, %v3921_v50  ;;  %v4034_v6 = vand.u32 2147483648, %v8090_v63 }
0x1acc   : > { %v3923_v20 = vmul.f32 %v6787_v19, %v3922_v56  ;;  %v3972_v57 = vmul.f32 %v3955_v10, %v3948_v35  ;;  %v4035_v49 = vor.u32 1.1754944e-38, %v4034_v6  ;;  %v6379_v35 = vld [vmem:[%s8796_s6 + $0x150] sm:$0xff]  ;;  %v6384_v56 = vld [vmem:[%s8797_s7 + $0x158] sm:$0xff] }
0x1acd   : > { %v6400_v6 = vld [vmem:[%s8797_s7 + $0x178] sm:$0xff] }
0x1ace   : > { %v3927_v62 = vsel %vm3926_vm13, %v6787_v19, %v3923_v20  ;;  %v3996_v61 = vadd.f32 %v3979_v60, %v3972_v57  ;;  %v4036_v9 = vsel %vm4033_vm5, %v4035_v49, %v4031_v18  ;;  %v6383_v19 = vld [vmem:[%s8797_s7 + $0x150] sm:$0xff] }
0x1acf   : > { %v3949_v27 = vmul.f32 %v3927_v62, %v8082_v12  ;;  %v6381_v62 = vld [vmem:[%s8797_s7 + $0x140] sm:$0xff] }
0x1ad0   : > { %v4038_v5 = vmul.f32 %v4021_v54, %v3996_v61 }
0x1ad1   : > { %v3973_v25 = vmul.f32 %v3960_v4, %v3949_v27  ;;  %v6373_v4 = vld [vmem:[%s8819_s5 + $0x80] sm:$0xff] }
0x1ad2   : > { %v4040_v12 = vadd.f32 %v4038_v5, %v8030_v30  ;;  %v6375_v30 = vld [vmem:[%s8819_s5 + $0x90] sm:$0xff] }
0x1ad3   : > { %v3997_v3 = vadd.f32 %v3984_v28, %v3973_v25  ;;  %v6382_v28 = vld [vmem:[%s8797_s7 + $0x148] sm:$0xff] }
0x1ad4   : > { %v8111_v63 = vmul.f32 0.70710677, %v4040_v12 }
0x1ad5   : > { %v4039_v10 = vmul.f32 %v4036_v9, %v3997_v3 }
0x1ad7   : > { %v4041_v40 = vadd.f32 %v4039_v10, %v8028_v42  ;;  %v6374_v42 = vld [vmem:[%s8819_s5 + $0x88] sm:$0xff] }
0x1ad9   : > { %v8108_v16 = vmul.f32 0.70710677, %v4041_v40 }
0x1adb   : > { %4085 = vmatpush.msrb.mxu0 %v8108_v16 }
0x1add   : > { %4086 = vmatpush.msrb.mxu0 %v8111_v63 }
0x1ade   : > { %6385 = vmatmul.msk.f32.vlgmr.msrb.gmra.mxu0 %vm535_vm0, %v6373_v4 }
0x1ae6   : > { %6386 = vmatmul.msk.f32.gmra.mxu0 %vm535_vm0, %v6374_v42 }
0x1aee   : > { %6387 = vmatmul.msk.f32.gmra.mxu0 %vm535_vm0, %v6375_v30 }
0x1af6   : > { %6388 = vmatmul.msk.f32.gmra.mxu0 %vm535_vm0, %v6376_v13 }
0x1b5b   : > { %v4088_v15 = vpop.f32.mrf.mxu0 }
0x1b5c   : > { %4100 = vadd.xlane.f32.xlu1 %v4088_v15 }
0x1b63   : > { %v4091_v43 = vpop.f32.mrf.mxu0 }
0x1b64   : > { %4102 = vadd.xlane.f32.xlu0 %v4091_v43 }
0x1b6b   : > { %v4094_v14 = vpop.f32.mrf.mxu0 }
0x1b6c   : > { %4104 = vadd.xlane.f32.xlu2 %v4094_v14 }
0x1b73   : > { %v4097_v21 = vpop.f32.mrf.mxu0 }
0x1b74   : > { %4106 = vadd.xlane.f32.xlu1 %v4097_v21 }
0x1b78   : > { %4197 = vperm.xlu0 %6563, %v6380_v0  }
0x1b84   : > { %4216 = vperm.xlu2 %6565, %v6383_v19  }
0x1b8c   : > { %4187 = vperm.xlu2 %6565, %v6378_v36  }
0x1b94   : > { %4182 = vperm.xlu2 %6565, %v6377_v29  }
0x1b9c   : > { %4211 = vperm.xlu2 %6565, %v6382_v28  }
0x1bcf   : > { %v4101_v22 = vpop.xlane.xlu1 %4100 }
0x1bd0   : > { %v4108_v57 = vmul.f32 %v4101_v22, %v7228_v37 }
0x1bd2   : > { %v8157_v58 = vsub.f32 %v4088_v15, %v4108_v57 }
0x1bd4   : > { %v4116_v60 = vmul.f32 %v8157_v58, %v8157_v58 }
0x1bd7   : > { %v4103_v52 = vpop.xlane.xlu0 %4102 }
0x1bd8   : > { %v4109_v20 = vmul.f32 %v4103_v52, %v7228_v37 }
0x1bda   : > { %v8155_v48 = vsub.f32 %v4091_v43, %v4109_v20 }
0x1bdc   : > { %v4117_v45 = vmul.f32 %v8155_v48, %v8155_v48 }
0x1bdf   : > { %v4105_v32 = vpop.xlane.xlu2 %4104 }
0x1be0   : > { %v4110_v33 = vmul.f32 %v4105_v32, %v7228_v37 }
0x1be2   : > { %v4114_v38 = vsub.f32 %v4094_v14, %v4110_v33 }
0x1be4   : > { %v4118_v44 = vmul.f32 %v4114_v38, %v4114_v38 }
0x1be6   : > { %4124 = vadd.xlane.f32.xlu1 %v4118_v44 }
0x1be7   : > { %v4107_v46 = vpop.xlane.xlu1 %4106  ;;  %v4217_v22 = vpop.permute.xlu2 %4216 }
0x1be8   : > { %v4111_v50 = vmul.f32 %v4107_v46, %v7228_v37 }
0x1bea   : > { %v4115_v8 = vsub.f32 %v4097_v21, %v4111_v50  ;;  %v4198_v27 = vpop.permute.xlu0 %4197 }
0x1bec   : > { %v4119_v51 = vmul.f32 %v4115_v8, %v4115_v8 }
0x1bee   : > { %4126 = vadd.xlane.f32.xlu0 %v4119_v51 }
0x1bff   : > { %4192 = vperm.xlu1 %6564, %v6379_v35  }
0x1c02   : > { %4221 = vperm.xlu0 %6563, %v6384_v56  }
0x1c29   : > { %4122 = vadd.xlane.f32.xlu1 %v4117_v45 }
0x1c2c   : > { %4120 = vadd.xlane.f32.xlu0 %v4116_v60 }
0x1c42   : > { %4206 = vperm.xlu1 %6564, %v6381_v62   ;;  %v4188_v62 = vpop.permute.xlu2 %4187 }
0x1c4a   : > { %4449 = vperm.xlu1 %6564, %v6400_v6  }
0x1c59   : > { %v4125_v1 = vpop.xlane.xlu1 %4124 }
0x1c5a   : > { %v4130_v61 = vmul.f32 %v4125_v1, %v7228_v37 }
0x1c5c   : > { %v4134_v59 = vadd.f32 1e-05, %v4130_v61 }
0x1c5e   : > { %6788 = vrsqrt.f32 %v4134_v59  ;;  %vm4162_vm10 = vweird.f32 %v4134_v59 }
0x1c61   : > { %v4127_v41 = vpop.xlane.xlu0 %4126 }
0x1c62   : > { %v4131_v25 = vmul.f32 %v4127_v41, %v7228_v37 }
0x1c64   : > { %v6789_v18 = vpop.eup %6788  ;;  %v4135_v49 = vadd.f32 1e-05, %v4131_v25 }
0x1c65   : > { %v4157_v54 = vmul.f32 %v6789_v18, %v4134_v59  ;;  %vm4163_vm9 = vweird.f32 %v6789_v18 }
0x1c66   : > { %6790 = vrsqrt.f32 %v4135_v49  ;;  %vm4172_vm7 = vweird.f32 %v4135_v49  ;;  %vm4164_vm11 = vmor %vm4162_vm10, %vm4163_vm9 }
0x1c67   : > { %v4158_v3 = vmul.f32 %v6789_v18, %v4157_v54 }
0x1c69   : > { %v4159_v10 = vmul.f32 0.5, %v4158_v3  ;;  %v4183_v3 = vpop.permute.xlu2 %4182 }
0x1c6b   : > { %v4160_v4 = vsub.f32 1.5, %v4159_v10 }
0x1c6c   : > { %v6791_v5 = vpop.eup %6790 }
0x1c6d   : > { %v4167_v9 = vmul.f32 %v6791_v5, %v4135_v49  ;;  %vm4173_vm6 = vweird.f32 %v6791_v5  ;;  %v4161_v13 = vmul.f32 %v6789_v18, %v4160_v4 }
0x1c6e   : > { %vm4174_vm8 = vmor %vm4172_vm7, %vm4173_vm6 }
0x1c6f   : > { %v4168_v40 = vmul.f32 %v6791_v5, %v4167_v9  ;;  %v4165_v43 = vsel %vm4164_vm11, %v6789_v18, %v4161_v13 }
0x1c70   : > { %v4178_v21 = vmul.f32 %v4165_v43, %v4114_v38 }
0x1c71   : > { %v4169_v12 = vmul.f32 0.5, %v4168_v40  ;;  %v4193_v0 = vpop.permute.xlu1 %4192 }
0x1c72   : > { %v4202_v36 = vmul.f32 %v4193_v0, %v4178_v21 }
0x1c73   : > { %v4170_v42 = vsub.f32 1.5, %v4169_v12 }
0x1c74   : > { %v4222_v29 = vpop.permute.xlu0 %4221  ;;  %v4226_v32 = vadd.f32 %v4217_v22, %v4202_v36 }
0x1c75   : > { %v4171_v30 = vmul.f32 %v6791_v5, %v4170_v42 }
0x1c76   : > { %v4228_v44 = vsub.f32 0.0, %v4226_v32 }
0x1c77   : > { %v4175_v15 = vsel %vm4174_vm8, %v6791_v5, %v4171_v30 }
0x1c78   : > { %v4179_v14 = vmul.f32 %v4175_v15, %v4115_v8  ;;  %v4230_v50 = vmul.f32 1.442695, %v4228_v44  ;;  %v4212_v44 = vpop.permute.xlu2 %4211 }
0x1c7a   : > { %v4203_v19 = vmul.f32 %v4198_v27, %v4179_v14 }
0x1c7c   : > { %v4227_v28 = vadd.f32 %v4222_v29, %v4203_v19 }
0x1c7e   : > { %v4229_v33 = vsub.f32 0.0, %v4227_v28 }
0x1c80   : > { %v4232_v46 = vmul.f32 1.442695, %v4229_v33 }
0x1c82   : > { %6792 = vpow2.f32 %v4232_v46 }
0x1c83   : > { %6794 = vpow2.f32 %v4230_v50 }
0x1c88   : > { %v6793_v51 = vpop.eup %6792 }
0x1c89   : > { %v6795_v35 = vpop.eup %6794  ;;  %v4235_v56 = vadd.f32 1.0, %v6793_v51 }
0x1c8a   : > { %v8171_v52 = vadd.f32 1.0, %v6795_v35 }
0x1c8b   : > { %6796 = vrcp.f32 %v4235_v56  ;;  %vm4256_vm3 = vweird.f32 %v4235_v56  ;;  %v4262_v14 = vand.u32 2147483648, %v4235_v56  ;;  %v4260_v36 = vand.u32 2147483647, %v4235_v56 }
0x1c8c   : > { %6798 = vrcp.f32 %v8171_v52  ;;  %v4247_v32 = vand.u32 2147483648, %v8171_v52  ;;  %vm4241_vm8 = vweird.f32 %v8171_v52  ;;  %v4245_v46 = vand.u32 2147483647, %v8171_v52 }
0x1c8d   : > { %v4263_v50 = vor.u32 1.1754944e-38, %v4262_v14  ;;  %vm4261_vm10 = vcmp.eq.f32.partialorder %v4260_v36, 8.507059e+37 }
0x1c8e   : > { %vm4246_vm11 = vcmp.eq.f32.partialorder %v4245_v46, 8.507059e+37 }
0x1c91   : > { %v6797_v60 = vpop.eup %6796 }
0x1c92   : > { %v6799_v27 = vpop.eup %6798  ;;  %v4252_v1 = vmul.f32 %v6797_v60, %v4235_v56  ;;  %vm4257_vm15 = vweird.f32 %v6797_v60 }
0x1c93   : > { %v4237_v41 = vmul.f32 %v6799_v27, %v8171_v52  ;;  %vm8178_vm5 = vmor %vm4256_vm3, %vm4257_vm15  ;;  %vm4242_vm7 = vweird.f32 %v6799_v27 }
0x1c94   : > { %v4253_v25 = vsub.f32 1.0, %v4252_v1  ;;  %vm4243_vm9 = vmor %vm4241_vm8, %vm4242_vm7 }
0x1c95   : > { %v4238_v9 = vsub.f32 1.0, %v4237_v41 }
0x1c96   : > { %v4254_v10 = vmul.f32 %v6797_v60, %v4253_v25 }
0x1c97   : > { %v4239_v30 = vmul.f32 %v6799_v27, %v4238_v9 }
0x1c98   : > { %v4255_v15 = vadd.f32 %v6797_v60, %v4254_v10 }
0x1c99   : > { %v4240_v29 = vadd.f32 %v6799_v27, %v4239_v30  ;;  %v6394_v30 = vld [vmem:[%s8796_s6 + $0x168] sm:$0xff] }
0x1c9a   : > { %v4259_v33 = vsel %vm8178_vm5, %v6797_v60, %v4255_v15 }
0x1c9b   : > { %v4244_v56 = vsel %vm4243_vm9, %v6799_v27, %v4240_v29  ;;  %v6389_v27 = vld [vmem:[%s8819_s5 + $0xa0] sm:$0xff] }
0x1c9c   : > { %v4123_v38 = vpop.xlane.xlu1 %4122 }
0x1c9d   : > { %v4129_v8 = vmul.f32 %v4123_v38, %v7228_v37  ;;  %v4264_v38 = vsel %vm4261_vm10, %v4263_v50, %v4259_v33 }
0x1c9f   : > { %v4133_v20 = vadd.f32 1e-05, %v4129_v8  ;;  %v4121_v57 = vpop.xlane.xlu0 %4120  ;;  %v4248_v8 = vor.u32 1.1754944e-38, %v4247_v32 }
0x1ca0   : > { %v4128_v45 = vmul.f32 %v4121_v57, %v7228_v37 }
0x1ca1   : > { %6800 = vrsqrt.f32 %v4133_v20  ;;  %vm4152_vm14 = vweird.f32 %v4133_v20  ;;  %v4249_v60 = vsel %vm4246_vm11, %v4248_v8, %v4244_v56 }
0x1ca2   : > { %v4132_v6 = vadd.f32 1e-05, %v4128_v45 }
0x1ca4   : > { %6802 = vrsqrt.f32 %v4132_v6  ;;  %vm4142_vm4 = vweird.f32 %v4132_v6 }
0x1ca7   : > { %v6801_v61 = vpop.eup %6800 }
0x1ca8   : > { %v4147_v59 = vmul.f32 %v6801_v61, %v4133_v20  ;;  %vm4153_vm13 = vweird.f32 %v6801_v61 }
0x1ca9   : > { %vm4154_vm1 = vmor %vm4152_vm14, %vm4153_vm13 }
0x1caa   : > { %v6803_v18 = vpop.eup %6802  ;;  %v4148_v49 = vmul.f32 %v6801_v61, %v4147_v59 }
0x1cab   : > { %v4137_v54 = vmul.f32 %v6803_v18, %v4132_v6  ;;  %vm4143_vm2 = vweird.f32 %v6803_v18 }
0x1cac   : > { %v4149_v5 = vmul.f32 0.5, %v4148_v49  ;;  %vm4144_vm6 = vmor %vm4142_vm4, %vm4143_vm2  ;;  %v6398_v49 = vld [vmem:[%s8797_s7 + $0x168] sm:$0xff] }
0x1cad   : > { %v4138_v40 = vmul.f32 %v6803_v18, %v4137_v54 }
0x1cae   : > { %v4150_v12 = vsub.f32 1.5, %v4149_v5 }
0x1caf   : > { %v4139_v4 = vmul.f32 0.5, %v4138_v40 }
0x1cb0   : > { %v4151_v42 = vmul.f32 %v6801_v61, %v4150_v12 }
0x1cb1   : > { %v4140_v13 = vsub.f32 1.5, %v4139_v4 }
0x1cb2   : > { %v4155_v43 = vsel %vm4154_vm1, %v6801_v61, %v4151_v42  ;;  %v6392_v61 = vld [vmem:[%s8819_s5 + $0xb8] sm:$0xff] }
0x1cb3   : > { %v4177_v21 = vmul.f32 %v4155_v43, %v8155_v48  ;;  %v4141_v0 = vmul.f32 %v6803_v18, %v4140_v13  ;;  %v6396_v42 = vld [vmem:[%s8796_s6 + $0x178] sm:$0xff] }
0x1cb4   : > { %v4207_v20 = vpop.permute.xlu1 %4206 }
0x1cb5   : > { %v4201_v28 = vmul.f32 %v4188_v62, %v4177_v21  ;;  %v4145_v22 = vsel %vm4144_vm6, %v6803_v18, %v4141_v0 }
0x1cb6   : > { %v4176_v48 = vmul.f32 %v4145_v22, %v8157_v58 }
0x1cb7   : > { %v4225_v51 = vadd.f32 %v4212_v44, %v4201_v28 }
0x1cb8   : > { %v4200_v35 = vmul.f32 %v4183_v3, %v4176_v48 }
0x1cb9   : > { %v4267_v57 = vmul.f32 %v4264_v38, %v4225_v51 }
0x1cba   : > { %v4224_v45 = vadd.f32 %v4207_v20, %v4200_v35 }
0x1cbb   : > { %v4269_v62 = vadd.f32 %v4267_v57, %v8108_v16  ;;  %v6390_v16 = vld [vmem:[%s8819_s5 + $0xa8] sm:$0xff] }
0x1cbc   : > { %v4266_v58 = vmul.f32 %v4249_v60, %v4224_v45  ;;  %v4450_v13 = vpop.permute.xlu1 %4449 }
0x1cbd   : > { %v8189_v6 = vmul.f32 0.70710677, %v4269_v62 }
0x1cbe   : > { %v4268_v52 = vadd.f32 %v4266_v58, %v8111_v63  ;;  %v6391_v63 = vld [vmem:[%s8819_s5 + $0xb0] sm:$0xff] }
0x1cbf   : > { %4313 = vmatpush.msrb.mxu1 %v8189_v6 }
0x1cc0   : > { %v8193_v1 = vmul.f32 0.70710677, %v4268_v52 }
0x1cc2   : > { %4314 = vmatpush.msrb.mxu1 %v8193_v1 }
0x1cc3   : > { %6401 = vmatmul.msk.f32.vlgmr.msrb.gmra.mxu1 %vm535_vm0, %v6389_v27 }
0x1ccb   : > { %6402 = vmatmul.msk.f32.gmra.mxu1 %vm535_vm0, %v6390_v16 }
0x1cd3   : > { %6403 = vmatmul.msk.f32.gmra.mxu1 %vm535_vm0, %v6391_v63 }
0x1cdb   : > { %6404 = vmatmul.msk.f32.gmra.mxu1 %vm535_vm0, %v6392_v61 }
0x1d40   : > { %v8212_v59 = vpop.f32.mrf.mxu1 }
0x1d48   : > { %v4319_v41 = vpop.f32.mrf.mxu1 }
0x1d49   : > { %4330 = vadd.xlane.f32.xlu2 %v4319_v41 }
0x1d50   : > { %v8214_v25 = vpop.f32.mrf.mxu1 }
0x1d58   : > { %v4325_v18 = vpop.f32.mrf.mxu1 }
0x1d59   : > { %4334 = vadd.xlane.f32.xlu0 %v4325_v18 }
0x1d61   : > { %4439 = vperm.xlu2 %6565, %v6398_v49  }
0x1dbc   : > { %v4331_v54 = vpop.xlane.xlu2 %4330 }
0x1dbd   : > { %v4337_v3 = vmul.f32 %v4331_v54, %v7228_v37 }
0x1dbf   : > { %v4341_v5 = vsub.f32 %v4319_v41, %v4337_v3 }
0x1dc1   : > { %v4345_v9 = vmul.f32 %v4341_v5, %v4341_v5 }
0x1dc3   : > { %4350 = vadd.xlane.f32.xlu1 %v4345_v9 }
0x1dcc   : > { %v4335_v10 = vpop.xlane.xlu0 %4334 }
0x1dcd   : > { %v4339_v40 = vmul.f32 %v4335_v10, %v7228_v37  ;;  %v4440_v10 = vpop.permute.xlu2 %4439 }
0x1dcf   : > { %v4343_v12 = vsub.f32 %v4325_v18, %v4339_v40 }
0x1dd1   : > { %v4347_v4 = vmul.f32 %v4343_v12, %v4343_v12 }
0x1dd3   : > { %4354 = vadd.xlane.f32.xlu0 %v4347_v4 }
0x1de7   : > { %4425 = vperm.xlu0 %6563, %v6396_v42  }
0x1def   : > { %4415 = vperm.xlu0 %6563, %v6394_v30  }
0x1e36   : > { %v4351_v21 = vpop.xlane.xlu1 %4350 }
0x1e37   : > { %v4357_v19 = vmul.f32 %v4351_v21, %v7228_v37 }
0x1e39   : > { %v4361_v28 = vadd.f32 1e-05, %v4357_v19  ;;  %v6412_v19 = vld [vmem:[%s8800_s10 + $0x28] sm:$0xff] }
0x1e3b   : > { %vm4380_vm2 = vweird.f32 %v4361_v28 }
0x1e46   : > { %v4355_v15 = vpop.xlane.xlu0 %4354 }
0x1e47   : > { %v4359_v43 = vmul.f32 %v4355_v15, %v7228_v37 }
0x1e49   : > { %v4363_v14 = vadd.f32 1e-05, %v4359_v43  ;;  %v6406_v43 = vld [vmem:[%s8798_s8 + $0x28] sm:$0xff] }
0x1e4b   : > { %6804 = vrsqrt.f32 %v4363_v14  ;;  %vm4400_vm14 = vweird.f32 %v4363_v14 }
0x1e4c   : > { %6806 = vrsqrt.f32 %v4361_v28 }
0x1e51   : > { %v6805_v0 = vpop.eup %6804 }
0x1e52   : > { %v4395_v36 = vmul.f32 %v6805_v0, %v4363_v14  ;;  %vm4401_vm13 = vweird.f32 %v6805_v0  ;;  %v6807_v50 = vpop.eup %6806 }
0x1e53   : > { %vm4402_vm15 = vmor %vm4400_vm14, %vm4401_vm13  ;;  %v4375_v56 = vmul.f32 %v6807_v50, %v4361_v28  ;;  %vm4381_vm1 = vweird.f32 %v6807_v50 }
0x1e54   : > { %v4396_v29 = vmul.f32 %v6805_v0, %v4395_v36  ;;  %vm4382_vm3 = vmor %vm4380_vm2, %vm4381_vm1 }
0x1e55   : > { %v4376_v20 = vmul.f32 %v6807_v50, %v4375_v56 }
0x1e56   : > { %v4397_v22 = vmul.f32 0.5, %v4396_v29 }
0x1e57   : > { %v4377_v57 = vmul.f32 0.5, %v4376_v20 }
0x1e58   : > { %v4398_v32 = vsub.f32 1.5, %v4397_v22 }
0x1e59   : > { %v4426_v46 = vpop.permute.xlu0 %4425  ;;  %v4378_v60 = vsub.f32 1.5, %v4377_v57 }
0x1e5a   : > { %v4399_v33 = vmul.f32 %v6805_v0, %v4398_v32 }
0x1e5b   : > { %v4379_v58 = vmul.f32 %v6807_v50, %v4378_v60 }
0x1e5c   : > { %v4403_v44 = vsel %vm4402_vm15, %v6805_v0, %v4399_v33  ;;  %v6411_v0 = vld [vmem:[%s8800_s10 + $0x20] sm:$0xff] }
0x1e5d   : > { %v4407_v48 = vmul.f32 %v4403_v44, %v4343_v12  ;;  %v4383_v27 = vsel %vm4382_vm3, %v6807_v50, %v4379_v58 }
0x1e5e   : > { %v4405_v61 = vmul.f32 %v4383_v27, %v4341_v5  ;;  %v6405_v5 = vld [vmem:[%s8798_s8 + $0x20] sm:$0xff] }
0x1e5f   : > { %v4431_v51 = vmul.f32 %v4426_v46, %v4407_v48  ;;  %v6410_v46 = vld [vmem:[%s8799_s9 + $0x28] sm:$0xff] }
0x1e61   : > { %v4455_v35 = vadd.f32 %v4450_v13, %v4431_v51  ;;  %v4416_v63 = vpop.permute.xlu0 %4415 }
0x1e62   : > { %v4429_v49 = vmul.f32 %v4416_v63, %v4405_v61 }
0x1e63   : > { %v4457_v38 = vsub.f32 0.0, %v4455_v35 }
0x1e64   : > { %v4453_v12 = vadd.f32 %v4440_v10, %v4429_v49  ;;  %v3621_v10 = vsub.f32 1.3, %v7948_v47 }
0x1e65   : > { %v4460_v8 = vmul.f32 1.442695, %v4457_v38 }
0x1e67   : > { %6808 = vpow2.f32 %v4460_v8 }
0x1e6d   : > { %v6809_v45 = vpop.eup %6808 }
0x1e6e   : > { %v4463_v62 = vadd.f32 1.0, %v6809_v45 }
0x1e70   : > { %6810 = vrcp.f32 %v4463_v62  ;;  %v4490_v18 = vand.u32 2147483648, %v4463_v62  ;;  %v4488_v3 = vand.u32 2147483647, %v4463_v62  ;;  %vm4484_vm5 = vweird.f32 %v4463_v62 }
0x1e72   : > { %v4491_v40 = vor.u32 1.1754944e-38, %v4490_v18  ;;  %vm4489_vm7 = vcmp.eq.f32.partialorder %v4488_v3, 8.507059e+37 }
0x1e76   : > { %v6811_v52 = vpop.eup %6810 }
0x1e77   : > { %v4480_v16 = vmul.f32 %v6811_v52, %v4463_v62  ;;  %vm4485_vm4 = vweird.f32 %v6811_v52 }
0x1e78   : > { %vm4486_vm6 = vmor %vm4484_vm5, %vm4485_vm4 }
0x1e79   : > { %v4481_v41 = vsub.f32 1.0, %v4480_v16 }
0x1e7b   : > { %v4482_v54 = vmul.f32 %v6811_v52, %v4481_v41 }
0x1e7d   : > { %v4483_v9 = vadd.f32 %v6811_v52, %v4482_v54 }
0x1e7f   : > { %v4487_v4 = vsel %vm4486_vm6, %v6811_v52, %v4483_v9 }
0x1e80   : > { %v4492_v42 = vsel %vm4489_vm7, %v4491_v40, %v4487_v4  ;;  %v3620_v40 = vsub.f32 1.3, %v7950_v23 }
0x1e81   : > { %v4495_v30 = vmul.f32 %v4492_v42, %v4453_v12 }
0x1e83   : > { %v4497_v13 = vadd.f32 %v4495_v30, %v8189_v6  ;;  %v6409_v6 = vld [vmem:[%s8799_s9 + $0x20] sm:$0xff] }
0x1e85   : > { %v4499_v15 = vmul.f32 0.70710677, %v4497_v13 }
0x1e87   : > { %4526 = vmatpush.msrb.mxu2 %v4499_v15 }
0x1e88   : > { %6407 = vmatmul.msk.f32.vlgmr.msrb.gmra.mxu2 %vm1340_vm12, %v6405_v5  ;;  %v3623_v5 = vmul.f32 %v3621_v10, %v2038_v2 }
0x1e90   : > { %6408 = vmatmul.msk.f32.gmra.mxu2 %vm1340_vm12, %v6406_v43  ;;  %v3622_v43 = vmul.f32 %v3620_v40, %v2037_v24 }
0x1f0b   : > { %v4528_v14 = vpop.f32.mrf.mxu2 }
0x1f0c   : > { %4540 = vadd.xlane.f32.xlu0 %v4528_v14 }
0x1f13   : > { %v4531_v21 = vpop.f32.mrf.mxu2 }
0x1f14   : > { %4542 = vadd.xlane.f32.xlu2 %v4531_v21 }
0x1f20   : > { %4582 = vperm.xlu0 %6563, %v6409_v6  }
0x1f28   : > { %4594 = vperm.xlu0 %6563, %v6411_v0  }
0x1f2c   : > { %4599 = vperm.xlu2 %6565, %v6412_v19  }
0x1f7f   : > { %v4541_v36 = vpop.xlane.xlu0 %4540 }
0x1f80   : > { %v4544_v29 = vmul.f32 %v4541_v36, %v7228_v37 }
0x1f82   : > { %v4546_v28 = vsub.f32 %v4528_v14, %v4544_v29 }
0x1f84   : > { %v4548_v22 = vmul.f32 %v4546_v28, %v4546_v28 }
0x1f86   : > { %4550 = vadd.xlane.f32.xlu1 %v4548_v22 }
0x1f87   : > { %v4543_v32 = vpop.xlane.xlu2 %4542 }
0x1f88   : > { %v4545_v33 = vmul.f32 %v4543_v32, %v7228_v37 }
0x1f8a   : > { %v4547_v44 = vsub.f32 %v4531_v21, %v4545_v33 }
0x1f8c   : > { %v4549_v48 = vmul.f32 %v4547_v44, %v4547_v44 }
0x1f8e   : > { %4552 = vadd.xlane.f32.xlu1 %v4549_v48 }
0x1f8f   : > { %v4600_v15 = vpop.permute.xlu2 %4599 }
0x1f92   : > { %v4583_v16 = vpop.permute.xlu0 %4582 }
0x1f9a   : > { %v4595_v4 = vpop.permute.xlu0 %4594 }
0x1fa7   : > { %4587 = vperm.xlu1 %6564, %v6410_v46  }
0x1ff9   : > { %v4551_v50 = vpop.xlane.xlu1 %4550 }
0x1ffa   : > { %v4554_v51 = vmul.f32 %v4551_v50, %v7228_v37 }
0x1ffc   : > { %v4556_v35 = vadd.f32 1e-05, %v4554_v51 }
0x1ffe   : > { %6812 = vrsqrt.f32 %v4556_v35  ;;  %vm4564_vm9 = vweird.f32 %v4556_v35 }
0x2001   : > { %v4553_v56 = vpop.xlane.xlu1 %4552 }
0x2002   : > { %v4555_v38 = vmul.f32 %v4553_v56, %v7228_v37 }
0x2004   : > { %v6813_v8 = vpop.eup %6812  ;;  %v4557_v20 = vadd.f32 1e-05, %v4555_v38 }
0x2005   : > { %v4559_v57 = vmul.f32 %v6813_v8, %v4556_v35  ;;  %vm4565_vm8 = vweird.f32 %v6813_v8 }
0x2006   : > { %6814 = vrsqrt.f32 %v4557_v20  ;;  %vm4566_vm10 = vmor %vm4564_vm9, %vm4565_vm8  ;;  %vm4574_vm13 = vweird.f32 %v4557_v20 }
0x2007   : > { %v4560_v45 = vmul.f32 %v6813_v8, %v4559_v57 }
0x2009   : > { %v4561_v60 = vmul.f32 0.5, %v4560_v45 }
0x200b   : > { %v4562_v62 = vsub.f32 1.5, %v4561_v60 }
0x200c   : > { %v6815_v58 = vpop.eup %6814 }
0x200d   : > { %v4563_v52 = vmul.f32 %v6813_v8, %v4562_v62  ;;  %v4569_v27 = vmul.f32 %v6815_v58, %v4557_v20  ;;  %vm4575_vm11 = vweird.f32 %v6815_v58 }
0x200e   : > { %vm4576_vm14 = vmor %vm4574_vm13, %vm4575_vm11 }
0x200f   : > { %v4567_v63 = vsel %vm4566_vm10, %v6813_v8, %v4563_v52  ;;  %v4570_v61 = vmul.f32 %v6815_v58, %v4569_v27 }
0x2010   : > { %v4578_v18 = vmul.f32 %v4567_v63, %v4546_v28 }
0x2011   : > { %v4571_v41 = vmul.f32 0.5, %v4570_v61 }
0x2012   : > { %v4590_v3 = vmul.f32 %v4583_v16, %v4578_v18 }
0x2013   : > { %v4572_v49 = vsub.f32 1.5, %v4571_v41 }
0x2014   : > { %v4602_v30 = vadd.f32 %v4595_v4, %v4590_v3 }
0x2015   : > { %v4573_v54 = vmul.f32 %v6815_v58, %v4572_v49 }
0x2016   : > { %v8260_v21 = vmul.f32 %v4602_v30, %v3622_v43 }
0x2017   : > { %v4577_v9 = vsel %vm4576_vm14, %v6815_v58, %v4573_v54 }
0x2018   : > { %v4579_v12 = vmul.f32 %v4577_v9, %v4547_v44 }
0x2019   : > { %v4588_v42 = vpop.permute.xlu1 %4587 }
0x201a   : > { %v4591_v13 = vmul.f32 %v4588_v42, %v4579_v12 }
0x201c   : > { %v4603_v14 = vadd.f32 %v4600_v15, %v4591_v13 }
0x201e   : > { %v8262_v6 = vmul.f32 %v4603_v14, %v3623_v5 }
0x2020   : > { %v4606_v47 = vadd.f32 %v8262_v6, %v8260_v21 }
0x2022   : > { %v4607_v23 = vrot.slane %v4606_v47, 4 }
0x2024   : > { %v4608_v0 = vadd.f32 %v4607_v23, %v4606_v47 }
0x2026   : > { %v4609_v19 = vrot.slane %v4608_v0, 2 }
0x2028   : > { %v4610_v36 = vadd.f32 %v4609_v19, %v4608_v0 }
0x202a   : > { %v4611_v29 = vrot.slane %v4610_v36, 1 }
0x202c   : > { %v4612_v28 = vadd.f32 %v4611_v29, %v4610_v36 }
0x202e   : > { %v6413_v22 = vadd.f32 -1.0, %v4612_v28 }
0x2030   : > { %v4614_v55 = vmul.f32 0.0625, %v6413_v22 }
0x2032   : > { %vm4615_vm15 = vcmp.gt.f32.partialorder %v8260_v21, %v4614_v55  ;;  %vm4616_vm1 = vcmp.gt.f32.partialorder %v8262_v6, %v4614_v55 }
0x2033   : > { %v6414_v53 = vsel %vm4615_vm15, 1.0, %v7044_v39  ;;  %v6415_v2 = vsel %vm4616_vm1, 1.0, %v7044_v39 }
0x2034   : > { %v4621_v24 = vadd.f32 %v6415_v2, %v6414_v53  ;;  %v4628_v32 = vmul.f32 %v6414_v53, %v8260_v21  ;;  %v4629_v33 = vmul.f32 %v6415_v2, %v8262_v6 }
0x2036   : > { %v4622_v44 = vrot.slane %v4621_v24, 4  ;;  %v4630_v48 = vadd.f32 %v4629_v33, %v4628_v32 }
0x2038   : > { %v4623_v46 = vadd.f32 %v4622_v44, %v4621_v24  ;;  %v4631_v50 = vrot.slane %v4630_v48, 4 }
0x203a   : > { %v4624_v51 = vrot.slane %v4623_v46, 2  ;;  %v4632_v56 = vadd.f32 %v4631_v50, %v4630_v48 }
0x203c   : > { %v4625_v35 = vadd.f32 %v4624_v51, %v4623_v46  ;;  %v4633_v20 = vrot.slane %v4632_v56, 2 }
0x203e   : > { %v4626_v38 = vrot.slane %v4625_v35, 1  ;;  %v4634_v57 = vadd.f32 %v4633_v20, %v4632_v56 }
0x2040   : > { %v4627_v8 = vadd.f32 %v4626_v38, %v4625_v35  ;;  %v4635_v60 = vrot.slane %v4634_v57, 1 }
0x2042   : > { %6816 = vrcp.f32 %v4627_v8  ;;  %v4649_v52 = vand.u32 2147483648, %v4627_v8  ;;  %v4636_v27 = vadd.f32 %v4635_v60, %v4634_v57  ;;  %v4647_v63 = vand.u32 2147483647, %v4627_v8 }
0x2043   : > { %vm4643_vm3 = vweird.f32 %v4627_v8 }
0x2044   : > { %v4650_v41 = vor.u32 1.1754944e-38, %v4649_v52  ;;  %v6416_v18 = vadd.f32 -1.0, %v4636_v27  ;;  %vm4648_vm5 = vcmp.eq.f32.partialorder %v4647_v63, 8.507059e+37 }
0x2048   : > { %v6817_v45 = vpop.eup %6816 }
0x2049   : > { %v4639_v62 = vmul.f32 %v6817_v45, %v4627_v8  ;;  %vm4644_vm2 = vweird.f32 %v6817_v45 }
0x204a   : > { %vm4645_vm4 = vmor %vm4643_vm3, %vm4644_vm2 }
0x204b   : > { %v4640_v58 = vsub.f32 1.0, %v4639_v62 }
0x204d   : > { %v4641_v16 = vmul.f32 %v6817_v45, %v4640_v58 }
0x204f   : > { %v4642_v61 = vadd.f32 %v6817_v45, %v4641_v16 }
0x2051   : > { %v4646_v49 = vsel %vm4645_vm4, %v6817_v45, %v4642_v61 }
0x2052   : > { %v4651_v54 = vsel %vm4648_vm5, %v4650_v41, %v4646_v49 }
0x2053   : > { %v4652_v3 = vmul.f32 %v6416_v18, %v4651_v54 }
0x2055   : > { %vm4653_vm6 = vcmp.gt.f32.partialorder %v8260_v21, %v4652_v3  ;;  %vm4654_vm7 = vcmp.gt.f32.partialorder %v8262_v6, %v4652_v3 }
0x2056   : > { %v6417_v9 = vsel %vm4653_vm6, 1.0, %v7044_v39  ;;  %v6418_v10 = vsel %vm4654_vm7, 1.0, %v7044_v39 }
0x2057   : > { %v4659_v40 = vadd.f32 %v6418_v10, %v6417_v9  ;;  %v4666_v12 = vmul.f32 %v6417_v9, %v8260_v21  ;;  %v4667_v4 = vmul.f32 %v6418_v10, %v8262_v6 }
0x2059   : > { %v4660_v42 = vrot.slane %v4659_v40, 4  ;;  %v4668_v30 = vadd.f32 %v4667_v4, %v4666_v12 }
0x205b   : > { %v4661_v13 = vadd.f32 %v4660_v42, %v4659_v40  ;;  %v4669_v15 = vrot.slane %v4668_v30, 4 }
0x205d   : > { %v4662_v5 = vrot.slane %v4661_v13, 2  ;;  %v4670_v14 = vadd.f32 %v4669_v15, %v4668_v30 }
0x205f   : > { %v4663_v43 = vadd.f32 %v4662_v5, %v4661_v13  ;;  %v4671_v0 = vrot.slane %v4670_v14, 2 }
0x2061   : > { %v4664_v47 = vrot.slane %v4663_v43, 1  ;;  %v4672_v19 = vadd.f32 %v4671_v0, %v4670_v14 }
0x2063   : > { %v4665_v23 = vadd.f32 %v4664_v47, %v4663_v43  ;;  %v4673_v29 = vrot.slane %v4672_v19, 1 }
0x2065   : > { %6818 = vrcp.f32 %v4665_v23  ;;  %v4687_v55 = vand.u32 2147483648, %v4665_v23  ;;  %v4674_v53 = vadd.f32 %v4673_v29, %v4672_v19  ;;  %v4685_v24 = vand.u32 2147483647, %v4665_v23 }
0x2066   : > { %vm4681_vm9 = vweird.f32 %v4665_v23 }
0x2067   : > { %v4688_v33 = vor.u32 1.1754944e-38, %v4687_v55  ;;  %v6419_v44 = vadd.f32 -1.0, %v4674_v53  ;;  %vm4686_vm11 = vcmp.eq.f32.partialorder %v4685_v24, 8.507059e+37 }
0x206b   : > { %v6819_v36 = vpop.eup %6818 }
0x206c   : > { %v4677_v28 = vmul.f32 %v6819_v36, %v4665_v23  ;;  %vm4682_vm8 = vweird.f32 %v6819_v36 }
0x206d   : > { %vm4683_vm10 = vmor %vm4681_vm9, %vm4682_vm8 }
0x206e   : > { %v4678_v22 = vsub.f32 1.0, %v4677_v28 }
0x2070   : > { %v4679_v2 = vmul.f32 %v6819_v36, %v4678_v22 }
0x2072   : > { %v4680_v32 = vadd.f32 %v6819_v36, %v4679_v2 }
0x2074   : > { %v4684_v48 = vsel %vm4683_vm10, %v6819_v36, %v4680_v32 }
0x2075   : > { %v4689_v46 = vsel %vm4686_vm11, %v4688_v33, %v4684_v48 }
0x2076   : > { %v4690_v50 = vmul.f32 %v6419_v44, %v4689_v46 }
0x2078   : > { %vm4691_vm13 = vcmp.gt.f32.partialorder %v8260_v21, %v4690_v50  ;;  %vm4692_vm14 = vcmp.gt.f32.partialorder %v8262_v6, %v4690_v50 }
0x2079   : > { %v6420_v51 = vsel %vm4691_vm13, 1.0, %v7044_v39  ;;  %v6421_v35 = vsel %vm4692_vm14, 1.0, %v7044_v39 }
0x207a   : > { %v4697_v56 = vadd.f32 %v6421_v35, %v6420_v51  ;;  %v4704_v38 = vmul.f32 %v6420_v51, %v8260_v21  ;;  %v4705_v8 = vmul.f32 %v6421_v35, %v8262_v6 }
0x207c   : > { %v4698_v20 = vrot.slane %v4697_v56, 4  ;;  %v4706_v57 = vadd.f32 %v4705_v8, %v4704_v38 }
0x207e   : > { %v4699_v45 = vadd.f32 %v4698_v20, %v4697_v56  ;;  %v4707_v60 = vrot.slane %v4706_v57, 4 }
0x2080   : > { %v4700_v62 = vrot.slane %v4699_v45, 2  ;;  %v4708_v52 = vadd.f32 %v4707_v60, %v4706_v57 }
0x2082   : > { %v4701_v58 = vadd.f32 %v4700_v62, %v4699_v45  ;;  %v4709_v63 = vrot.slane %v4708_v52, 2 }
0x2084   : > { %v4702_v27 = vrot.slane %v4701_v58, 1  ;;  %v4710_v61 = vadd.f32 %v4709_v63, %v4708_v52 }
0x2086   : > { %v4703_v16 = vadd.f32 %v4702_v27, %v4701_v58  ;;  %v4711_v18 = vrot.slane %v4710_v61, 1 }
0x2088   : > { %6820 = vrcp.f32 %v4703_v16  ;;  %v4725_v3 = vand.u32 2147483648, %v4703_v16  ;;  %v4712_v9 = vadd.f32 %v4711_v18, %v4710_v61  ;;  %v4723_v40 = vand.u32 2147483647, %v4703_v16 }
0x2089   : > { %vm4719_vm1 = vweird.f32 %v4703_v16 }
0x208a   : > { %v4726_v4 = vor.u32 1.1754944e-38, %v4725_v3  ;;  %v6422_v42 = vadd.f32 -1.0, %v4712_v9  ;;  %vm4724_vm3 = vcmp.eq.f32.partialorder %v4723_v40, 8.507059e+37 }
0x208e   : > { %v6821_v41 = vpop.eup %6820 }
0x208f   : > { %v4715_v49 = vmul.f32 %v6821_v41, %v4703_v16  ;;  %vm4720_vm15 = vweird.f32 %v6821_v41 }
0x2090   : > { %vm4721_vm2 = vmor %vm4719_vm1, %vm4720_vm15 }
0x2091   : > { %v4716_v54 = vsub.f32 1.0, %v4715_v49 }
0x2093   : > { %v4717_v10 = vmul.f32 %v6821_v41, %v4716_v54 }
0x2095   : > { %v4718_v12 = vadd.f32 %v6821_v41, %v4717_v10 }
0x2097   : > { %v4722_v30 = vsel %vm4721_vm2, %v6821_v41, %v4718_v12 }
0x2098   : > { %v4727_v13 = vsel %vm4724_vm3, %v4726_v4, %v4722_v30 }
0x2099   : > { %v4728_v15 = vmul.f32 %v6422_v42, %v4727_v13 }
0x209b   : > { %vm4729_vm4 = vcmp.gt.f32.partialorder %v8260_v21, %v4728_v15  ;;  %vm4730_vm5 = vcmp.gt.f32.partialorder %v8262_v6, %v4728_v15 }
0x209c   : > { %v6423_v5 = vsel %vm4729_vm4, 1.0, %v7044_v39  ;;  %v6424_v43 = vsel %vm4730_vm5, 1.0, %v7044_v39 }
0x209d   : > { %v4735_v14 = vadd.f32 %v6424_v43, %v6423_v5  ;;  %v4742_v47 = vmul.f32 %v6423_v5, %v8260_v21  ;;  %v4743_v23 = vmul.f32 %v6424_v43, %v8262_v6 }
0x209f   : > { %v4736_v0 = vrot.slane %v4735_v14, 4  ;;  %v4744_v19 = vadd.f32 %v4743_v23, %v4742_v47 }
0x20a1   : > { %v4737_v36 = vadd.f32 %v4736_v0, %v4735_v14  ;;  %v4745_v29 = vrot.slane %v4744_v19, 4 }
0x20a3   : > { %v4738_v28 = vrot.slane %v4737_v36, 2  ;;  %v4746_v55 = vadd.f32 %v4745_v29, %v4744_v19 }
0x20a5   : > { %v4739_v22 = vadd.f32 %v4738_v28, %v4737_v36  ;;  %v4747_v24 = vrot.slane %v4746_v55, 2 }
0x20a7   : > { %v4740_v53 = vrot.slane %v4739_v22, 1  ;;  %v4748_v32 = vadd.f32 %v4747_v24, %v4746_v55 }
0x20a9   : > { %v4741_v2 = vadd.f32 %v4740_v53, %v4739_v22  ;;  %v4749_v44 = vrot.slane %v4748_v32, 1 }
0x20ab   : > { %6822 = vrcp.f32 %v4741_v2  ;;  %v4763_v50 = vand.u32 2147483648, %v4741_v2  ;;  %v4750_v51 = vadd.f32 %v4749_v44, %v4748_v32  ;;  %v4761_v56 = vand.u32 2147483647, %v4741_v2 }
0x20ac   : > { %vm4757_vm7 = vweird.f32 %v4741_v2 }
0x20ad   : > { %v4764_v8 = vor.u32 1.1754944e-38, %v4763_v50  ;;  %v6425_v20 = vadd.f32 -1.0, %v4750_v51  ;;  %vm4762_vm9 = vcmp.eq.f32.partialorder %v4761_v56, 8.507059e+37 }
0x20b1   : > { %v6823_v33 = vpop.eup %6822 }
0x20b2   : > { %v4753_v48 = vmul.f32 %v6823_v33, %v4741_v2  ;;  %vm4758_vm6 = vweird.f32 %v6823_v33 }
0x20b3   : > { %vm4759_vm8 = vmor %vm4757_vm7, %vm4758_vm6 }
0x20b4   : > { %v4754_v46 = vsub.f32 1.0, %v4753_v48 }
0x20b6   : > { %v4755_v35 = vmul.f32 %v6823_v33, %v4754_v46 }
0x20b8   : > { %v4756_v38 = vadd.f32 %v6823_v33, %v4755_v35 }
0x20ba   : > { %v4760_v57 = vsel %vm4759_vm8, %v6823_v33, %v4756_v38 }
0x20bb   : > { %v4765_v45 = vsel %vm4762_vm9, %v4764_v8, %v4760_v57 }
0x20bc   : > { %v4766_v60 = vmul.f32 %v6425_v20, %v4765_v45 }
0x20be   : > { %vm4767_vm10 = vcmp.gt.f32.partialorder %v8260_v21, %v4766_v60  ;;  %vm4768_vm11 = vcmp.gt.f32.partialorder %v8262_v6, %v4766_v60 }
0x20bf   : > { %v6426_v62 = vsel %vm4767_vm10, 1.0, %v7044_v39  ;;  %v6427_v58 = vsel %vm4768_vm11, 1.0, %v7044_v39 }
0x20c0   : > { %v4773_v52 = vadd.f32 %v6427_v58, %v6426_v62  ;;  %v4780_v27 = vmul.f32 %v6426_v62, %v8260_v21  ;;  %v4781_v16 = vmul.f32 %v6427_v58, %v8262_v6 }
0x20c2   : > { %v4774_v63 = vrot.slane %v4773_v52, 4  ;;  %v4782_v61 = vadd.f32 %v4781_v16, %v4780_v27 }
0x20c4   : > { %v4775_v41 = vadd.f32 %v4774_v63, %v4773_v52  ;;  %v4783_v18 = vrot.slane %v4782_v61, 4 }
0x20c6   : > { %v4776_v49 = vrot.slane %v4775_v41, 2  ;;  %v4784_v3 = vadd.f32 %v4783_v18, %v4782_v61 }
0x20c8   : > { %v4777_v54 = vadd.f32 %v4776_v49, %v4775_v41  ;;  %v4785_v40 = vrot.slane %v4784_v3, 2 }
0x20ca   : > { %v4778_v9 = vrot.slane %v4777_v54, 1  ;;  %v4786_v12 = vadd.f32 %v4785_v40, %v4784_v3 }
0x20cc   : > { %v4779_v10 = vadd.f32 %v4778_v9, %v4777_v54  ;;  %v4787_v42 = vrot.slane %v4786_v12, 1 }
0x20ce   : > { %6824 = vrcp.f32 %v4779_v10  ;;  %v4801_v15 = vand.u32 2147483648, %v4779_v10  ;;  %v4788_v5 = vadd.f32 %v4787_v42, %v4786_v12  ;;  %v4799_v14 = vand.u32 2147483647, %v4779_v10 }
0x20cf   : > { %vm4795_vm14 = vweird.f32 %v4779_v10 }
0x20d0   : > { %v4802_v23 = vor.u32 1.1754944e-38, %v4801_v15  ;;  %v6428_v0 = vadd.f32 -1.0, %v4788_v5  ;;  %vm4800_vm1 = vcmp.eq.f32.partialorder %v4799_v14, 8.507059e+37 }
0x20d4   : > { %v6825_v4 = vpop.eup %6824 }
0x20d5   : > { %v4791_v30 = vmul.f32 %v6825_v4, %v4779_v10  ;;  %vm4796_vm13 = vweird.f32 %v6825_v4 }
0x20d6   : > { %vm4797_vm15 = vmor %vm4795_vm14, %vm4796_vm13 }
0x20d7   : > { %v4792_v13 = vsub.f32 1.0, %v4791_v30 }
0x20d9   : > { %v4793_v43 = vmul.f32 %v6825_v4, %v4792_v13 }
0x20db   : > { %v4794_v47 = vadd.f32 %v6825_v4, %v4793_v43 }
0x20dd   : > { %v4798_v19 = vsel %vm4797_vm15, %v6825_v4, %v4794_v47 }
0x20de   : > { %v4803_v36 = vsel %vm4800_vm1, %v4802_v23, %v4798_v19 }
0x20df   : > { %v4804_v29 = vmul.f32 %v6428_v0, %v4803_v36 }
0x20e1   : > { %vm4805_vm2 = vcmp.gt.f32.partialorder %v8260_v21, %v4804_v29  ;;  %vm4806_vm3 = vcmp.gt.f32.partialorder %v8262_v6, %v4804_v29 }
0x20e2   : > { %v6429_v28 = vsel %vm4805_vm2, 1.0, %v7044_v39  ;;  %v6430_v22 = vsel %vm4806_vm3, 1.0, %v7044_v39 }
0x20e3   : > { %v4811_v55 = vadd.f32 %v6430_v22, %v6429_v28  ;;  %v4818_v53 = vmul.f32 %v6429_v28, %v8260_v21  ;;  %v4819_v2 = vmul.f32 %v6430_v22, %v8262_v6 }
0x20e5   : > { %v4812_v24 = vrot.slane %v4811_v55, 4  ;;  %v4820_v32 = vadd.f32 %v4819_v2, %v4818_v53 }
0x20e7   : > { %v4813_v33 = vadd.f32 %v4812_v24, %v4811_v55  ;;  %v4821_v44 = vrot.slane %v4820_v32, 4 }
0x20e9   : > { %v4814_v48 = vrot.slane %v4813_v33, 2  ;;  %v4822_v50 = vadd.f32 %v4821_v44, %v4820_v32 }
0x20eb   : > { %v4815_v46 = vadd.f32 %v4814_v48, %v4813_v33  ;;  %v4823_v56 = vrot.slane %v4822_v50, 2 }
0x20ed   : > { %v4816_v51 = vrot.slane %v4815_v46, 1  ;;  %v4824_v38 = vadd.f32 %v4823_v56, %v4822_v50 }
0x20ef   : > { %v4817_v35 = vadd.f32 %v4816_v51, %v4815_v46  ;;  %v4825_v20 = vrot.slane %v4824_v38, 1 }
0x20f1   : > { %6826 = vrcp.f32 %v4817_v35  ;;  %v4839_v60 = vand.u32 2147483648, %v4817_v35  ;;  %v4826_v62 = vadd.f32 %v4825_v20, %v4824_v38  ;;  %v4837_v52 = vand.u32 2147483647, %v4817_v35 }
0x20f2   : > { %vm4833_vm5 = vweird.f32 %v4817_v35 }
0x20f3   : > { %v4840_v16 = vor.u32 1.1754944e-38, %v4839_v60  ;;  %v6431_v63 = vadd.f32 -1.0, %v4826_v62  ;;  %vm4838_vm7 = vcmp.eq.f32.partialorder %v4837_v52, 8.507059e+37 }
0x20f7   : > { %v6827_v8 = vpop.eup %6826 }
0x20f8   : > { %v4829_v57 = vmul.f32 %v6827_v8, %v4817_v35  ;;  %vm4834_vm4 = vweird.f32 %v6827_v8 }
0x20f9   : > { %vm4835_vm6 = vmor %vm4833_vm5, %vm4834_vm4 }
0x20fa   : > { %v4830_v45 = vsub.f32 1.0, %v4829_v57 }
0x20fc   : > { %v4831_v58 = vmul.f32 %v6827_v8, %v4830_v45 }
0x20fe   : > { %v4832_v27 = vadd.f32 %v6827_v8, %v4831_v58 }
0x2100   : > { %v4836_v61 = vsel %vm4835_vm6, %v6827_v8, %v4832_v27 }
0x2101   : > { %v4841_v41 = vsel %vm4838_vm7, %v4840_v16, %v4836_v61 }
0x2102   : > { %v4842_v18 = vmul.f32 %v6431_v63, %v4841_v41 }
0x2104   : > { %vm4843_vm8 = vcmp.gt.f32.partialorder %v8260_v21, %v4842_v18  ;;  %vm4844_vm9 = vcmp.gt.f32.partialorder %v8262_v6, %v4842_v18 }
0x2105   : > { %v6432_v49 = vsel %vm4843_vm8, 1.0, %v7044_v39  ;;  %v6433_v54 = vsel %vm4844_vm9, 1.0, %v7044_v39 }
0x2106   : > { %v4849_v3 = vadd.f32 %v6433_v54, %v6432_v49  ;;  %v4856_v9 = vmul.f32 %v6432_v49, %v8260_v21  ;;  %v4857_v10 = vmul.f32 %v6433_v54, %v8262_v6 }
0x2108   : > { %v4850_v40 = vrot.slane %v4849_v3, 4  ;;  %v4858_v12 = vadd.f32 %v4857_v10, %v4856_v9 }
0x210a   : > { %v4851_v4 = vadd.f32 %v4850_v40, %v4849_v3  ;;  %v4859_v42 = vrot.slane %v4858_v12, 4 }
0x210c   : > { %v4852_v30 = vrot.slane %v4851_v4, 2  ;;  %v4860_v15 = vadd.f32 %v4859_v42, %v4858_v12 }
0x210e   : > { %v4853_v13 = vadd.f32 %v4852_v30, %v4851_v4  ;;  %v4861_v14 = vrot.slane %v4860_v15, 2 }
0x2110   : > { %v4854_v5 = vrot.slane %v4853_v13, 1  ;;  %v4862_v47 = vadd.f32 %v4861_v14, %v4860_v15 }
0x2112   : > { %v4855_v43 = vadd.f32 %v4854_v5, %v4853_v13  ;;  %v4863_v0 = vrot.slane %v4862_v47, 1 }
0x2114   : > { %6828 = vrcp.f32 %v4855_v43  ;;  %v4877_v29 = vand.u32 2147483648, %v4855_v43  ;;  %v4864_v28 = vadd.f32 %v4863_v0, %v4862_v47  ;;  %v4875_v55 = vand.u32 2147483647, %v4855_v43 }
0x2115   : > { %vm4871_vm11 = vweird.f32 %v4855_v43 }
0x2116   : > { %v4878_v2 = vor.u32 1.1754944e-38, %v4877_v29  ;;  %v6434_v24 = vadd.f32 -1.0, %v4864_v28  ;;  %vm4876_vm14 = vcmp.eq.f32.partialorder %v4875_v55, 8.507059e+37 }
0x211a   : > { %v6829_v23 = vpop.eup %6828 }
0x211b   : > { %v4867_v19 = vmul.f32 %v6829_v23, %v4855_v43  ;;  %vm4872_vm10 = vweird.f32 %v6829_v23 }
0x211c   : > { %vm4873_vm13 = vmor %vm4871_vm11, %vm4872_vm10 }
0x211d   : > { %v4868_v36 = vsub.f32 1.0, %v4867_v19 }
0x211f   : > { %v4869_v22 = vmul.f32 %v6829_v23, %v4868_v36 }
0x2121   : > { %v4870_v53 = vadd.f32 %v6829_v23, %v4869_v22 }
0x2123   : > { %v4874_v32 = vsel %vm4873_vm13, %v6829_v23, %v4870_v53 }
0x2124   : > { %v4879_v33 = vsel %vm4876_vm14, %v4878_v2, %v4874_v32 }
0x2125   : > { %v4880_v44 = vmul.f32 %v6434_v24, %v4879_v33 }
0x2127   : > { %vm4881_vm15 = vcmp.gt.f32.partialorder %v8260_v21, %v4880_v44  ;;  %vm4882_vm1 = vcmp.gt.f32.partialorder %v8262_v6, %v4880_v44 }
0x2128   : > { %v6435_v48 = vsel %vm4881_vm15, 1.0, %v7044_v39  ;;  %v6436_v46 = vsel %vm4882_vm1, 1.0, %v7044_v39 }
0x2129   : > { %v4887_v50 = vadd.f32 %v6436_v46, %v6435_v48  ;;  %v4894_v51 = vmul.f32 %v6435_v48, %v8260_v21  ;;  %v4895_v35 = vmul.f32 %v6436_v46, %v8262_v6 }
0x212b   : > { %v4888_v56 = vrot.slane %v4887_v50, 4  ;;  %v4896_v38 = vadd.f32 %v4895_v35, %v4894_v51 }
0x212d   : > { %v4889_v8 = vadd.f32 %v4888_v56, %v4887_v50  ;;  %v4897_v20 = vrot.slane %v4896_v38, 4 }
0x212f   : > { %v4890_v57 = vrot.slane %v4889_v8, 2  ;;  %v4898_v60 = vadd.f32 %v4897_v20, %v4896_v38 }
0x2131   : > { %v4891_v45 = vadd.f32 %v4890_v57, %v4889_v8  ;;  %v4899_v52 = vrot.slane %v4898_v60, 2 }
0x2133   : > { %v4892_v62 = vrot.slane %v4891_v45, 1  ;;  %v4900_v27 = vadd.f32 %v4899_v52, %v4898_v60 }
0x2135   : > { %v4893_v58 = vadd.f32 %v4892_v62, %v4891_v45  ;;  %v4901_v63 = vrot.slane %v4900_v27, 1 }
0x2137   : > { %6830 = vrcp.f32 %v4893_v58  ;;  %v4915_v18 = vand.u32 2147483648, %v4893_v58  ;;  %v4902_v49 = vadd.f32 %v4901_v63, %v4900_v27  ;;  %v4913_v3 = vand.u32 2147483647, %v4893_v58 }
0x2138   : > { %vm4909_vm3 = vweird.f32 %v4893_v58 }
0x2139   : > { %v4916_v10 = vor.u32 1.1754944e-38, %v4915_v18  ;;  %v6437_v40 = vadd.f32 -1.0, %v4902_v49  ;;  %vm4914_vm5 = vcmp.eq.f32.partialorder %v4913_v3, 8.507059e+37 }
0x213d   : > { %v6831_v16 = vpop.eup %6830 }
0x213e   : > { %v4905_v61 = vmul.f32 %v6831_v16, %v4893_v58  ;;  %vm4910_vm2 = vweird.f32 %v6831_v16 }
0x213f   : > { %vm4911_vm4 = vmor %vm4909_vm3, %vm4910_vm2 }
0x2140   : > { %v4906_v41 = vsub.f32 1.0, %v4905_v61 }
0x2142   : > { %v4907_v54 = vmul.f32 %v6831_v16, %v4906_v41 }
0x2144   : > { %v4908_v9 = vadd.f32 %v6831_v16, %v4907_v54 }
0x2146   : > { %v4912_v12 = vsel %vm4911_vm4, %v6831_v16, %v4908_v9 }
0x2147   : > { %v4917_v4 = vsel %vm4914_vm5, %v4916_v10, %v4912_v12 }
0x2148   : > { %v4918_v42 = vmul.f32 %v6437_v40, %v4917_v4 }
0x214a   : > { %vm4919_vm6 = vcmp.gt.f32.partialorder %v8260_v21, %v4918_v42  ;;  %vm4920_vm7 = vcmp.gt.f32.partialorder %v8262_v6, %v4918_v42 }
0x214b   : > { %v6438_v30 = vsel %vm4919_vm6, 1.0, %v7044_v39  ;;  %v6439_v13 = vsel %vm4920_vm7, 1.0, %v7044_v39 }
0x214c   : > { %v4925_v15 = vadd.f32 %v6439_v13, %v6438_v30  ;;  %v4932_v5 = vmul.f32 %v6438_v30, %v8260_v21  ;;  %v4933_v43 = vmul.f32 %v6439_v13, %v8262_v6 }
0x214e   : > { %v4926_v14 = vrot.slane %v4925_v15, 4  ;;  %v4934_v47 = vadd.f32 %v4933_v43, %v4932_v5 }
0x2150   : > { %v4927_v23 = vadd.f32 %v4926_v14, %v4925_v15  ;;  %v4935_v0 = vrot.slane %v4934_v47, 4 }
0x2152   : > { %v4928_v19 = vrot.slane %v4927_v23, 2  ;;  %v4936_v29 = vadd.f32 %v4935_v0, %v4934_v47 }
0x2154   : > { %v4929_v36 = vadd.f32 %v4928_v19, %v4927_v23  ;;  %v4937_v55 = vrot.slane %v4936_v29, 2 }
0x2156   : > { %v4930_v28 = vrot.slane %v4929_v36, 1  ;;  %v4938_v53 = vadd.f32 %v4937_v55, %v4936_v29 }
0x2158   : > { %v4931_v22 = vadd.f32 %v4930_v28, %v4929_v36  ;;  %v4939_v24 = vrot.slane %v4938_v53, 1 }
0x215a   : > { %6832 = vrcp.f32 %v4931_v22  ;;  %v4953_v44 = vand.u32 2147483648, %v4931_v22  ;;  %v4940_v48 = vadd.f32 %v4939_v24, %v4938_v53  ;;  %v4951_v50 = vand.u32 2147483647, %v4931_v22 }
0x215b   : > { %vm4947_vm9 = vweird.f32 %v4931_v22 }
0x215c   : > { %v4954_v35 = vor.u32 1.1754944e-38, %v4953_v44  ;;  %v6440_v56 = vadd.f32 -1.0, %v4940_v48  ;;  %vm4952_vm11 = vcmp.eq.f32.partialorder %v4951_v50, 8.507059e+37 }
0x2160   : > { %v6833_v2 = vpop.eup %6832 }
0x2161   : > { %v4943_v32 = vmul.f32 %v6833_v2, %v4931_v22  ;;  %vm4948_vm8 = vweird.f32 %v6833_v2 }
0x2162   : > { %vm4949_vm10 = vmor %vm4947_vm9, %vm4948_vm8 }
0x2163   : > { %v4944_v33 = vsub.f32 1.0, %v4943_v32 }
0x2165   : > { %v4945_v46 = vmul.f32 %v6833_v2, %v4944_v33 }
0x2167   : > { %v4946_v51 = vadd.f32 %v6833_v2, %v4945_v46 }
0x2169   : > { %v4950_v38 = vsel %vm4949_vm10, %v6833_v2, %v4946_v51 }
0x216a   : > { %v4955_v8 = vsel %vm4952_vm11, %v4954_v35, %v4950_v38 }
0x216b   : > { %v4956_v20 = vmul.f32 %v6440_v56, %v4955_v8 }
0x216d   : > { %vm4957_vm13 = vcmp.gt.f32.partialorder %v8260_v21, %v4956_v20  ;;  %vm4958_vm14 = vcmp.gt.f32.partialorder %v8262_v6, %v4956_v20 }
0x216e   : > { %v6441_v57 = vsel %vm4957_vm13, 1.0, %v7044_v39  ;;  %v6442_v45 = vsel %vm4958_vm14, 1.0, %v7044_v39 }
0x216f   : > { %v4963_v60 = vadd.f32 %v6442_v45, %v6441_v57  ;;  %v4970_v62 = vmul.f32 %v6441_v57, %v8260_v21  ;;  %v4971_v58 = vmul.f32 %v6442_v45, %v8262_v6 }
0x2171   : > { %v4964_v52 = vrot.slane %v4963_v60, 4  ;;  %v4972_v27 = vadd.f32 %v4971_v58, %v4970_v62 }
0x2173   : > { %v4965_v16 = vadd.f32 %v4964_v52, %v4963_v60  ;;  %v4973_v63 = vrot.slane %v4972_v27, 4 }
0x2175   : > { %v4966_v61 = vrot.slane %v4965_v16, 2  ;;  %v4974_v18 = vadd.f32 %v4973_v63, %v4972_v27 }
0x2177   : > { %v4967_v41 = vadd.f32 %v4966_v61, %v4965_v16  ;;  %v4975_v3 = vrot.slane %v4974_v18, 2 }
0x2179   : > { %v4968_v49 = vrot.slane %v4967_v41, 1  ;;  %v4976_v9 = vadd.f32 %v4975_v3, %v4974_v18 }
0x217b   : > { %v4969_v54 = vadd.f32 %v4968_v49, %v4967_v41  ;;  %v4977_v40 = vrot.slane %v4976_v9, 1 }
0x217d   : > { %6834 = vrcp.f32 %v4969_v54  ;;  %v4991_v42 = vand.u32 2147483648, %v4969_v54  ;;  %v4978_v30 = vadd.f32 %v4977_v40, %v4976_v9  ;;  %v4989_v15 = vand.u32 2147483647, %v4969_v54 }
0x217e   : > { %vm4985_vm1 = vweird.f32 %v4969_v54 }
0x217f   : > { %v4992_v43 = vor.u32 1.1754944e-38, %v4991_v42  ;;  %v6443_v14 = vadd.f32 -1.0, %v4978_v30  ;;  %vm4990_vm3 = vcmp.eq.f32.partialorder %v4989_v15, 8.507059e+37 }
0x2183   : > { %v6835_v10 = vpop.eup %6834 }
0x2184   : > { %v4981_v12 = vmul.f32 %v6835_v10, %v4969_v54  ;;  %vm4986_vm15 = vweird.f32 %v6835_v10 }
0x2185   : > { %vm4987_vm2 = vmor %vm4985_vm1, %vm4986_vm15 }
0x2186   : > { %v4982_v4 = vsub.f32 1.0, %v4981_v12 }
0x2188   : > { %v4983_v13 = vmul.f32 %v6835_v10, %v4982_v4 }
0x218a   : > { %v4984_v5 = vadd.f32 %v6835_v10, %v4983_v13 }
0x218c   : > { %v4988_v47 = vsel %vm4987_vm2, %v6835_v10, %v4984_v5 }
0x218d   : > { %v4993_v23 = vsel %vm4990_vm3, %v4992_v43, %v4988_v47 }
0x218e   : > { %v4994_v0 = vmul.f32 %v6443_v14, %v4993_v23 }
0x2190   : > { %vm4995_vm4 = vcmp.gt.f32.partialorder %v8260_v21, %v4994_v0  ;;  %vm4996_vm5 = vcmp.gt.f32.partialorder %v8262_v6, %v4994_v0 }
0x2191   : > { %v6444_v19 = vsel %vm4995_vm4, 1.0, %v7044_v39  ;;  %v6445_v36 = vsel %vm4996_vm5, 1.0, %v7044_v39 }
0x2192   : > { %v5001_v29 = vadd.f32 %v6445_v36, %v6444_v19  ;;  %v5008_v28 = vmul.f32 %v6444_v19, %v8260_v21  ;;  %v5009_v22 = vmul.f32 %v6445_v36, %v8262_v6 }
0x2194   : > { %v5002_v55 = vrot.slane %v5001_v29, 4  ;;  %v5010_v53 = vadd.f32 %v5009_v22, %v5008_v28 }
0x2196   : > { %v5003_v2 = vadd.f32 %v5002_v55, %v5001_v29  ;;  %v5011_v24 = vrot.slane %v5010_v53, 4 }
0x2198   : > { %v5004_v32 = vrot.slane %v5003_v2, 2  ;;  %v5012_v44 = vadd.f32 %v5011_v24, %v5010_v53 }
0x219a   : > { %v5005_v33 = vadd.f32 %v5004_v32, %v5003_v2  ;;  %v5013_v50 = vrot.slane %v5012_v44, 2 }
0x219c   : > { %v5006_v48 = vrot.slane %v5005_v33, 1  ;;  %v5014_v51 = vadd.f32 %v5013_v50, %v5012_v44 }
0x219e   : > { %v5007_v46 = vadd.f32 %v5006_v48, %v5005_v33  ;;  %v5015_v56 = vrot.slane %v5014_v51, 1 }
0x21a0   : > { %6836 = vrcp.f32 %v5007_v46  ;;  %v5029_v20 = vand.u32 2147483648, %v5007_v46  ;;  %v5016_v57 = vadd.f32 %v5015_v56, %v5014_v51  ;;  %v5027_v60 = vand.u32 2147483647, %v5007_v46 }
0x21a1   : > { %vm5023_vm7 = vweird.f32 %v5007_v46 }
0x21a2   : > { %v5030_v58 = vor.u32 1.1754944e-38, %v5029_v20  ;;  %v6446_v52 = vadd.f32 -1.0, %v5016_v57  ;;  %vm5028_vm9 = vcmp.eq.f32.partialorder %v5027_v60, 8.507059e+37 }
0x21a6   : > { %v6837_v35 = vpop.eup %6836 }
0x21a7   : > { %v5019_v38 = vmul.f32 %v6837_v35, %v5007_v46  ;;  %vm5024_vm6 = vweird.f32 %v6837_v35 }
0x21a8   : > { %vm5025_vm8 = vmor %vm5023_vm7, %vm5024_vm6 }
0x21a9   : > { %v5020_v8 = vsub.f32 1.0, %v5019_v38 }
0x21ab   : > { %v5021_v45 = vmul.f32 %v6837_v35, %v5020_v8 }
0x21ad   : > { %v5022_v62 = vadd.f32 %v6837_v35, %v5021_v45 }
0x21af   : > { %v5026_v27 = vsel %vm5025_vm8, %v6837_v35, %v5022_v62 }
0x21b0   : > { %v5031_v16 = vsel %vm5028_vm9, %v5030_v58, %v5026_v27 }
0x21b1   : > { %v5032_v63 = vmul.f32 %v6446_v52, %v5031_v16 }
0x21b3   : > { %vm5033_vm10 = vcmp.gt.f32.partialorder %v8260_v21, %v5032_v63  ;;  %vm5034_vm11 = vcmp.gt.f32.partialorder %v8262_v6, %v5032_v63 }
0x21b4   : > { %v6447_v61 = vsel %vm5033_vm10, 1.0, %v7044_v39  ;;  %v6448_v41 = vsel %vm5034_vm11, 1.0, %v7044_v39 }
0x21b5   : > { %v5039_v18 = vadd.f32 %v6448_v41, %v6447_v61  ;;  %v5046_v49 = vmul.f32 %v6447_v61, %v8260_v21  ;;  %v5047_v54 = vmul.f32 %v6448_v41, %v8262_v6 }
0x21b7   : > { %v5040_v3 = vrot.slane %v5039_v18, 4  ;;  %v5048_v9 = vadd.f32 %v5047_v54, %v5046_v49 }
0x21b9   : > { %v5041_v10 = vadd.f32 %v5040_v3, %v5039_v18  ;;  %v5049_v40 = vrot.slane %v5048_v9, 4 }
0x21bb   : > { %v5042_v12 = vrot.slane %v5041_v10, 2  ;;  %v5050_v42 = vadd.f32 %v5049_v40, %v5048_v9 }
0x21bd   : > { %v5043_v4 = vadd.f32 %v5042_v12, %v5041_v10  ;;  %v5051_v15 = vrot.slane %v5050_v42, 2 }
0x21bf   : > { %v5044_v30 = vrot.slane %v5043_v4, 1  ;;  %v5052_v5 = vadd.f32 %v5051_v15, %v5050_v42 }
0x21c1   : > { %v5045_v13 = vadd.f32 %v5044_v30, %v5043_v4  ;;  %v5053_v14 = vrot.slane %v5052_v5, 1 }
0x21c3   : > { %6838 = vrcp.f32 %v5045_v13  ;;  %v5067_v0 = vand.u32 2147483648, %v5045_v13  ;;  %v5054_v19 = vadd.f32 %v5053_v14, %v5052_v5  ;;  %v5065_v29 = vand.u32 2147483647, %v5045_v13 }
0x21c4   : > { %vm5061_vm14 = vweird.f32 %v5045_v13 }
0x21c5   : > { %v5068_v22 = vor.u32 1.1754944e-38, %v5067_v0  ;;  %v6449_v55 = vadd.f32 -1.0, %v5054_v19  ;;  %vm5066_vm1 = vcmp.eq.f32.partialorder %v5065_v29, 8.507059e+37 }
0x21c9   : > { %v6839_v43 = vpop.eup %6838 }
0x21ca   : > { %v5057_v47 = vmul.f32 %v6839_v43, %v5045_v13  ;;  %vm5062_vm13 = vweird.f32 %v6839_v43 }
0x21cb   : > { %vm5063_vm15 = vmor %vm5061_vm14, %vm5062_vm13 }
0x21cc   : > { %v5058_v23 = vsub.f32 1.0, %v5057_v47 }
0x21ce   : > { %v5059_v36 = vmul.f32 %v6839_v43, %v5058_v23 }
0x21d0   : > { %v5060_v28 = vadd.f32 %v6839_v43, %v5059_v36 }
0x21d2   : > { %v5064_v53 = vsel %vm5063_vm15, %v6839_v43, %v5060_v28 }
0x21d3   : > { %v5069_v2 = vsel %vm5066_vm1, %v5068_v22, %v5064_v53 }
0x21d4   : > { %v5070_v24 = vmul.f32 %v6449_v55, %v5069_v2 }
0x21d6   : > { %vm5071_vm2 = vcmp.gt.f32.partialorder %v8260_v21, %v5070_v24  ;;  %vm5072_vm3 = vcmp.gt.f32.partialorder %v8262_v6, %v5070_v24 }
0x21d7   : > { %v6450_v32 = vsel %vm5071_vm2, 1.0, %v7044_v39  ;;  %v6451_v33 = vsel %vm5072_vm3, 1.0, %v7044_v39 }
0x21d8   : > { %v5077_v44 = vadd.f32 %v6451_v33, %v6450_v32  ;;  %v5084_v48 = vmul.f32 %v6450_v32, %v8260_v21  ;;  %v5085_v46 = vmul.f32 %v6451_v33, %v8262_v6 }
0x21da   : > { %v5078_v50 = vrot.slane %v5077_v44, 4  ;;  %v5086_v51 = vadd.f32 %v5085_v46, %v5084_v48 }
0x21dc   : > { %v5079_v35 = vadd.f32 %v5078_v50, %v5077_v44  ;;  %v5087_v56 = vrot.slane %v5086_v51, 4 }
0x21de   : > { %v5080_v38 = vrot.slane %v5079_v35, 2  ;;  %v5088_v20 = vadd.f32 %v5087_v56, %v5086_v51 }
0x21e0   : > { %v5081_v8 = vadd.f32 %v5080_v38, %v5079_v35  ;;  %v5089_v60 = vrot.slane %v5088_v20, 2 }
0x21e2   : > { %v5082_v57 = vrot.slane %v5081_v8, 1  ;;  %v5090_v62 = vadd.f32 %v5089_v60, %v5088_v20 }
0x21e4   : > { %v5083_v45 = vadd.f32 %v5082_v57, %v5081_v8  ;;  %v5091_v52 = vrot.slane %v5090_v62, 1 }
0x21e6   : > { %6840 = vrcp.f32 %v5083_v45  ;;  %v5105_v63 = vand.u32 2147483648, %v5083_v45  ;;  %v5092_v61 = vadd.f32 %v5091_v52, %v5090_v62  ;;  %v5103_v18 = vand.u32 2147483647, %v5083_v45 }
0x21e7   : > { %vm5099_vm5 = vweird.f32 %v5083_v45 }
0x21e8   : > { %v5106_v54 = vor.u32 1.1754944e-38, %v5105_v63  ;;  %v6452_v3 = vadd.f32 -1.0, %v5092_v61  ;;  %vm5104_vm7 = vcmp.eq.f32.partialorder %v5103_v18, 8.507059e+37 }
0x21ec   : > { %v6841_v58 = vpop.eup %6840 }
0x21ed   : > { %v5095_v27 = vmul.f32 %v6841_v58, %v5083_v45  ;;  %vm5100_vm4 = vweird.f32 %v6841_v58 }
0x21ee   : > { %vm5101_vm6 = vmor %vm5099_vm5, %vm5100_vm4 }
0x21ef   : > { %v5096_v16 = vsub.f32 1.0, %v5095_v27 }
0x21f1   : > { %v5097_v41 = vmul.f32 %v6841_v58, %v5096_v16 }
0x21f3   : > { %v5098_v49 = vadd.f32 %v6841_v58, %v5097_v41 }
0x21f5   : > { %v5102_v9 = vsel %vm5101_vm6, %v6841_v58, %v5098_v49 }
0x21f6   : > { %v5107_v10 = vsel %vm5104_vm7, %v5106_v54, %v5102_v9 }
0x21f7   : > { %v5108_v40 = vmul.f32 %v6452_v3, %v5107_v10 }
0x21f9   : > { %vm5109_vm8 = vcmp.gt.f32.partialorder %v8260_v21, %v5108_v40  ;;  %vm5110_vm9 = vcmp.gt.f32.partialorder %v8262_v6, %v5108_v40 }
0x21fa   : > { %v6453_v12 = vsel %vm5109_vm8, 1.0, %v7044_v39  ;;  %v6454_v4 = vsel %vm5110_vm9, 1.0, %v7044_v39 }
0x21fb   : > { %v5115_v42 = vadd.f32 %v6454_v4, %v6453_v12  ;;  %v5122_v30 = vmul.f32 %v6453_v12, %v8260_v21  ;;  %v5123_v13 = vmul.f32 %v6454_v4, %v8262_v6 }
0x21fd   : > { %v5116_v15 = vrot.slane %v5115_v42, 4  ;;  %v5124_v5 = vadd.f32 %v5123_v13, %v5122_v30 }
0x21ff   : > { %v5117_v43 = vadd.f32 %v5116_v15, %v5115_v42  ;;  %v5125_v14 = vrot.slane %v5124_v5, 4 }
0x2201   : > { %v5118_v47 = vrot.slane %v5117_v43, 2  ;;  %v5126_v0 = vadd.f32 %v5125_v14, %v5124_v5 }
0x2203   : > { %v5119_v23 = vadd.f32 %v5118_v47, %v5117_v43  ;;  %v5127_v29 = vrot.slane %v5126_v0, 2 }
0x2205   : > { %v5120_v19 = vrot.slane %v5119_v23, 1  ;;  %v5128_v28 = vadd.f32 %v5127_v29, %v5126_v0 }
0x2207   : > { %v5121_v36 = vadd.f32 %v5120_v19, %v5119_v23  ;;  %v5129_v55 = vrot.slane %v5128_v28, 1 }
0x2209   : > { %6842 = vrcp.f32 %v5121_v36  ;;  %v5143_v24 = vand.u32 2147483648, %v5121_v36  ;;  %v5130_v32 = vadd.f32 %v5129_v55, %v5128_v28  ;;  %v5141_v44 = vand.u32 2147483647, %v5121_v36 }
0x220a   : > { %vm5137_vm11 = vweird.f32 %v5121_v36 }
0x220b   : > { %v5144_v46 = vor.u32 1.1754944e-38, %v5143_v24  ;;  %v6455_v50 = vadd.f32 -1.0, %v5130_v32  ;;  %vm5142_vm14 = vcmp.eq.f32.partialorder %v5141_v44, 8.507059e+37 }
0x220f   : > { %v6843_v22 = vpop.eup %6842 }
0x2210   : > { %v5133_v53 = vmul.f32 %v6843_v22, %v5121_v36  ;;  %vm5138_vm10 = vweird.f32 %v6843_v22 }
0x2211   : > { %vm5139_vm13 = vmor %vm5137_vm11, %vm5138_vm10 }
0x2212   : > { %v5134_v2 = vsub.f32 1.0, %v5133_v53 }
0x2214   : > { %v5135_v33 = vmul.f32 %v6843_v22, %v5134_v2 }
0x2216   : > { %v5136_v48 = vadd.f32 %v6843_v22, %v5135_v33 }
0x2218   : > { %v5140_v51 = vsel %vm5139_vm13, %v6843_v22, %v5136_v48  ;;  %v6938_v22 = vld [vmem:[%s8817_s3] sm:$0xff]  ;;  %v6940_v48 = vld [vmem:[%s8817_s3 + $0x10] sm:$0xff] }
0x2219   : > { %v5145_v35 = vsel %vm5142_vm14, %v5144_v46, %v5140_v51 }
0x221a   : > { %v5146_v56 = vmul.f32 %v6455_v50, %v5145_v35 }
0x221c   : > { %vm5147_vm15 = vcmp.gt.f32.partialorder %v8260_v21, %v5146_v56  ;;  %vm5148_vm1 = vcmp.gt.f32.partialorder %v8262_v6, %v5146_v56  ;;  %v6941_v56 = vld [vmem:[%s8817_s3 + $0x18] sm:$0xff] }
0x221d   : > { %v6456_v38 = vsel %vm5147_vm15, 1.0, %v7044_v39  ;;  %v6457_v8 = vsel %vm5148_vm1, 1.0, %v7044_v39 }
0x221e   : > { %v5153_v20 = vadd.f32 %v6457_v8, %v6456_v38  ;;  %v5160_v57 = vmul.f32 %v6456_v38, %v8260_v21  ;;  %v5161_v45 = vmul.f32 %v6457_v8, %v8262_v6 }
0x2220   : > { %v5154_v60 = vrot.slane %v5153_v20, 4  ;;  %v5162_v62 = vadd.f32 %v5161_v45, %v5160_v57 }
0x2222   : > { %v5155_v58 = vadd.f32 %v5154_v60, %v5153_v20  ;;  %v5163_v52 = vrot.slane %v5162_v62, 4  ;;  %v6462_v60 = vld [vmem:[%s8796_s6 + $0x198] sm:$0xff] }
0x2224   : > { %v5156_v27 = vrot.slane %v5155_v58, 2  ;;  %v5164_v63 = vadd.f32 %v5163_v52, %v5162_v62  ;;  %v6465_v62 = vld [vmem:[%s8797_s7 + $0x190] sm:$0xff] }
0x2226   : > { %v5157_v16 = vadd.f32 %v5156_v27, %v5155_v58  ;;  %v5165_v18 = vrot.slane %v5164_v63, 2 }
0x2228   : > { %v5158_v61 = vrot.slane %v5157_v16, 1  ;;  %v5166_v49 = vadd.f32 %v5165_v18, %v5164_v63 }
0x222a   : > { %v5159_v41 = vadd.f32 %v5158_v61, %v5157_v16  ;;  %v5167_v3 = vrot.slane %v5166_v49, 1 }
0x222c   : > { %6844 = vrcp.f32 %v5159_v41  ;;  %v5181_v10 = vand.u32 2147483648, %v5159_v41  ;;  %v5168_v40 = vadd.f32 %v5167_v3, %v5166_v49  ;;  %v5179_v4 = vand.u32 2147483647, %v5159_v41 }
0x222d   : > { %vm5175_vm3 = vweird.f32 %v5159_v41 }
0x222e   : > { %v5182_v30 = vor.u32 1.1754944e-38, %v5181_v10  ;;  %v6458_v13 = vadd.f32 -1.0, %v5168_v40  ;;  %vm5180_vm5 = vcmp.eq.f32.partialorder %v5179_v4, 8.507059e+37  ;;  %v6460_v10 = vld [vmem:[%s8796_s6 + $0x188] sm:$0xff]  ;;  %v6459_v40 = vld [vmem:[%s8796_s6 + $0x180] sm:$0xff] }
0x2232   : > { %v6845_v54 = vpop.eup %6844 }
0x2233   : > { %v5171_v39 = vmul.f32 %v6845_v54, %v5159_v41  ;;  %vm5176_vm2 = vweird.f32 %v6845_v54 }
0x2234   : > { %vm5177_vm4 = vmor %vm5175_vm3, %vm5176_vm2 }
0x2235   : > { %v5172_v9 = vsub.f32 1.0, %v5171_v39 }
0x2237   : > { %v5173_v12 = vmul.f32 %v6845_v54, %v5172_v9  ;;  %v6461_v9 = vld [vmem:[%s8796_s6 + $0x190] sm:$0xff] }
0x2239   : > { %v5174_v42 = vadd.f32 %v6845_v54, %v5173_v12  ;;  %v6464_v12 = vld [vmem:[%s8797_s7 + $0x188] sm:$0xff] }
0x223b   : > { %v5178_v15 = vsel %vm5177_vm4, %v6845_v54, %v5174_v42 }
0x223c   : > { %v5183_v5 = vsel %vm5180_vm5, %v5182_v30, %v5178_v15  ;;  %v6463_v30 = vld [vmem:[%s8797_s7 + $0x180] sm:$0xff] }
0x223d   : > { %v5184_v43 = vmul.f32 %v6458_v13, %v5183_v5 }
0x223f   : > { %v5186_v14 = vsub.f32 %v8262_v6, %v5184_v43  ;;  %v5185_v47 = vsub.f32 %v8260_v21, %v5184_v43 }
0x2241   : > { %v5188_v23 = vmax.f32 %v5186_v14, 0.0  ;;  %v5187_v0 = vmax.f32 %v5185_v47, 0.0 }
0x2243   : > { %v5190_v19 = vadd.f32 1e-15, %v5188_v23  ;;  %v5206_v36 = vmul.f32 %v5188_v23, %v7188_v11  ;;  %v5189_v29 = vadd.f32 1e-15, %v5187_v0  ;;  %v5205_v28 = vmul.f32 %v5187_v0, %v7194_v17  ;;  %v6939_v11 = vld [vmem:[%s8817_s3 + $0x8] sm:$0xff]  ;;  %s6966_s3 = scalar_lea.hbm %s8803_s13, 2 }
0x2244   : > { %p6968_p3 = scmp.lt.s32.totalorder %s6966_s3, %s6962_s2 }
0x2245   : > { %6846 = vlog2.f32 %v5190_v19  ;;  %5231 = vmatpush.msrb.mxu3 %v5206_v36 }
0x2246   : > { %6848 = vlog2.f32 %v5189_v29  ;;  %p6969_p4 = por %p6968_p3, %p6967_p2 }
0x2247   : > { %5232 = vmatpush.msrb.mxu3 %v5205_v28 }
0x2248   : > { %6467 = vmatmul.msk.f32.vlgmr.msrb.gmra.mxu3 %vm535_vm0, %v6938_v22  ;;  %p6970_p5 = pnand %p6969_p4, %p6965_p1 }
0x224b   : > { %v6847_v6 = vpop.eup %6846 }
0x224c   : > { %v6849_v21 = vpop.eup %6848  ;;  %v5194_v55 = vmul.f32 0.6931472, %v6847_v6 }
0x224d   : > { %v5192_v53 = vmul.f32 0.6931472, %v6849_v21 }
0x224e   : > { %v5196_v2 = vmul.f32 %v5194_v55, %v5188_v23 }
0x224f   : > { %v5195_v24 = vmul.f32 %v5192_v53, %v5187_v0 }
0x2250   : > { %6468 = vmatmul.msk.f32.gmra.mxu3 %vm535_vm0, %v6939_v11 }
0x2251   : > { %v5197_v17 = vadd.f32 %v5196_v2, %v5195_v24 }
0x2253   : > { %v5198_v32 = vrot.slane %v5197_v17, 4 }
0x2255   : > { %v5199_v33 = vadd.f32 %v5198_v32, %v5197_v17 }
0x2257   : > { %v5200_v44 = vrot.slane %v5199_v33, 2 }
0x2258   : > { %6469 = vmatmul.msk.f32.gmra.mxu3 %vm535_vm0, %v6940_v48 }
0x2259   : > { %v5201_v46 = vadd.f32 %v5200_v44, %v5199_v33 }
0x225b   : > { %v5202_v50 = vrot.slane %v5201_v46, 1 }
0x225d   : > { %v5203_v51 = vadd.f32 %v5202_v50, %v5201_v46 }
0x225f   : > { %v5204_v35 = vadd.f32 %v5203_v51, %v7974_v7  ;;  %v6466_v7 = vld [vmem:[%s8797_s7 + $0x198] sm:$0xff] }
0x2260   : > { %6470 = vmatmul.msk.f32.gmra.mxu3 %vm535_vm0, %v6941_v56 }
0x2261   : > { %v6015_v38 = vmul.f32 0.33333334, %v5204_v35 }
0x2263   : > { %6016 = vst [vmem:[%s8804_s24] sm:$0x1] %v6015_v38  ;;  %s6023_s24 = scalar_lea.sflag [#allocation6], %s7185_s17 }
0x22cb   : > { %v5234_v8 = vpop.f32.mrf.mxu3 }
0x22d3   : > { %v5237_v20 = vpop.f32.mrf.mxu3 }
0x22d4   : > { %5248 = vadd.xlane.f32.xlu2 %v5237_v20 }
0x22db   : > { %v5240_v57 = vpop.f32.mrf.mxu3 }
0x22dc   : > { %5250 = vadd.xlane.f32.xlu1 %v5240_v57 }
0x22e3   : > { %v5243_v45 = vpop.f32.mrf.mxu3 }
0x22e4   : > { %5252 = vadd.xlane.f32.xlu0 %v5243_v45 }
0x22ec   : > { %5367 = vperm.xlu2 %6565, %v6466_v7   ;;  %5246 = vadd.xlane.f32.xlu0 %v5234_v8 }
0x22f5   : > { %5343 = vperm.xlu1 %6564, %v6462_v60  }
0x22fd   : > { %5362 = vperm.xlu1 %6564, %v6465_v62  }
0x2347   : > { %v5249_v4 = vpop.xlane.xlu2 %5248 }
0x2348   : > { %v5255_v42 = vmul.f32 %v5249_v4, %v7228_v37 }
0x234a   : > { %v8412_v13 = vsub.f32 %v5237_v20, %v5255_v42 }
0x234c   : > { %v5263_v15 = vmul.f32 %v8412_v13, %v8412_v13 }
0x234f   : > { %v5251_v58 = vpop.xlane.xlu1 %5250  ;;  %v5368_v51 = vpop.permute.xlu2 %5367 }
0x2350   : > { %v5256_v52 = vmul.f32 %v5251_v58, %v7228_v37 }
0x2352   : > { %v5260_v27 = vsub.f32 %v5240_v57, %v5256_v52 }
0x2354   : > { %v5264_v16 = vmul.f32 %v5260_v27, %v5260_v27 }
0x2356   : > { %5270 = vadd.xlane.f32.xlu0 %v5264_v16 }
0x2357   : > { %v5253_v63 = vpop.xlane.xlu0 %5252 }
0x2358   : > { %v5257_v61 = vmul.f32 %v5253_v63, %v7228_v37 }
0x235a   : > { %v5261_v41 = vsub.f32 %v5243_v45, %v5257_v61 }
0x235c   : > { %v5265_v18 = vmul.f32 %v5261_v41, %v5261_v41 }
0x235e   : > { %5272 = vadd.xlane.f32.xlu1 %v5265_v18 }
0x235f   : > { %v5247_v49 = vpop.xlane.xlu0 %5246 }
0x2360   : > { %v5254_v54 = vmul.f32 %v5247_v49, %v7228_v37 }
0x2362   : > { %v8392_v3 = vsub.f32 %v5234_v8, %v5254_v54 }
0x2364   : > { %v5262_v39 = vmul.f32 %v8392_v3, %v8392_v3 }
0x2366   : > { %5266 = vadd.xlane.f32.xlu2 %v5262_v39 }
0x2367   : > { %v5344_v5 = vpop.permute.xlu1 %5343 }
0x236a   : > { %5338 = vperm.xlu0 %6563, %v6461_v9  }
0x236f   : > { %v5363_v43 = vpop.permute.xlu1 %5362 }
0x2377   : > { %5333 = vperm.xlu1 %6564, %v6460_v10  }
0x237f   : > { %5328 = vperm.xlu1 %6564, %v6459_v40  }
0x2387   : > { %5357 = vperm.xlu1 %6564, %v6464_v12  }
0x238f   : > { %5352 = vperm.xlu1 %6564, %v6463_v30  }
0x2394   : > { %5268 = vadd.xlane.f32.xlu0 %v5263_v15 }
0x23c9   : > { %v5271_v14 = vpop.xlane.xlu0 %5270 }
0x23ca   : > { %v5276_v47 = vmul.f32 %v5271_v14, %v7228_v37 }
0x23cc   : > { %v5280_v23 = vadd.f32 1e-05, %v5276_v47 }
0x23ce   : > { %6850 = vrsqrt.f32 %v5280_v23  ;;  %vm5308_vm7 = vweird.f32 %v5280_v23 }
0x23d1   : > { %v5273_v0 = vpop.xlane.xlu1 %5272 }
0x23d2   : > { %v5277_v19 = vmul.f32 %v5273_v0, %v7228_v37 }
0x23d4   : > { %v6851_v36 = vpop.eup %6850  ;;  %v5281_v29 = vadd.f32 1e-05, %v5277_v19 }
0x23d5   : > { %v5303_v28 = vmul.f32 %v6851_v36, %v5280_v23  ;;  %vm5309_vm6 = vweird.f32 %v6851_v36 }
0x23d6   : > { %6852 = vrsqrt.f32 %v5281_v29  ;;  %vm5310_vm8 = vmor %vm5308_vm7, %vm5309_vm6  ;;  %vm5318_vm10 = vweird.f32 %v5281_v29 }
0x23d7   : > { %v5304_v22 = vmul.f32 %v6851_v36, %v5303_v28 }
0x23d9   : > { %v5305_v6 = vmul.f32 0.5, %v5304_v22  ;;  %v5267_v20 = vpop.xlane.xlu2 %5266 }
0x23da   : > { %v5274_v7 = vmul.f32 %v5267_v20, %v7228_v37 }
0x23db   : > { %v5306_v21 = vsub.f32 1.5, %v5305_v6 }
0x23dc   : > { %v6853_v55 = vpop.eup %6852  ;;  %v5339_v50 = vpop.permute.xlu0 %5338  ;;  %v5278_v58 = vadd.f32 1e-05, %v5274_v7 }
0x23dd   : > { %v5313_v53 = vmul.f32 %v6853_v55, %v5281_v29  ;;  %v5307_v2 = vmul.f32 %v6851_v36, %v5306_v21  ;;  %vm5319_vm9 = vweird.f32 %v6853_v55 }
0x23de   : > { %vm5320_vm11 = vmor %vm5318_vm10, %vm5319_vm9  ;;  %vm5288_vm14 = vweird.f32 %v5278_v58 }
0x23df   : > { %v5314_v24 = vmul.f32 %v6853_v55, %v5313_v53  ;;  %v5311_v17 = vsel %vm5310_vm8, %v6851_v36, %v5307_v2 }
0x23e0   : > { %v5324_v44 = vmul.f32 %v5311_v17, %v5260_v27 }
0x23e1   : > { %v5315_v11 = vmul.f32 0.5, %v5314_v24 }
0x23e2   : > { %v5348_v35 = vmul.f32 %v5339_v50, %v5324_v44 }
0x23e3   : > { %v5316_v32 = vsub.f32 1.5, %v5315_v11 }
0x23e4   : > { %v5372_v38 = vadd.f32 %v5363_v43, %v5348_v35 }
0x23e5   : > { %v5317_v33 = vmul.f32 %v6853_v55, %v5316_v32 }
0x23e6   : > { %v5374_v57 = vsub.f32 0.0, %v5372_v38 }
0x23e7   : > { %v5321_v48 = vsel %vm5320_vm11, %v6853_v55, %v5317_v33 }
0x23e8   : > { %v5325_v46 = vmul.f32 %v5321_v48, %v5261_v41  ;;  %v5376_v60 = vmul.f32 1.442695, %v5374_v57 }
0x23e9   : > { %v5334_v16 = vpop.permute.xlu1 %5333 }
0x23ea   : > { %v5349_v56 = vmul.f32 %v5344_v5, %v5325_v46  ;;  %6854 = vpow2.f32 %v5376_v60  ;;  %v6942_v60 = vld [vmem:[%s8818_s4] sm:$0xff] }
0x23ec   : > { %v5373_v8 = vadd.f32 %v5368_v51, %v5349_v56 }
0x23ee   : > { %v5375_v45 = vsub.f32 0.0, %v5373_v8 }
0x23f0   : > { %v5378_v62 = vmul.f32 1.442695, %v5375_v45  ;;  %v6855_v52 = vpop.eup %6854 }
0x23f1   : > { %v5380_v61 = vadd.f32 1.0, %v6855_v52  ;;  %v5329_v10 = vpop.permute.xlu1 %5328  ;;  %v6945_v52 = vld [vmem:[%s8818_s4 + $0x18] sm:$0xff] }
0x23f2   : > { %6856 = vpow2.f32 %v5378_v62  ;;  %v6943_v62 = vld [vmem:[%s8818_s4 + $0x8] sm:$0xff] }
0x23f3   : > { %6858 = vrsqrt.f32 %v5278_v58  ;;  %vm5387_vm6 = vweird.f32 %v5380_v61  ;;  %v5393_v24 = vand.u32 2147483648, %v5380_v61  ;;  %v5391_v33 = vand.u32 2147483647, %v5380_v61 }
0x23f4   : > { %6860 = vrcp.f32 %v5380_v61 }
0x23f5   : > { %v5394_v56 = vor.u32 1.1754944e-38, %v5393_v24  ;;  %vm5392_vm10 = vcmp.eq.f32.partialorder %v5391_v33, 8.507059e+37 }
0x23f8   : > { %v6857_v27 = vpop.eup %6856 }
0x23f9   : > { %v6859_v63 = vpop.eup %6858  ;;  %v5381_v41 = vadd.f32 1.0, %v6857_v27  ;;  %v5358_v0 = vpop.permute.xlu1 %5357 }
0x23fa   : > { %v5283_v18 = vmul.f32 %v6859_v63, %v5278_v58  ;;  %v6861_v40 = vpop.eup %6860  ;;  %vm5289_vm13 = vweird.f32 %v6859_v63  ;;  %v6944_v58 = vld [vmem:[%s8818_s4 + $0x10] sm:$0xff] }
0x23fb   : > { %6862 = vrcp.f32 %v5381_v41  ;;  %v5383_v42 = vmul.f32 %v6861_v40, %v5380_v61  ;;  %vm5290_vm15 = vmor %vm5288_vm14, %vm5289_vm13  ;;  %vm5388_vm2 = vweird.f32 %v6861_v40  ;;  %v5408_v17 = vand.u32 2147483648, %v5381_v41 }
0x23fc   : > { %v5284_v39 = vmul.f32 %v6859_v63, %v5283_v18  ;;  %vm8421_vm7 = vmor %vm5387_vm6, %vm5388_vm2  ;;  %vm5402_vm8 = vweird.f32 %v5381_v41  ;;  %v5406_v48 = vand.u32 2147483647, %v5381_v41  ;;  %v6472_v18 = vld [vmem:[%s8796_s6 + $0x1a8] sm:$0xff] }
0x23fd   : > { %v5384_v14 = vsub.f32 1.0, %v5383_v42  ;;  %v5409_v38 = vor.u32 1.1754944e-38, %v5408_v17 }
0x23fe   : > { %v5285_v4 = vmul.f32 0.5, %v5284_v39  ;;  %vm5407_vm11 = vcmp.eq.f32.partialorder %v5406_v48, 8.507059e+37 }
0x23ff   : > { %v5385_v29 = vmul.f32 %v6861_v40, %v5384_v14 }
0x2400   : > { %v5286_v15 = vsub.f32 1.5, %v5285_v4 }
0x2401   : > { %v6863_v12 = vpop.eup %6862  ;;  %v5386_v53 = vadd.f32 %v6861_v40, %v5385_v29  ;;  %v5353_v46 = vpop.permute.xlu1 %5352 }
0x2402   : > { %v5398_v30 = vmul.f32 %v6863_v12, %v5381_v41  ;;  %v5287_v23 = vmul.f32 %v6859_v63, %v5286_v15  ;;  %vm5403_vm5 = vweird.f32 %v6863_v12  ;;  %v6478_v41 = vld [vmem:[%s8797_s7 + $0x1b8] sm:$0xff]  ;;  %v6473_v15 = vld [vmem:[%s8796_s6 + $0x1b0] sm:$0xff] }
0x2403   : > { %vm5404_vm9 = vmor %vm5402_vm8, %vm5403_vm5  ;;  %v5390_v50 = vsel %vm8421_vm7, %v6861_v40, %v5386_v53 }
0x2404   : > { %v5399_v47 = vsub.f32 1.0, %v5398_v30  ;;  %v5291_v22 = vsel %vm5290_vm15, %v6859_v63, %v5287_v23  ;;  %v5395_v57 = vsel %vm5392_vm10, %v5394_v56, %v5390_v50 }
0x2405   : > { %v5322_v55 = vmul.f32 %v5291_v22, %v8392_v3  ;;  %v6475_v22 = vld [vmem:[%s8797_s7 + $0x1a0] sm:$0xff] }
0x2406   : > { %v5400_v28 = vmul.f32 %v6863_v12, %v5399_v47 }
0x2407   : > { %v5269_v49 = vpop.xlane.xlu0 %5268  ;;  %v5346_v3 = vmul.f32 %v5329_v10, %v5322_v55 }
0x2408   : > { %v5275_v54 = vmul.f32 %v5269_v49, %v7228_v37  ;;  %v5401_v2 = vadd.f32 %v6863_v12, %v5400_v28  ;;  %v6471_v49 = vld [vmem:[%s8796_s6 + $0x1a0] sm:$0xff] }
0x2409   : > { %v5370_v8 = vadd.f32 %v5353_v46, %v5346_v3 }
0x240a   : > { %v5279_v9 = vadd.f32 1e-05, %v5275_v54  ;;  %v5405_v35 = vsel %vm5404_vm9, %v6863_v12, %v5401_v2  ;;  %v6476_v54 = vld [vmem:[%s8797_s7 + $0x1a8] sm:$0xff] }
0x240b   : > { %v5410_v45 = vsel %vm5407_vm11, %v5409_v38, %v5405_v35 }
0x240c   : > { %6864 = vrsqrt.f32 %v5279_v9  ;;  %vm5298_vm3 = vweird.f32 %v5279_v9 }
0x2412   : > { %v6865_v5 = vpop.eup %6864 }
0x2413   : > { %v5293_v43 = vmul.f32 %v6865_v5, %v5279_v9  ;;  %vm5299_vm1 = vweird.f32 %v6865_v5 }
0x2414   : > { %vm5300_vm4 = vmor %vm5298_vm3, %vm5299_vm1 }
0x2415   : > { %v5294_v19 = vmul.f32 %v6865_v5, %v5293_v43  ;;  %v6474_v43 = vld [vmem:[%s8796_s6 + $0x1b8] sm:$0xff] }
0x2417   : > { %v5295_v36 = vmul.f32 0.5, %v5294_v19 }
0x2419   : > { %v5296_v6 = vsub.f32 1.5, %v5295_v36 }
0x241b   : > { %v5297_v21 = vmul.f32 %v6865_v5, %v5296_v6 }
0x241d   : > { %v5301_v11 = vsel %vm5300_vm4, %v6865_v5, %v5297_v21  ;;  %v6477_v5 = vld [vmem:[%s8797_s7 + $0x1b0] sm:$0xff] }
0x241e   : > { %v5323_v44 = vmul.f32 %v5301_v11, %v8412_v13  ;;  %v8430_v13 = vmul.f32 %v5395_v57, %v5370_v8 }
0x2420   : > { %v5347_v51 = vmul.f32 %v5334_v16, %v5323_v44 }
0x2422   : > { %v5371_v20 = vadd.f32 %v5358_v0, %v5347_v51 }
0x2424   : > { %v8428_v7 = vmul.f32 %v5410_v45, %v5371_v20 }
0x2426   : > { %5438 = vmatpush.msra.mxu0 %v8428_v7 }
0x2428   : > { %5439 = vmatpush.msra.mxu0 %v8430_v13 }
0x2429   : > { %6479 = vmatmul.msk.f32.vlgmr.msra.gmra.mxu0 %vm535_vm0, %v6942_v60 }
0x2431   : > { %6480 = vmatmul.msk.f32.gmra.mxu0 %vm535_vm0, %v6943_v62 }
0x2439   : > { %6481 = vmatmul.msk.f32.gmra.mxu0 %vm535_vm0, %v6944_v58 }
0x2441   : > { %6482 = vmatmul.msk.f32.gmra.mxu0 %vm535_vm0, %v6945_v52 }
0x24a6   : > { %v5441_v27 = vpop.f32.mrf.mxu0 }
0x24ae   : > { %v5444_v16 = vpop.f32.mrf.mxu0 }
0x24af   : > { %5455 = vadd.xlane.f32.xlu2 %v5444_v16 }
0x24b6   : > { %v5447_v63 = vpop.f32.mrf.mxu0 }
0x24b7   : > { %5457 = vadd.xlane.f32.xlu0 %v5447_v63 }
0x24be   : > { %v5450_v61 = vpop.f32.mrf.mxu0 }
0x24bf   : > { %5453 = vadd.xlane.f32.xlu0 %v5441_v27  ;;  %5459 = vadd.xlane.f32.xlu1 %v5450_v61 }
0x24d8   : > { %5574 = vperm.xlu1 %6564, %v6478_v41  }
0x24e0   : > { %5540 = vperm.xlu1 %6564, %v6472_v18  }
0x24e8   : > { %5535 = vperm.xlu1 %6564, %v6471_v49  }
0x24f0   : > { %5564 = vperm.xlu1 %6564, %v6476_v54  }
0x2522   : > { %v5456_v47 = vpop.xlane.xlu2 %5455 }
0x2523   : > { %v5462_v0 = vmul.f32 %v5456_v47, %v7228_v37 }
0x2525   : > { %v8477_v36 = vsub.f32 %v5444_v16, %v5462_v0 }
0x2527   : > { %v5470_v28 = vmul.f32 %v8477_v36, %v8477_v36 }
0x252a   : > { %v5458_v39 = vpop.xlane.xlu0 %5457 }
0x252b   : > { %v5463_v9 = vmul.f32 %v5458_v39, %v7228_v37 }
0x252d   : > { %v5467_v10 = vsub.f32 %v5447_v63, %v5463_v9 }
0x252f   : > { %v5471_v40 = vmul.f32 %v5467_v10, %v5467_v10 }
0x2531   : > { %5477 = vadd.xlane.f32.xlu0 %v5471_v40 }
0x2532   : > { %v5460_v12 = vpop.xlane.xlu1 %5459  ;;  %v5454_v14 = vpop.xlane.xlu0 %5453 }
0x2533   : > { %v5464_v4 = vmul.f32 %v5460_v12, %v7228_v37  ;;  %v5461_v23 = vmul.f32 %v5454_v14, %v7228_v37 }
0x2535   : > { %v5468_v42 = vsub.f32 %v5450_v61, %v5464_v4  ;;  %v8475_v19 = vsub.f32 %v5441_v27, %v5461_v23 }
0x2537   : > { %v5472_v30 = vmul.f32 %v5468_v42, %v5468_v42  ;;  %v5469_v29 = vmul.f32 %v8475_v19, %v8475_v19 }
0x2539   : > { %5479 = vadd.xlane.f32.xlu2 %v5472_v30 }
0x2545   : > { %5545 = vperm.xlu0 %6563, %v6473_v15  }
0x254a   : > { %v5575_v16 = vpop.permute.xlu1 %5574 }
0x254d   : > { %5569 = vperm.xlu0 %6563, %v6477_v5  }
0x2551   : > { %5550 = vperm.xlu2 %6565, %v6474_v43  }
0x2552   : > { %v5541_v14 = vpop.permute.xlu1 %5540 }
0x2577   : > { %5473 = vadd.xlane.f32.xlu0 %v5469_v29 }
0x257a   : > { %5475 = vadd.xlane.f32.xlu2 %v5470_v28 }
0x2592   : > { %5559 = vperm.xlu2 %6565, %v6475_v22  }
0x25a4   : > { %v5478_v6 = vpop.xlane.xlu0 %5477 }
0x25a5   : > { %v5483_v21 = vmul.f32 %v5478_v6, %v7228_v37 }
0x25a7   : > { %v5487_v55 = vadd.f32 1e-05, %v5483_v21 }
0x25a9   : > { %6866 = vrsqrt.f32 %v5487_v55  ;;  %vm5515_vm14 = vweird.f32 %v5487_v55 }
0x25ac   : > { %v5480_v53 = vpop.xlane.xlu2 %5479 }
0x25ad   : > { %v5484_v2 = vmul.f32 %v5480_v53, %v7228_v37 }
0x25af   : > { %v5488_v24 = vadd.f32 1e-05, %v5484_v2  ;;  %v6867_v11 = vpop.eup %6866 }
0x25b0   : > { %v5510_v17 = vmul.f32 %v6867_v11, %v5487_v55  ;;  %vm5516_vm13 = vweird.f32 %v6867_v11 }
0x25b1   : > { %6868 = vrsqrt.f32 %v5488_v24  ;;  %vm5517_vm1 = vmor %vm5515_vm14, %vm5516_vm13  ;;  %vm5525_vm2 = vweird.f32 %v5488_v24 }
0x25b2   : > { %v5511_v33 = vmul.f32 %v6867_v11, %v5510_v17  ;;  %v5536_v17 = vpop.permute.xlu1 %5535 }
0x25b4   : > { %v5512_v46 = vmul.f32 0.5, %v5511_v33  ;;  %v5551_v62 = vpop.permute.xlu2 %5550 }
0x25b6   : > { %v5513_v50 = vsub.f32 1.5, %v5512_v46 }
0x25b7   : > { %v6869_v32 = vpop.eup %6868  ;;  %v5546_v38 = vpop.permute.xlu0 %5545 }
0x25b8   : > { %v5520_v44 = vmul.f32 %v6869_v32, %v5488_v24  ;;  %v5514_v35 = vmul.f32 %v6867_v11, %v5513_v50  ;;  %vm5526_vm15 = vweird.f32 %v6869_v32 }
0x25b9   : > { %vm5527_vm3 = vmor %vm5525_vm2, %vm5526_vm15 }
0x25ba   : > { %v5521_v48 = vmul.f32 %v6869_v32, %v5520_v44  ;;  %v5518_v8 = vsel %vm5517_vm1, %v6867_v11, %v5514_v35 }
0x25bb   : > { %v5531_v57 = vmul.f32 %v5518_v8, %v5467_v10 }
0x25bc   : > { %v5522_v3 = vmul.f32 0.5, %v5521_v48 }
0x25bd   : > { %v5555_v60 = vmul.f32 %v5546_v38, %v5531_v57 }
0x25be   : > { %v5523_v51 = vsub.f32 1.5, %v5522_v3 }
0x25bf   : > { %v5570_v58 = vpop.permute.xlu0 %5569 }
0x25c0   : > { %v5524_v56 = vmul.f32 %v6869_v32, %v5523_v51  ;;  %v5579_v27 = vadd.f32 %v5570_v58, %v5555_v60 }
0x25c2   : > { %v5528_v20 = vsel %vm5527_vm3, %v6869_v32, %v5524_v56  ;;  %v5581_v61 = vsub.f32 0.0, %v5579_v27 }
0x25c3   : > { %v5532_v45 = vmul.f32 %v5528_v20, %v5468_v42  ;;  %v6491_v20 = vld [vmem:[%s8797_s7 + $0x1c0] sm:$0xff] }
0x25c4   : > { %v5583_v18 = vmul.f32 1.442695, %v5581_v61  ;;  %v5565_v61 = vpop.permute.xlu1 %5564 }
0x25c5   : > { %v5556_v52 = vmul.f32 %v5551_v62, %v5532_v45 }
0x25c6   : > { %6870 = vpow2.f32 %v5583_v18 }
0x25c7   : > { %v5580_v63 = vadd.f32 %v5575_v16, %v5556_v52 }
0x25c9   : > { %v5582_v41 = vsub.f32 0.0, %v5580_v63 }
0x25cb   : > { %v5585_v49 = vmul.f32 1.442695, %v5582_v41 }
0x25cc   : > { %v6871_v54 = vpop.eup %6870 }
0x25cd   : > { %6872 = vpow2.f32 %v5585_v49  ;;  %v5587_v9 = vadd.f32 1.0, %v6871_v54 }
0x25cf   : > { %6874 = vrcp.f32 %v5587_v9  ;;  %v5600_v35 = vand.u32 2147483648, %v5587_v9  ;;  %vm5594_vm11 = vweird.f32 %v5587_v9  ;;  %v5598_v56 = vand.u32 2147483647, %v5587_v9 }
0x25d1   : > { %v5601_v52 = vor.u32 1.1754944e-38, %v5600_v35  ;;  %vm5599_vm2 = vcmp.eq.f32.partialorder %v5598_v56, 8.507059e+37 }
0x25d3   : > { %v6873_v39 = vpop.eup %6872 }
0x25d4   : > { %v8488_v40 = vadd.f32 1.0, %v6873_v39 }
0x25d5   : > { %v6875_v5 = vpop.eup %6874 }
0x25d6   : > { %6876 = vrcp.f32 %v8488_v40  ;;  %v5590_v47 = vmul.f32 %v6875_v5, %v5587_v9  ;;  %vm5595_vm8 = vweird.f32 %v6875_v5  ;;  %v5615_v45 = vand.u32 2147483648, %v8488_v40 }
0x25d7   : > { %vm8495_vm14 = vmor %vm5594_vm11, %vm5595_vm8  ;;  %vm5609_vm15 = vweird.f32 %v8488_v40  ;;  %v5613_v58 = vand.u32 2147483647, %v8488_v40 }
0x25d8   : > { %v5591_v6 = vsub.f32 1.0, %v5590_v47  ;;  %v5616_v18 = vor.u32 1.1754944e-38, %v5615_v45  ;;  %v6488_v47 = vld [vmem:[%s8796_s6 + $0x1c8] sm:$0xff] }
0x25d9   : > { %vm5614_vm3 = vcmp.eq.f32.partialorder %v5613_v58, 8.507059e+37 }
0x25da   : > { %v5592_v11 = vmul.f32 %v6875_v5, %v5591_v6 }
0x25dc   : > { %v6877_v43 = vpop.eup %6876  ;;  %v5593_v3 = vadd.f32 %v6875_v5, %v5592_v11 }
0x25dd   : > { %v5605_v0 = vmul.f32 %v6877_v43, %v8488_v40  ;;  %vm5610_vm13 = vweird.f32 %v6877_v43 }
0x25de   : > { %v5597_v62 = vsel %vm8495_vm14, %v6875_v5, %v5593_v3  ;;  %vm5611_vm1 = vmor %vm5609_vm15, %vm5610_vm13  ;;  %v6494_v3 = vld [vmem:[%s8797_s7 + $0x1d8] sm:$0xff] }
0x25df   : > { %v5606_v55 = vsub.f32 1.0, %v5605_v0  ;;  %v5602_v41 = vsel %vm5599_vm2, %v5601_v52, %v5597_v62  ;;  %v6490_v0 = vld [vmem:[%s8796_s6 + $0x1d8] sm:$0xff] }
0x25e1   : > { %v5607_v44 = vmul.f32 %v6877_v43, %v5606_v55 }
0x25e3   : > { %v5608_v38 = vadd.f32 %v6877_v43, %v5607_v44 }
0x25e5   : > { %v5612_v63 = vsel %vm5611_vm1, %v6877_v43, %v5608_v38  ;;  %v6493_v43 = vld [vmem:[%s8797_s7 + $0x1d0] sm:$0xff] }
0x25ea   : > { %v5474_v10 = vpop.xlane.xlu0 %5473 }
0x25eb   : > { %v5481_v12 = vmul.f32 %v5474_v10, %v7228_v37 }
0x25ed   : > { %v5485_v4 = vadd.f32 1e-05, %v5481_v12  ;;  %v5476_v42 = vpop.xlane.xlu2 %5475 }
0x25ee   : > { %v5482_v30 = vmul.f32 %v5476_v42, %v7228_v37  ;;  %v6486_v42 = vld [vmem:[%s8819_s5 + $0xd8] sm:$0xff] }
0x25ef   : > { %6878 = vrsqrt.f32 %v5485_v4  ;;  %vm5495_vm5 = vweird.f32 %v5485_v4 }
0x25f0   : > { %v5486_v15 = vadd.f32 1e-05, %v5482_v30 }
0x25f2   : > { %6880 = vrsqrt.f32 %v5486_v15  ;;  %vm5505_vm9 = vweird.f32 %v5486_v15 }
0x25f5   : > { %v6879_v23 = vpop.eup %6878 }
0x25f6   : > { %v5490_v29 = vmul.f32 %v6879_v23, %v5485_v4  ;;  %vm5496_vm4 = vweird.f32 %v6879_v23  ;;  %v6483_v4 = vld [vmem:[%s8819_s5 + $0xc0] sm:$0xff] }
0x25f7   : > { %vm5497_vm6 = vmor %vm5495_vm5, %vm5496_vm4 }
0x25f8   : > { %v6881_v28 = vpop.eup %6880  ;;  %v5491_v22 = vmul.f32 %v6879_v23, %v5490_v29  ;;  %v6492_v29 = vld [vmem:[%s8797_s7 + $0x1c8] sm:$0xff] }
0x25f9   : > { %v5500_v21 = vmul.f32 %v6881_v28, %v5486_v15  ;;  %vm5506_vm7 = vweird.f32 %v6881_v28 }
0x25fa   : > { %v5492_v53 = vmul.f32 0.5, %v5491_v22  ;;  %vm5507_vm10 = vmor %vm5505_vm9, %vm5506_vm7  ;;  %v6395_v22 = vld [vmem:[%s8796_s6 + $0x170] sm:$0xff] }
0x25fb   : > { %v5501_v2 = vmul.f32 %v6881_v28, %v5500_v21 }
0x25fc   : > { %v5493_v24 = vsub.f32 1.5, %v5492_v53  ;;  %v6504_v53 = vld [vmem:[%s8796_s6 + $0x1f0] sm:$0xff] }
0x25fd   : > { %v5502_v32 = vmul.f32 0.5, %v5501_v2 }
0x25fe   : > { %v5494_v33 = vmul.f32 %v6879_v23, %v5493_v24 }
0x25ff   : > { %v5503_v48 = vsub.f32 1.5, %v5502_v32 }
0x2600   : > { %v5498_v46 = vsel %vm5497_vm6, %v6879_v23, %v5494_v33  ;;  %v6487_v23 = vld [vmem:[%s8796_s6 + $0x1c0] sm:$0xff] }
0x2601   : > { %v5504_v50 = vmul.f32 %v6881_v28, %v5503_v48  ;;  %v5529_v51 = vmul.f32 %v5498_v46, %v8475_v19  ;;  %v5560_v19 = vpop.permute.xlu2 %5559 }
0x2603   : > { %v5508_v8 = vsel %vm5507_vm10, %v6881_v28, %v5504_v50  ;;  %v5553_v57 = vmul.f32 %v5536_v17, %v5529_v51  ;;  %v6489_v28 = vld [vmem:[%s8796_s6 + $0x1d0] sm:$0xff] }
0x2604   : > { %v5530_v60 = vmul.f32 %v5508_v8, %v8477_v36  ;;  %v5617_v36 = vsel %vm5614_vm3, %v5616_v18, %v5612_v63 }
0x2605   : > { %v5577_v27 = vadd.f32 %v5560_v19, %v5553_v57 }
0x2606   : > { %v5554_v16 = vmul.f32 %v5541_v14, %v5530_v60 }
0x2607   : > { %v5619_v49 = vmul.f32 %v5602_v41, %v5577_v27 }
0x2608   : > { %v5578_v54 = vadd.f32 %v5565_v61, %v5554_v16 }
0x2609   : > { %v5621_v10 = vadd.f32 %v5619_v49, %v8430_v13  ;;  %v6485_v13 = vld [vmem:[%s8819_s5 + $0xd0] sm:$0xff] }
0x260a   : > { %v5620_v39 = vmul.f32 %v5617_v36, %v5578_v54 }
0x260b   : > { %v8510_v40 = vmul.f32 0.70710677, %v5621_v10 }
0x260c   : > { %v5622_v9 = vadd.f32 %v5620_v39, %v8428_v7  ;;  %v6484_v7 = vld [vmem:[%s8819_s5 + $0xc8] sm:$0xff] }
0x260e   : > { %v8507_v12 = vmul.f32 0.70710677, %v5622_v9 }
0x2610   : > { %5666 = vmatpush.msra.mxu1 %v8507_v12 }
0x2612   : > { %5667 = vmatpush.msra.mxu1 %v8510_v40 }
0x2613   : > { %6495 = vmatmul.msk.f32.vlgmr.msra.gmra.mxu1 %vm535_vm0, %v6483_v4 }
0x261b   : > { %6496 = vmatmul.msk.f32.gmra.mxu1 %vm535_vm0, %v6484_v7 }
0x2623   : > { %6497 = vmatmul.msk.f32.gmra.mxu1 %vm535_vm0, %v6485_v13 }
0x262b   : > { %6498 = vmatmul.msk.f32.gmra.mxu1 %vm535_vm0, %v6486_v42 }
0x2690   : > { %v5669_v30 = vpop.f32.mrf.mxu1 }
0x2691   : > { %5681 = vadd.xlane.f32.xlu2 %v5669_v30 }
0x2698   : > { %v5672_v15 = vpop.f32.mrf.mxu1 }
0x26a0   : > { %v5675_v5 = vpop.f32.mrf.mxu1 }
0x26a1   : > { %5685 = vadd.xlane.f32.xlu0 %v5675_v5 }
0x26a8   : > { %v5678_v14 = vpop.f32.mrf.mxu1 }
0x26a9   : > { %5797 = vperm.xlu2 %6565, %v6493_v43   ;;  %5683 = vadd.xlane.f32.xlu0 %v5672_v15 }
0x26aa   : > { %5687 = vadd.xlane.f32.xlu1 %v5678_v14 }
0x26b1   : > { %5768 = vperm.xlu2 %6565, %v6488_v47  }
0x26b9   : > { %5763 = vperm.xlu2 %6565, %v6487_v23   ;;  %v6285_v23 = vld [vmem:[%s8796_s6 + $0xf0] sm:$0xff] }
0x26bd   : > { %5778 = vperm.xlu0 %6563, %v6490_v0  }
0x26c1   : > { %5792 = vperm.xlu2 %6565, %v6492_v29  }
0x26c3   : > { %5773 = vperm.xlu1 %6564, %v6489_v28  }
0x26ea   : > { %4332 = vadd.xlane.f32.xlu2 %v8214_v25 }
0x2702   : > { %4420 = vperm.xlu2 %6565, %v6395_v22  }
0x2704   : > { %v5682_v6 = vpop.xlane.xlu2 %5681 }
0x2705   : > { %v5689_v21 = vmul.f32 %v5682_v6, %v7228_v37  ;;  %v6289_v6 = vld [vmem:[%s8797_s7 + $0xf0] sm:$0xff] }
0x2707   : > { %v8552_v55 = vsub.f32 %v5669_v30, %v5689_v21  ;;  %v6399_v21 = vld [vmem:[%s8797_s7 + $0x170] sm:$0xff] }
0x2709   : > { %v5697_v2 = vmul.f32 %v8552_v55, %v8552_v55 }
0x270a   : > { %5950 = vperm.xlu2 %6565, %v6504_v53  }
0x270b   : > { %5701 = vadd.xlane.f32.xlu1 %v5697_v2 }
0x270c   : > { %v5798_v38 = vpop.permute.xlu2 %5797 }
0x2713   : > { %2747 = vadd.xlane.f32.xlu1 %v7804_v31 }
0x2714   : > { %v5686_v24 = vpop.xlane.xlu0 %5685  ;;  %v8575_v8 = vpop.permute.xlu2 %5768 }
0x2715   : > { %v5691_v11 = vmul.f32 %v5686_v24, %v7228_v37 }
0x2717   : > { %v5695_v17 = vsub.f32 %v5675_v5, %v5691_v11 }
0x2719   : > { %v5699_v32 = vmul.f32 %v5695_v17, %v5695_v17 }
0x271b   : > { %5705 = vadd.xlane.f32.xlu0 %v5699_v32  ;;  %2743 = vadd.xlane.f32.xlu1 %v7802_v26 }
0x271c   : > { %v5684_v50 = vpop.xlane.xlu0 %5683  ;;  %v8580_v57 = vpop.permute.xlu2 %5763 }
0x271d   : > { %v5688_v33 = vpop.xlane.xlu1 %5687  ;;  %v5690_v51 = vmul.f32 %v5684_v50, %v7228_v37 }
0x271e   : > { %v5692_v44 = vmul.f32 %v5688_v33, %v7228_v37 }
0x271f   : > { %v8571_v35 = vsub.f32 %v5672_v15, %v5690_v51 }
0x2720   : > { %v8563_v48 = vsub.f32 %v5678_v14, %v5692_v44 }
0x2721   : > { %v5698_v56 = vmul.f32 %v8571_v35, %v8571_v35 }
0x2722   : > { %v5700_v46 = vmul.f32 %v8563_v48, %v8563_v48 }
0x2724   : > { %5707 = vadd.xlane.f32.xlu0 %v5700_v46  ;;  %v8582_v62 = vpop.permute.xlu2 %5792 }
0x272f   : > { %v5779_v19 = vpop.permute.xlu0 %5778 }
0x2735   : > { %v5774_v45 = vpop.permute.xlu1 %5773 }
0x2738   : > { %5802 = vperm.xlu0 %6563, %v6494_v3  }
0x275d   : > { %v4333_v27 = vpop.xlane.xlu2 %4332 }
0x275e   : > { %v4338_v63 = vmul.f32 %v4333_v27, %v7228_v37 }
0x2760   : > { %v8592_v18 = vsub.f32 %v8214_v25, %v4338_v63 }
0x2762   : > { %5703 = vadd.xlane.f32.xlu0 %v5698_v56  ;;  %v4346_v36 = vmul.f32 %v8592_v18, %v8592_v18 }
0x2776   : > { %5787 = vperm.xlu0 %6563, %v6491_v20  }
0x277e   : > { %v5702_v60 = vpop.xlane.xlu1 %5701 }
0x2786   : > { %v2748_v58 = vpop.xlane.xlu1 %2747 }
0x2787   : > { %v2753_v52 = vmul.f32 %v2748_v58, %v7228_v37 }
0x2789   : > { %v8586_v16 = vsub.f32 %v7804_v31, %v2753_v52 }
0x278b   : > { %v2761_v61 = vmul.f32 %v8586_v16, %v8586_v16 }
0x278d   : > { %2767 = vadd.xlane.f32.xlu1 %v2761_v61 }
0x278e   : > { %v5706_v41 = vpop.xlane.xlu0 %5705 }
0x278f   : > { %v5711_v49 = vmul.f32 %v5706_v41, %v7228_v37 }
0x2791   : > { %v5715_v54 = vadd.f32 1e-05, %v5711_v49 }
0x2793   : > { %6882 = vrsqrt.f32 %v5715_v54  ;;  %vm5743_vm5 = vweird.f32 %v5715_v54 }
0x2795   : > { %4352 = vadd.xlane.f32.xlu1 %v4346_v36 }
0x2797   : > { %v5708_v31 = vpop.xlane.xlu0 %5707 }
0x2798   : > { %v5712_v39 = vmul.f32 %v5708_v31, %v7228_v37 }
0x2799   : > { %v6883_v9 = vpop.eup %6882 }
0x279a   : > { %v5738_v10 = vmul.f32 %v6883_v9, %v5715_v54  ;;  %v5716_v4 = vadd.f32 1e-05, %v5712_v39  ;;  %vm5744_vm4 = vweird.f32 %v6883_v9 }
0x279b   : > { %vm5745_vm6 = vmor %vm5743_vm5, %vm5744_vm4 }
0x279c   : > { %v5739_v7 = vmul.f32 %v6883_v9, %v5738_v10  ;;  %6884 = vrsqrt.f32 %v5716_v4  ;;  %vm5753_vm8 = vweird.f32 %v5716_v4 }
0x279e   : > { %v5740_v13 = vmul.f32 0.5, %v5739_v7 }
0x27a0   : > { %4328 = vadd.xlane.f32.xlu0 %v8212_v59  ;;  %v5741_v42 = vsub.f32 1.5, %v5740_v13 }
0x27a2   : > { %v6885_v25 = vpop.eup %6884  ;;  %v5742_v5 = vmul.f32 %v6883_v9, %v5741_v42 }
0x27a3   : > { %v5748_v30 = vmul.f32 %v6885_v25, %v5716_v4  ;;  %vm5754_vm7 = vweird.f32 %v6885_v25 }
0x27a4   : > { %v5746_v47 = vsel %vm5745_vm6, %v6883_v9, %v5742_v5  ;;  %vm5755_vm9 = vmor %vm5753_vm8, %vm5754_vm7 }
0x27a5   : > { %v5749_v15 = vmul.f32 %v6885_v25, %v5748_v30  ;;  %v5759_v0 = vmul.f32 %v5746_v47, %v5695_v17  ;;  %v5709_v17 = vmul.f32 %v5702_v60, %v7228_v37 }
0x27a7   : > { %v5750_v43 = vmul.f32 0.5, %v5749_v15  ;;  %v5783_v28 = vmul.f32 %v5774_v45, %v5759_v0  ;;  %v5713_v46 = vadd.f32 1e-05, %v5709_v17 }
0x27a9   : > { %v5751_v14 = vsub.f32 1.5, %v5750_v43  ;;  %v5807_v2 = vadd.f32 %v5798_v38, %v5783_v28  ;;  %vm5723_vm11 = vweird.f32 %v5713_v46 }
0x27aa   : > { %v5803_v32 = vpop.permute.xlu0 %5802 }
0x27ab   : > { %v5752_v29 = vmul.f32 %v6885_v25, %v5751_v14  ;;  %v5809_v11 = vsub.f32 0.0, %v5807_v2 }
0x27ad   : > { %v5756_v22 = vsel %vm5755_vm9, %v6885_v25, %v5752_v29  ;;  %v5811_v44 = vmul.f32 1.442695, %v5809_v11 }
0x27ae   : > { %2835 = vperm.xlu1 %6564, %v6285_v23   ;;  %v5760_v53 = vmul.f32 %v5756_v22, %v8563_v48 }
0x27af   : > { %6886 = vpow2.f32 %v5811_v44 }
0x27b0   : > { %v5784_v24 = vmul.f32 %v5779_v19, %v5760_v53  ;;  %6888 = vrsqrt.f32 %v5713_v46  ;;  %v2744_v19 = vpop.xlane.xlu1 %2743 }
0x27b1   : > { %v2751_v27 = vmul.f32 %v2744_v19, %v7228_v37 }
0x27b2   : > { %v5808_v33 = vadd.f32 %v5803_v32, %v5784_v24 }
0x27b3   : > { %v8613_v54 = vsub.f32 %v7802_v26, %v2751_v27 }
0x27b4   : > { %2859 = vperm.xlu0 %6563, %v6289_v6   ;;  %v5810_v3 = vsub.f32 0.0, %v5808_v33 }
0x27b5   : > { %v6887_v51 = vpop.eup %6886  ;;  %v2759_v9 = vmul.f32 %v8613_v54, %v8613_v54 }
0x27b6   : > { %4444 = vperm.xlu1 %6564, %v6399_v21   ;;  %v5813_v50 = vmul.f32 1.442695, %v5810_v3  ;;  %v6889_v56 = vpop.eup %6888  ;;  %v5815_v20 = vadd.f32 1.0, %v6887_v51 }
0x27b7   : > { %v5718_v48 = vmul.f32 %v6889_v56, %v5713_v46  ;;  %vm5724_vm10 = vweird.f32 %v6889_v56  ;;  %v6283_v46 = vld [vmem:[%s8796_s6 + $0xe0] sm:$0xff] }
0x27b8   : > { %6890 = vpow2.f32 %v5813_v50  ;;  %vm5725_vm13 = vmor %vm5723_vm11, %vm5724_vm10  ;;  %v5828_v43 = vand.u32 2147483648, %v5815_v20  ;;  %vm5822_vm15 = vweird.f32 %v5815_v20  ;;  %v5826_v47 = vand.u32 2147483647, %v5815_v20 }
0x27b9   : > { %6892 = vrcp.f32 %v5815_v20  ;;  %v5719_v38 = vmul.f32 %v6889_v56, %v5718_v48 }
0x27ba   : > { %v5829_v6 = vor.u32 1.1754944e-38, %v5828_v43  ;;  %vm5827_vm4 = vcmp.eq.f32.partialorder %v5826_v47, 8.507059e+37 }
0x27bb   : > { %v5720_v60 = vmul.f32 0.5, %v5719_v38  ;;  %v6500_v38 = vld [vmem:[%s8819_s5 + $0xe8] sm:$0xff] }
0x27bd   : > { %v5721_v49 = vsub.f32 1.5, %v5720_v60 }
0x27be   : > { %v6891_v45 = vpop.eup %6890 }
0x27bf   : > { %v5816_v58 = vadd.f32 1.0, %v6891_v45  ;;  %v6893_v52 = vpop.eup %6892  ;;  %v5722_v10 = vmul.f32 %v6889_v56, %v5721_v49 }
0x27c0   : > { %v5818_v41 = vmul.f32 %v6893_v52, %v5815_v20  ;;  %vm5823_vm14 = vweird.f32 %v6893_v52 }
0x27c1   : > { %6894 = vrcp.f32 %v5816_v58  ;;  %v5726_v25 = vsel %vm5725_vm13, %v6889_v56, %v5722_v10  ;;  %vm5824_vm1 = vmor %vm5822_vm15, %vm5823_vm14  ;;  %v5843_v17 = vand.u32 2147483648, %v5816_v58  ;;  %vm5837_vm7 = vweird.f32 %v5816_v58 }
0x27c2   : > { %v5819_v39 = vsub.f32 1.0, %v5818_v41  ;;  %v5757_v15 = vmul.f32 %v5726_v25, %v8552_v55  ;;  %v5841_v33 = vand.u32 2147483647, %v5816_v58  ;;  %v6506_v25 = vld [vmem:[%s8797_s7 + $0x1f0] sm:$0xff] }
0x27c3   : > { %v5844_v3 = vor.u32 1.1754944e-38, %v5843_v17 }
0x27c4   : > { %v5820_v7 = vmul.f32 %v6893_v52, %v5819_v39  ;;  %v5781_v29 = vmul.f32 %v8580_v57, %v5757_v15  ;;  %vm5842_vm9 = vcmp.eq.f32.partialorder %v5841_v33, 8.507059e+37 }
0x27c6   : > { %v5821_v5 = vadd.f32 %v6893_v52, %v5820_v7 }
0x27c7   : > { %v6895_v31 = vpop.eup %6894 }
0x27c8   : > { %v5833_v4 = vmul.f32 %v6895_v31, %v5816_v58  ;;  %v5825_v28 = vsel %vm5824_vm1, %v6893_v52, %v5821_v5  ;;  %vm5838_vm6 = vweird.f32 %v6895_v31  ;;  %v6501_v52 = vld [vmem:[%s8819_s5 + $0xf0] sm:$0xff] }
0x27c9   : > { %v5830_v55 = vsel %vm5827_vm4, %v5829_v6, %v5825_v28  ;;  %vm5839_vm8 = vmor %vm5837_vm7, %vm5838_vm6  ;;  %v6393_v6 = vld [vmem:[%s8796_s6 + $0x160] sm:$0xff] }
0x27ca   : > { %v5834_v30 = vsub.f32 1.0, %v5833_v4 }
0x27cc   : > { %v5835_v23 = vmul.f32 %v6895_v31, %v5834_v30 }
0x27ce   : > { %v5836_v2 = vadd.f32 %v6895_v31, %v5835_v23 }
0x27d0   : > { %v5840_v44 = vsel %vm5839_vm8, %v6895_v31, %v5836_v2 }
0x27d1   : > { %v5845_v51 = vsel %vm5842_vm9, %v5844_v3, %v5840_v44 }
0x27d5   : > { %v5704_v63 = vpop.xlane.xlu0 %5703 }
0x27d6   : > { %v5710_v61 = vmul.f32 %v5704_v63, %v7228_v37 }
0x27d8   : > { %v5714_v36 = vadd.f32 1e-05, %v5710_v61 }
0x27da   : > { %6896 = vrsqrt.f32 %v5714_v36  ;;  %vm5733_vm3 = vweird.f32 %v5714_v36 }
0x27de   : > { %2763 = vadd.xlane.f32.xlu0 %v2759_v9 }
0x27e0   : > { %v6897_v13 = vpop.eup %6896 }
0x27e1   : > { %v5728_v42 = vmul.f32 %v6897_v13, %v5714_v36  ;;  %vm5734_vm2 = vweird.f32 %v6897_v13 }
0x27e2   : > { %vm5735_vm5 = vmor %vm5733_vm3, %vm5734_vm2 }
0x27e3   : > { %v5729_v26 = vmul.f32 %v6897_v13, %v5728_v42 }
0x27e5   : > { %v5730_v14 = vmul.f32 0.5, %v5729_v26 }
0x27e7   : > { %v5731_v0 = vsub.f32 1.5, %v5730_v14 }
0x27e8   : > { %v5788_v22 = vpop.permute.xlu0 %5787 }
0x27e9   : > { %v5732_v21 = vmul.f32 %v6897_v13, %v5731_v0  ;;  %v5805_v53 = vadd.f32 %v5788_v22, %v5781_v29  ;;  %v6287_v22 = vld [vmem:[%s8797_s7 + $0xe0] sm:$0xff] }
0x27eb   : > { %v5736_v24 = vsel %vm5735_vm5, %v6897_v13, %v5732_v21  ;;  %v5847_v11 = vmul.f32 %v5830_v55, %v5805_v53  ;;  %v6503_v21 = vld [vmem:[%s8796_s6 + $0x1e0] sm:$0xff] }
0x27ec   : > { %v5758_v32 = vmul.f32 %v5736_v24, %v8571_v35 }
0x27ed   : > { %v5849_v35 = vadd.f32 %v5847_v11, %v8510_v40 }
0x27ee   : > { %v5782_v57 = vmul.f32 %v8575_v8, %v5758_v32  ;;  %v6397_v8 = vld [vmem:[%s8797_s7 + $0x160] sm:$0xff] }
0x27ef   : > { %v8630_v45 = vmul.f32 0.70710677, %v5849_v35 }
0x27f0   : > { %v5806_v50 = vadd.f32 %v8582_v62, %v5782_v57  ;;  %v6499_v62 = vld [vmem:[%s8819_s5 + $0xe0] sm:$0xff] }
0x27f2   : > { %2825 = vperm.xlu0 %6563, %v6283_v46   ;;  %v5848_v56 = vmul.f32 %v5845_v51, %v5806_v50  ;;  %v4421_v50 = vpop.permute.xlu2 %4420 }
0x27f4   : > { %v5850_v20 = vadd.f32 %v5848_v56, %v8507_v12  ;;  %v6505_v12 = vld [vmem:[%s8797_s7 + $0x1e0] sm:$0xff] }
0x27f6   : > { %v5852_v48 = vmul.f32 0.70710677, %v5850_v20 }
0x27f8   : > { %5890 = vmatpush.msra.mxu2 %v5852_v48 }
0x27fa   : > { %5891 = vmatpush.msra.mxu2 %v8630_v45  ;;  %4434 = vperm.xlu0 %6563, %v6397_v8  }
0x27fb   : > { %6507 = vmatmul.msk.f32.vlgmr.msra.gmra.mxu2 %vm535_vm0, %v6499_v62 }
0x2800   : > { %v2768_v40 = vpop.xlane.xlu1 %2767 }
0x2801   : > { %v2773_v19 = vmul.f32 %v2768_v40, %v7228_v37  ;;  %v5951_v40 = vpop.permute.xlu2 %5950 }
0x2802   : > { %5957 = vperm.xlu0 %6563, %v6505_v12  }
0x2803   : > { %v2777_v58 = vadd.f32 1e-05, %v2773_v19  ;;  %6508 = vmatmul.msk.f32.gmra.mxu2 %vm535_vm0, %v6500_v38 }
0x2805   : > { %6898 = vrsqrt.f32 %v2777_v58  ;;  %vm2805_vm11 = vweird.f32 %v2777_v58 }
0x2808   : > { %v4353_v49 = vpop.xlane.xlu1 %4352 }
0x280b   : > { %v6899_v60 = vpop.eup %6898  ;;  %6509 = vmatmul.msk.f32.gmra.mxu2 %vm535_vm0, %v6501_v52 }
0x280c   : > { %v2800_v27 = vmul.f32 %v6899_v60, %v2777_v58  ;;  %vm2806_vm10 = vweird.f32 %v6899_v60 }
0x280d   : > { %vm2807_vm13 = vmor %vm2805_vm11, %vm2806_vm10 }
0x280e   : > { %v2801_v63 = vmul.f32 %v6899_v60, %v2800_v27 }
0x2810   : > { %v2802_v61 = vmul.f32 0.5, %v2801_v63 }
0x2812   : > { %v2803_v41 = vsub.f32 1.5, %v2802_v61 }
0x2813   : > { %v4329_v14 = vpop.xlane.xlu0 %4328 }
0x2814   : > { %v2804_v36 = vmul.f32 %v6899_v60, %v2803_v41  ;;  %v4336_v23 = vmul.f32 %v4329_v14, %v7228_v37 }
0x2816   : > { %v2808_v31 = vsel %vm2807_vm13, %v6899_v60, %v2804_v36  ;;  %v8665_v29 = vsub.f32 %v8212_v59, %v4336_v23  ;;  %v4358_v59 = vmul.f32 %v4353_v49, %v7228_v37 }
0x2817   : > { %v2821_v39 = vmul.f32 %v2808_v31, %v8586_v16 }
0x2818   : > { %v4344_v28 = vmul.f32 %v8665_v29, %v8665_v29  ;;  %v4362_v53 = vadd.f32 1e-05, %v4358_v59 }
0x281a   : > { %6900 = vrsqrt.f32 %v4362_v53  ;;  %vm4390_vm15 = vweird.f32 %v4362_v53 }
0x2820   : > { %v2836_v9 = vpop.permute.xlu1 %2835  ;;  %v6901_v55 = vpop.eup %6900 }
0x2821   : > { %v2845_v10 = vmul.f32 %v2836_v9, %v2821_v39  ;;  %v4385_v2 = vmul.f32 %v6901_v55, %v4362_v53  ;;  %vm4391_vm14 = vweird.f32 %v6901_v55 }
0x2822   : > { %vm4392_vm1 = vmor %vm4390_vm15, %vm4391_vm14 }
0x2823   : > { %v4386_v24 = vmul.f32 %v6901_v55, %v4385_v2 }
0x2825   : > { %v4387_v11 = vmul.f32 0.5, %v4386_v24 }
0x2826   : > { %v2860_v32 = vpop.permute.xlu0 %2859 }
0x2827   : > { %v4388_v17 = vsub.f32 1.5, %v4387_v11  ;;  %v2869_v44 = vadd.f32 %v2860_v32, %v2845_v10 }
0x2828   : > { %v4445_v42 = vpop.permute.xlu1 %4444 }
0x2829   : > { %v4389_v33 = vmul.f32 %v6901_v55, %v4388_v17  ;;  %v2871_v51 = vsub.f32 0.0, %v2869_v44 }
0x282b   : > { %v4393_v57 = vsel %vm4392_vm1, %v6901_v55, %v4389_v33  ;;  %v2873_v48 = vmul.f32 1.442695, %v2871_v51 }
0x282c   : > { %v4406_v46 = vmul.f32 %v4393_v57, %v8592_v18 }
0x282d   : > { %6902 = vpow2.f32 %v2873_v48 }
0x282e   : > { %v4430_v56 = vmul.f32 %v4421_v50, %v4406_v46 }
0x2830   : > { %v4454_v35 = vadd.f32 %v4445_v42, %v4430_v56 }
0x2832   : > { %v4456_v62 = vsub.f32 0.0, %v4454_v35 }
0x2833   : > { %v6903_v38 = vpop.eup %6902 }
0x2834   : > { %v4458_v12 = vmul.f32 1.442695, %v4456_v62  ;;  %v8681_v58 = vadd.f32 1.0, %v6903_v38 }
0x2836   : > { %vm2884_vm9 = vweird.f32 %v8681_v58  ;;  %v2890_v57 = vand.u32 2147483648, %v8681_v58  ;;  %v2888_v50 = vand.u32 2147483647, %v8681_v58 }
0x2838   : > { %vm2889_vm14 = vcmp.eq.f32.partialorder %v2888_v50, 8.507059e+37 }
0x2851   : > { %v2764_v3 = vpop.xlane.xlu0 %2763 }
0x2852   : > { %v2771_v20 = vmul.f32 %v2764_v3, %v7228_v37 }
0x2854   : > { %v2775_v8 = vadd.f32 1e-05, %v2771_v20 }
0x2856   : > { %6904 = vrsqrt.f32 %v2775_v8  ;;  %vm2785_vm3 = vweird.f32 %v2775_v8 }
0x2857   : > { %6906 = vpow2.f32 %v4458_v12 }
0x2858   : > { %6908 = vrcp.f32 %v8681_v58 }
0x285c   : > { %v6905_v19 = vpop.eup %6904 }
0x285d   : > { %v2780_v18 = vmul.f32 %v6905_v19, %v2775_v8  ;;  %v6907_v27 = vpop.eup %6906  ;;  %vm2786_vm2 = vweird.f32 %v6905_v19  ;;  %v2891_v8 = vor.u32 1.1754944e-38, %v2890_v57 }
0x285e   : > { %v8685_v49 = vadd.f32 1.0, %v6907_v27  ;;  %v8687_v31 = vpop.eup %6908  ;;  %vm2787_vm4 = vmor %vm2785_vm3, %vm2786_vm2 }
0x285f   : > { %v2781_v61 = vmul.f32 %v6905_v19, %v2780_v18  ;;  %v2880_v42 = vmul.f32 %v8687_v31, %v8681_v58  ;;  %vm2885_vm8 = vweird.f32 %v8687_v31 }
0x2860   : > { %vm2886_vm10 = vmor %vm2884_vm9, %vm2885_vm8  ;;  %vm4469_vm2 = vweird.f32 %v8685_v49  ;;  %v4475_v58 = vand.u32 2147483648, %v8685_v49  ;;  %v4473_v27 = vand.u32 2147483647, %v8685_v49 }
0x2861   : > { %v2782_v36 = vmul.f32 0.5, %v2781_v61  ;;  %v2881_v14 = vsub.f32 1.0, %v2880_v42 }
0x2864   : > { %v2826_v32 = vpop.permute.xlu0 %2825 }
0x287e   : > { %v5893_v4 = vpop.f32.mrf.mxu2 }
0x287f   : > { %5903 = vadd.xlane.f32.xlu1 %v5893_v4 }
0x2886   : > { %v5896_v7 = vpop.f32.mrf.mxu2 }
0x288e   : > { %v5898_v13 = vpop.f32.mrf.mxu2 }
0x288f   : > { %5905 = vadd.xlane.f32.xlu1 %v5898_v13 }
0x28a8   : > { %5962 = vperm.xlu1 %6564, %v6506_v25  }
0x28f2   : > { %v5904_v30 = vpop.xlane.xlu1 %5903 }
0x28f3   : > { %v5907_v26 = vmul.f32 %v5904_v30, %v7228_v37 }
0x28f5   : > { %v8654_v15 = vsub.f32 %v5893_v4, %v5907_v26  ;;  %v2783_v4 = vsub.f32 1.5, %v2782_v36 }
0x28f7   : > { %v5911_v16 = vmul.f32 %v8654_v15, %v8654_v15 }
0x28f9   : > { %5913 = vadd.xlane.f32.xlu1 %v5911_v16  ;;  %v2784_v16 = vmul.f32 %v6905_v19, %v2783_v4 }
0x2902   : > { %v5906_v5 = vpop.xlane.xlu1 %5905 }
0x2903   : > { %v5908_v43 = vmul.f32 %v5906_v5, %v7228_v37 }
0x2905   : > { %v8659_v47 = vsub.f32 %v5898_v13, %v5908_v43 }
0x2907   : > { %v5912_v0 = vmul.f32 %v8659_v47, %v8659_v47 }
0x2909   : > { %5915 = vadd.xlane.f32.xlu2 %v5912_v0 }
0x2911   : > { %4348 = vadd.xlane.f32.xlu2 %v4344_v28 }
0x2912   : > { %2849 = vperm.xlu1 %6564, %v6287_v22  }
0x291a   : > { %v5963_v52 = vpop.permute.xlu1 %5962 }
0x2929   : > { %4410 = vperm.xlu2 %6565, %v6393_v6   ;;  %v2882_v6 = vmul.f32 %v8687_v31, %v2881_v14 }
0x292b   : > { %v2883_v17 = vadd.f32 %v8687_v31, %v2882_v6 }
0x292d   : > { %v2887_v20 = vsel %vm2886_vm10, %v8687_v31, %v2883_v17  ;;  %v4435_v31 = vpop.permute.xlu0 %4434 }
0x292e   : > { %v2892_v38 = vsel %vm2889_vm14, %v2891_v8, %v2887_v20 }
0x2931   : > { %5945 = vperm.xlu2 %6565, %v6503_v21  }
0x296c   : > { %v5914_v39 = vpop.xlane.xlu1 %5913 }
0x296d   : > { %v5917_v13 = vmul.f32 %v5914_v39, %v7228_v37  ;;  %v4476_v39 = vor.u32 1.1754944e-38, %v4475_v58 }
0x296f   : > { %v8696_v43 = vadd.f32 1e-05, %v5917_v13 }
0x297c   : > { %v5916_v60 = vpop.xlane.xlu2 %5915 }
0x297d   : > { %v5918_v63 = vmul.f32 %v5916_v60, %v7228_v37 }
0x297f   : > { %v5920_v41 = vadd.f32 1e-05, %v5918_v63 }
0x2981   : > { %6910 = vrsqrt.f32 %v5920_v41  ;;  %vm5937_vm6 = vweird.f32 %v5920_v41 }
0x2982   : > { %6912 = vrcp.f32 %v8685_v49 }
0x2984   : > { %v4349_v9 = vpop.xlane.xlu2 %4348  ;;  %v2850_v44 = vpop.permute.xlu1 %2849 }
0x2985   : > { %v4356_v10 = vmul.f32 %v4349_v9, %v7228_v37  ;;  %v2788_v37 = vsel %vm2787_vm4, %v6905_v19, %v2784_v16  ;;  %vm4474_vm4 = vcmp.eq.f32.partialorder %v4473_v27, 8.507059e+37 }
0x2986   : > { %v2819_v53 = vmul.f32 %v2788_v37, %v8613_v54 }
0x2987   : > { %v6911_v7 = vpop.eup %6910  ;;  %v4360_v25 = vadd.f32 1e-05, %v4356_v10 }
0x2988   : > { %v5932_v30 = vmul.f32 %v6911_v7, %v5920_v41  ;;  %v8694_v26 = vpop.eup %6912  ;;  %vm5938_vm5 = vweird.f32 %v6911_v7  ;;  %v2843_v54 = vmul.f32 %v2826_v32, %v2819_v53 }
0x2989   : > { %6914 = vrsqrt.f32 %v4360_v25  ;;  %v4465_v0 = vmul.f32 %v8694_v26, %v8685_v49  ;;  %vm5939_vm7 = vmor %vm5937_vm6, %vm5938_vm5  ;;  %vm4370_vm13 = vweird.f32 %v4360_v25  ;;  %vm4470_vm1 = vweird.f32 %v8694_v26 }
0x298a   : > { %v5933_v5 = vmul.f32 %v6911_v7, %v5932_v30  ;;  %6916 = vrsqrt.f32 %v8696_v43  ;;  %v2867_v35 = vadd.f32 %v2850_v44, %v2843_v54  ;;  %vm4471_vm3 = vmor %vm4469_vm2, %vm4470_vm1  ;;  %vm5927_vm6 = vweird.f32 %v8696_v43  ;;  %v526_v54 = vld [vmem:[%s8801_s11] sm:$0xf] }
0x298b   : > { %v4466_v55 = vsub.f32 1.0, %v4465_v0 }
0x298c   : > { %v5934_v23 = vmul.f32 0.5, %v5933_v5  ;;  %v4411_v61 = vpop.permute.xlu2 %4410 }
0x298d   : > { %v4467_v51 = vmul.f32 %v8694_v26, %v4466_v55 }
0x298e   : > { %v5935_v28 = vsub.f32 1.5, %v5934_v23 }
0x298f   : > { %v6915_v22 = vpop.eup %6914 }
0x2990   : > { %v5936_v21 = vmul.f32 %v6911_v7, %v5935_v28  ;;  %v4365_v59 = vmul.f32 %v6915_v22, %v4360_v25  ;;  %v8708_v46 = vpop.eup %6916  ;;  %vm4371_vm11 = vweird.f32 %v6915_v22 }
0x2991   : > { %v5922_v48 = vmul.f32 %v8708_v46, %v8696_v43  ;;  %vm4372_vm15 = vmor %vm4370_vm13, %vm4371_vm11  ;;  %vm5928_vm5 = vweird.f32 %v8708_v46 }
0x2992   : > { %v5940_v2 = vsel %vm5939_vm7, %v6911_v7, %v5936_v21  ;;  %v4366_v24 = vmul.f32 %v6915_v22, %v4365_v59  ;;  %vm5929_vm7 = vmor %vm5927_vm6, %vm5928_vm5 }
0x2993   : > { %v5942_v11 = vmul.f32 %v5940_v2, %v8659_v47  ;;  %v5923_v63 = vmul.f32 %v8708_v46, %v5922_v48 }
0x2994   : > { %v4367_v33 = vmul.f32 0.5, %v4366_v24  ;;  %v5946_v28 = vpop.permute.xlu2 %5945  ;;  %v5958_v24 = vpop.permute.xlu0 %5957 }
0x2995   : > { %v5954_v3 = vmul.f32 %v5951_v40, %v5942_v11  ;;  %v4468_v40 = vadd.f32 %v8694_v26, %v4467_v51  ;;  %v5924_v4 = vmul.f32 0.5, %v5923_v63 }
0x2996   : > { %v4368_v47 = vsub.f32 1.5, %v4367_v33 }
0x2997   : > { %v5966_v56 = vadd.f32 %v5963_v52, %v5954_v3  ;;  %v2909_v52 = vmul.f32 %v2892_v38, %v2867_v35  ;;  %v4472_v41 = vsel %vm4471_vm3, %v8694_v26, %v4468_v40  ;;  %v5925_v30 = vsub.f32 1.5, %v5924_v4 }
0x2998   : > { %v4369_v62 = vmul.f32 %v6915_v22, %v4368_v47  ;;  %v4477_v7 = vsel %vm4474_vm4, %v4476_v39, %v4472_v41 }
0x2999   : > { %v5967_v12 = vsub.f32 0.0, %v5966_v56  ;;  %v2911_v9 = vadd.f32 %v2909_v52, %v7783_v34  ;;  %v5926_v14 = vmul.f32 %v8708_v46, %v5925_v30 }
0x299a   : > { %v4373_v19 = vsel %vm4372_vm15, %v6915_v22, %v4369_v62 }
0x299b   : > { %v5968_v18 = vmul.f32 1.442695, %v5967_v12  ;;  %v4404_v60 = vmul.f32 %v4373_v19, %v8665_v29  ;;  %v6502_v29 = vld [vmem:[%s8819_s5 + $0xf8] sm:$0xff]  ;;  %v2913_v25 = vmul.f32 0.70710677, %v2911_v9  ;;  %v5930_v37 = vsel %vm5929_vm7, %v8708_v46, %v5926_v14 }
0x299c   : > { %6510 = vmatmul.msk.f32.gmra.mxu2 %vm535_vm0, %v6502_v29  ;;  %v5941_v22 = vmul.f32 %v5930_v37, %v8654_v15 }
0x299d   : > { %6918 = vpow2.f32 %v5968_v18  ;;  %v4428_v36 = vmul.f32 %v4411_v61, %v4404_v60  ;;  %v2915_v34 = vmax.f32 %v2913_v25, 0.0 }
0x299e   : > { %v5953_v59 = vmul.f32 %v5946_v28, %v5941_v22 }
0x299f   : > { %v4452_v10 = vadd.f32 %v4435_v31, %v4428_v36 }
0x29a0   : > { %v5965_v11 = vadd.f32 %v5958_v24, %v5953_v59 }
0x29a1   : > { %v4494_v13 = vmul.f32 %v4477_v7, %v4452_v10 }
0x29a3   : > { %v6919_v49 = vpop.eup %6918  ;;  %v4496_v42 = vadd.f32 %v4494_v13, %v8193_v1 }
0x29a4   : > { %v5970_v26 = vadd.f32 1.0, %v6919_v49 }
0x29a5   : > { %v4498_v16 = vmul.f32 0.70710677, %v4496_v42 }
0x29a6   : > { %6920 = vrcp.f32 %v5970_v26  ;;  %v5982_v21 = vand.u32 2147483648, %v5970_v26  ;;  %v5980_v55 = vand.u32 2147483647, %v5970_v26  ;;  %vm5976_vm8 = vweird.f32 %v5970_v26 }
0x29a7   : > { %v4500_v5 = vmax.f32 %v4498_v16, 0.0 }
0x29a8   : > { %v5983_v43 = vor.u32 1.1754944e-38, %v5982_v21  ;;  %vm5981_vm10 = vcmp.eq.f32.partialorder %v5980_v55, 8.507059e+37 }
0x29a9   : > { %v4501_v23 = vadd.f32 %v4500_v5, %v2915_v34 }
0x29ac   : > { %v6921_v0 = vpop.eup %6920 }
0x29ad   : > { %v5972_v1 = vmul.f32 %v6921_v0, %v5970_v26  ;;  %vm5977_vm0 = vweird.f32 %v6921_v0 }
0x29ae   : > { %vm5978_vm9 = vmor %vm5976_vm8, %vm5977_vm0 }
0x29af   : > { %v5973_v6 = vsub.f32 1.0, %v5972_v1 }
0x29b1   : > { %v5974_v53 = vmul.f32 %v6921_v0, %v5973_v6 }
0x29b3   : > { %v5975_v2 = vadd.f32 %v6921_v0, %v5974_v53 }
0x29b5   : > { %v5979_v17 = vsel %vm5978_vm9, %v6921_v0, %v5975_v2 }
0x29b6   : > { %v5984_v32 = vsel %vm5981_vm10, %v5983_v43, %v5979_v17 }
0x29b7   : > { %v5986_v33 = vmul.f32 %v5984_v32, %v5965_v11 }
0x29b9   : > { %v5987_v15 = vadd.f32 %v5986_v33, %v8630_v45 }
0x29bb   : > { %v5988_v57 = vmul.f32 0.70710677, %v5987_v15 }
0x29bd   : > { %v5989_v44 = vmax.f32 %v5988_v57, 0.0 }
0x29bf   : > { %v5990_v46 = vadd.f32 %v5989_v44, %v4501_v23 }
0x29c1   : > { %6009 = vmatpush.msra.mxu3 %v5990_v46 }
0x29c2   : > { %6511 = vmatmul.msk.f32.vlgmr.msra.gmra.mxu3 %vm1340_vm12, %v526_v54 }
0x29c3   : > { %6973 = shalt.err (!%p6970_p5)
}
0x29c4   : > { %6517 = dma.vmem_to_hbm [thread:$0]  (%p7154_p6), %s6048_s22, 16, %s6050_s23, %s6023_s24  }
0x29c5   : > { %s6150_s21 = sshll.u32 %s7185_s17, 2  ;;  %s6513_s0 = sshll.u32 %s7136_s29, 2 }
0x29c6   : > { %s6032_s16 = scalar_lea.hbm %s8802_s12, %s6513_s0  ;;  %s481_s4 = scalar_lea.vmem [#allocation3], %s6150_s21 }
0x29c7   : > { %s6034_s15 = sshll.u32 %s481_s4, 4  ;;  %s6036_s2 = sshll.u32 %s6032_s16, 4  ;;  %s6035_s15 = int_to_ptr.vmem [resolvable:$true] %s6034_s15  ;;  %s6037_s2 = int_to_ptr.hbm [resolvable:$true] %s6036_s2 }
0x29c8   : > { %s6018_s3 = scalar_lea.sflag [#allocation4], %s7185_s17  ;;  %s6988_s20 = sshra.s32 %s6037_s2, 4  ;;  %s6989_s20 = int_to_ptr.hbm [resolvable:$true] %s6988_s20 }
0x29c9   : > { %s6990_s5 = scalar_lea.hbm %s6989_s20, 4  ;;  %s6994_s23 = scalar_lea.hbm %s8802_s12, 8 }
0x29ca   : > { %p6991_p7 = scmp.ne.s32.totalorder %s6989_s20, %s6990_s5  ;;  %p6995_p12 = scmp.lt.s32.totalorder %s6989_s20, %s8802_s12 }
0x29cb   : > { %p6996_p13 = scmp.lt.s32.totalorder %s6994_s23, %s6990_s5 }
0x29cc   : > { %p6992_p10 = pnand %p6991_p7, %p7154_p6 }
0x29cd   : > { %p6997_p0 = por %p6996_p13, %p6995_p12 }
0x29ce   : > { %p6993_p11 = pneg %p6992_p10 }
0x29d0   : > { %p6998_p1 = pnand %p6997_p0, %p6993_p11 }
0x2a1f   : > { %v5901_v45 = vpop.f32.mrf.mxu2 }
0x2a45   : > { %v6011_v3 = vpop.f32.mrf.mxu3 }
0x2a46   : > { %6014 = vst [vmem:[%s481_s4] sm:$0xf] %v6011_v3 }
0x2a47   : > { %7001 = shalt.err (!%p6998_p1)
}
0x2a48   : > { %6516 = dma.vmem_to_hbm [thread:$0]  (%p7154_p6), %s6035_s15, 64, %s6037_s2, %s6018_s3  }
0x2a49 PF: > { %s6061_s17 = sand.u32 1, %s7028_s25   ;;  %p6521_p2 = pnand %p6145_p9, %p7158_p8 }
0x2a4a   : > { %s6062_s0 = scalar_lea.sflag [#allocation4], %s6061_s17 }
0x2a4b   : > { %p6522_p3 = pneg %p6521_p2 }
0x2a4d   : > { %7019 = dma.done.wait (%p6522_p3), %s6062_s0, 64  }
0x2a4e   : > { %7021 = vsyncadd (%p6522_p3), %s6062_s0, 4294967232  ;;  %s6072_s1 = scalar_lea.sflag [#allocation6], %s6061_s17 }
0x2a4f   : > { %7023 = dma.done.wait (%p6522_p3), %s6072_s1, 16  }
0x2a50   : > { %7025 = vsyncadd (%p6522_p3), %s6072_s1, 4294967280  ;;  %s8831_s5 = sld [smem:[#allocation9_spill]]  ;;  %p27_p6 = scmp.ge.s32.totalorder %s7140_s14, 4  }
0x2a51   : > { %s8832_s25 = smov %s7032_s26  ;;  %s8833_s26 = smov %s7036_s27 }
0x2a52   : > { %s8835_s28 = smov %s7140_s14  ;;  %29 = sbr.rel (!%p27_p6) target bundleno = 12 (0xc), region = 206 }
0x2a56   : > { %s8834_s27 = smov %s8831_s5 }
0x2a57   :  { %6077 = vsyncpa [#allocation4], 1 }
0x2a58   :  { %6079 = vsyncpa [#allocation4 + $0x1], 1 }
0x2a59   :  { %6080 = vsyncpa [#allocation6], 1 }
0x2a5a   :  { %6082 = vsyncpa [#allocation6 + $0x1], 1 }

</bundles_post_ra>
